<compile_context>
chip_gen: v5e
topology: v5e:2x2
jax: 0.10.0
libtpu: 0.0.40
codegen_flags: <defaults>
</compile_context>

<pallas_src>
from functools import partial

import jax
import jax.numpy as jnp
from jax.experimental import pallas as pl
from jax.experimental.pallas import tpu as pltpu

BN_EPS = 1e-5


def _round_up(x, m):
    return (x + m - 1) // m * m


# ----------------------------- Pallas kernels -----------------------------

def _make_matmul_kernel(apply_relu, has_res):
    """MXU matmul with fused scale/bias (+ optional residual) + optional ReLU."""
    if has_res:
        def kernel(a_ref, b_ref, scale_ref, bias_ref, res_ref, o_ref, acc_ref):
            @pl.when(pl.program_id(2) == 0)
            def _():
                acc_ref[...] = jnp.zeros_like(acc_ref)

            acc_ref[...] += jnp.dot(a_ref[...], b_ref[...],
                                    preferred_element_type=jnp.float32)

            @pl.when(pl.program_id(2) == pl.num_programs(2) - 1)
            def _():
                y = (acc_ref[...] * scale_ref[...] + bias_ref[...]
                     + res_ref[...].astype(jnp.float32))
                if apply_relu:
                    y = jnp.maximum(y, 0.0)
                o_ref[...] = y.astype(o_ref.dtype)
    else:
        def kernel(a_ref, b_ref, scale_ref, bias_ref, o_ref, acc_ref):
            @pl.when(pl.program_id(2) == 0)
            def _():
                acc_ref[...] = jnp.zeros_like(acc_ref)

            acc_ref[...] += jnp.dot(a_ref[...], b_ref[...],
                                    preferred_element_type=jnp.float32)

            @pl.when(pl.program_id(2) == pl.num_programs(2) - 1)
            def _():
                y = acc_ref[...] * scale_ref[...] + bias_ref[...]
                if apply_relu:
                    y = jnp.maximum(y, 0.0)
                o_ref[...] = y.astype(o_ref.dtype)
    return kernel


def matmul_scale_bias(a, b, scale, bias, relu, res=None):
    """(M,K) @ (K,N) on the MXU (bf16 operands, f32 accumulation), then
    * scale[N] + bias[N] (+ optional residual), optional ReLU.  Returns bf16."""
    M, K = a.shape
    _, N = b.shape

    # M: sublane-aligned only (no 4x padding to 128 for the tiny decoder M=32).
    Mp = _round_up(M, 8)
    if Mp > 128:
        Mp = _round_up(M, 128)
        bm = 128
    else:
        bm = Mp
    Kp = _round_up(K, 128)
    Np = _round_up(N, 128)
    bn = 256 if Np % 256 == 0 else 128
    if Kp <= 4096:                       # single K step for every conv here
        bk = Kp
    elif Kp % 512 == 0:
        bk = 512
    elif Kp % 256 == 0:
        bk = 256
    else:
        bk = 128

    a_p = a.astype(jnp.bfloat16)
    if (Mp, Kp) != (M, K):
        a_p = jnp.pad(a_p, ((0, Mp - M), (0, Kp - K)))
    b_p = b.astype(jnp.bfloat16)
    if (Kp, Np) != (K, N):
        b_p = jnp.pad(b_p, ((0, Kp - K), (0, Np - N)))
    s_p = scale.astype(jnp.float32)
    c_p = bias.astype(jnp.float32)
    if Np != N:
        s_p = jnp.pad(s_p, (0, Np - N))
        c_p = jnp.pad(c_p, (0, Np - N))
    s_p = s_p.reshape(1, Np)
    c_p = c_p.reshape(1, Np)

    inputs = [a_p, b_p, s_p, c_p]
    in_specs = [
        pl.BlockSpec((bm, bk), lambda i, j, k: (i, k)),
        pl.BlockSpec((bk, bn), lambda i, j, k: (k, j)),
        pl.BlockSpec((1, bn), lambda i, j, k: (0, j)),
        pl.BlockSpec((1, bn), lambda i, j, k: (0, j)),
    ]
    has_res = res is not None
    if has_res:
        r_p = res.astype(jnp.bfloat16)
        if (Mp, Np) != (M, N):
            r_p = jnp.pad(r_p, ((0, Mp - M), (0, Np - N)))
        inputs.append(r_p)
        in_specs.append(pl.BlockSpec((bm, bn), lambda i, j, k: (i, j)))

    bytes_acc = 2 * (Mp * Kp + Kp * Np + Mp * Np) + 8 * Np
    if has_res:
        bytes_acc += 2 * Mp * Np

    out = pl.pallas_call(
        _make_matmul_kernel(relu, has_res),
        out_shape=jax.ShapeDtypeStruct((Mp, Np), jnp.bfloat16),
        grid_spec=pltpu.PrefetchScalarGridSpec(
            num_scalar_prefetch=0,
            grid=(Mp // bm, Np // bn, Kp // bk),
            in_specs=in_specs,
            out_specs=pl.BlockSpec((bm, bn), lambda i, j, k: (i, j)),
            scratch_shapes=[pltpu.VMEM((bm, bn), jnp.float32)],
        ),
        compiler_params=pltpu.CompilerParams(
            dimension_semantics=("parallel", "parallel", "arbitrary")),
        cost_estimate=pl.CostEstimate(
            flops=2 * Mp * Np * Kp, transcendentals=0, bytes_accessed=bytes_acc),
    )(*inputs)
    if (Mp, Np) != (M, N):
        out = out[:M, :N]
    return out


def _max_reduce_kernel(x_ref, o_ref):
    o_ref[...] = jnp.max(x_ref[...], axis=0)


def _gap_kernel(x_ref, o_ref, *, inv_hw):
    o_ref[...] = jnp.sum(x_ref[...].astype(jnp.float32), axis=1) * inv_hw


def global_avg_pool(x):
    """AdaptiveAvgPool2d(1) on NHWC: (N,H,W,C) -> lane-dense (N,C) f32."""
    N, H, W, C = x.shape
    HW = H * W
    Cp = _round_up(C, 128)
    HWp = _round_up(HW, 8)
    Nr = _round_up(N, 8)
    x_r = x.reshape(N, HW, C)
    if (Nr, HWp, Cp) != (N, HW, C):
        x_r = jnp.pad(x_r, ((0, Nr - N), (0, HWp - HW), (0, Cp - C)))
    out = pl.pallas_call(
        partial(_gap_kernel, inv_hw=1.0 / HW),
        out_shape=jax.ShapeDtypeStruct((Nr, Cp), jnp.float32),
    )(x_r)
    return out[:N, :C]


# ------------------------------ conv / pool --------------------------------

def conv2d_bn_act(x, w, scale, bias, *, stride=1, padding=0, dilation=1,
                  relu=True, residual=None):
    """Conv2d(bias=False) + folded eval-mode BN + optional ReLU, with an
    optional fused residual add.  x is NHWC bf16, w is OIHW (PyTorch layout)."""
    N, H, W, C = x.shape
    O, _, KH, KW = w.shape
    OH = (H + 2 * padding - dilation * (KH - 1) - 1) // stride + 1
    OW = (W + 2 * padding - dilation * (KW - 1) - 1) // stride + 1

    if KH == 1 and KW == 1 and stride == 1 and padding == 0:
        col = x.reshape(N * H * W, C)
        wmat = w.reshape(O, C).T
    else:
        xp = x
        if padding:
            xp = jnp.pad(x, ((0, 0), (padding, padding), (padding, padding), (0, 0)))
        patches = []
        for i in range(KH):
            for j in range(KW):
                hs, ws = i * dilation, j * dilation
                patches.append(xp[:, hs:hs + stride * (OH - 1) + 1:stride,
                                  ws:ws + stride * (OW - 1) + 1:stride, :])
        col = jnp.concatenate(patches, axis=-1).reshape(N * OH * OW, KH * KW * C)
        wmat = w.transpose(2, 3, 1, 0).reshape(KH * KW * C, O)

    res = residual.reshape(N * OH * OW, O) if residual is not None else None
    out = matmul_scale_bias(col, wmat, scale, bias, relu, res)
    return out.reshape(N, OH, OW, O)


def maxpool2d_3x3_s2_p1(x):
    """MaxPool2d(3, stride=2, padding=1) on NHWC via a Pallas max-reduce."""
    N, H, W, C = x.shape
    OH = (H + 2 - 3) // 2 + 1
    OW = (W + 2 - 3) // 2 + 1
    xp = jnp.pad(x, ((0, 0), (1, 1), (1, 1), (0, 0)), constant_values=-jnp.inf)
    patches = []
    for i in range(3):
        for j in range(3):
            patches.append(xp[:, i:i + 2 * (OH - 1) + 1:2,
                              j:j + 2 * (OW - 1) + 1:2, :].reshape(N * OH * OW, C))
    stacked = jnp.stack(patches, axis=0)                  # (9, M, C)
    M = N * OH * OW
    Mp, Cp = _round_up(M, 8), _round_up(C, 128)
    if (Mp, Cp) != (M, C):
        stacked = jnp.pad(stacked, ((0, 0), (0, Mp - M), (0, Cp - C)))
    out = pl.pallas_call(
        _max_reduce_kernel,
        out_shape=jax.ShapeDtypeStruct((Mp, Cp), x.dtype),
    )(stacked)
    return out[:M, :C].reshape(N, OH, OW, C)


# ------------------------------- parameters --------------------------------

def bn_fold(bn):
    scale = bn['gamma'] / jnp.sqrt(bn['var'] + BN_EPS)
    bias = bn['beta'] - bn['mean'] * scale
    return scale, bias


class ParamGen:
    def __init__(self, key):
        self.key = key

    def _next(self):
        self.key, sub = jax.random.split(self.key)
        return sub

    def conv(self, o, c, kh, kw):
        fan_in = c * kh * kw
        return jax.random.normal(self._next(), (o, c, kh, kw), jnp.float32) / jnp.sqrt(fan_in)

    def bn(self, c):
        return {
            'gamma': jax.random.uniform(self._next(), (c,), jnp.float32, 0.5, 1.5),
            'beta': jax.random.normal(self._next(), (c,), jnp.float32) * 0.1,
            'mean': jax.random.normal(self._next(), (c,), jnp.float32) * 0.1,
            'var': jax.random.uniform(self._next(), (c,), jnp.float32, 0.5, 1.5),
        }


def build_params(key, input_channels):
    g = ParamGen(key)
    p = {}
    # resnet34 stem
    p['conv1_w'] = g.conv(64, input_channels, 7, 7)
    p['bn1'] = g.bn(64)
    # layer1: 3 BasicBlocks, 64 -> 64
    p['layer1'] = [{'conv1_w': g.conv(64, 64, 3, 3), 'bn1': g.bn(64),
                    'conv2_w': g.conv(64, 64, 3, 3), 'bn2': g.bn(64),
                    'downsample': None} for _ in range(3)]
    # layer2: 4 BasicBlocks, 64 -> 128, first block stride 2 with downsample
    p['layer2'] = []
    for b in range(4):
        in_c = 64 if b == 0 else 128
        blk = {'conv1_w': g.conv(128, in_c, 3, 3), 'bn1': g.bn(128),
               'conv2_w': g.conv(128, 128, 3, 3), 'bn2': g.bn(128),
               'downsample': None}
        if b == 0:
            blk['downsample'] = {'w': g.conv(128, 64, 1, 1), 'bn': g.bn(128)}
        p['layer2'].append(blk)
    # DeepLabV3 decoder: ASPP(128 -> 256, rates (12,24,36)) + 3x3 conv + BN + ReLU
    co = 256
    p['aspp'] = {
        'b0_w': g.conv(co, 128, 1, 1), 'b0_bn': g.bn(co),
        'rates': (12, 24, 36),
        'branches': [{'w': g.conv(co, 128, 3, 3), 'bn': g.bn(co)} for _ in range(3)],
        'pool_w': g.conv(co, 128, 1, 1), 'pool_bn': g.bn(co),
        'proj_w': g.conv(co, 5 * co, 1, 1), 'proj_bn': g.bn(co),
    }
    p['dec_conv_w'] = g.conv(co, co, 3, 3)
    p['dec_bn'] = g.bn(co)
    return p


# -------------------------------- forward ----------------------------------

def basic_block(x, blk, stride):
    s1, b1 = bn_fold(blk['bn1'])
    out = conv2d_bn_act(x, blk['conv1_w'], s1, b1, stride=stride, padding=1, relu=True)
    if blk['downsample'] is not None:
        sd, bd = bn_fold(blk['downsample']['bn'])
        identity = conv2d_bn_act(x, blk['downsample']['w'], sd, bd,
                                 stride=stride, padding=0, relu=False)
    else:
        identity = x
    # residual add + ReLU fused into the second conv's matmul epilogue.
    s2, b2 = bn_fold(blk['bn2'])
    return conv2d_bn_act(out, blk['conv2_w'], s2, b2, stride=1, padding=1,
                         relu=True, residual=identity)


def resnet34_encoder(x, p):
    s, b = bn_fold(p['bn1'])
    x0 = conv2d_bn_act(x, p['conv1_w'], s, b, stride=2, padding=3, relu=True)
    x1 = maxpool2d_3x3_s2_p1(x0)
    x2 = x1
    for blk in p['layer1']:
        x2 = basic_block(x2, blk, stride=1)
    x3 = x2
    for i, blk in enumerate(p['layer2']):
        x3 = basic_block(x3, blk, stride=2 if i == 0 else 1)
    return [x0, x2, x3]          # decoder consumes features[-1] (128 channels)


def aspp(x, p):
    N, H, W, C = x.shape
    co = 256
    # When dilation >= feature size, the dilated 3x3 branches only ever hit the
    # center tap -> collapse to 1x1 convs and fuse with the 1x1 branch into a
    # single matmul with 4*co output channels.
    degenerate = all(r >= H and r >= W for r in p['rates'])
    if degenerate:
        w_list = [p['b0_w']] + [br['w'][:, :, 1:2, 1:2] for br in p['branches']]
        w_cat = jnp.concatenate(w_list, axis=0)                    # (4*co, C, 1, 1)
        scales, biases = [], []
        s0, b0 = bn_fold(p['b0_bn']); scales.append(s0); biases.append(b0)
        for br in p['branches']:
            s, b = bn_fold(br['bn']); scales.append(s); biases.append(b)
        fused = conv2d_bn_act(x, w_cat, jnp.concatenate(scales),
                              jnp.concatenate(biases), relu=True)  # (N,H,W,4*co)
        res = [fused]
    else:
        res = []
        s, b = bn_fold(p['b0_bn'])
        res.append(conv2d_bn_act(x, p['b0_w'], s, b, relu=True))
        for rate, br in zip(p['rates'], p['branches']):
            s, b = bn_fold(br['bn'])
            res.append(conv2d_bn_act(x, br['w'], s, b, padding=rate,
                                     dilation=rate, relu=True))
    # pooling branch: global avg pool -> 1x1 conv -> BN -> ReLU -> upsample
    pooled = global_avg_pool(x)                                    # (N, C) f32
    s, b = bn_fold(p['pool_bn'])
    pooled = matmul_scale_bias(pooled, p['pool_w'].reshape(co, C).T, s, b, relu=True)
    pooled = jnp.broadcast_to(pooled[:, None, None, :], (N, H, W, co))  # 1x1->HxW bilinear == broadcast
    res.append(pooled)
    cat = jnp.concatenate(res, axis=-1)                            # (N, H, W, 5*co)
    s, b = bn_fold(p['proj_bn'])
    out = conv2d_bn_act(cat, p['proj_w'], s, b, relu=True)
    # TODO(synk): nn.Dropout(0.5) after the projection is identity at inference; omitted.
    return out


def deeplabv3_forward(x, p):
    # NCHW f32 in -> NHWC bf16 internally (lane-dense channels) -> NCHW f32 out.
    x = jnp.transpose(x, (0, 2, 3, 1)).astype(jnp.bfloat16)
    feats = resnet34_encoder(x, p)
    y = aspp(feats[-1], p['aspp'])
    s, b = bn_fold(p['dec_bn'])
    y = conv2d_bn_act(y, p['dec_conv_w'], s, b, padding=1, relu=True)
    return jnp.transpose(y, (0, 3, 1, 2)).astype(jnp.float32)


# ---------------------------------- main ------------------------------------

if __name__ == "__main__":
    key = jax.random.PRNGKey(0)
    kx, kp = jax.random.split(key)
    input_channels = 4
    x = jax.random.normal(kx, (2, input_channels, 32, 32), jnp.float32)
    params = build_params(kp, input_channels)

    fwd = jax.jit(lambda inp: deeplabv3_forward(inp, params))
    out = fwd(x)
    jax.block_until_ready(out)
    assert out.shape == (2, 256, 4, 4), out.shape
    assert bool(jnp.all(jnp.isfinite(out)))
    print("KERNEL_OK")
</pallas_src>

<mosaic_0001>
module attributes {stable_mosaic.version = 11 : i64} {
  func.func @kernel(%arg0: i32, %arg1: i32, %arg2: i32, %arg3: memref<128x256xbf16, #tpu.memory_space<vmem>>, %arg4: memref<256x128xbf16, #tpu.memory_space<vmem>>, %arg5: memref<1x128xf32, #tpu.memory_space<vmem>>, %arg6: memref<1x128xf32, #tpu.memory_space<vmem>>, %arg7: memref<128x128xbf16, #tpu.memory_space<vmem>>, %arg8: memref<128x128xf32, #tpu.memory_space<vmem>>) attributes {dimension_semantics = [#tpu.dimension_semantics<parallel>, #tpu.dimension_semantics<parallel>, #tpu.dimension_semantics<arbitrary>], iteration_bounds = array<i64: 4, 1, 1>, scalar_prefetch = 0 : i64, scratch_operands = 1 : i64, tpu.core_type = #tpu.core_type<tc>, window_params = [{transform_indices = @transform_0, window_bounds = array<i64: 128, 256>}, {transform_indices = @transform_1, window_bounds = array<i64: 256, 128>}, {transform_indices = @transform_2, window_bounds = array<i64: 1, 128>}, {transform_indices = @transform_3, window_bounds = array<i64: 1, 128>}, {transform_indices = @transform_4, window_bounds = array<i64: 128, 128>}]} {
    %c0_i32 = arith.constant 0 : i32
    %0 = arith.cmpi eq, %arg2, %c0_i32 : i32
    %1 = arith.extui %0 : i1 to i32
    %c0_i32_0 = arith.constant 0 : i32
    %2 = arith.cmpi ne, %1, %c0_i32_0 : i32
    scf.if %2 {
      %cst_10 = arith.constant 0.000000e+00 : f32
      %12 = vector.broadcast %cst_10 : f32 to vector<128x128xf32>
      %c0_11 = arith.constant 0 : index
      %c0_12 = arith.constant 0 : index
      %13 = vector.load %arg8[%c0_11, %c0_12] : memref<128x128xf32, #tpu.memory_space<vmem>>, vector<128x128xf32>
      tpu.vector_store %arg8[%c0_11, %c0_12], %12 {strides = array<i32>} : memref<128x128xf32, #tpu.memory_space<vmem>>, vector<128x128xf32>,
    } else {
    }
    %c0 = arith.constant 0 : index
    %c0_1 = arith.constant 0 : index
    %3 = vector.load %arg8[%c0, %c0_1] : memref<128x128xf32, #tpu.memory_space<vmem>>, vector<128x128xf32>
    %c0_2 = arith.constant 0 : index
    %c0_3 = arith.constant 0 : index
    %4 = vector.load %arg3[%c0_2, %c0_3] : memref<128x256xbf16, #tpu.memory_space<vmem>>, vector<128x256xbf16>
    %c0_4 = arith.constant 0 : index
    %c0_5 = arith.constant 0 : index
    %5 = vector.load %arg4[%c0_4, %c0_5] : memref<256x128xbf16, #tpu.memory_space<vmem>>, vector<256x128xbf16>
    %cst = arith.constant dense<0.000000e+00> : vector<128x128xf32>
    %6 = tpu.matmul %4, %5, %cst {dimension_numbers = #tpu.dot_dimension_numbers<[1], [0], [0], [1], [0, 0, 1, 1], [], []>} : vector<128x256xbf16>, vector<256x128xbf16>, vector<128x128xf32> -> vector<128x128xf32>
    %7 = arith.addf %3, %6 : vector<128x128xf32>
    %c0_6 = arith.constant 0 : index
    %c0_7 = arith.constant 0 : index
    %8 = vector.load %arg8[%c0_6, %c0_7] : memref<128x128xf32, #tpu.memory_space<vmem>>, vector<128x128xf32>
    tpu.vector_store %arg8[%c0_6, %c0_7], %7 {strides = array<i32>} : memref<128x128xf32, #tpu.memory_space<vmem>>, vector<128x128xf32>,
    %c0_i32_8 = arith.constant 0 : i32
    %9 = arith.cmpi eq, %arg2, %c0_i32_8 : i32
    %10 = arith.extui %9 : i1 to i32
    %c0_i32_9 = arith.constant 0 : i32
    %11 = arith.cmpi ne, %10, %c0_i32_9 : i32
    scf.if %11 {
      %c0_10 = arith.constant 0 : index
      %c0_11 = arith.constant 0 : index
      %12 = vector.load %arg8[%c0_10, %c0_11] : memref<128x128xf32, #tpu.memory_space<vmem>>, vector<128x128xf32>
      %c0_12 = arith.constant 0 : index
      %c0_13 = arith.constant 0 : index
      %13 = vector.load %arg5[%c0_12, %c0_13] : memref<1x128xf32, #tpu.memory_space<vmem>>, vector<1x128xf32>
      %14 = vector.broadcast %13 : vector<1x128xf32> to vector<128x128xf32>
      %15 = arith.mulf %12, %14 : vector<128x128xf32>
      %c0_14 = arith.constant 0 : index
      %c0_15 = arith.constant 0 : index
      %16 = vector.load %arg6[%c0_14, %c0_15] : memref<1x128xf32, #tpu.memory_space<vmem>>, vector<1x128xf32>
      %17 = vector.broadcast %16 : vector<1x128xf32> to vector<128x128xf32>
      %18 = arith.addf %15, %17 : vector<128x128xf32>
      %cst_16 = arith.constant 0.000000e+00 : f32
      %19 = vector.broadcast %cst_16 : f32 to vector<128x128xf32>
      %20 = arith.maximumf %18, %19 : vector<128x128xf32>
      %21 = arith.truncf %20 : vector<128x128xf32> to vector<128x128xbf16>
      %c0_17 = arith.constant 0 : index
      %c0_18 = arith.constant 0 : index
      %22 = vector.load %arg7[%c0_17, %c0_18] : memref<128x128xbf16, #tpu.memory_space<vmem>>, vector<128x128xbf16>
      tpu.vector_store %arg7[%c0_17, %c0_18], %21 {strides = array<i32>} : memref<128x128xbf16, #tpu.memory_space<vmem>>, vector<128x128xbf16>,
    } else {
    }
    return
  }
  func.func @transform_0(%arg0: i32, %arg1: i32, %arg2: i32) -> (i32, i32) {
    %c0_i32 = arith.constant 0 : i32
    return %arg0, %arg2 : i32, i32
  }
  func.func @transform_1(%arg0: i32, %arg1: i32, %arg2: i32) -> (i32, i32) {
    %c0_i32 = arith.constant 0 : i32
    return %arg2, %arg1 : i32, i32
  }
  func.func @transform_2(%arg0: i32, %arg1: i32, %arg2: i32) -> (i32, i32) {
    %c0_i32 = arith.constant 0 : i32
    %c0_i32_0 = arith.constant 0 : i32
    return %c0_i32, %arg1 : i32, i32
  }
  func.func @transform_3(%arg0: i32, %arg1: i32, %arg2: i32) -> (i32, i32) {
    %c0_i32 = arith.constant 0 : i32
    %c0_i32_0 = arith.constant 0 : i32
    return %c0_i32, %arg1 : i32, i32
  }
  func.func @transform_4(%arg0: i32, %arg1: i32, %arg2: i32) -> (i32, i32) {
    %c0_i32 = arith.constant 0 : i32
    return %arg0, %arg1 : i32, i32
  }
}

module attributes {stable_mosaic.version = 11 : i64} {
  func.func @_max_reduce_kernel(%arg0: memref<9x128x128xbf16, #tpu.memory_space<vmem>>, %arg1: memref<128x128xbf16, #tpu.memory_space<vmem>>) attributes {dimension_semantics = [], scalar_prefetch = 0 : i64, scratch_operands = 0 : i64, tpu.core_type = #tpu.core_type<tc>} {
    %c0 = arith.constant 0 : index
    %c0_0 = arith.constant 0 : index
    %c0_1 = arith.constant 0 : index
    %0 = vector.load %arg0[%c0, %c0_0, %c0_1] : memref<9x128x128xbf16, #tpu.memory_space<vmem>>, vector<9x128x128xbf16>
    %cst = arith.constant dense<0xFF80> : vector<128x128xbf16>
    %1 = vector.multi_reduction <maximumf>, %0, %cst [0] : vector<9x128x128xbf16> to vector<128x128xbf16>
    %c0_2 = arith.constant 0 : index
    %c0_3 = arith.constant 0 : index
    %2 = vector.load %arg1[%c0_2, %c0_3] : memref<128x128xbf16, #tpu.memory_space<vmem>>, vector<128x128xbf16>
    tpu.vector_store %arg1[%c0_2, %c0_3], %1 {strides = array<i32>} : memref<128x128xbf16, #tpu.memory_space<vmem>>, vector<128x128xbf16>,
    return
  }
}

module attributes {stable_mosaic.version = 11 : i64} {
  func.func @kernel(%arg0: i32, %arg1: i32, %arg2: i32, %arg3: memref<32x128xbf16, #tpu.memory_space<vmem>>, %arg4: memref<128x128xbf16, #tpu.memory_space<vmem>>, %arg5: memref<1x128xf32, #tpu.memory_space<vmem>>, %arg6: memref<1x128xf32, #tpu.memory_space<vmem>>, %arg7: memref<32x128xbf16, #tpu.memory_space<vmem>>, %arg8: memref<32x128xf32, #tpu.memory_space<vmem>>) attributes {dimension_semantics = [#tpu.dimension_semantics<parallel>, #tpu.dimension_semantics<parallel>, #tpu.dimension_semantics<arbitrary>], iteration_bounds = array<i64: 1, 1, 1>, scalar_prefetch = 0 : i64, scratch_operands = 1 : i64, tpu.core_type = #tpu.core_type<tc>, window_params = [{transform_indices = @transform_0, window_bounds = array<i64: 32, 128>}, {transform_indices = @transform_1, window_bounds = array<i64: 128, 128>}, {transform_indices = @transform_2, window_bounds = array<i64: 1, 128>}, {transform_indices = @transform_3, window_bounds = array<i64: 1, 128>}, {transform_indices = @transform_4, window_bounds = array<i64: 32, 128>}]} {
    %c0_i32 = arith.constant 0 : i32
    %0 = arith.cmpi eq, %arg2, %c0_i32 : i32
    %1 = arith.extui %0 : i1 to i32
    %c0_i32_0 = arith.constant 0 : i32
    %2 = arith.cmpi ne, %1, %c0_i32_0 : i32
    scf.if %2 {
      %cst_10 = arith.constant 0.000000e+00 : f32
      %12 = vector.broadcast %cst_10 : f32 to vector<32x128xf32>
      %c0_11 = arith.constant 0 : index
      %c0_12 = arith.constant 0 : index
      %13 = vector.load %arg8[%c0_11, %c0_12] : memref<32x128xf32, #tpu.memory_space<vmem>>, vector<32x128xf32>
      tpu.vector_store %arg8[%c0_11, %c0_12], %12 {strides = array<i32>} : memref<32x128xf32, #tpu.memory_space<vmem>>, vector<32x128xf32>,
    } else {
    }
    %c0 = arith.constant 0 : index
    %c0_1 = arith.constant 0 : index
    %3 = vector.load %arg8[%c0, %c0_1] : memref<32x128xf32, #tpu.memory_space<vmem>>, vector<32x128xf32>
    %c0_2 = arith.constant 0 : index
    %c0_3 = arith.constant 0 : index
    %4 = vector.load %arg3[%c0_2, %c0_3] : memref<32x128xbf16, #tpu.memory_space<vmem>>, vector<32x128xbf16>
    %c0_4 = arith.constant 0 : index
    %c0_5 = arith.constant 0 : index
    %5 = vector.load %arg4[%c0_4, %c0_5] : memref<128x128xbf16, #tpu.memory_space<vmem>>, vector<128x128xbf16>
    %cst = arith.constant dense<0.000000e+00> : vector<32x128xf32>
    %6 = tpu.matmul %4, %5, %cst {dimension_numbers = #tpu.dot_dimension_numbers<[1], [0], [0], [1], [0, 0, 1, 1], [], []>} : vector<32x128xbf16>, vector<128x128xbf16>, vector<32x128xf32> -> vector<32x128xf32>
    %7 = arith.addf %3, %6 : vector<32x128xf32>
    %c0_6 = arith.constant 0 : index
    %c0_7 = arith.constant 0 : index
    %8 = vector.load %arg8[%c0_6, %c0_7] : memref<32x128xf32, #tpu.memory_space<vmem>>, vector<32x128xf32>
    tpu.vector_store %arg8[%c0_6, %c0_7], %7 {strides = array<i32>} : memref<32x128xf32, #tpu.memory_space<vmem>>, vector<32x128xf32>,
    %c0_i32_8 = arith.constant 0 : i32
    %9 = arith.cmpi eq, %arg2, %c0_i32_8 : i32
    %10 = arith.extui %9 : i1 to i32
    %c0_i32_9 = arith.constant 0 : i32
    %11 = arith.cmpi ne, %10, %c0_i32_9 : i32
    scf.if %11 {
      %c0_10 = arith.constant 0 : index
      %c0_11 = arith.constant 0 : index
      %12 = vector.load %arg8[%c0_10, %c0_11] : memref<32x128xf32, #tpu.memory_space<vmem>>, vector<32x128xf32>
      %c0_12 = arith.constant 0 : index
      %c0_13 = arith.constant 0 : index
      %13 = vector.load %arg5[%c0_12, %c0_13] : memref<1x128xf32, #tpu.memory_space<vmem>>, vector<1x128xf32>
      %14 = vector.broadcast %13 : vector<1x128xf32> to vector<32x128xf32>
      %15 = arith.mulf %12, %14 : vector<32x128xf32>
      %c0_14 = arith.constant 0 : index
      %c0_15 = arith.constant 0 : index
      %16 = vector.load %arg6[%c0_14, %c0_15] : memref<1x128xf32, #tpu.memory_space<vmem>>, vector<1x128xf32>
      %17 = vector.broadcast %16 : vector<1x128xf32> to vector<32x128xf32>
      %18 = arith.addf %15, %17 : vector<32x128xf32>
      %19 = arith.truncf %18 : vector<32x128xf32> to vector<32x128xbf16>
      %c0_16 = arith.constant 0 : index
      %c0_17 = arith.constant 0 : index
      %20 = vector.load %arg7[%c0_16, %c0_17] : memref<32x128xbf16, #tpu.memory_space<vmem>>, vector<32x128xbf16>
      tpu.vector_store %arg7[%c0_16, %c0_17], %19 {strides = array<i32>} : memref<32x128xbf16, #tpu.memory_space<vmem>>, vector<32x128xbf16>,
    } else {
    }
    return
  }
  func.func @transform_0(%arg0: i32, %arg1: i32, %arg2: i32) -> (i32, i32) {
    %c0_i32 = arith.constant 0 : i32
    return %arg0, %arg2 : i32, i32
  }
  func.func @transform_1(%arg0: i32, %arg1: i32, %arg2: i32) -> (i32, i32) {
    %c0_i32 = arith.constant 0 : i32
    return %arg2, %arg1 : i32, i32
  }
  func.func @transform_2(%arg0: i32, %arg1: i32, %arg2: i32) -> (i32, i32) {
    %c0_i32 = arith.constant 0 : i32
    %c0_i32_0 = arith.constant 0 : i32
    return %c0_i32, %arg1 : i32, i32
  }
  func.func @transform_3(%arg0: i32, %arg1: i32, %arg2: i32) -> (i32, i32) {
    %c0_i32 = arith.constant 0 : i32
    %c0_i32_0 = arith.constant 0 : i32
    return %c0_i32, %arg1 : i32, i32
  }
  func.func @transform_4(%arg0: i32, %arg1: i32, %arg2: i32) -> (i32, i32) {
    %c0_i32 = arith.constant 0 : i32
    return %arg0, %arg1 : i32, i32
  }
}

module attributes {stable_mosaic.version = 11 : i64} {
  func.func @kernel(%arg0: i32, %arg1: i32, %arg2: i32, %arg3: memref<128x640xbf16, #tpu.memory_space<vmem>>, %arg4: memref<640x128xbf16, #tpu.memory_space<vmem>>, %arg5: memref<1x128xf32, #tpu.memory_space<vmem>>, %arg6: memref<1x128xf32, #tpu.memory_space<vmem>>, %arg7: memref<128x128xbf16, #tpu.memory_space<vmem>>, %arg8: memref<128x128xbf16, #tpu.memory_space<vmem>>, %arg9: memref<128x128xf32, #tpu.memory_space<vmem>>) attributes {dimension_semantics = [#tpu.dimension_semantics<parallel>, #tpu.dimension_semantics<parallel>, #tpu.dimension_semantics<arbitrary>], iteration_bounds = array<i64: 1, 1, 1>, scalar_prefetch = 0 : i64, scratch_operands = 1 : i64, tpu.core_type = #tpu.core_type<tc>, window_params = [{transform_indices = @transform_0, window_bounds = array<i64: 128, 640>}, {transform_indices = @transform_1, window_bounds = array<i64: 640, 128>}, {transform_indices = @transform_2, window_bounds = array<i64: 1, 128>}, {transform_indices = @transform_3, window_bounds = array<i64: 1, 128>}, {transform_indices = @transform_4, window_bounds = array<i64: 128, 128>}, {transform_indices = @transform_5, window_bounds = array<i64: 128, 128>}]} {
    %c0_i32 = arith.constant 0 : i32
    %0 = arith.cmpi eq, %arg2, %c0_i32 : i32
    %1 = arith.extui %0 : i1 to i32
    %c0_i32_0 = arith.constant 0 : i32
    %2 = arith.cmpi ne, %1, %c0_i32_0 : i32
    scf.if %2 {
      %cst_10 = arith.constant 0.000000e+00 : f32
      %12 = vector.broadcast %cst_10 : f32 to vector<128x128xf32>
      %c0_11 = arith.constant 0 : index
      %c0_12 = arith.constant 0 : index
      %13 = vector.load %arg9[%c0_11, %c0_12] : memref<128x128xf32, #tpu.memory_space<vmem>>, vector<128x128xf32>
      tpu.vector_store %arg9[%c0_11, %c0_12], %12 {strides = array<i32>} : memref<128x128xf32, #tpu.memory_space<vmem>>, vector<128x128xf32>,
    } else {
    }
    %c0 = arith.constant 0 : index
    %c0_1 = arith.constant 0 : index
    %3 = vector.load %arg9[%c0, %c0_1] : memref<128x128xf32, #tpu.memory_space<vmem>>, vector<128x128xf32>
    %c0_2 = arith.constant 0 : index
    %c0_3 = arith.constant 0 : index
    %4 = vector.load %arg3[%c0_2, %c0_3] : memref<128x640xbf16, #tpu.memory_space<vmem>>, vector<128x640xbf16>
    %c0_4 = arith.constant 0 : index
    %c0_5 = arith.constant 0 : index
    %5 = vector.load %arg4[%c0_4, %c0_5] : memref<640x128xbf16, #tpu.memory_space<vmem>>, vector<640x128xbf16>
    %cst = arith.constant dense<0.000000e+00> : vector<128x128xf32>
    %6 = tpu.matmul %4, %5, %cst {dimension_numbers = #tpu.dot_dimension_numbers<[1], [0], [0], [1], [0, 0, 1, 1], [], []>} : vector<128x640xbf16>, vector<640x128xbf16>, vector<128x128xf32> -> vector<128x128xf32>
    %7 = arith.addf %3, %6 : vector<128x128xf32>
    %c0_6 = arith.constant 0 : index
    %c0_7 = arith.constant 0 : index
    %8 = vector.load %arg9[%c0_6, %c0_7] : memref<128x128xf32, #tpu.memory_space<vmem>>, vector<128x128xf32>
    tpu.vector_store %arg9[%c0_6, %c0_7], %7 {strides = array<i32>} : memref<128x128xf32, #tpu.memory_space<vmem>>, vector<128x128xf32>,
    %c0_i32_8 = arith.constant 0 : i32
    %9 = arith.cmpi eq, %arg2, %c0_i32_8 : i32
    %10 = arith.extui %9 : i1 to i32
    %c0_i32_9 = arith.constant 0 : i32
    %11 = arith.cmpi ne, %10, %c0_i32_9 : i32
    scf.if %11 {
      %c0_10 = arith.constant 0 : index
      %c0_11 = arith.constant 0 : index
      %12 = vector.load %arg9[%c0_10, %c0_11] : memref<128x128xf32, #tpu.memory_space<vmem>>, vector<128x128xf32>
      %c0_12 = arith.constant 0 : index
      %c0_13 = arith.constant 0 : index
      %13 = vector.load %arg5[%c0_12, %c0_13] : memref<1x128xf32, #tpu.memory_space<vmem>>, vector<1x128xf32>
      %14 = vector.broadcast %13 : vector<1x128xf32> to vector<128x128xf32>
      %15 = arith.mulf %12, %14 : vector<128x128xf32>
      %c0_14 = arith.constant 0 : index
      %c0_15 = arith.constant 0 : index
      %16 = vector.load %arg6[%c0_14, %c0_15] : memref<1x128xf32, #tpu.memory_space<vmem>>, vector<1x128xf32>
      %17 = vector.broadcast %16 : vector<1x128xf32> to vector<128x128xf32>
      %18 = arith.addf %15, %17 : vector<128x128xf32>
      %c0_16 = arith.constant 0 : index
      %c0_17 = arith.constant 0 : index
      %19 = vector.load %arg7[%c0_16, %c0_17] : memref<128x128xbf16, #tpu.memory_space<vmem>>, vector<128x128xbf16>
      %20 = arith.extf %19 : vector<128x128xbf16> to vector<128x128xf32>
      %21 = arith.addf %18, %20 : vector<128x128xf32>
      %cst_18 = arith.constant 0.000000e+00 : f32
      %22 = vector.broadcast %cst_18 : f32 to vector<128x128xf32>
      %23 = arith.maximumf %21, %22 : vector<128x128xf32>
      %24 = arith.truncf %23 : vector<128x128xf32> to vector<128x128xbf16>
      %c0_19 = arith.constant 0 : index
      %c0_20 = arith.constant 0 : index
      %25 = vector.load %arg8[%c0_19, %c0_20] : memref<128x128xbf16, #tpu.memory_space<vmem>>, vector<128x128xbf16>
      tpu.vector_store %arg8[%c0_19, %c0_20], %24 {strides = array<i32>} : memref<128x128xbf16, #tpu.memory_space<vmem>>, vector<128x128xbf16>,
    } else {
    }
    return
  }
  func.func @transform_0(%arg0: i32, %arg1: i32, %arg2: i32) -> (i32, i32) {
    %c0_i32 = arith.constant 0 : i32
    return %arg0, %arg2 : i32, i32
  }
  func.func @transform_1(%arg0: i32, %arg1: i32, %arg2: i32) -> (i32, i32) {
    %c0_i32 = arith.constant 0 : i32
    return %arg2, %arg1 : i32, i32
  }
  func.func @transform_2(%arg0: i32, %arg1: i32, %arg2: i32) -> (i32, i32) {
    %c0_i32 = arith.constant 0 : i32
    %c0_i32_0 = arith.constant 0 : i32
    return %c0_i32, %arg1 : i32, i32
  }
  func.func @transform_3(%arg0: i32, %arg1: i32, %arg2: i32) -> (i32, i32) {
    %c0_i32 = arith.constant 0 : i32
    %c0_i32_0 = arith.constant 0 : i32
    return %c0_i32, %arg1 : i32, i32
  }
  func.func @transform_4(%arg0: i32, %arg1: i32, %arg2: i32) -> (i32, i32) {
    %c0_i32 = arith.constant 0 : i32
    return %arg0, %arg1 : i32, i32
  }
  func.func @transform_5(%arg0: i32, %arg1: i32, %arg2: i32) -> (i32, i32) {
    %c0_i32 = arith.constant 0 : i32
    return %arg0, %arg1 : i32, i32
  }
}

module attributes {stable_mosaic.version = 11 : i64} {
  func.func @kernel(%arg0: i32, %arg1: i32, %arg2: i32, %arg3: memref<128x640xbf16, #tpu.memory_space<vmem>>, %arg4: memref<640x128xbf16, #tpu.memory_space<vmem>>, %arg5: memref<1x128xf32, #tpu.memory_space<vmem>>, %arg6: memref<1x128xf32, #tpu.memory_space<vmem>>, %arg7: memref<128x128xbf16, #tpu.memory_space<vmem>>, %arg8: memref<128x128xf32, #tpu.memory_space<vmem>>) attributes {dimension_semantics = [#tpu.dimension_semantics<parallel>, #tpu.dimension_semantics<parallel>, #tpu.dimension_semantics<arbitrary>], iteration_bounds = array<i64: 1, 1, 1>, scalar_prefetch = 0 : i64, scratch_operands = 1 : i64, tpu.core_type = #tpu.core_type<tc>, window_params = [{transform_indices = @transform_0, window_bounds = array<i64: 128, 640>}, {transform_indices = @transform_1, window_bounds = array<i64: 640, 128>}, {transform_indices = @transform_2, window_bounds = array<i64: 1, 128>}, {transform_indices = @transform_3, window_bounds = array<i64: 1, 128>}, {transform_indices = @transform_4, window_bounds = array<i64: 128, 128>}]} {
    %c0_i32 = arith.constant 0 : i32
    %0 = arith.cmpi eq, %arg2, %c0_i32 : i32
    %1 = arith.extui %0 : i1 to i32
    %c0_i32_0 = arith.constant 0 : i32
    %2 = arith.cmpi ne, %1, %c0_i32_0 : i32
    scf.if %2 {
      %cst_10 = arith.constant 0.000000e+00 : f32
      %12 = vector.broadcast %cst_10 : f32 to vector<128x128xf32>
      %c0_11 = arith.constant 0 : index
      %c0_12 = arith.constant 0 : index
      %13 = vector.load %arg8[%c0_11, %c0_12] : memref<128x128xf32, #tpu.memory_space<vmem>>, vector<128x128xf32>
      tpu.vector_store %arg8[%c0_11, %c0_12], %12 {strides = array<i32>} : memref<128x128xf32, #tpu.memory_space<vmem>>, vector<128x128xf32>,
    } else {
    }
    %c0 = arith.constant 0 : index
    %c0_1 = arith.constant 0 : index
    %3 = vector.load %arg8[%c0, %c0_1] : memref<128x128xf32, #tpu.memory_space<vmem>>, vector<128x128xf32>
    %c0_2 = arith.constant 0 : index
    %c0_3 = arith.constant 0 : index
    %4 = vector.load %arg3[%c0_2, %c0_3] : memref<128x640xbf16, #tpu.memory_space<vmem>>, vector<128x640xbf16>
    %c0_4 = arith.constant 0 : index
    %c0_5 = arith.constant 0 : index
    %5 = vector.load %arg4[%c0_4, %c0_5] : memref<640x128xbf16, #tpu.memory_space<vmem>>, vector<640x128xbf16>
    %cst = arith.constant dense<0.000000e+00> : vector<128x128xf32>
    %6 = tpu.matmul %4, %5, %cst {dimension_numbers = #tpu.dot_dimension_numbers<[1], [0], [0], [1], [0, 0, 1, 1], [], []>} : vector<128x640xbf16>, vector<640x128xbf16>, vector<128x128xf32> -> vector<128x128xf32>
    %7 = arith.addf %3, %6 : vector<128x128xf32>
    %c0_6 = arith.constant 0 : index
    %c0_7 = arith.constant 0 : index
    %8 = vector.load %arg8[%c0_6, %c0_7] : memref<128x128xf32, #tpu.memory_space<vmem>>, vector<128x128xf32>
    tpu.vector_store %arg8[%c0_6, %c0_7], %7 {strides = array<i32>} : memref<128x128xf32, #tpu.memory_space<vmem>>, vector<128x128xf32>,
    %c0_i32_8 = arith.constant 0 : i32
    %9 = arith.cmpi eq, %arg2, %c0_i32_8 : i32
    %10 = arith.extui %9 : i1 to i32
    %c0_i32_9 = arith.constant 0 : i32
    %11 = arith.cmpi ne, %10, %c0_i32_9 : i32
    scf.if %11 {
      %c0_10 = arith.constant 0 : index
      %c0_11 = arith.constant 0 : index
      %12 = vector.load %arg8[%c0_10, %c0_11] : memref<128x128xf32, #tpu.memory_space<vmem>>, vector<128x128xf32>
      %c0_12 = arith.constant 0 : index
      %c0_13 = arith.constant 0 : index
      %13 = vector.load %arg5[%c0_12, %c0_13] : memref<1x128xf32, #tpu.memory_space<vmem>>, vector<1x128xf32>
      %14 = vector.broadcast %13 : vector<1x128xf32> to vector<128x128xf32>
      %15 = arith.mulf %12, %14 : vector<128x128xf32>
      %c0_14 = arith.constant 0 : index
      %c0_15 = arith.constant 0 : index
      %16 = vector.load %arg6[%c0_14, %c0_15] : memref<1x128xf32, #tpu.memory_space<vmem>>, vector<1x128xf32>
      %17 = vector.broadcast %16 : vector<1x128xf32> to vector<128x128xf32>
      %18 = arith.addf %15, %17 : vector<128x128xf32>
      %cst_16 = arith.constant 0.000000e+00 : f32
      %19 = vector.broadcast %cst_16 : f32 to vector<128x128xf32>
      %20 = arith.maximumf %18, %19 : vector<128x128xf32>
      %21 = arith.truncf %20 : vector<128x128xf32> to vector<128x128xbf16>
      %c0_17 = arith.constant 0 : index
      %c0_18 = arith.constant 0 : index
      %22 = vector.load %arg7[%c0_17, %c0_18] : memref<128x128xbf16, #tpu.memory_space<vmem>>, vector<128x128xbf16>
      tpu.vector_store %arg7[%c0_17, %c0_18], %21 {strides = array<i32>} : memref<128x128xbf16, #tpu.memory_space<vmem>>, vector<128x128xbf16>,
    } else {
    }
    return
  }
  func.func @transform_0(%arg0: i32, %arg1: i32, %arg2: i32) -> (i32, i32) {
    %c0_i32 = arith.constant 0 : i32
    return %arg0, %arg2 : i32, i32
  }
  func.func @transform_1(%arg0: i32, %arg1: i32, %arg2: i32) -> (i32, i32) {
    %c0_i32 = arith.constant 0 : i32
    return %arg2, %arg1 : i32, i32
  }
  func.func @transform_2(%arg0: i32, %arg1: i32, %arg2: i32) -> (i32, i32) {
    %c0_i32 = arith.constant 0 : i32
    %c0_i32_0 = arith.constant 0 : i32
    return %c0_i32, %arg1 : i32, i32
  }
  func.func @transform_3(%arg0: i32, %arg1: i32, %arg2: i32) -> (i32, i32) {
    %c0_i32 = arith.constant 0 : i32
    %c0_i32_0 = arith.constant 0 : i32
    return %c0_i32, %arg1 : i32, i32
  }
  func.func @transform_4(%arg0: i32, %arg1: i32, %arg2: i32) -> (i32, i32) {
    %c0_i32 = arith.constant 0 : i32
    return %arg0, %arg1 : i32, i32
  }
}

module attributes {stable_mosaic.version = 11 : i64} {
  func.func @kernel(%arg0: i32, %arg1: i32, %arg2: i32, %arg3: memref<32x640xbf16, #tpu.memory_space<vmem>>, %arg4: memref<640x128xbf16, #tpu.memory_space<vmem>>, %arg5: memref<1x128xf32, #tpu.memory_space<vmem>>, %arg6: memref<1x128xf32, #tpu.memory_space<vmem>>, %arg7: memref<32x128xbf16, #tpu.memory_space<vmem>>, %arg8: memref<32x128xf32, #tpu.memory_space<vmem>>) attributes {dimension_semantics = [#tpu.dimension_semantics<parallel>, #tpu.dimension_semantics<parallel>, #tpu.dimension_semantics<arbitrary>], iteration_bounds = array<i64: 1, 1, 1>, scalar_prefetch = 0 : i64, scratch_operands = 1 : i64, tpu.core_type = #tpu.core_type<tc>, window_params = [{transform_indices = @transform_0, window_bounds = array<i64: 32, 640>}, {transform_indices = @transform_1, window_bounds = array<i64: 640, 128>}, {transform_indices = @transform_2, window_bounds = array<i64: 1, 128>}, {transform_indices = @transform_3, window_bounds = array<i64: 1, 128>}, {transform_indices = @transform_4, window_bounds = array<i64: 32, 128>}]} {
    %c0_i32 = arith.constant 0 : i32
    %0 = arith.cmpi eq, %arg2, %c0_i32 : i32
    %1 = arith.extui %0 : i1 to i32
    %c0_i32_0 = arith.constant 0 : i32
    %2 = arith.cmpi ne, %1, %c0_i32_0 : i32
    scf.if %2 {
      %cst_10 = arith.constant 0.000000e+00 : f32
      %12 = vector.broadcast %cst_10 : f32 to vector<32x128xf32>
      %c0_11 = arith.constant 0 : index
      %c0_12 = arith.constant 0 : index
      %13 = vector.load %arg8[%c0_11, %c0_12] : memref<32x128xf32, #tpu.memory_space<vmem>>, vector<32x128xf32>
      tpu.vector_store %arg8[%c0_11, %c0_12], %12 {strides = array<i32>} : memref<32x128xf32, #tpu.memory_space<vmem>>, vector<32x128xf32>,
    } else {
    }
    %c0 = arith.constant 0 : index
    %c0_1 = arith.constant 0 : index
    %3 = vector.load %arg8[%c0, %c0_1] : memref<32x128xf32, #tpu.memory_space<vmem>>, vector<32x128xf32>
    %c0_2 = arith.constant 0 : index
    %c0_3 = arith.constant 0 : index
    %4 = vector.load %arg3[%c0_2, %c0_3] : memref<32x640xbf16, #tpu.memory_space<vmem>>, vector<32x640xbf16>
    %c0_4 = arith.constant 0 : index
    %c0_5 = arith.constant 0 : index
    %5 = vector.load %arg4[%c0_4, %c0_5] : memref<640x128xbf16, #tpu.memory_space<vmem>>, vector<640x128xbf16>
    %cst = arith.constant dense<0.000000e+00> : vector<32x128xf32>
    %6 = tpu.matmul %4, %5, %cst {dimension_numbers = #tpu.dot_dimension_numbers<[1], [0], [0], [1], [0, 0, 1, 1], [], []>} : vector<32x640xbf16>, vector<640x128xbf16>, vector<32x128xf32> -> vector<32x128xf32>
    %7 = arith.addf %3, %6 : vector<32x128xf32>
    %c0_6 = arith.constant 0 : index
    %c0_7 = arith.constant 0 : index
    %8 = vector.load %arg8[%c0_6, %c0_7] : memref<32x128xf32, #tpu.memory_space<vmem>>, vector<32x128xf32>
    tpu.vector_store %arg8[%c0_6, %c0_7], %7 {strides = array<i32>} : memref<32x128xf32, #tpu.memory_space<vmem>>, vector<32x128xf32>,
    %c0_i32_8 = arith.constant 0 : i32
    %9 = arith.cmpi eq, %arg2, %c0_i32_8 : i32
    %10 = arith.extui %9 : i1 to i32
    %c0_i32_9 = arith.constant 0 : i32
    %11 = arith.cmpi ne, %10, %c0_i32_9 : i32
    scf.if %11 {
      %c0_10 = arith.constant 0 : index
      %c0_11 = arith.constant 0 : index
      %12 = vector.load %arg8[%c0_10, %c0_11] : memref<32x128xf32, #tpu.memory_space<vmem>>, vector<32x128xf32>
      %c0_12 = arith.constant 0 : index
      %c0_13 = arith.constant 0 : index
      %13 = vector.load %arg5[%c0_12, %c0_13] : memref<1x128xf32, #tpu.memory_space<vmem>>, vector<1x128xf32>
      %14 = vector.broadcast %13 : vector<1x128xf32> to vector<32x128xf32>
      %15 = arith.mulf %12, %14 : vector<32x128xf32>
      %c0_14 = arith.constant 0 : index
      %c0_15 = arith.constant 0 : index
      %16 = vector.load %arg6[%c0_14, %c0_15] : memref<1x128xf32, #tpu.memory_space<vmem>>, vector<1x128xf32>
      %17 = vector.broadcast %16 : vector<1x128xf32> to vector<32x128xf32>
      %18 = arith.addf %15, %17 : vector<32x128xf32>
      %cst_16 = arith.constant 0.000000e+00 : f32
      %19 = vector.broadcast %cst_16 : f32 to vector<32x128xf32>
      %20 = arith.maximumf %18, %19 : vector<32x128xf32>
      %21 = arith.truncf %20 : vector<32x128xf32> to vector<32x128xbf16>
      %c0_17 = arith.constant 0 : index
      %c0_18 = arith.constant 0 : index
      %22 = vector.load %arg7[%c0_17, %c0_18] : memref<32x128xbf16, #tpu.memory_space<vmem>>, vector<32x128xbf16>
      tpu.vector_store %arg7[%c0_17, %c0_18], %21 {strides = array<i32>} : memref<32x128xbf16, #tpu.memory_space<vmem>>, vector<32x128xbf16>,
    } else {
    }
    return
  }
  func.func @transform_0(%arg0: i32, %arg1: i32, %arg2: i32) -> (i32, i32) {
    %c0_i32 = arith.constant 0 : i32
    return %arg0, %arg2 : i32, i32
  }
  func.func @transform_1(%arg0: i32, %arg1: i32, %arg2: i32) -> (i32, i32) {
    %c0_i32 = arith.constant 0 : i32
    return %arg2, %arg1 : i32, i32
  }
  func.func @transform_2(%arg0: i32, %arg1: i32, %arg2: i32) -> (i32, i32) {
    %c0_i32 = arith.constant 0 : i32
    %c0_i32_0 = arith.constant 0 : i32
    return %c0_i32, %arg1 : i32, i32
  }
  func.func @transform_3(%arg0: i32, %arg1: i32, %arg2: i32) -> (i32, i32) {
    %c0_i32 = arith.constant 0 : i32
    %c0_i32_0 = arith.constant 0 : i32
    return %c0_i32, %arg1 : i32, i32
  }
  func.func @transform_4(%arg0: i32, %arg1: i32, %arg2: i32) -> (i32, i32) {
    %c0_i32 = arith.constant 0 : i32
    return %arg0, %arg1 : i32, i32
  }
}

module attributes {stable_mosaic.version = 11 : i64} {
  func.func @kernel(%arg0: i32, %arg1: i32, %arg2: i32, %arg3: memref<32x1152xbf16, #tpu.memory_space<vmem>>, %arg4: memref<1152x128xbf16, #tpu.memory_space<vmem>>, %arg5: memref<1x128xf32, #tpu.memory_space<vmem>>, %arg6: memref<1x128xf32, #tpu.memory_space<vmem>>, %arg7: memref<32x128xbf16, #tpu.memory_space<vmem>>, %arg8: memref<32x128xbf16, #tpu.memory_space<vmem>>, %arg9: memref<32x128xf32, #tpu.memory_space<vmem>>) attributes {dimension_semantics = [#tpu.dimension_semantics<parallel>, #tpu.dimension_semantics<parallel>, #tpu.dimension_semantics<arbitrary>], iteration_bounds = array<i64: 1, 1, 1>, scalar_prefetch = 0 : i64, scratch_operands = 1 : i64, tpu.core_type = #tpu.core_type<tc>, window_params = [{transform_indices = @transform_0, window_bounds = array<i64: 32, 1152>}, {transform_indices = @transform_1, window_bounds = array<i64: 1152, 128>}, {transform_indices = @transform_2, window_bounds = array<i64: 1, 128>}, {transform_indices = @transform_3, window_bounds = array<i64: 1, 128>}, {transform_indices = @transform_4, window_bounds = array<i64: 32, 128>}, {transform_indices = @transform_5, window_bounds = array<i64: 32, 128>}]} {
    %c0_i32 = arith.constant 0 : i32
    %0 = arith.cmpi eq, %arg2, %c0_i32 : i32
    %1 = arith.extui %0 : i1 to i32
    %c0_i32_0 = arith.constant 0 : i32
    %2 = arith.cmpi ne, %1, %c0_i32_0 : i32
    scf.if %2 {
      %cst_10 = arith.constant 0.000000e+00 : f32
      %12 = vector.broadcast %cst_10 : f32 to vector<32x128xf32>
      %c0_11 = arith.constant 0 : index
      %c0_12 = arith.constant 0 : index
      %13 = vector.load %arg9[%c0_11, %c0_12] : memref<32x128xf32, #tpu.memory_space<vmem>>, vector<32x128xf32>
      tpu.vector_store %arg9[%c0_11, %c0_12], %12 {strides = array<i32>} : memref<32x128xf32, #tpu.memory_space<vmem>>, vector<32x128xf32>,
    } else {
    }
    %c0 = arith.constant 0 : index
    %c0_1 = arith.constant 0 : index
    %3 = vector.load %arg9[%c0, %c0_1] : memref<32x128xf32, #tpu.memory_space<vmem>>, vector<32x128xf32>
    %c0_2 = arith.constant 0 : index
    %c0_3 = arith.constant 0 : index
    %4 = vector.load %arg3[%c0_2, %c0_3] : memref<32x1152xbf16, #tpu.memory_space<vmem>>, vector<32x1152xbf16>
    %c0_4 = arith.constant 0 : index
    %c0_5 = arith.constant 0 : index
    %5 = vector.load %arg4[%c0_4, %c0_5] : memref<1152x128xbf16, #tpu.memory_space<vmem>>, vector<1152x128xbf16>
    %cst = arith.constant dense<0.000000e+00> : vector<32x128xf32>
    %6 = tpu.matmul %4, %5, %cst {dimension_numbers = #tpu.dot_dimension_numbers<[1], [0], [0], [1], [0, 0, 1, 1], [], []>} : vector<32x1152xbf16>, vector<1152x128xbf16>, vector<32x128xf32> -> vector<32x128xf32>
    %7 = arith.addf %3, %6 : vector<32x128xf32>
    %c0_6 = arith.constant 0 : index
    %c0_7 = arith.constant 0 : index
    %8 = vector.load %arg9[%c0_6, %c0_7] : memref<32x128xf32, #tpu.memory_space<vmem>>, vector<32x128xf32>
    tpu.vector_store %arg9[%c0_6, %c0_7], %7 {strides = array<i32>} : memref<32x128xf32, #tpu.memory_space<vmem>>, vector<32x128xf32>,
    %c0_i32_8 = arith.constant 0 : i32
    %9 = arith.cmpi eq, %arg2, %c0_i32_8 : i32
    %10 = arith.extui %9 : i1 to i32
    %c0_i32_9 = arith.constant 0 : i32
    %11 = arith.cmpi ne, %10, %c0_i32_9 : i32
    scf.if %11 {
      %c0_10 = arith.constant 0 : index
      %c0_11 = arith.constant 0 : index
      %12 = vector.load %arg9[%c0_10, %c0_11] : memref<32x128xf32, #tpu.memory_space<vmem>>, vector<32x128xf32>
      %c0_12 = arith.constant 0 : index
      %c0_13 = arith.constant 0 : index
      %13 = vector.load %arg5[%c0_12, %c0_13] : memref<1x128xf32, #tpu.memory_space<vmem>>, vector<1x128xf32>
      %14 = vector.broadcast %13 : vector<1x128xf32> to vector<32x128xf32>
      %15 = arith.mulf %12, %14 : vector<32x128xf32>
      %c0_14 = arith.constant 0 : index
      %c0_15 = arith.constant 0 : index
      %16 = vector.load %arg6[%c0_14, %c0_15] : memref<1x128xf32, #tpu.memory_space<vmem>>, vector<1x128xf32>
      %17 = vector.broadcast %16 : vector<1x128xf32> to vector<32x128xf32>
      %18 = arith.addf %15, %17 : vector<32x128xf32>
      %c0_16 = arith.constant 0 : index
      %c0_17 = arith.constant 0 : index
      %19 = vector.load %arg7[%c0_16, %c0_17] : memref<32x128xbf16, #tpu.memory_space<vmem>>, vector<32x128xbf16>
      %20 = arith.extf %19 : vector<32x128xbf16> to vector<32x128xf32>
      %21 = arith.addf %18, %20 : vector<32x128xf32>
      %cst_18 = arith.constant 0.000000e+00 : f32
      %22 = vector.broadcast %cst_18 : f32 to vector<32x128xf32>
      %23 = arith.maximumf %21, %22 : vector<32x128xf32>
      %24 = arith.truncf %23 : vector<32x128xf32> to vector<32x128xbf16>
      %c0_19 = arith.constant 0 : index
      %c0_20 = arith.constant 0 : index
      %25 = vector.load %arg8[%c0_19, %c0_20] : memref<32x128xbf16, #tpu.memory_space<vmem>>, vector<32x128xbf16>
      tpu.vector_store %arg8[%c0_19, %c0_20], %24 {strides = array<i32>} : memref<32x128xbf16, #tpu.memory_space<vmem>>, vector<32x128xbf16>,
    } else {
    }
    return
  }
  func.func @transform_0(%arg0: i32, %arg1: i32, %arg2: i32) -> (i32, i32) {
    %c0_i32 = arith.constant 0 : i32
    return %arg0, %arg2 : i32, i32
  }
  func.func @transform_1(%arg0: i32, %arg1: i32, %arg2: i32) -> (i32, i32) {
    %c0_i32 = arith.constant 0 : i32
    return %arg2, %arg1 : i32, i32
  }
  func.func @transform_2(%arg0: i32, %arg1: i32, %arg2: i32) -> (i32, i32) {
    %c0_i32 = arith.constant 0 : i32
    %c0_i32_0 = arith.constant 0 : i32
    return %c0_i32, %arg1 : i32, i32
  }
  func.func @transform_3(%arg0: i32, %arg1: i32, %arg2: i32) -> (i32, i32) {
    %c0_i32 = arith.constant 0 : i32
    %c0_i32_0 = arith.constant 0 : i32
    return %c0_i32, %arg1 : i32, i32
  }
  func.func @transform_4(%arg0: i32, %arg1: i32, %arg2: i32) -> (i32, i32) {
    %c0_i32 = arith.constant 0 : i32
    return %arg0, %arg1 : i32, i32
  }
  func.func @transform_5(%arg0: i32, %arg1: i32, %arg2: i32) -> (i32, i32) {
    %c0_i32 = arith.constant 0 : i32
    return %arg0, %arg1 : i32, i32
  }
}

module attributes {stable_mosaic.version = 11 : i64} {
  func.func @_gap_kernel(%arg0: memref<8x16x128xbf16, #tpu.memory_space<vmem>>, %arg1: memref<8x128xf32, #tpu.memory_space<vmem>>) attributes {dimension_semantics = [], scalar_prefetch = 0 : i64, scratch_operands = 0 : i64, tpu.core_type = #tpu.core_type<tc>} {
    %c0 = arith.constant 0 : index
    %c0_0 = arith.constant 0 : index
    %c0_1 = arith.constant 0 : index
    %0 = vector.load %arg0[%c0, %c0_0, %c0_1] : memref<8x16x128xbf16, #tpu.memory_space<vmem>>, vector<8x16x128xbf16>
    %1 = arith.extf %0 : vector<8x16x128xbf16> to vector<8x16x128xf32>
    %cst = arith.constant dense<0.000000e+00> : vector<8x128xf32>
    %2 = vector.multi_reduction <add>, %1, %cst [1] : vector<8x16x128xf32> to vector<8x128xf32>
    %cst_2 = arith.constant 6.250000e-02 : f32
    %3 = vector.broadcast %cst_2 : f32 to vector<8x128xf32>
    %4 = arith.mulf %2, %3 : vector<8x128xf32>
    %c0_3 = arith.constant 0 : index
    %c0_4 = arith.constant 0 : index
    %5 = vector.load %arg1[%c0_3, %c0_4] : memref<8x128xf32, #tpu.memory_space<vmem>>, vector<8x128xf32>
    tpu.vector_store %arg1[%c0_3, %c0_4], %4 {strides = array<i32>} : memref<8x128xf32, #tpu.memory_space<vmem>>, vector<8x128xf32>,
    return
  }
}

module attributes {stable_mosaic.version = 11 : i64} {
  func.func @kernel(%arg0: i32, %arg1: i32, %arg2: i32, %arg3: memref<32x1152xbf16, #tpu.memory_space<vmem>>, %arg4: memref<1152x128xbf16, #tpu.memory_space<vmem>>, %arg5: memref<1x128xf32, #tpu.memory_space<vmem>>, %arg6: memref<1x128xf32, #tpu.memory_space<vmem>>, %arg7: memref<32x128xbf16, #tpu.memory_space<vmem>>, %arg8: memref<32x128xf32, #tpu.memory_space<vmem>>) attributes {dimension_semantics = [#tpu.dimension_semantics<parallel>, #tpu.dimension_semantics<parallel>, #tpu.dimension_semantics<arbitrary>], iteration_bounds = array<i64: 1, 1, 1>, scalar_prefetch = 0 : i64, scratch_operands = 1 : i64, tpu.core_type = #tpu.core_type<tc>, window_params = [{transform_indices = @transform_0, window_bounds = array<i64: 32, 1152>}, {transform_indices = @transform_1, window_bounds = array<i64: 1152, 128>}, {transform_indices = @transform_2, window_bounds = array<i64: 1, 128>}, {transform_indices = @transform_3, window_bounds = array<i64: 1, 128>}, {transform_indices = @transform_4, window_bounds = array<i64: 32, 128>}]} {
    %c0_i32 = arith.constant 0 : i32
    %0 = arith.cmpi eq, %arg2, %c0_i32 : i32
    %1 = arith.extui %0 : i1 to i32
    %c0_i32_0 = arith.constant 0 : i32
    %2 = arith.cmpi ne, %1, %c0_i32_0 : i32
    scf.if %2 {
      %cst_10 = arith.constant 0.000000e+00 : f32
      %12 = vector.broadcast %cst_10 : f32 to vector<32x128xf32>
      %c0_11 = arith.constant 0 : index
      %c0_12 = arith.constant 0 : index
      %13 = vector.load %arg8[%c0_11, %c0_12] : memref<32x128xf32, #tpu.memory_space<vmem>>, vector<32x128xf32>
      tpu.vector_store %arg8[%c0_11, %c0_12], %12 {strides = array<i32>} : memref<32x128xf32, #tpu.memory_space<vmem>>, vector<32x128xf32>,
    } else {
    }
    %c0 = arith.constant 0 : index
    %c0_1 = arith.constant 0 : index
    %3 = vector.load %arg8[%c0, %c0_1] : memref<32x128xf32, #tpu.memory_space<vmem>>, vector<32x128xf32>
    %c0_2 = arith.constant 0 : index
    %c0_3 = arith.constant 0 : index
    %4 = vector.load %arg3[%c0_2, %c0_3] : memref<32x1152xbf16, #tpu.memory_space<vmem>>, vector<32x1152xbf16>
    %c0_4 = arith.constant 0 : index
    %c0_5 = arith.constant 0 : index
    %5 = vector.load %arg4[%c0_4, %c0_5] : memref<1152x128xbf16, #tpu.memory_space<vmem>>, vector<1152x128xbf16>
    %cst = arith.constant dense<0.000000e+00> : vector<32x128xf32>
    %6 = tpu.matmul %4, %5, %cst {dimension_numbers = #tpu.dot_dimension_numbers<[1], [0], [0], [1], [0, 0, 1, 1], [], []>} : vector<32x1152xbf16>, vector<1152x128xbf16>, vector<32x128xf32> -> vector<32x128xf32>
    %7 = arith.addf %3, %6 : vector<32x128xf32>
    %c0_6 = arith.constant 0 : index
    %c0_7 = arith.constant 0 : index
    %8 = vector.load %arg8[%c0_6, %c0_7] : memref<32x128xf32, #tpu.memory_space<vmem>>, vector<32x128xf32>
    tpu.vector_store %arg8[%c0_6, %c0_7], %7 {strides = array<i32>} : memref<32x128xf32, #tpu.memory_space<vmem>>, vector<32x128xf32>,
    %c0_i32_8 = arith.constant 0 : i32
    %9 = arith.cmpi eq, %arg2, %c0_i32_8 : i32
    %10 = arith.extui %9 : i1 to i32
    %c0_i32_9 = arith.constant 0 : i32
    %11 = arith.cmpi ne, %10, %c0_i32_9 : i32
    scf.if %11 {
      %c0_10 = arith.constant 0 : index
      %c0_11 = arith.constant 0 : index
      %12 = vector.load %arg8[%c0_10, %c0_11] : memref<32x128xf32, #tpu.memory_space<vmem>>, vector<32x128xf32>
      %c0_12 = arith.constant 0 : index
      %c0_13 = arith.constant 0 : index
      %13 = vector.load %arg5[%c0_12, %c0_13] : memref<1x128xf32, #tpu.memory_space<vmem>>, vector<1x128xf32>
      %14 = vector.broadcast %13 : vector<1x128xf32> to vector<32x128xf32>
      %15 = arith.mulf %12, %14 : vector<32x128xf32>
      %c0_14 = arith.constant 0 : index
      %c0_15 = arith.constant 0 : index
      %16 = vector.load %arg6[%c0_14, %c0_15] : memref<1x128xf32, #tpu.memory_space<vmem>>, vector<1x128xf32>
      %17 = vector.broadcast %16 : vector<1x128xf32> to vector<32x128xf32>
      %18 = arith.addf %15, %17 : vector<32x128xf32>
      %cst_16 = arith.constant 0.000000e+00 : f32
      %19 = vector.broadcast %cst_16 : f32 to vector<32x128xf32>
      %20 = arith.maximumf %18, %19 : vector<32x128xf32>
      %21 = arith.truncf %20 : vector<32x128xf32> to vector<32x128xbf16>
      %c0_17 = arith.constant 0 : index
      %c0_18 = arith.constant 0 : index
      %22 = vector.load %arg7[%c0_17, %c0_18] : memref<32x128xbf16, #tpu.memory_space<vmem>>, vector<32x128xbf16>
      tpu.vector_store %arg7[%c0_17, %c0_18], %21 {strides = array<i32>} : memref<32x128xbf16, #tpu.memory_space<vmem>>, vector<32x128xbf16>,
    } else {
    }
    return
  }
  func.func @transform_0(%arg0: i32, %arg1: i32, %arg2: i32) -> (i32, i32) {
    %c0_i32 = arith.constant 0 : i32
    return %arg0, %arg2 : i32, i32
  }
  func.func @transform_1(%arg0: i32, %arg1: i32, %arg2: i32) -> (i32, i32) {
    %c0_i32 = arith.constant 0 : i32
    return %arg2, %arg1 : i32, i32
  }
  func.func @transform_2(%arg0: i32, %arg1: i32, %arg2: i32) -> (i32, i32) {
    %c0_i32 = arith.constant 0 : i32
    %c0_i32_0 = arith.constant 0 : i32
    return %c0_i32, %arg1 : i32, i32
  }
  func.func @transform_3(%arg0: i32, %arg1: i32, %arg2: i32) -> (i32, i32) {
    %c0_i32 = arith.constant 0 : i32
    %c0_i32_0 = arith.constant 0 : i32
    return %c0_i32, %arg1 : i32, i32
  }
  func.func @transform_4(%arg0: i32, %arg1: i32, %arg2: i32) -> (i32, i32) {
    %c0_i32 = arith.constant 0 : i32
    return %arg0, %arg1 : i32, i32
  }
}

module attributes {stable_mosaic.version = 11 : i64} {
  func.func @kernel(%arg0: i32, %arg1: i32, %arg2: i32, %arg3: memref<8x128xbf16, #tpu.memory_space<vmem>>, %arg4: memref<128x256xbf16, #tpu.memory_space<vmem>>, %arg5: memref<1x256xf32, #tpu.memory_space<vmem>>, %arg6: memref<1x256xf32, #tpu.memory_space<vmem>>, %arg7: memref<8x256xbf16, #tpu.memory_space<vmem>>, %arg8: memref<8x256xf32, #tpu.memory_space<vmem>>) attributes {dimension_semantics = [#tpu.dimension_semantics<parallel>, #tpu.dimension_semantics<parallel>, #tpu.dimension_semantics<arbitrary>], iteration_bounds = array<i64: 1, 1, 1>, scalar_prefetch = 0 : i64, scratch_operands = 1 : i64, tpu.core_type = #tpu.core_type<tc>, window_params = [{transform_indices = @transform_0, window_bounds = array<i64: 8, 128>}, {transform_indices = @transform_1, window_bounds = array<i64: 128, 256>}, {transform_indices = @transform_2, window_bounds = array<i64: 1, 256>}, {transform_indices = @transform_3, window_bounds = array<i64: 1, 256>}, {transform_indices = @transform_4, window_bounds = array<i64: 8, 256>}]} {
    %c0_i32 = arith.constant 0 : i32
    %0 = arith.cmpi eq, %arg2, %c0_i32 : i32
    %1 = arith.extui %0 : i1 to i32
    %c0_i32_0 = arith.constant 0 : i32
    %2 = arith.cmpi ne, %1, %c0_i32_0 : i32
    scf.if %2 {
      %cst_10 = arith.constant 0.000000e+00 : f32
      %12 = vector.broadcast %cst_10 : f32 to vector<8x256xf32>
      %c0_11 = arith.constant 0 : index
      %c0_12 = arith.constant 0 : index
      %13 = vector.load %arg8[%c0_11, %c0_12] : memref<8x256xf32, #tpu.memory_space<vmem>>, vector<8x256xf32>
      tpu.vector_store %arg8[%c0_11, %c0_12], %12 {strides = array<i32>} : memref<8x256xf32, #tpu.memory_space<vmem>>, vector<8x256xf32>,
    } else {
    }
    %c0 = arith.constant 0 : index
    %c0_1 = arith.constant 0 : index
    %3 = vector.load %arg8[%c0, %c0_1] : memref<8x256xf32, #tpu.memory_space<vmem>>, vector<8x256xf32>
    %c0_2 = arith.constant 0 : index
    %c0_3 = arith.constant 0 : index
    %4 = vector.load %arg3[%c0_2, %c0_3] : memref<8x128xbf16, #tpu.memory_space<vmem>>, vector<8x128xbf16>
    %c0_4 = arith.constant 0 : index
    %c0_5 = arith.constant 0 : index
    %5 = vector.load %arg4[%c0_4, %c0_5] : memref<128x256xbf16, #tpu.memory_space<vmem>>, vector<128x256xbf16>
    %cst = arith.constant dense<0.000000e+00> : vector<8x256xf32>
    %6 = tpu.matmul %4, %5, %cst {dimension_numbers = #tpu.dot_dimension_numbers<[1], [0], [0], [1], [0, 0, 1, 1], [], []>} : vector<8x128xbf16>, vector<128x256xbf16>, vector<8x256xf32> -> vector<8x256xf32>
    %7 = arith.addf %3, %6 : vector<8x256xf32>
    %c0_6 = arith.constant 0 : index
    %c0_7 = arith.constant 0 : index
    %8 = vector.load %arg8[%c0_6, %c0_7] : memref<8x256xf32, #tpu.memory_space<vmem>>, vector<8x256xf32>
    tpu.vector_store %arg8[%c0_6, %c0_7], %7 {strides = array<i32>} : memref<8x256xf32, #tpu.memory_space<vmem>>, vector<8x256xf32>,
    %c0_i32_8 = arith.constant 0 : i32
    %9 = arith.cmpi eq, %arg2, %c0_i32_8 : i32
    %10 = arith.extui %9 : i1 to i32
    %c0_i32_9 = arith.constant 0 : i32
    %11 = arith.cmpi ne, %10, %c0_i32_9 : i32
    scf.if %11 {
      %c0_10 = arith.constant 0 : index
      %c0_11 = arith.constant 0 : index
      %12 = vector.load %arg8[%c0_10, %c0_11] : memref<8x256xf32, #tpu.memory_space<vmem>>, vector<8x256xf32>
      %c0_12 = arith.constant 0 : index
      %c0_13 = arith.constant 0 : index
      %13 = vector.load %arg5[%c0_12, %c0_13] : memref<1x256xf32, #tpu.memory_space<vmem>>, vector<1x256xf32>
      %14 = vector.broadcast %13 : vector<1x256xf32> to vector<8x256xf32>
      %15 = arith.mulf %12, %14 : vector<8x256xf32>
      %c0_14 = arith.constant 0 : index
      %c0_15 = arith.constant 0 : index
      %16 = vector.load %arg6[%c0_14, %c0_15] : memref<1x256xf32, #tpu.memory_space<vmem>>, vector<1x256xf32>
      %17 = vector.broadcast %16 : vector<1x256xf32> to vector<8x256xf32>
      %18 = arith.addf %15, %17 : vector<8x256xf32>
      %cst_16 = arith.constant 0.000000e+00 : f32
      %19 = vector.broadcast %cst_16 : f32 to vector<8x256xf32>
      %20 = arith.maximumf %18, %19 : vector<8x256xf32>
      %21 = arith.truncf %20 : vector<8x256xf32> to vector<8x256xbf16>
      %c0_17 = arith.constant 0 : index
      %c0_18 = arith.constant 0 : index
      %22 = vector.load %arg7[%c0_17, %c0_18] : memref<8x256xbf16, #tpu.memory_space<vmem>>, vector<8x256xbf16>
      tpu.vector_store %arg7[%c0_17, %c0_18], %21 {strides = array<i32>} : memref<8x256xbf16, #tpu.memory_space<vmem>>, vector<8x256xbf16>,
    } else {
    }
    return
  }
  func.func @transform_0(%arg0: i32, %arg1: i32, %arg2: i32) -> (i32, i32) {
    %c0_i32 = arith.constant 0 : i32
    return %arg0, %arg2 : i32, i32
  }
  func.func @transform_1(%arg0: i32, %arg1: i32, %arg2: i32) -> (i32, i32) {
    %c0_i32 = arith.constant 0 : i32
    return %arg2, %arg1 : i32, i32
  }
  func.func @transform_2(%arg0: i32, %arg1: i32, %arg2: i32) -> (i32, i32) {
    %c0_i32 = arith.constant 0 : i32
    %c0_i32_0 = arith.constant 0 : i32
    return %c0_i32, %arg1 : i32, i32
  }
  func.func @transform_3(%arg0: i32, %arg1: i32, %arg2: i32) -> (i32, i32) {
    %c0_i32 = arith.constant 0 : i32
    %c0_i32_0 = arith.constant 0 : i32
    return %c0_i32, %arg1 : i32, i32
  }
  func.func @transform_4(%arg0: i32, %arg1: i32, %arg2: i32) -> (i32, i32) {
    %c0_i32 = arith.constant 0 : i32
    return %arg0, %arg1 : i32, i32
  }
}

module attributes {stable_mosaic.version = 11 : i64} {
  func.func @kernel(%arg0: i32, %arg1: i32, %arg2: i32, %arg3: memref<32x128xbf16, #tpu.memory_space<vmem>>, %arg4: memref<128x256xbf16, #tpu.memory_space<vmem>>, %arg5: memref<1x256xf32, #tpu.memory_space<vmem>>, %arg6: memref<1x256xf32, #tpu.memory_space<vmem>>, %arg7: memref<32x256xbf16, #tpu.memory_space<vmem>>, %arg8: memref<32x256xf32, #tpu.memory_space<vmem>>) attributes {dimension_semantics = [#tpu.dimension_semantics<parallel>, #tpu.dimension_semantics<parallel>, #tpu.dimension_semantics<arbitrary>], iteration_bounds = array<i64: 1, 4, 1>, scalar_prefetch = 0 : i64, scratch_operands = 1 : i64, tpu.core_type = #tpu.core_type<tc>, window_params = [{transform_indices = @transform_0, window_bounds = array<i64: 32, 128>}, {transform_indices = @transform_1, window_bounds = array<i64: 128, 256>}, {transform_indices = @transform_2, window_bounds = array<i64: 1, 256>}, {transform_indices = @transform_3, window_bounds = array<i64: 1, 256>}, {transform_indices = @transform_4, window_bounds = array<i64: 32, 256>}]} {
    %c0_i32 = arith.constant 0 : i32
    %0 = arith.cmpi eq, %arg2, %c0_i32 : i32
    %1 = arith.extui %0 : i1 to i32
    %c0_i32_0 = arith.constant 0 : i32
    %2 = arith.cmpi ne, %1, %c0_i32_0 : i32
    scf.if %2 {
      %cst_10 = arith.constant 0.000000e+00 : f32
      %12 = vector.broadcast %cst_10 : f32 to vector<32x256xf32>
      %c0_11 = arith.constant 0 : index
      %c0_12 = arith.constant 0 : index
      %13 = vector.load %arg8[%c0_11, %c0_12] : memref<32x256xf32, #tpu.memory_space<vmem>>, vector<32x256xf32>
      tpu.vector_store %arg8[%c0_11, %c0_12], %12 {strides = array<i32>} : memref<32x256xf32, #tpu.memory_space<vmem>>, vector<32x256xf32>,
    } else {
    }
    %c0 = arith.constant 0 : index
    %c0_1 = arith.constant 0 : index
    %3 = vector.load %arg8[%c0, %c0_1] : memref<32x256xf32, #tpu.memory_space<vmem>>, vector<32x256xf32>
    %c0_2 = arith.constant 0 : index
    %c0_3 = arith.constant 0 : index
    %4 = vector.load %arg3[%c0_2, %c0_3] : memref<32x128xbf16, #tpu.memory_space<vmem>>, vector<32x128xbf16>
    %c0_4 = arith.constant 0 : index
    %c0_5 = arith.constant 0 : index
    %5 = vector.load %arg4[%c0_4, %c0_5] : memref<128x256xbf16, #tpu.memory_space<vmem>>, vector<128x256xbf16>
    %cst = arith.constant dense<0.000000e+00> : vector<32x256xf32>
    %6 = tpu.matmul %4, %5, %cst {dimension_numbers = #tpu.dot_dimension_numbers<[1], [0], [0], [1], [0, 0, 1, 1], [], []>} : vector<32x128xbf16>, vector<128x256xbf16>, vector<32x256xf32> -> vector<32x256xf32>
    %7 = arith.addf %3, %6 : vector<32x256xf32>
    %c0_6 = arith.constant 0 : index
    %c0_7 = arith.constant 0 : index
    %8 = vector.load %arg8[%c0_6, %c0_7] : memref<32x256xf32, #tpu.memory_space<vmem>>, vector<32x256xf32>
    tpu.vector_store %arg8[%c0_6, %c0_7], %7 {strides = array<i32>} : memref<32x256xf32, #tpu.memory_space<vmem>>, vector<32x256xf32>,
    %c0_i32_8 = arith.constant 0 : i32
    %9 = arith.cmpi eq, %arg2, %c0_i32_8 : i32
    %10 = arith.extui %9 : i1 to i32
    %c0_i32_9 = arith.constant 0 : i32
    %11 = arith.cmpi ne, %10, %c0_i32_9 : i32
    scf.if %11 {
      %c0_10 = arith.constant 0 : index
      %c0_11 = arith.constant 0 : index
      %12 = vector.load %arg8[%c0_10, %c0_11] : memref<32x256xf32, #tpu.memory_space<vmem>>, vector<32x256xf32>
      %c0_12 = arith.constant 0 : index
      %c0_13 = arith.constant 0 : index
      %13 = vector.load %arg5[%c0_12, %c0_13] : memref<1x256xf32, #tpu.memory_space<vmem>>, vector<1x256xf32>
      %14 = vector.broadcast %13 : vector<1x256xf32> to vector<32x256xf32>
      %15 = arith.mulf %12, %14 : vector<32x256xf32>
      %c0_14 = arith.constant 0 : index
      %c0_15 = arith.constant 0 : index
      %16 = vector.load %arg6[%c0_14, %c0_15] : memref<1x256xf32, #tpu.memory_space<vmem>>, vector<1x256xf32>
      %17 = vector.broadcast %16 : vector<1x256xf32> to vector<32x256xf32>
      %18 = arith.addf %15, %17 : vector<32x256xf32>
      %cst_16 = arith.constant 0.000000e+00 : f32
      %19 = vector.broadcast %cst_16 : f32 to vector<32x256xf32>
      %20 = arith.maximumf %18, %19 : vector<32x256xf32>
      %21 = arith.truncf %20 : vector<32x256xf32> to vector<32x256xbf16>
      %c0_17 = arith.constant 0 : index
      %c0_18 = arith.constant 0 : index
      %22 = vector.load %arg7[%c0_17, %c0_18] : memref<32x256xbf16, #tpu.memory_space<vmem>>, vector<32x256xbf16>
      tpu.vector_store %arg7[%c0_17, %c0_18], %21 {strides = array<i32>} : memref<32x256xbf16, #tpu.memory_space<vmem>>, vector<32x256xbf16>,
    } else {
    }
    return
  }
  func.func @transform_0(%arg0: i32, %arg1: i32, %arg2: i32) -> (i32, i32) {
    %c0_i32 = arith.constant 0 : i32
    return %arg0, %arg2 : i32, i32
  }
  func.func @transform_1(%arg0: i32, %arg1: i32, %arg2: i32) -> (i32, i32) {
    %c0_i32 = arith.constant 0 : i32
    return %arg2, %arg1 : i32, i32
  }
  func.func @transform_2(%arg0: i32, %arg1: i32, %arg2: i32) -> (i32, i32) {
    %c0_i32 = arith.constant 0 : i32
    %c0_i32_0 = arith.constant 0 : i32
    return %c0_i32, %arg1 : i32, i32
  }
  func.func @transform_3(%arg0: i32, %arg1: i32, %arg2: i32) -> (i32, i32) {
    %c0_i32 = arith.constant 0 : i32
    %c0_i32_0 = arith.constant 0 : i32
    return %c0_i32, %arg1 : i32, i32
  }
  func.func @transform_4(%arg0: i32, %arg1: i32, %arg2: i32) -> (i32, i32) {
    %c0_i32 = arith.constant 0 : i32
    return %arg0, %arg1 : i32, i32
  }
}

module attributes {stable_mosaic.version = 11 : i64} {
  func.func @kernel(%arg0: i32, %arg1: i32, %arg2: i32, %arg3: memref<32x1280xbf16, #tpu.memory_space<vmem>>, %arg4: memref<1280x256xbf16, #tpu.memory_space<vmem>>, %arg5: memref<1x256xf32, #tpu.memory_space<vmem>>, %arg6: memref<1x256xf32, #tpu.memory_space<vmem>>, %arg7: memref<32x256xbf16, #tpu.memory_space<vmem>>, %arg8: memref<32x256xf32, #tpu.memory_space<vmem>>) attributes {dimension_semantics = [#tpu.dimension_semantics<parallel>, #tpu.dimension_semantics<parallel>, #tpu.dimension_semantics<arbitrary>], iteration_bounds = array<i64: 1, 1, 1>, scalar_prefetch = 0 : i64, scratch_operands = 1 : i64, tpu.core_type = #tpu.core_type<tc>, window_params = [{transform_indices = @transform_0, window_bounds = array<i64: 32, 1280>}, {transform_indices = @transform_1, window_bounds = array<i64: 1280, 256>}, {transform_indices = @transform_2, window_bounds = array<i64: 1, 256>}, {transform_indices = @transform_3, window_bounds = array<i64: 1, 256>}, {transform_indices = @transform_4, window_bounds = array<i64: 32, 256>}]} {
    %c0_i32 = arith.constant 0 : i32
    %0 = arith.cmpi eq, %arg2, %c0_i32 : i32
    %1 = arith.extui %0 : i1 to i32
    %c0_i32_0 = arith.constant 0 : i32
    %2 = arith.cmpi ne, %1, %c0_i32_0 : i32
    scf.if %2 {
      %cst_10 = arith.constant 0.000000e+00 : f32
      %12 = vector.broadcast %cst_10 : f32 to vector<32x256xf32>
      %c0_11 = arith.constant 0 : index
      %c0_12 = arith.constant 0 : index
      %13 = vector.load %arg8[%c0_11, %c0_12] : memref<32x256xf32, #tpu.memory_space<vmem>>, vector<32x256xf32>
      tpu.vector_store %arg8[%c0_11, %c0_12], %12 {strides = array<i32>} : memref<32x256xf32, #tpu.memory_space<vmem>>, vector<32x256xf32>,
    } else {
    }
    %c0 = arith.constant 0 : index
    %c0_1 = arith.constant 0 : index
    %3 = vector.load %arg8[%c0, %c0_1] : memref<32x256xf32, #tpu.memory_space<vmem>>, vector<32x256xf32>
    %c0_2 = arith.constant 0 : index
    %c0_3 = arith.constant 0 : index
    %4 = vector.load %arg3[%c0_2, %c0_3] : memref<32x1280xbf16, #tpu.memory_space<vmem>>, vector<32x1280xbf16>
    %c0_4 = arith.constant 0 : index
    %c0_5 = arith.constant 0 : index
    %5 = vector.load %arg4[%c0_4, %c0_5] : memref<1280x256xbf16, #tpu.memory_space<vmem>>, vector<1280x256xbf16>
    %cst = arith.constant dense<0.000000e+00> : vector<32x256xf32>
    %6 = tpu.matmul %4, %5, %cst {dimension_numbers = #tpu.dot_dimension_numbers<[1], [0], [0], [1], [0, 0, 1, 1], [], []>} : vector<32x1280xbf16>, vector<1280x256xbf16>, vector<32x256xf32> -> vector<32x256xf32>
    %7 = arith.addf %3, %6 : vector<32x256xf32>
    %c0_6 = arith.constant 0 : index
    %c0_7 = arith.constant 0 : index
    %8 = vector.load %arg8[%c0_6, %c0_7] : memref<32x256xf32, #tpu.memory_space<vmem>>, vector<32x256xf32>
    tpu.vector_store %arg8[%c0_6, %c0_7], %7 {strides = array<i32>} : memref<32x256xf32, #tpu.memory_space<vmem>>, vector<32x256xf32>,
    %c0_i32_8 = arith.constant 0 : i32
    %9 = arith.cmpi eq, %arg2, %c0_i32_8 : i32
    %10 = arith.extui %9 : i1 to i32
    %c0_i32_9 = arith.constant 0 : i32
    %11 = arith.cmpi ne, %10, %c0_i32_9 : i32
    scf.if %11 {
      %c0_10 = arith.constant 0 : index
      %c0_11 = arith.constant 0 : index
      %12 = vector.load %arg8[%c0_10, %c0_11] : memref<32x256xf32, #tpu.memory_space<vmem>>, vector<32x256xf32>
      %c0_12 = arith.constant 0 : index
      %c0_13 = arith.constant 0 : index
      %13 = vector.load %arg5[%c0_12, %c0_13] : memref<1x256xf32, #tpu.memory_space<vmem>>, vector<1x256xf32>
      %14 = vector.broadcast %13 : vector<1x256xf32> to vector<32x256xf32>
      %15 = arith.mulf %12, %14 : vector<32x256xf32>
      %c0_14 = arith.constant 0 : index
      %c0_15 = arith.constant 0 : index
      %16 = vector.load %arg6[%c0_14, %c0_15] : memref<1x256xf32, #tpu.memory_space<vmem>>, vector<1x256xf32>
      %17 = vector.broadcast %16 : vector<1x256xf32> to vector<32x256xf32>
      %18 = arith.addf %15, %17 : vector<32x256xf32>
      %cst_16 = arith.constant 0.000000e+00 : f32
      %19 = vector.broadcast %cst_16 : f32 to vector<32x256xf32>
      %20 = arith.maximumf %18, %19 : vector<32x256xf32>
      %21 = arith.truncf %20 : vector<32x256xf32> to vector<32x256xbf16>
      %c0_17 = arith.constant 0 : index
      %c0_18 = arith.constant 0 : index
      %22 = vector.load %arg7[%c0_17, %c0_18] : memref<32x256xbf16, #tpu.memory_space<vmem>>, vector<32x256xbf16>
      tpu.vector_store %arg7[%c0_17, %c0_18], %21 {strides = array<i32>} : memref<32x256xbf16, #tpu.memory_space<vmem>>, vector<32x256xbf16>,
    } else {
    }
    return
  }
  func.func @transform_0(%arg0: i32, %arg1: i32, %arg2: i32) -> (i32, i32) {
    %c0_i32 = arith.constant 0 : i32
    return %arg0, %arg2 : i32, i32
  }
  func.func @transform_1(%arg0: i32, %arg1: i32, %arg2: i32) -> (i32, i32) {
    %c0_i32 = arith.constant 0 : i32
    return %arg2, %arg1 : i32, i32
  }
  func.func @transform_2(%arg0: i32, %arg1: i32, %arg2: i32) -> (i32, i32) {
    %c0_i32 = arith.constant 0 : i32
    %c0_i32_0 = arith.constant 0 : i32
    return %c0_i32, %arg1 : i32, i32
  }
  func.func @transform_3(%arg0: i32, %arg1: i32, %arg2: i32) -> (i32, i32) {
    %c0_i32 = arith.constant 0 : i32
    %c0_i32_0 = arith.constant 0 : i32
    return %c0_i32, %arg1 : i32, i32
  }
  func.func @transform_4(%arg0: i32, %arg1: i32, %arg2: i32) -> (i32, i32) {
    %c0_i32 = arith.constant 0 : i32
    return %arg0, %arg1 : i32, i32
  }
}

module attributes {stable_mosaic.version = 11 : i64} {
  func.func @kernel(%arg0: i32, %arg1: i32, %arg2: i32, %arg3: memref<32x2304xbf16, #tpu.memory_space<vmem>>, %arg4: memref<2304x256xbf16, #tpu.memory_space<vmem>>, %arg5: memref<1x256xf32, #tpu.memory_space<vmem>>, %arg6: memref<1x256xf32, #tpu.memory_space<vmem>>, %arg7: memref<32x256xbf16, #tpu.memory_space<vmem>>, %arg8: memref<32x256xf32, #tpu.memory_space<vmem>>) attributes {dimension_semantics = [#tpu.dimension_semantics<parallel>, #tpu.dimension_semantics<parallel>, #tpu.dimension_semantics<arbitrary>], iteration_bounds = array<i64: 1, 1, 1>, scalar_prefetch = 0 : i64, scratch_operands = 1 : i64, tpu.core_type = #tpu.core_type<tc>, window_params = [{transform_indices = @transform_0, window_bounds = array<i64: 32, 2304>}, {transform_indices = @transform_1, window_bounds = array<i64: 2304, 256>}, {transform_indices = @transform_2, window_bounds = array<i64: 1, 256>}, {transform_indices = @transform_3, window_bounds = array<i64: 1, 256>}, {transform_indices = @transform_4, window_bounds = array<i64: 32, 256>}]} {
    %c0_i32 = arith.constant 0 : i32
    %0 = arith.cmpi eq, %arg2, %c0_i32 : i32
    %1 = arith.extui %0 : i1 to i32
    %c0_i32_0 = arith.constant 0 : i32
    %2 = arith.cmpi ne, %1, %c0_i32_0 : i32
    scf.if %2 {
      %cst_10 = arith.constant 0.000000e+00 : f32
      %12 = vector.broadcast %cst_10 : f32 to vector<32x256xf32>
      %c0_11 = arith.constant 0 : index
      %c0_12 = arith.constant 0 : index
      %13 = vector.load %arg8[%c0_11, %c0_12] : memref<32x256xf32, #tpu.memory_space<vmem>>, vector<32x256xf32>
      tpu.vector_store %arg8[%c0_11, %c0_12], %12 {strides = array<i32>} : memref<32x256xf32, #tpu.memory_space<vmem>>, vector<32x256xf32>,
    } else {
    }
    %c0 = arith.constant 0 : index
    %c0_1 = arith.constant 0 : index
    %3 = vector.load %arg8[%c0, %c0_1] : memref<32x256xf32, #tpu.memory_space<vmem>>, vector<32x256xf32>
    %c0_2 = arith.constant 0 : index
    %c0_3 = arith.constant 0 : index
    %4 = vector.load %arg3[%c0_2, %c0_3] : memref<32x2304xbf16, #tpu.memory_space<vmem>>, vector<32x2304xbf16>
    %c0_4 = arith.constant 0 : index
    %c0_5 = arith.constant 0 : index
    %5 = vector.load %arg4[%c0_4, %c0_5] : memref<2304x256xbf16, #tpu.memory_space<vmem>>, vector<2304x256xbf16>
    %cst = arith.constant dense<0.000000e+00> : vector<32x256xf32>
    %6 = tpu.matmul %4, %5, %cst {dimension_numbers = #tpu.dot_dimension_numbers<[1], [0], [0], [1], [0, 0, 1, 1], [], []>} : vector<32x2304xbf16>, vector<2304x256xbf16>, vector<32x256xf32> -> vector<32x256xf32>
    %7 = arith.addf %3, %6 : vector<32x256xf32>
    %c0_6 = arith.constant 0 : index
    %c0_7 = arith.constant 0 : index
    %8 = vector.load %arg8[%c0_6, %c0_7] : memref<32x256xf32, #tpu.memory_space<vmem>>, vector<32x256xf32>
    tpu.vector_store %arg8[%c0_6, %c0_7], %7 {strides = array<i32>} : memref<32x256xf32, #tpu.memory_space<vmem>>, vector<32x256xf32>,
    %c0_i32_8 = arith.constant 0 : i32
    %9 = arith.cmpi eq, %arg2, %c0_i32_8 : i32
    %10 = arith.extui %9 : i1 to i32
    %c0_i32_9 = arith.constant 0 : i32
    %11 = arith.cmpi ne, %10, %c0_i32_9 : i32
    scf.if %11 {
      %c0_10 = arith.constant 0 : index
      %c0_11 = arith.constant 0 : index
      %12 = vector.load %arg8[%c0_10, %c0_11] : memref<32x256xf32, #tpu.memory_space<vmem>>, vector<32x256xf32>
      %c0_12 = arith.constant 0 : index
      %c0_13 = arith.constant 0 : index
      %13 = vector.load %arg5[%c0_12, %c0_13] : memref<1x256xf32, #tpu.memory_space<vmem>>, vector<1x256xf32>
      %14 = vector.broadcast %13 : vector<1x256xf32> to vector<32x256xf32>
      %15 = arith.mulf %12, %14 : vector<32x256xf32>
      %c0_14 = arith.constant 0 : index
      %c0_15 = arith.constant 0 : index
      %16 = vector.load %arg6[%c0_14, %c0_15] : memref<1x256xf32, #tpu.memory_space<vmem>>, vector<1x256xf32>
      %17 = vector.broadcast %16 : vector<1x256xf32> to vector<32x256xf32>
      %18 = arith.addf %15, %17 : vector<32x256xf32>
      %cst_16 = arith.constant 0.000000e+00 : f32
      %19 = vector.broadcast %cst_16 : f32 to vector<32x256xf32>
      %20 = arith.maximumf %18, %19 : vector<32x256xf32>
      %21 = arith.truncf %20 : vector<32x256xf32> to vector<32x256xbf16>
      %c0_17 = arith.constant 0 : index
      %c0_18 = arith.constant 0 : index
      %22 = vector.load %arg7[%c0_17, %c0_18] : memref<32x256xbf16, #tpu.memory_space<vmem>>, vector<32x256xbf16>
      tpu.vector_store %arg7[%c0_17, %c0_18], %21 {strides = array<i32>} : memref<32x256xbf16, #tpu.memory_space<vmem>>, vector<32x256xbf16>,
    } else {
    }
    return
  }
  func.func @transform_0(%arg0: i32, %arg1: i32, %arg2: i32) -> (i32, i32) {
    %c0_i32 = arith.constant 0 : i32
    return %arg0, %arg2 : i32, i32
  }
  func.func @transform_1(%arg0: i32, %arg1: i32, %arg2: i32) -> (i32, i32) {
    %c0_i32 = arith.constant 0 : i32
    return %arg2, %arg1 : i32, i32
  }
  func.func @transform_2(%arg0: i32, %arg1: i32, %arg2: i32) -> (i32, i32) {
    %c0_i32 = arith.constant 0 : i32
    %c0_i32_0 = arith.constant 0 : i32
    return %c0_i32, %arg1 : i32, i32
  }
  func.func @transform_3(%arg0: i32, %arg1: i32, %arg2: i32) -> (i32, i32) {
    %c0_i32 = arith.constant 0 : i32
    %c0_i32_0 = arith.constant 0 : i32
    return %c0_i32, %arg1 : i32, i32
  }
  func.func @transform_4(%arg0: i32, %arg1: i32, %arg2: i32) -> (i32, i32) {
    %c0_i32 = arith.constant 0 : i32
    return %arg0, %arg1 : i32, i32
  }
}

</mosaic_0001>

<bundles_post_ra>
// kernel: _lambda_.22
= control target key start
LH: loop header
LB: loop body
LE: loop exit
PB: predicated region body
PF: predicated region fallthrough
CT: control target
= control target key end

     0   :  { %s1245_s15 = smov 0   ;;  %s1247_s16 = smov 0   ;;  %s1419_s0 = inlined_call_operand.vmem [shape: bf16[512,256], index: 0, kind: input, shape index: {}]   ;;  %s1420_s1 = inlined_call_operand.vmem [shape: bf16[256,128], index: 1, kind: input, shape index: {}]   ;;  %s1421_s2 = inlined_call_operand.vmem [shape: f32[1,128], index: 2, kind: input, shape index: {}]   ;;  %s1422_s3 = inlined_call_operand.vmem [shape: f32[1,128], index: 3, kind: input, shape index: {}]   ;;  %s1423_s4 = inlined_call_operand.vmem [shape: bf16[512,128], index: 4, kind: output, shape index: {}]  }
   0x1   :  { %s1249_s17 = smov 0  }
   0x2 LB: > { %s33_s18 = sadd.s32 1, %s1214_s16  ;;  %p938_p0 = scmp.ge.s32.totalorder %s1218_s17, 1  ;;  %s1218_s17 = sphi %s1249_s17, %s14_s17   ;;  %s1214_s16 = sphi %s1247_s16, %s1425_s16   ;;  %s1210_s15 = sphi %s1245_s15, %s1424_s15  }
   0x3   : > { %p35_p1 = scmp.ge.s32.totalorder %s33_s18, 4  ;;  %p224_p2 = scmp.lt.s32.totalorder %s1218_s17, 5 }
   0x5   : > { %s1427_s18 = smov (%p35_p1, %s33_s18), 0  ;;  %p225_p3 = pnand %p938_p0, %p224_p2 }
   0x6   : > { %s939_s5 = sshll.u32 (!%p225_p3), %s1210_s15, 4 }
   0x7   : > { %228 = sbr.rel (%p225_p3) target bundleno = 244 (0xf4), region = 36  ;;  %p274_p4 = scmp.lt.s32.totalorder (!%p225_p3), %s939_s5, 63 }
   0xc   : > { %v1098_v0 = vld [vmem:[%s1420_s1 + $0x38] sm:$0xff]  ;;  %v1097_v2 = vld [vmem:[%s1420_s1 + $0x30] sm:$0xff]  ;;  %v1096_v4 = vld [vmem:[%s1420_s1 + $0x28] sm:$0xff]  ;;  %s1429_s5 = smov (!%p274_p4, %s939_s5), 63 }
   0xd   : > { %v1106_v1 = vld [vmem:[%s1420_s1 + $0x78] sm:$0xff]  ;;  %568 = vmatpush.bf16.msra.mxu0 %v1098_v0  ;;  %1154 = vmatpush.bf16.msra.mxu2 %v1098_v0  ;;  %v1105_v3 = vld [vmem:[%s1420_s1 + $0x70] sm:$0xff]  ;;  %v1104_v5 = vld [vmem:[%s1420_s1 + $0x68] sm:$0xff]  ;;  %s1074_s21 = sshll.u32 %s1429_s5, 3  ;;  %s943_s12 = sshll.u32 %s1429_s5, 2 }
   0xe   : > { %617 = vmatpush.bf16.msra.mxu1 %v1106_v1  ;;  %1162 = vmatpush.bf16.msra.mxu3 %v1106_v1  ;;  %v1095_v6 = vld [vmem:[%s1420_s1 + $0x20] sm:$0xff]  ;;  %v1094_v8 = vld [vmem:[%s1420_s1 + $0x18] sm:$0xff]  ;;  %v1093_v10 = vld [vmem:[%s1420_s1 + $0x10] sm:$0xff]  ;;  %s1311_s26 = scalar_lea.vmem %s1419_s0, %s1074_s21  ;;  %s1373_s15 = scalar_lea.vmem %s1423_s4, %s943_s12 }
   0xf   : > { %v1103_v7 = vld [vmem:[%s1420_s1 + $0x60] sm:$0xff]  ;;  %v1102_v9 = vld [vmem:[%s1420_s1 + $0x58] sm:$0xff]  ;;  %v1101_v11 = vld [vmem:[%s1420_s1 + $0x50] sm:$0xff] }
  0x10   : > { %v1092_v12 = vld [vmem:[%s1420_s1 + $0x8] sm:$0xff]  ;;  %v1091_v14 = vld [vmem:[%s1420_s1] sm:$0xff]  ;;  %v954_v28 = vld [vmem:[%s1311_s26 + $0x10] sm:$0xf] }
  0x11   : > { %569 = vmatpush.bf16.msra.mxu0 %v1097_v2  ;;  %1155 = vmatpush.bf16.msra.mxu2 %v1097_v2  ;;  %v1100_v13 = vld [vmem:[%s1420_s1 + $0x48] sm:$0xff]  ;;  %v1099_v15 = vld [vmem:[%s1420_s1 + $0x40] sm:$0xff]  ;;  %v1078_v29 = vld [vmem:[%s1311_s26 + $0x14] sm:$0xf0] }
  0x12   : > { %618 = vmatpush.bf16.msra.mxu1 %v1105_v3  ;;  %1163 = vmatpush.bf16.msra.mxu3 %v1105_v3  ;;  %v946_v16 = vld [vmem:[%s1311_s26] sm:$0xf]  ;;  %v1076_v17 = vld [vmem:[%s1311_s26 + $0x4] sm:$0xf0]  ;;  %v1075_v20 = vld [vmem:[%s1311_s26 + $0x4] sm:$0xf]  ;;  %v955_v36 = vor.u32 %v1078_v29, %v954_v28 }
  0x13   : > { %v978_v18 = vld [vmem:[%s1311_s26 + $0x40] sm:$0xf]  ;;  %v1084_v19 = vld [vmem:[%s1311_s26 + $0x44] sm:$0xf0]  ;;  %v948_v21 = vld [vmem:[%s1311_s26 + $0x8] sm:$0xf0]  ;;  %v947_v24 = vor.u32 %v1076_v17, %v946_v16 }
  0x14   : > { %v1083_v22 = vld [vmem:[%s1311_s26 + $0x44] sm:$0xf]  ;;  %v980_v23 = vld [vmem:[%s1311_s26 + $0x48] sm:$0xf0]  ;;  %v979_v25 = vor.u32 %v1084_v19, %v978_v18  ;;  %v951_v26 = vor.u32 %v1075_v20, %v948_v21  ;;  %v986_v30 = vld [vmem:[%s1311_s26 + $0x50] sm:$0xf] }
  0x15   : > { %570 = vmatpush.bf16.msra.mxu0 %v1096_v4  ;;  %1156 = vmatpush.bf16.msra.mxu2 %v1096_v4  ;;  %v983_v27 = vor.u32 %v1083_v22, %v980_v23  ;;  %v1086_v31 = vld [vmem:[%s1311_s26 + $0x54] sm:$0xf0]  ;;  %v1077_v32 = vld [vmem:[%s1311_s26 + $0x14] sm:$0xf]  ;;  %v956_v33 = vld [vmem:[%s1311_s26 + $0x18] sm:$0xf0] }
  0x16   : > { %619 = vmatpush.bf16.msra.mxu1 %v1104_v5  ;;  %1164 = vmatpush.bf16.msra.mxu3 %v1104_v5  ;;  %v1085_v34 = vld [vmem:[%s1311_s26 + $0x54] sm:$0xf]  ;;  %v988_v35 = vld [vmem:[%s1311_s26 + $0x58] sm:$0xf0]  ;;  %v987_v37 = vor.u32 %v1086_v31, %v986_v30  ;;  %v959_v38 = vor.u32 %v1077_v32, %v956_v33  ;;  %v962_v40 = vld [vmem:[%s1311_s26 + $0x20] sm:$0xf] }
  0x17   : > { %v991_v39 = vor.u32 %v1085_v34, %v988_v35  ;;  %v1080_v41 = vld [vmem:[%s1311_s26 + $0x24] sm:$0xf0]  ;;  %v994_v42 = vld [vmem:[%s1311_s26 + $0x60] sm:$0xf]  ;;  %v1079_v44 = vld [vmem:[%s1311_s26 + $0x24] sm:$0xf] }
  0x18   : > { %v1088_v43 = vld [vmem:[%s1311_s26 + $0x64] sm:$0xf0]  ;;  %v964_v45 = vld [vmem:[%s1311_s26 + $0x28] sm:$0xf0]  ;;  %v1087_v46 = vld [vmem:[%s1311_s26 + $0x64] sm:$0xf]  ;;  %v963_v48 = vor.u32 %v1080_v41, %v962_v40 }
  0x19   : > { %571 = vmatpush.bf16.msra.mxu0 %v1095_v6  ;;  %1157 = vmatpush.bf16.msra.mxu2 %v1095_v6  ;;  %v996_v47 = vld [vmem:[%s1311_s26 + $0x68] sm:$0xf0]  ;;  %v995_v49 = vor.u32 %v1088_v43, %v994_v42  ;;  %v967_v50 = vor.u32 %v1079_v44, %v964_v45  ;;  %v970_v52 = vld [vmem:[%s1311_s26 + $0x30] sm:$0xf]  ;;  %v1082_v53 = vld [vmem:[%s1311_s26 + $0x34] sm:$0xf0] }
  0x1a   : > { %620 = vmatpush.bf16.msra.mxu1 %v1103_v7  ;;  %1165 = vmatpush.bf16.msra.mxu3 %v1103_v7  ;;  %v999_v51 = vor.u32 %v1087_v46, %v996_v47  ;;  %v1002_v54 = vld [vmem:[%s1311_s26 + $0x70] sm:$0xf]  ;;  %v1090_v55 = vld [vmem:[%s1311_s26 + $0x74] sm:$0xf0]  ;;  %v1081_v56 = vld [vmem:[%s1311_s26 + $0x34] sm:$0xf]  ;;  %v971_v60 = vor.u32 %v1082_v53, %v970_v52 }
  0x1b   : > { %v972_v57 = vld [vmem:[%s1311_s26 + $0x38] sm:$0xf0]  ;;  %v1089_v58 = vld [vmem:[%s1311_s26 + $0x74] sm:$0xf]  ;;  %v1003_v61 = vor.u32 %v1090_v55, %v1002_v54  ;;  %v1357_v3 = vld [vmem:[%s1421_s2] ss:$0 sm:$0xff] }
  0x1c   : > { %v1004_v59 = vld [vmem:[%s1311_s26 + $0x78] sm:$0xf0]  ;;  %v975_v62 = vor.u32 %v1081_v56, %v972_v57  ;;  %v1363_v7 = vld [vmem:[%s1422_s3] ss:$0 sm:$0xff] }
  0x1d   : > { %572 = vmatpush.bf16.msra.mxu0 %v1094_v8  ;;  %1158 = vmatpush.bf16.msra.mxu2 %v1094_v8  ;;  %v1007_v63 = vor.u32 %v1089_v58, %v1004_v59 }
  0x1e   : > { %621 = vmatpush.bf16.msra.mxu1 %v1102_v9  ;;  %1166 = vmatpush.bf16.msra.mxu3 %v1102_v9 }
  0x21   : > { %573 = vmatpush.bf16.msra.mxu0 %v1093_v10  ;;  %1159 = vmatpush.bf16.msra.mxu2 %v1093_v10 }
  0x22   : > { %622 = vmatpush.bf16.msra.mxu1 %v1101_v11  ;;  %1167 = vmatpush.bf16.msra.mxu3 %v1101_v11 }
  0x25   : > { %574 = vmatpush.bf16.msra.mxu0 %v1092_v12  ;;  %1160 = vmatpush.bf16.msra.mxu2 %v1092_v12 }
  0x26   : > { %623 = vmatpush.bf16.msra.mxu1 %v1100_v13  ;;  %1168 = vmatpush.bf16.msra.mxu3 %v1100_v13 }
  0x29   : > { %575 = vmatpush.bf16.msra.mxu0 %v1091_v14  ;;  %1161 = vmatpush.bf16.msra.mxu2 %v1091_v14 }
  0x2a   : > { %624 = vmatpush.bf16.msra.mxu1 %v1099_v15  ;;  %1169 = vmatpush.bf16.msra.mxu3 %v1099_v15 }
  0x2c   : > { %576 = vmatmul.bf16.vlgmr.msra.gmra.mxu0 %v947_v24  ;;  %596 = vmatmul.bf16.vlgmr.msra.gmra.mxu2 %v979_v25 }
  0x2d   : > { %625 = vmatmul.bf16.vlgmr.msra.gmra.mxu1 %v951_v26  ;;  %645 = vmatmul.bf16.vlgmr.msra.gmra.mxu3 %v983_v27 }
  0x3c   : > { %581 = vmatmul.bf16.gmra.mxu0 %v955_v36  ;;  %601 = vmatmul.bf16.gmra.mxu2 %v987_v37 }
  0x3d   : > { %630 = vmatmul.bf16.gmra.mxu1 %v959_v38  ;;  %650 = vmatmul.bf16.gmra.mxu3 %v991_v39 }
  0x4c   : > { %586 = vmatmul.bf16.gmra.mxu0 %v963_v48  ;;  %606 = vmatmul.bf16.gmra.mxu2 %v995_v49 }
  0x4d   : > { %635 = vmatmul.bf16.gmra.mxu1 %v967_v50  ;;  %655 = vmatmul.bf16.gmra.mxu3 %v999_v51 }
  0x5c   : > { %591 = vmatmul.bf16.gmra.mxu0 %v971_v60  ;;  %611 = vmatmul.bf16.gmra.mxu2 %v1003_v61 }
  0x5d   : > { %640 = vmatmul.bf16.gmra.mxu1 %v975_v62  ;;  %660 = vmatmul.bf16.gmra.mxu3 %v1007_v63 }
  0xa9   : > { %v577_v0 = vpop.f32.mrf.mxu0 }
  0xaa   : > { %v626_v1 = vpop.f32.mrf.mxu1 }
  0xab   : > { %v627_v2 = vadd.f32 %v626_v1, %v577_v0 }
  0xad   : > { %v721_v6 = vmul.f32 %v1357_v3, %v627_v2 }
  0xaf   : > { %v597_v4 = vpop.f32.mrf.mxu2  ;;  %v741_v12 = vadd.f32 %v1363_v7, %v721_v6 }
  0xb0   : > { %v646_v5 = vpop.f32.mrf.mxu3 }
  0xb1   : > { %v579_v8 = vpop.f32.mrf.mxu0  ;;  %v647_v10 = vadd.f32 %v646_v5, %v597_v4  ;;  %v757_v18 = vmax.f32 %v741_v12, 0.0 }
  0xb2   : > { %v628_v9 = vpop.f32.mrf.mxu1 }
  0xb3   : > { %v629_v11 = vadd.f32 %v628_v9, %v579_v8  ;;  %v729_v14 = vmul.f32 %v1357_v3, %v647_v10 }
  0xb5   : > { %v722_v13 = vmul.f32 %v1357_v3, %v629_v11  ;;  %v749_v23 = vadd.f32 %v1363_v7, %v729_v14 }
  0xb7   : > { %v742_v15 = vadd.f32 %v1363_v7, %v722_v13  ;;  %v599_v16 = vpop.f32.mrf.mxu2  ;;  %v765_v28 = vmax.f32 %v749_v23, 0.0 }
  0xb8   : > { %v648_v17 = vpop.f32.mrf.mxu3 }
  0xb9   : > { %v758_v19 = vmax.f32 %v742_v15, 0.0  ;;  %v649_v20 = vadd.f32 %v648_v17, %v599_v16  ;;  %v582_v21 = vpop.f32.mrf.mxu0 }
  0xba   : > { %v631_v22 = vpop.f32.mrf.mxu1 }
  0xbb   : > { %v1110_v24 = vpack.c.bf16 %v758_v19, %v757_v18  ;;  %v730_v25 = vmul.f32 %v1357_v3, %v649_v20  ;;  %v632_v27 = vadd.f32 %v631_v22, %v582_v21 }
  0xbd   : > { %1111 = vst [vmem:[%s1373_s15] sm:$0xff] %v1110_v24   ;;  %v750_v26 = vadd.f32 %v1363_v7, %v730_v25  ;;  %v723_v33 = vmul.f32 %v1357_v3, %v632_v27 }
  0xbf   : > { %v766_v29 = vmax.f32 %v750_v26, 0.0  ;;  %v602_v30 = vpop.f32.mrf.mxu2  ;;  %v743_v38 = vadd.f32 %v1363_v7, %v723_v33 }
  0xc0   : > { %v651_v31 = vpop.f32.mrf.mxu3 }
  0xc1   : > { %v1130_v32 = vpack.c.bf16 %v766_v29, %v765_v28  ;;  %v584_v34 = vpop.f32.mrf.mxu0  ;;  %v652_v36 = vadd.f32 %v651_v31, %v602_v30  ;;  %v759_v44 = vmax.f32 %v743_v38, 0.0 }
  0xc2   : > { %v633_v35 = vpop.f32.mrf.mxu1 }
  0xc3   : > { %1150 = vst [vmem:[%s1373_s15 + $0x20] sm:$0xff] %v1130_v32   ;;  %v634_v37 = vadd.f32 %v633_v35, %v584_v34  ;;  %v731_v40 = vmul.f32 %v1357_v3, %v652_v36 }
  0xc5   : > { %v724_v39 = vmul.f32 %v1357_v3, %v634_v37  ;;  %v751_v49 = vadd.f32 %v1363_v7, %v731_v40 }
  0xc7   : > { %v744_v41 = vadd.f32 %v1363_v7, %v724_v39  ;;  %v604_v42 = vpop.f32.mrf.mxu2  ;;  %v767_v54 = vmax.f32 %v751_v49, 0.0 }
  0xc8   : > { %v653_v43 = vpop.f32.mrf.mxu3 }
  0xc9   : > { %v760_v45 = vmax.f32 %v744_v41, 0.0  ;;  %v654_v46 = vadd.f32 %v653_v43, %v604_v42  ;;  %v587_v47 = vpop.f32.mrf.mxu0 }
  0xca   : > { %v636_v48 = vpop.f32.mrf.mxu1 }
  0xcb   : > { %v1115_v50 = vpack.c.bf16 %v760_v45, %v759_v44  ;;  %v732_v51 = vmul.f32 %v1357_v3, %v654_v46  ;;  %v637_v53 = vadd.f32 %v636_v48, %v587_v47 }
  0xcd   : > { %1147 = vst [vmem:[%s1373_s15 + $0x8] sm:$0xff] %v1115_v50   ;;  %v752_v52 = vadd.f32 %v1363_v7, %v732_v51  ;;  %v725_v59 = vmul.f32 %v1357_v3, %v637_v53 }
  0xcf   : > { %v768_v55 = vmax.f32 %v752_v52, 0.0  ;;  %v607_v56 = vpop.f32.mrf.mxu2  ;;  %v745_v0 = vadd.f32 %v1363_v7, %v725_v59 }
  0xd0   : > { %v656_v57 = vpop.f32.mrf.mxu3 }
  0xd1   : > { %v1135_v58 = vpack.c.bf16 %v768_v55, %v767_v54  ;;  %v589_v60 = vpop.f32.mrf.mxu0  ;;  %v657_v62 = vadd.f32 %v656_v57, %v607_v56  ;;  %v761_v8 = vmax.f32 %v745_v0, 0.0 }
  0xd2   : > { %v638_v61 = vpop.f32.mrf.mxu1 }
  0xd3   : > { %1151 = vst [vmem:[%s1373_s15 + $0x28] sm:$0xff] %v1135_v58   ;;  %v639_v63 = vadd.f32 %v638_v61, %v589_v60  ;;  %v733_v2 = vmul.f32 %v1357_v3, %v657_v62 }
  0xd5   : > { %v726_v1 = vmul.f32 %v1357_v3, %v639_v63  ;;  %v753_v13 = vadd.f32 %v1363_v7, %v733_v2 }
  0xd7   : > { %v746_v4 = vadd.f32 %v1363_v7, %v726_v1  ;;  %v609_v5 = vpop.f32.mrf.mxu2  ;;  %v769_v18 = vmax.f32 %v753_v13, 0.0 }
  0xd8   : > { %v658_v6 = vpop.f32.mrf.mxu3 }
  0xd9   : > { %v762_v9 = vmax.f32 %v746_v4, 0.0  ;;  %v659_v10 = vadd.f32 %v658_v6, %v609_v5  ;;  %v592_v11 = vpop.f32.mrf.mxu0 }
  0xda   : > { %v641_v12 = vpop.f32.mrf.mxu1 }
  0xdb   : > { %v1120_v14 = vpack.c.bf16 %v762_v9, %v761_v8  ;;  %v734_v15 = vmul.f32 %v1357_v3, %v659_v10  ;;  %v642_v17 = vadd.f32 %v641_v12, %v592_v11 }
  0xdd   : > { %1148 = vst [vmem:[%s1373_s15 + $0x10] sm:$0xff] %v1120_v14   ;;  %v754_v16 = vadd.f32 %v1363_v7, %v734_v15  ;;  %v727_v23 = vmul.f32 %v1357_v3, %v642_v17 }
  0xdf   : > { %v770_v19 = vmax.f32 %v754_v16, 0.0  ;;  %v612_v20 = vpop.f32.mrf.mxu2  ;;  %v747_v28 = vadd.f32 %v1363_v7, %v727_v23 }
  0xe0   : > { %v661_v21 = vpop.f32.mrf.mxu3 }
  0xe1   : > { %v1140_v22 = vpack.c.bf16 %v770_v19, %v769_v18  ;;  %v594_v24 = vpop.f32.mrf.mxu0  ;;  %v662_v26 = vadd.f32 %v661_v21, %v612_v20  ;;  %v763_v34 = vmax.f32 %v747_v28, 0.0 }
  0xe2   : > { %v643_v25 = vpop.f32.mrf.mxu1 }
  0xe3   : > { %1152 = vst [vmem:[%s1373_s15 + $0x30] sm:$0xff] %v1140_v22   ;;  %v644_v27 = vadd.f32 %v643_v25, %v594_v24  ;;  %v735_v30 = vmul.f32 %v1357_v3, %v662_v26 }
  0xe5   : > { %v728_v29 = vmul.f32 %v1357_v3, %v644_v27  ;;  %v755_v37 = vadd.f32 %v1363_v7, %v735_v30 }
  0xe7   : > { %v748_v31 = vadd.f32 %v1363_v7, %v728_v29  ;;  %v614_v32 = vpop.f32.mrf.mxu2  ;;  %v771_v41 = vmax.f32 %v755_v37, 0.0 }
  0xe8   : > { %v663_v33 = vpop.f32.mrf.mxu3 }
  0xe9   : > { %v764_v35 = vmax.f32 %v748_v31, 0.0  ;;  %v664_v36 = vadd.f32 %v663_v33, %v614_v32 }
  0xeb   : > { %v1125_v38 = vpack.c.bf16 %v764_v35, %v763_v34  ;;  %v736_v39 = vmul.f32 %v1357_v3, %v664_v36 }
  0xed   : > { %1149 = vst [vmem:[%s1373_s15 + $0x18] sm:$0xff] %v1125_v38   ;;  %v756_v40 = vadd.f32 %v1363_v7, %v736_v39 }
  0xef   : > { %v772_v42 = vmax.f32 %v756_v40, 0.0 }
  0xf1   : > { %v1145_v43 = vpack.c.bf16 %v772_v42, %v771_v41 }
  0xf3   : > { %1153 = vst [vmem:[%s1373_s15 + $0x38] sm:$0xff] %v1145_v43  }
  0xf4 PF: > { %s14_s17 = sadd.s32 1, %s1218_s17   ;;  %s1424_s15 = smov %s1214_s16 }
  0xf5   : > { %p11_p5 = scmp.ge.s32.totalorder %s14_s17, 6   ;;  %s1425_s16 = smov %s1427_s18 }
  0xf7   :  { %13 = sbr.rel (!%p11_p5) target bundleno = 2 (0x2), region = 83 }

// kernel: _lambda_.23
= control target key start
LH: loop header
LB: loop body
LE: loop exit
PB: predicated region body
PF: predicated region fallthrough
CT: control target
= control target key end

     0   :  { %s1116_s0 = inlined_call_operand.vmem [shape: bf16[9,128,128], index: 0, kind: input, shape index: {}]   ;;  %s1117_s1 = inlined_call_operand.vmem [shape: bf16[128,128], index: 1, kind: output, shape index: {}]  }
   0x1   :  { %v461_v0 = vld [vmem:[%s1116_s0] sm:$0xff]   ;;  %v788_v16 = vld [vmem:[%s1116_s0 + $0x8] sm:$0xff]   ;;  %v789_v56 = vld [vmem:[%s1116_s0 + $0x10] sm:$0xff]  }
   0x2   :  { %v795_v1 = vld [vmem:[%s1116_s0 + $0x40] sm:$0xff]   ;;  %v462_v3 = vunpack.c.l.bf16 %v461_v0  ;;  %v463_v4 = vunpack.c.h.bf16 %v461_v0  ;;  %v796_v17 = vld [vmem:[%s1116_s0 + $0x48] sm:$0xff]   ;;  %v466_v28 = vunpack.c.l.bf16 %v788_v16  ;;  %v467_v29 = vunpack.c.h.bf16 %v788_v16  ;;  %v797_v61 = vld [vmem:[%s1116_s0 + $0x50] sm:$0xff]  }
   0x3   :  { %v803_v2 = vld [vmem:[%s1116_s0 + $0x80] sm:$0xff]   ;;  %v494_v5 = vunpack.c.l.bf16 %v795_v1  ;;  %v495_v6 = vunpack.c.h.bf16 %v795_v1  ;;  %v804_v26 = vld [vmem:[%s1116_s0 + $0x88] sm:$0xff]   ;;  %v498_v30 = vunpack.c.l.bf16 %v796_v17  ;;  %v499_v31 = vunpack.c.h.bf16 %v796_v17 }
   0x4   :  { %v811_v7 = vld [vmem:[%s1116_s0 + $0xc0] sm:$0xff]   ;;  %v526_v8 = vunpack.c.l.bf16 %v803_v2  ;;  %v527_v9 = vunpack.c.h.bf16 %v803_v2  ;;  %v812_v36 = vld [vmem:[%s1116_s0 + $0xc8] sm:$0xff]   ;;  %v530_v39 = vunpack.c.l.bf16 %v804_v26  ;;  %v531_v40 = vunpack.c.h.bf16 %v804_v26 }
   0x5   :  { %v819_v10 = vld [vmem:[%s1116_s0 + $0x100] sm:$0xff]   ;;  %v558_v12 = vunpack.c.l.bf16 %v811_v7  ;;  %v559_v13 = vunpack.c.h.bf16 %v811_v7  ;;  %v296_v14 = vmax.f32 %v462_v3, %v494_v5  ;;  %v304_v15 = vmax.f32 %v463_v4, %v495_v6  ;;  %v820_v41 = vld [vmem:[%s1116_s0 + $0x108] sm:$0xff]   ;;  %v805_v7 = vld [vmem:[%s1116_s0 + $0x90] sm:$0xff]  }
   0x6   :  { %v827_v11 = vld [vmem:[%s1116_s0 + $0x140] sm:$0xff]   ;;  %v590_v18 = vunpack.c.l.bf16 %v819_v10  ;;  %v591_v19 = vunpack.c.h.bf16 %v819_v10  ;;  %v828_v46 = vld [vmem:[%s1116_s0 + $0x148] sm:$0xff]   ;;  %v562_v47 = vunpack.c.l.bf16 %v812_v36  ;;  %v563_v48 = vunpack.c.h.bf16 %v812_v36 }
   0x7   :  { %v835_v20 = vld [vmem:[%s1116_s0 + $0x180] sm:$0xff]   ;;  %v622_v21 = vunpack.c.l.bf16 %v827_v11  ;;  %v623_v22 = vunpack.c.h.bf16 %v827_v11  ;;  %v297_v24 = vmax.f32 %v296_v14, %v526_v8  ;;  %v305_v25 = vmax.f32 %v304_v15, %v527_v9  ;;  %v836_v49 = vld [vmem:[%s1116_s0 + $0x188] sm:$0xff]  }
   0x8   :  { %v843_v23 = vld [vmem:[%s1116_s0 + $0x1c0] sm:$0xff]   ;;  %v654_v32 = vunpack.c.l.bf16 %v835_v20  ;;  %v655_v33 = vunpack.c.h.bf16 %v835_v20  ;;  %v312_v50 = vmax.f32 %v466_v28, %v498_v30  ;;  %v320_v51 = vmax.f32 %v467_v29, %v499_v31  ;;  %v844_v2 = vld [vmem:[%s1116_s0 + $0x1c8] sm:$0xff]   ;;  %v837_v30 = vld [vmem:[%s1116_s0 + $0x190] sm:$0xff]  }
   0x9   :  { %v851_v27 = vld [vmem:[%s1116_s0 + $0x200] sm:$0xff]   ;;  %v298_v34 = vmax.f32 %v297_v24, %v558_v12  ;;  %v306_v35 = vmax.f32 %v305_v25, %v559_v13  ;;  %v686_v37 = vunpack.c.l.bf16 %v843_v23  ;;  %v687_v38 = vunpack.c.h.bf16 %v843_v23  ;;  %v852_v10 = vld [vmem:[%s1116_s0 + $0x208] sm:$0xff]   ;;  %v813_v13 = vld [vmem:[%s1116_s0 + $0xd0] sm:$0xff]  }
   0xa   :  { %v718_v42 = vunpack.c.l.bf16 %v851_v27  ;;  %v719_v43 = vunpack.c.h.bf16 %v851_v27  ;;  %v594_v54 = vunpack.c.l.bf16 %v820_v41  ;;  %v595_v55 = vunpack.c.h.bf16 %v820_v41  ;;  %v829_v27 = vld [vmem:[%s1116_s0 + $0x150] sm:$0xff]  }
   0xb   :  { %v299_v44 = vmax.f32 %v298_v34, %v590_v18  ;;  %v307_v45 = vmax.f32 %v306_v35, %v591_v19  ;;  %v626_v57 = vunpack.c.l.bf16 %v828_v46  ;;  %v627_v58 = vunpack.c.h.bf16 %v828_v46 }
   0xc   :  { %v313_v59 = vmax.f32 %v312_v50, %v530_v39  ;;  %v321_v60 = vmax.f32 %v320_v51, %v531_v40  ;;  %v658_v0 = vunpack.c.l.bf16 %v836_v49  ;;  %v659_v1 = vunpack.c.h.bf16 %v836_v49 }
   0xd   :  { %v300_v52 = vmax.f32 %v299_v44, %v622_v21  ;;  %v308_v53 = vmax.f32 %v307_v45, %v623_v22  ;;  %v470_v5 = vunpack.c.l.bf16 %v789_v56  ;;  %v471_v6 = vunpack.c.h.bf16 %v789_v56  ;;  %v821_v22 = vld [vmem:[%s1116_s0 + $0x110] sm:$0xff]  }
   0xe   :  { %v314_v3 = vmax.f32 %v313_v59, %v562_v47  ;;  %v322_v4 = vmax.f32 %v321_v60, %v563_v48  ;;  %v502_v11 = vunpack.c.l.bf16 %v797_v61  ;;  %v503_v12 = vunpack.c.h.bf16 %v797_v61  ;;  %v845_v47 = vld [vmem:[%s1116_s0 + $0x1d0] sm:$0xff]  }
   0xf   :  { %v301_v62 = vmax.f32 %v300_v52, %v654_v32  ;;  %v309_v63 = vmax.f32 %v308_v53, %v655_v33  ;;  %v690_v14 = vunpack.c.l.bf16 %v844_v2  ;;  %v691_v15 = vunpack.c.h.bf16 %v844_v2  ;;  %v806_v52 = vld [vmem:[%s1116_s0 + $0x98] sm:$0xff]  }
  0x10   :  { %v315_v16 = vmax.f32 %v314_v3, %v594_v54  ;;  %v323_v17 = vmax.f32 %v322_v4, %v595_v55  ;;  %v534_v20 = vunpack.c.l.bf16 %v805_v7  ;;  %v535_v21 = vunpack.c.h.bf16 %v805_v7  ;;  %v853_v55 = vld [vmem:[%s1116_s0 + $0x210] sm:$0xff]   ;;  %v822_v3 = vld [vmem:[%s1116_s0 + $0x118] sm:$0xff]  }
  0x11   :  { %v302_v8 = vmax.f32 %v301_v62, %v686_v37  ;;  %v310_v9 = vmax.f32 %v309_v63, %v687_v38  ;;  %v722_v23 = vunpack.c.l.bf16 %v852_v10  ;;  %v566_v26 = vunpack.c.l.bf16 %v813_v13  ;;  %v790_v37 = vld [vmem:[%s1116_s0 + $0x18] sm:$0xff]  }
  0x12   :  { %v316_v24 = vmax.f32 %v315_v16, %v626_v57  ;;  %v324_v25 = vmax.f32 %v323_v17, %v627_v58  ;;  %v567_v29 = vunpack.c.h.bf16 %v813_v13  ;;  %v328_v31 = vmax.f32 %v470_v5, %v502_v11  ;;  %v814_v62 = vld [vmem:[%s1116_s0 + $0xd8] sm:$0xff]  }
  0x13   :  { %v303_v18 = vmax.f32 %v302_v8, %v718_v42  ;;  %v311_v19 = vmax.f32 %v310_v9, %v719_v43  ;;  %v336_v32 = vmax.f32 %v471_v6, %v503_v12  ;;  %v723_v33 = vunpack.c.h.bf16 %v852_v10  ;;  %v798_v42 = vld [vmem:[%s1116_s0 + $0x58] sm:$0xff]  }
  0x14   :  { %v317_v34 = vmax.f32 %v316_v24, %v658_v0  ;;  %v325_v35 = vmax.f32 %v324_v25, %v659_v1  ;;  %v598_v36 = vunpack.c.l.bf16 %v821_v22  ;;  %v599_v38 = vunpack.c.h.bf16 %v821_v22  ;;  %v830_v8 = vld [vmem:[%s1116_s0 + $0x158] sm:$0xff]  }
  0x15   :  { %v751_v28 = vpack.c.bf16 %v311_v19, %v303_v18  ;;  %v630_v39 = vunpack.c.l.bf16 %v829_v27  ;;  %v329_v40 = vmax.f32 %v328_v31, %v534_v20  ;;  %v337_v41 = vmax.f32 %v336_v32, %v535_v21  ;;  %v838_v11 = vld [vmem:[%s1116_s0 + $0x198] sm:$0xff]   ;;  %v791_v18 = vld [vmem:[%s1116_s0 + $0x20] sm:$0xff]  }
  0x16   :  { %v318_v43 = vmax.f32 %v317_v34, %v690_v14  ;;  %v326_v44 = vmax.f32 %v325_v35, %v691_v15  ;;  %v631_v45 = vunpack.c.h.bf16 %v829_v27  ;;  %v662_v46 = vunpack.c.l.bf16 %v837_v30  ;;  %v799_v19 = vld [vmem:[%s1116_s0 + $0x60] sm:$0xff]  }
  0x17   :  { %752 = vst [vmem:[%s1117_s1] sm:$0xff] %v751_v28   ;;  %v330_v48 = vmax.f32 %v329_v40, %v566_v26  ;;  %v338_v49 = vmax.f32 %v337_v41, %v567_v29  ;;  %v474_v50 = vunpack.c.l.bf16 %v790_v37  ;;  %v475_v51 = vunpack.c.h.bf16 %v790_v37  ;;  %v846_v28 = vld [vmem:[%s1116_s0 + $0x1d8] sm:$0xff]   ;;  %v807_v29 = vld [vmem:[%s1116_s0 + $0xa0] sm:$0xff]  }
  0x18   :  { %v319_v53 = vmax.f32 %v318_v43, %v722_v23  ;;  %v327_v54 = vmax.f32 %v326_v44, %v723_v33  ;;  %v506_v56 = vunpack.c.l.bf16 %v798_v42  ;;  %v507_v57 = vunpack.c.h.bf16 %v798_v42  ;;  %v823_v44 = vld [vmem:[%s1116_s0 + $0x120] sm:$0xff]  }
  0x19   :  { %v663_v58 = vunpack.c.h.bf16 %v837_v30  ;;  %v694_v59 = vunpack.c.l.bf16 %v845_v47  ;;  %v331_v60 = vmax.f32 %v330_v48, %v598_v36  ;;  %v339_v61 = vmax.f32 %v338_v49, %v599_v38  ;;  %v854_v30 = vld [vmem:[%s1116_s0 + $0x218] sm:$0xff]  }
  0x1a   :  { %v756_v63 = vpack.c.bf16 %v327_v54, %v319_v53  ;;  %v695_v0 = vunpack.c.h.bf16 %v845_v47  ;;  %v538_v1 = vunpack.c.l.bf16 %v806_v52  ;;  %v539_v2 = vunpack.c.h.bf16 %v806_v52  ;;  %v831_v52 = vld [vmem:[%s1116_s0 + $0x160] sm:$0xff]  }
  0x1b   :  { %v726_v4 = vunpack.c.l.bf16 %v853_v55  ;;  %v727_v5 = vunpack.c.h.bf16 %v853_v55  ;;  %v332_v6 = vmax.f32 %v331_v60, %v630_v39  ;;  %v340_v7 = vmax.f32 %v339_v61, %v631_v45  ;;  %v815_v39 = vld [vmem:[%s1116_s0 + $0xe0] sm:$0xff]  }
  0x1c   :  { %859 = vst [vmem:[%s1117_s1 + $0x8] sm:$0xff] %v756_v63   ;;  %v570_v9 = vunpack.c.l.bf16 %v814_v62  ;;  %v571_v10 = vunpack.c.h.bf16 %v814_v62  ;;  %v344_v12 = vmax.f32 %v474_v50, %v506_v56  ;;  %v352_v13 = vmax.f32 %v475_v51, %v507_v57  ;;  %v839_v53 = vld [vmem:[%s1116_s0 + $0x1a0] sm:$0xff]  }
  0x1d   :  { %v333_v14 = vmax.f32 %v332_v6, %v662_v46  ;;  %v341_v15 = vmax.f32 %v340_v7, %v663_v58  ;;  %v602_v16 = vunpack.c.l.bf16 %v822_v3  ;;  %v603_v17 = vunpack.c.h.bf16 %v822_v3  ;;  %v847_v7 = vld [vmem:[%s1116_s0 + $0x1e0] sm:$0xff]  }
  0x1e   :  { %v634_v20 = vunpack.c.l.bf16 %v830_v8  ;;  %v635_v21 = vunpack.c.h.bf16 %v830_v8  ;;  %v345_v22 = vmax.f32 %v344_v12, %v538_v1  ;;  %v353_v23 = vmax.f32 %v352_v13, %v539_v2 }
  0x1f   :  { %v334_v24 = vmax.f32 %v333_v14, %v694_v59  ;;  %v342_v25 = vmax.f32 %v341_v15, %v695_v0  ;;  %v666_v26 = vunpack.c.l.bf16 %v838_v11  ;;  %v667_v27 = vunpack.c.h.bf16 %v838_v11  ;;  %v792_v59 = vld [vmem:[%s1116_s0 + $0x28] sm:$0xff]  }
  0x20   :  { %v346_v31 = vmax.f32 %v345_v22, %v570_v9  ;;  %v354_v32 = vmax.f32 %v353_v23, %v571_v10  ;;  %v478_v33 = vunpack.c.l.bf16 %v791_v18  ;;  %v510_v34 = vunpack.c.l.bf16 %v799_v19  ;;  %v800_v0 = vld [vmem:[%s1116_s0 + $0x68] sm:$0xff]  }
  0x21   :  { %v335_v35 = vmax.f32 %v334_v24, %v726_v4  ;;  %v343_v36 = vmax.f32 %v342_v25, %v727_v5  ;;  %v479_v37 = vunpack.c.h.bf16 %v791_v18  ;;  %v511_v38 = vunpack.c.h.bf16 %v799_v19  ;;  %v808_v10 = vld [vmem:[%s1116_s0 + $0xa8] sm:$0xff]  }
  0x22   :  { %v698_v40 = vunpack.c.l.bf16 %v846_v28  ;;  %v347_v41 = vmax.f32 %v346_v31, %v602_v16  ;;  %v355_v42 = vmax.f32 %v354_v32, %v603_v17  ;;  %v542_v43 = vunpack.c.l.bf16 %v807_v29  ;;  %v816_v15 = vld [vmem:[%s1116_s0 + $0xe8] sm:$0xff]  }
  0x23   :  { %v761_v45 = vpack.c.bf16 %v343_v36, %v335_v35  ;;  %v699_v46 = vunpack.c.h.bf16 %v846_v28  ;;  %v730_v47 = vunpack.c.l.bf16 %v854_v30  ;;  %v543_v48 = vunpack.c.h.bf16 %v807_v29  ;;  %v824_v25 = vld [vmem:[%s1116_s0 + $0x128] sm:$0xff]  }
  0x24   :  { %v348_v49 = vmax.f32 %v347_v41, %v634_v20  ;;  %v356_v50 = vmax.f32 %v355_v42, %v635_v21  ;;  %v574_v51 = vunpack.c.l.bf16 %v815_v39  ;;  %v360_v54 = vmax.f32 %v478_v33, %v510_v34  ;;  %v855_v21 = vld [vmem:[%s1116_s0 + $0x220] sm:$0xff]   ;;  %v832_v32 = vld [vmem:[%s1116_s0 + $0x168] sm:$0xff]  }
  0x25   :  { %860 = vst [vmem:[%s1117_s1 + $0x10] sm:$0xff] %v761_v45   ;;  %v731_v55 = vunpack.c.h.bf16 %v854_v30  ;;  %v575_v56 = vunpack.c.h.bf16 %v815_v39  ;;  %v606_v57 = vunpack.c.l.bf16 %v823_v44  ;;  %v368_v58 = vmax.f32 %v479_v37, %v511_v38  ;;  %v840_v33 = vld [vmem:[%s1116_s0 + $0x1a8] sm:$0xff]   ;;  %v801_v45 = vld [vmem:[%s1116_s0 + $0x70] sm:$0xff]  }
  0x26   :  { %v349_v60 = vmax.f32 %v348_v49, %v666_v26  ;;  %v357_v61 = vmax.f32 %v356_v50, %v667_v27  ;;  %v607_v62 = vunpack.c.h.bf16 %v823_v44  ;;  %v361_v63 = vmax.f32 %v360_v54, %v542_v43 }
  0x27   :  { %v638_v1 = vunpack.c.l.bf16 %v831_v52  ;;  %v639_v2 = vunpack.c.h.bf16 %v831_v52  ;;  %v670_v3 = vunpack.c.l.bf16 %v839_v53  ;;  %v369_v4 = vmax.f32 %v368_v58, %v543_v48 }
  0x28   :  { %v350_v5 = vmax.f32 %v349_v60, %v698_v40  ;;  %v358_v6 = vmax.f32 %v357_v61, %v699_v46  ;;  %v362_v8 = vmax.f32 %v361_v63, %v574_v51  ;;  %v482_v9 = vunpack.c.l.bf16 %v792_v59  ;;  %v793_v40 = vld [vmem:[%s1116_s0 + $0x30] sm:$0xff]   ;;  %v848_v51 = vld [vmem:[%s1116_s0 + $0x1e8] sm:$0xff]  }
  0x29   :  { %v370_v11 = vmax.f32 %v369_v4, %v575_v56  ;;  %v483_v12 = vunpack.c.h.bf16 %v792_v59  ;;  %v514_v13 = vunpack.c.l.bf16 %v800_v0  ;;  %v515_v14 = vunpack.c.h.bf16 %v800_v0  ;;  %v817_v0 = vld [vmem:[%s1116_s0 + $0xf0] sm:$0xff]  }
  0x2a   :  { %v351_v16 = vmax.f32 %v350_v5, %v730_v47  ;;  %v359_v17 = vmax.f32 %v358_v6, %v731_v55  ;;  %v671_v18 = vunpack.c.h.bf16 %v839_v53  ;;  %v363_v19 = vmax.f32 %v362_v8, %v606_v57  ;;  %v809_v55 = vld [vmem:[%s1116_s0 + $0xb0] sm:$0xff]  }
  0x2b   :  { %v702_v20 = vunpack.c.l.bf16 %v847_v7  ;;  %v371_v22 = vmax.f32 %v370_v11, %v607_v62  ;;  %v546_v23 = vunpack.c.l.bf16 %v808_v10  ;;  %v547_v24 = vunpack.c.h.bf16 %v808_v10 }
  0x2c   :  { %v766_v26 = vpack.c.bf16 %v359_v17, %v351_v16  ;;  %v703_v27 = vunpack.c.h.bf16 %v847_v7  ;;  %v364_v28 = vmax.f32 %v363_v19, %v638_v1  ;;  %v578_v29 = vunpack.c.l.bf16 %v816_v15  ;;  %v794_v19 = vld [vmem:[%s1116_s0 + $0x38] sm:$0xff]  }
  0x2d   :  { %v372_v30 = vmax.f32 %v371_v22, %v639_v2  ;;  %v579_v31 = vunpack.c.h.bf16 %v816_v15  ;;  %v376_v34 = vmax.f32 %v482_v9, %v514_v13  ;;  %v384_v35 = vmax.f32 %v483_v12, %v515_v14  ;;  %v856_v2 = vld [vmem:[%s1116_s0 + $0x228] sm:$0xff]   ;;  %v825_v9 = vld [vmem:[%s1116_s0 + $0x130] sm:$0xff]  }
  0x2e   :  { %861 = vst [vmem:[%s1117_s1 + $0x18] sm:$0xff] %v766_v26   ;;  %v734_v36 = vunpack.c.l.bf16 %v855_v21  ;;  %v735_v37 = vunpack.c.h.bf16 %v855_v21  ;;  %v365_v38 = vmax.f32 %v364_v28, %v670_v3  ;;  %v610_v39 = vunpack.c.l.bf16 %v824_v25  ;;  %v833_v12 = vld [vmem:[%s1116_s0 + $0x170] sm:$0xff]  }
  0x2f   :  { %v373_v41 = vmax.f32 %v372_v30, %v671_v18  ;;  %v611_v42 = vunpack.c.h.bf16 %v824_v25  ;;  %v377_v43 = vmax.f32 %v376_v34, %v546_v23  ;;  %v385_v44 = vmax.f32 %v384_v35, %v547_v24  ;;  %v802_v24 = vld [vmem:[%s1116_s0 + $0x78] sm:$0xff]  }
  0x30   :  { %v366_v46 = vmax.f32 %v365_v38, %v702_v20  ;;  %v642_v47 = vunpack.c.l.bf16 %v832_v32  ;;  %v643_v48 = vunpack.c.h.bf16 %v832_v32  ;;  %v674_v49 = vunpack.c.l.bf16 %v840_v33  ;;  %v810_v34 = vld [vmem:[%s1116_s0 + $0xb8] sm:$0xff]  }
  0x31   :  { %v374_v50 = vmax.f32 %v373_v41, %v703_v27  ;;  %v378_v52 = vmax.f32 %v377_v43, %v578_v29  ;;  %v386_v53 = vmax.f32 %v385_v44, %v579_v31  ;;  %v486_v54 = vunpack.c.l.bf16 %v793_v40  ;;  %v841_v29 = vld [vmem:[%s1116_s0 + $0x1b0] sm:$0xff]   ;;  %v818_v44 = vld [vmem:[%s1116_s0 + $0xf8] sm:$0xff]  }
  0x32   :  { %v367_v56 = vmax.f32 %v366_v46, %v734_v36  ;;  %v487_v57 = vunpack.c.h.bf16 %v793_v40  ;;  %v518_v58 = vunpack.c.l.bf16 %v801_v45  ;;  %v519_v59 = vunpack.c.h.bf16 %v801_v45  ;;  %v857_v46 = vld [vmem:[%s1116_s0 + $0x230] sm:$0xff]  }
  0x33   :  { %v375_v60 = vmax.f32 %v374_v50, %v735_v37  ;;  %v675_v61 = vunpack.c.h.bf16 %v840_v33  ;;  %v379_v62 = vmax.f32 %v378_v52, %v610_v39  ;;  %v387_v63 = vmax.f32 %v386_v53, %v611_v42  ;;  %v849_v37 = vld [vmem:[%s1116_s0 + $0x1f0] sm:$0xff]   ;;  %v826_v53 = vld [vmem:[%s1116_s0 + $0x138] sm:$0xff]  }
  0x34   :  { %v706_v1 = vunpack.c.l.bf16 %v848_v51  ;;  %v550_v3 = vunpack.c.l.bf16 %v809_v55  ;;  %v551_v4 = vunpack.c.h.bf16 %v809_v55  ;;  %v707_v6 = vunpack.c.h.bf16 %v848_v51 }
  0x35   :  { %v771_v5 = vpack.c.bf16 %v375_v60, %v367_v56  ;;  %v380_v7 = vmax.f32 %v379_v62, %v642_v47  ;;  %v388_v8 = vmax.f32 %v387_v63, %v643_v48  ;;  %v582_v10 = vunpack.c.l.bf16 %v817_v0  ;;  %v834_v62 = vld [vmem:[%s1116_s0 + $0x178] sm:$0xff]  }
  0x36   :  { %v583_v11 = vunpack.c.h.bf16 %v817_v0  ;;  %v392_v13 = vmax.f32 %v486_v54, %v518_v58  ;;  %v400_v14 = vmax.f32 %v487_v57, %v519_v59  ;;  %v738_v15 = vunpack.c.l.bf16 %v856_v2 }
  0x37   :  { %862 = vst [vmem:[%s1117_s1 + $0x20] sm:$0xff] %v771_v5   ;;  %v739_v16 = vunpack.c.h.bf16 %v856_v2  ;;  %v381_v17 = vmax.f32 %v380_v7, %v674_v49  ;;  %v389_v18 = vmax.f32 %v388_v8, %v675_v61  ;;  %v614_v20 = vunpack.c.l.bf16 %v825_v9  ;;  %v842_v5 = vld [vmem:[%s1116_s0 + $0x1b8] sm:$0xff]  }
  0x38   :  { %v615_v21 = vunpack.c.h.bf16 %v825_v9  ;;  %v393_v22 = vmax.f32 %v392_v13, %v550_v3  ;;  %v401_v23 = vmax.f32 %v400_v14, %v551_v4  ;;  %v646_v27 = vunpack.c.l.bf16 %v833_v12 }
  0x39   :  { %v382_v25 = vmax.f32 %v381_v17, %v706_v1  ;;  %v390_v26 = vmax.f32 %v389_v18, %v707_v6  ;;  %v647_v28 = vunpack.c.h.bf16 %v833_v12  ;;  %v490_v32 = vunpack.c.l.bf16 %v794_v19  ;;  %v850_v12 = vld [vmem:[%s1116_s0 + $0x1f8] sm:$0xff]  }
  0x3a   :  { %v394_v30 = vmax.f32 %v393_v22, %v582_v10  ;;  %v402_v31 = vmax.f32 %v401_v23, %v583_v11  ;;  %v491_v33 = vunpack.c.h.bf16 %v794_v19  ;;  %v522_v38 = vunpack.c.l.bf16 %v802_v24  ;;  %v858_v18 = vld [vmem:[%s1116_s0 + $0x238] sm:$0xff]  }
  0x3b   :  { %v383_v35 = vmax.f32 %v382_v25, %v738_v15  ;;  %v391_v36 = vmax.f32 %v390_v26, %v739_v16  ;;  %v523_v39 = vunpack.c.h.bf16 %v802_v24  ;;  %v678_v40 = vunpack.c.l.bf16 %v841_v29 }
  0x3c   :  { %v679_v41 = vunpack.c.h.bf16 %v841_v29  ;;  %v395_v42 = vmax.f32 %v394_v30, %v614_v20  ;;  %v403_v43 = vmax.f32 %v402_v31, %v615_v21  ;;  %v554_v47 = vunpack.c.l.bf16 %v810_v34 }
  0x3d   :  { %v776_v45 = vpack.c.bf16 %v391_v36, %v383_v35  ;;  %v555_v48 = vunpack.c.h.bf16 %v810_v34  ;;  %v710_v49 = vunpack.c.l.bf16 %v849_v37  ;;  %v711_v50 = vunpack.c.h.bf16 %v849_v37 }
  0x3e   :  { %v396_v51 = vmax.f32 %v395_v42, %v646_v27  ;;  %v404_v52 = vmax.f32 %v403_v43, %v647_v28  ;;  %v586_v54 = vunpack.c.l.bf16 %v818_v44  ;;  %v587_v55 = vunpack.c.h.bf16 %v818_v44 }
  0x3f   :  { %863 = vst [vmem:[%s1117_s1 + $0x28] sm:$0xff] %v776_v45   ;;  %v408_v56 = vmax.f32 %v490_v32, %v522_v38  ;;  %v416_v57 = vmax.f32 %v491_v33, %v523_v39  ;;  %v742_v58 = vunpack.c.l.bf16 %v857_v46  ;;  %v743_v59 = vunpack.c.h.bf16 %v857_v46 }
  0x40   :  { %v397_v60 = vmax.f32 %v396_v51, %v678_v40  ;;  %v405_v61 = vmax.f32 %v404_v52, %v679_v41  ;;  %v618_v63 = vunpack.c.l.bf16 %v826_v53  ;;  %v619_v0 = vunpack.c.h.bf16 %v826_v53 }
  0x41   :  { %v409_v1 = vmax.f32 %v408_v56, %v554_v47  ;;  %v417_v2 = vmax.f32 %v416_v57, %v555_v48  ;;  %v650_v6 = vunpack.c.l.bf16 %v834_v62  ;;  %v651_v7 = vunpack.c.h.bf16 %v834_v62 }
  0x42   :  { %v398_v3 = vmax.f32 %v397_v60, %v710_v49  ;;  %v406_v4 = vmax.f32 %v405_v61, %v711_v50  ;;  %v682_v13 = vunpack.c.l.bf16 %v842_v5  ;;  %v683_v14 = vunpack.c.h.bf16 %v842_v5 }
  0x43   :  { %v410_v8 = vmax.f32 %v409_v1, %v586_v54  ;;  %v418_v9 = vmax.f32 %v417_v2, %v587_v55  ;;  %v714_v19 = vunpack.c.l.bf16 %v850_v12  ;;  %v715_v20 = vunpack.c.h.bf16 %v850_v12 }
  0x44   :  { %v399_v10 = vmax.f32 %v398_v3, %v742_v58  ;;  %v407_v11 = vmax.f32 %v406_v4, %v743_v59  ;;  %v746_v23 = vunpack.c.l.bf16 %v858_v18  ;;  %v747_v24 = vunpack.c.h.bf16 %v858_v18 }
  0x45   :  { %v411_v15 = vmax.f32 %v410_v8, %v618_v63  ;;  %v419_v16 = vmax.f32 %v418_v9, %v619_v0 }
  0x46   :  { %v781_v17 = vpack.c.bf16 %v407_v11, %v399_v10 }
  0x47   :  { %v412_v21 = vmax.f32 %v411_v15, %v650_v6  ;;  %v420_v22 = vmax.f32 %v419_v16, %v651_v7 }
  0x48   :  { %864 = vst [vmem:[%s1117_s1 + $0x30] sm:$0xff] %v781_v17  }
  0x49   :  { %v413_v25 = vmax.f32 %v412_v21, %v682_v13  ;;  %v421_v26 = vmax.f32 %v420_v22, %v683_v14 }
  0x4b   :  { %v414_v27 = vmax.f32 %v413_v25, %v714_v19  ;;  %v422_v28 = vmax.f32 %v421_v26, %v715_v20 }
  0x4d   :  { %v415_v29 = vmax.f32 %v414_v27, %v746_v23  ;;  %v423_v30 = vmax.f32 %v422_v28, %v747_v24 }
  0x4f   :  { %v786_v31 = vpack.c.bf16 %v423_v30, %v415_v29 }
  0x51   :  { %865 = vst [vmem:[%s1117_s1 + $0x38] sm:$0xff] %v786_v31  }

// kernel: _lambda_.31
= control target key start
LH: loop header
LB: loop body
LE: loop exit
PB: predicated region body
PF: predicated region fallthrough
CT: control target
= control target key end

     0   :  { %s309_s1 = inlined_call_operand.vmem [shape: bf16[128,128], index: 1, kind: input, shape index: {}]   ;;  %s310_s2 = inlined_call_operand.vmem [shape: f32[1,128], index: 2, kind: input, shape index: {}]   ;;  %s311_s3 = inlined_call_operand.vmem [shape: f32[1,128], index: 3, kind: input, shape index: {}]   ;;  %s312_s0 = inlined_call_operand.vmem [shape: bf16[32,128], index: 0, kind: input, shape index: {}]   ;;  %s313_s4 = inlined_call_operand.vmem [shape: bf16[32,128], index: 4, kind: output, shape index: {}]  }
   0x1   :  { %v220_v0 = vld [vmem:[%s309_s1 + $0x38] sm:$0xff]  ;;  %v219_v1 = vld [vmem:[%s309_s1 + $0x30] sm:$0xff]  ;;  %v218_v2 = vld [vmem:[%s309_s1 + $0x28] sm:$0xff] }
   0x2   :  { %109 = vmatpush.bf16.msra.mxu0 %v220_v0  ;;  %232 = vmatpush.bf16.msra.mxu1 %v220_v0  ;;  %v217_v3 = vld [vmem:[%s309_s1 + $0x20] sm:$0xff]  ;;  %v216_v4 = vld [vmem:[%s309_s1 + $0x18] sm:$0xff]  ;;  %v215_v5 = vld [vmem:[%s309_s1 + $0x10] sm:$0xff] }
   0x3   :  { %v214_v6 = vld [vmem:[%s309_s1 + $0x8] sm:$0xff]  ;;  %v213_v7 = vld [vmem:[%s309_s1] sm:$0xff] }
   0x4   :  { %v211_v8 = vld [vmem:[%s312_s0] sm:$0xff]  ;;  %v212_v9 = vld [vmem:[%s312_s0 + $0x8] sm:$0xff] }
   0x5   :  { %v240_v12 = vld [vmem:[%s310_s2] ss:$0 sm:$0xff] }
   0x6   :  { %110 = vmatpush.bf16.msra.mxu0 %v219_v1  ;;  %233 = vmatpush.bf16.msra.mxu1 %v219_v1  ;;  %v241_v14 = vld [vmem:[%s311_s3] ss:$0 sm:$0xff] }
   0xa   :  { %111 = vmatpush.bf16.msra.mxu0 %v218_v2  ;;  %234 = vmatpush.bf16.msra.mxu1 %v218_v2 }
   0xe   :  { %112 = vmatpush.bf16.msra.mxu0 %v217_v3  ;;  %235 = vmatpush.bf16.msra.mxu1 %v217_v3 }
  0x12   :  { %113 = vmatpush.bf16.msra.mxu0 %v216_v4  ;;  %236 = vmatpush.bf16.msra.mxu1 %v216_v4 }
  0x16   :  { %114 = vmatpush.bf16.msra.mxu0 %v215_v5  ;;  %237 = vmatpush.bf16.msra.mxu1 %v215_v5 }
  0x1a   :  { %115 = vmatpush.bf16.msra.mxu0 %v214_v6  ;;  %238 = vmatpush.bf16.msra.mxu1 %v214_v6 }
  0x1e   :  { %116 = vmatpush.bf16.msra.mxu0 %v213_v7  ;;  %239 = vmatpush.bf16.msra.mxu1 %v213_v7 }
  0x21   :  { %117 = vmatmul.bf16.vlgmr.msra.gmra.mxu0 %v211_v8  ;;  %122 = vmatmul.bf16.vlgmr.msra.gmra.mxu1 %v212_v9 }
  0x9e   :  { %v118_v10 = vpop.f32.mrf.mxu0  ;;  %v123_v11 = vpop.f32.mrf.mxu1 }
  0x9f   :  { %v147_v13 = vmul.f32 %v240_v12, %v118_v10  ;;  %v149_v15 = vmul.f32 %v240_v12, %v123_v11 }
  0xa1   :  { %v155_v20 = vadd.f32 %v241_v14, %v147_v13  ;;  %v157_v21 = vadd.f32 %v241_v14, %v149_v15 }
  0xa6   :  { %v120_v16 = vpop.f32.mrf.mxu0  ;;  %v125_v17 = vpop.f32.mrf.mxu1 }
  0xa7   :  { %v148_v18 = vmul.f32 %v240_v12, %v120_v16  ;;  %v150_v19 = vmul.f32 %v240_v12, %v125_v17 }
  0xa9   :  { %v156_v22 = vadd.f32 %v241_v14, %v148_v18  ;;  %v158_v23 = vadd.f32 %v241_v14, %v150_v19 }
  0xab   :  { %v224_v24 = vpack.c.bf16 %v156_v22, %v155_v20  ;;  %v229_v25 = vpack.c.bf16 %v158_v23, %v157_v21 }
  0xad   :  { %225 = vst [vmem:[%s313_s4] sm:$0xff] %v224_v24  }
  0xae   :  { %231 = vst [vmem:[%s313_s4 + $0x8] sm:$0xff] %v229_v25  }

// kernel: _lambda_.24
= control target key start
LH: loop header
LB: loop body
LE: loop exit
PB: predicated region body
PF: predicated region fallthrough
CT: control target
= control target key end

     0   :  { %s1977_s1 = inlined_call_operand.vmem [shape: bf16[640,128], index: 1, kind: input, shape index: {}]   ;;  %s1978_s0 = inlined_call_operand.vmem [shape: bf16[128,640], index: 0, kind: input, shape index: {}]   ;;  %s1979_s2 = inlined_call_operand.vmem [shape: f32[1,128], index: 2, kind: input, shape index: {}]   ;;  %s1980_s3 = inlined_call_operand.vmem [shape: f32[1,128], index: 3, kind: input, shape index: {}]   ;;  %s1981_s4 = inlined_call_operand.vmem [shape: bf16[128,128], index: 4, kind: output, shape index: {}]  }
   0x1   :  { %v1384_v0 = vld [vmem:[%s1977_s1 + $0x38] sm:$0xff]  ;;  %v1383_v1 = vld [vmem:[%s1977_s1 + $0x30] sm:$0xff]  ;;  %v1382_v2 = vld [vmem:[%s1977_s1 + $0x28] sm:$0xff] }
   0x2   :  { %1464 = vmatpush.bf16.msra.mxu1 %v1384_v0  ;;  %1465 = vmatpush.bf16.msra.mxu2 %v1384_v0  ;;  %v1381_v3 = vld [vmem:[%s1977_s1 + $0x20] sm:$0xff]  ;;  %v1380_v4 = vld [vmem:[%s1977_s1 + $0x18] sm:$0xff]  ;;  %v1379_v5 = vld [vmem:[%s1977_s1 + $0x10] sm:$0xff] }
   0x3   :  { %1466 = vmatpush.bf16.msra.mxu3 %v1384_v0  ;;  %629 = vmatpush.bf16.msra.mxu0 %v1384_v0  ;;  %v1378_v6 = vld [vmem:[%s1977_s1 + $0x8] sm:$0xff]  ;;  %v1377_v7 = vld [vmem:[%s1977_s1] sm:$0xff]  ;;  %v1059_v8 = vld [vmem:[%s1978_s0 + $0x50] sm:$0xf] }
   0x4   :  { %v1349_v9 = vld [vmem:[%s1978_s0 + $0x60] sm:$0xf0]  ;;  %v1099_v10 = vld [vmem:[%s1978_s0 + $0xa0] sm:$0xf]  ;;  %v1359_v11 = vld [vmem:[%s1978_s0 + $0xb0] sm:$0xf0] }
   0x5   :  { %v1139_v12 = vld [vmem:[%s1978_s0 + $0xf0] sm:$0xf]  ;;  %v1369_v13 = vld [vmem:[%s1978_s0 + $0x100] sm:$0xf0]  ;;  %v1019_v14 = vld [vmem:[%s1978_s0] sm:$0xf]  ;;  %v1060_v18 = vor.u32 %v1349_v9, %v1059_v8  ;;  %v1100_v19 = vor.u32 %v1359_v11, %v1099_v10 }
   0x6   :  { %1467 = vmatpush.bf16.msra.mxu1 %v1383_v1  ;;  %1468 = vmatpush.bf16.msra.mxu2 %v1383_v1  ;;  %v1339_v15 = vld [vmem:[%s1978_s0 + $0x10] sm:$0xf0]  ;;  %v1400_v16 = vld [vmem:[%s1977_s1 + $0xb8] sm:$0xff]  ;;  %v1140_v20 = vor.u32 %v1369_v13, %v1139_v12  ;;  %v1398_v28 = vld [vmem:[%s1977_s1 + $0xa8] sm:$0xff] }
   0x7   :  { %1469 = vmatpush.bf16.msra.mxu3 %v1383_v1  ;;  %630 = vmatpush.bf16.msra.mxu0 %v1383_v1  ;;  %v1392_v17 = vld [vmem:[%s1977_s1 + $0x78] sm:$0xff]  ;;  %v1020_v21 = vor.u32 %v1339_v15, %v1019_v14  ;;  %v1399_v24 = vld [vmem:[%s1977_s1 + $0xb0] sm:$0xff]  ;;  %v1390_v29 = vld [vmem:[%s1977_s1 + $0x68] sm:$0xff] }
   0x8   :  { %v1408_v22 = vld [vmem:[%s1977_s1 + $0xf8] sm:$0xff]  ;;  %v1391_v25 = vld [vmem:[%s1977_s1 + $0x70] sm:$0xff]  ;;  %v1406_v30 = vld [vmem:[%s1977_s1 + $0xe8] sm:$0xff] }
   0x9   :  { %v1416_v23 = vld [vmem:[%s1977_s1 + $0x138] sm:$0xff]  ;;  %v1407_v26 = vld [vmem:[%s1977_s1 + $0xf0] sm:$0xff]  ;;  %v1414_v31 = vld [vmem:[%s1977_s1 + $0x128] sm:$0xff] }
   0xa   :  { %1470 = vmatpush.bf16.msra.mxu1 %v1382_v2  ;;  %1471 = vmatpush.bf16.msra.mxu2 %v1382_v2  ;;  %v1415_v27 = vld [vmem:[%s1977_s1 + $0x130] sm:$0xff]  ;;  %v1397_v32 = vld [vmem:[%s1977_s1 + $0xa0] sm:$0xff]  ;;  %v1079_v36 = vld [vmem:[%s1978_s0 + $0x78] sm:$0xf] }
   0xb   :  { %1472 = vmatpush.bf16.msra.mxu3 %v1382_v2  ;;  %631 = vmatpush.bf16.msra.mxu0 %v1382_v2  ;;  %v1389_v33 = vld [vmem:[%s1977_s1 + $0x60] sm:$0xff]  ;;  %v1354_v37 = vld [vmem:[%s1978_s0 + $0x88] sm:$0xf0]  ;;  %v1119_v38 = vld [vmem:[%s1978_s0 + $0xc8] sm:$0xf] }
   0xc   :  { %v1405_v34 = vld [vmem:[%s1977_s1 + $0xe0] sm:$0xff]  ;;  %v1364_v39 = vld [vmem:[%s1978_s0 + $0xd8] sm:$0xf0]  ;;  %v1159_v40 = vld [vmem:[%s1978_s0 + $0x118] sm:$0xf]  ;;  %v1080_v46 = vor.u32 %v1354_v37, %v1079_v36 }
   0xd   :  { %v1413_v35 = vld [vmem:[%s1977_s1 + $0x120] sm:$0xff]  ;;  %v1374_v41 = vld [vmem:[%s1978_s0 + $0x128] sm:$0xf0]  ;;  %v1039_v42 = vld [vmem:[%s1978_s0 + $0x28] sm:$0xf]  ;;  %v1120_v47 = vor.u32 %v1364_v39, %v1119_v38 }
   0xe   :  { %1473 = vmatpush.bf16.msra.mxu1 %v1381_v3  ;;  %1474 = vmatpush.bf16.msra.mxu2 %v1381_v3  ;;  %v1344_v43 = vld [vmem:[%s1978_s0 + $0x38] sm:$0xf0]  ;;  %v1160_v48 = vor.u32 %v1374_v41, %v1159_v40  ;;  %v1395_v52 = vld [vmem:[%s1977_s1 + $0x90] sm:$0xff]  ;;  %v1394_v56 = vld [vmem:[%s1977_s1 + $0x88] sm:$0xff] }
   0xf   :  { %1475 = vmatpush.bf16.msra.mxu3 %v1381_v3  ;;  %632 = vmatpush.bf16.msra.mxu0 %v1381_v3  ;;  %v1396_v44 = vld [vmem:[%s1977_s1 + $0x98] sm:$0xff]  ;;  %v1040_v49 = vor.u32 %v1344_v43, %v1039_v42  ;;  %v1387_v53 = vld [vmem:[%s1977_s1 + $0x50] sm:$0xff]  ;;  %v1386_v57 = vld [vmem:[%s1977_s1 + $0x48] sm:$0xff] }
  0x10   :  { %v1388_v45 = vld [vmem:[%s1977_s1 + $0x58] sm:$0xff]  ;;  %v1403_v54 = vld [vmem:[%s1977_s1 + $0xd0] sm:$0xff]  ;;  %v1402_v58 = vld [vmem:[%s1977_s1 + $0xc8] sm:$0xff] }
  0x11   :  { %v1404_v50 = vld [vmem:[%s1977_s1 + $0xd8] sm:$0xff]  ;;  %v1411_v55 = vld [vmem:[%s1977_s1 + $0x110] sm:$0xff]  ;;  %v1410_v59 = vld [vmem:[%s1977_s1 + $0x108] sm:$0xff] }
  0x12   :  { %1476 = vmatpush.bf16.msra.mxu1 %v1380_v4  ;;  %1477 = vmatpush.bf16.msra.mxu2 %v1380_v4  ;;  %v1412_v51 = vld [vmem:[%s1977_s1 + $0x118] sm:$0xff]  ;;  %v1393_v60 = vld [vmem:[%s1977_s1 + $0x80] sm:$0xff]  ;;  %v1027_v2 = vld [vmem:[%s1978_s0 + $0x8] sm:$0xf] }
  0x13   :  { %1478 = vmatpush.bf16.msra.mxu3 %v1380_v4  ;;  %633 = vmatpush.bf16.msra.mxu0 %v1380_v4  ;;  %v1385_v61 = vld [vmem:[%s1977_s1 + $0x40] sm:$0xff]  ;;  %v1021_v1 = vld [vmem:[%s1978_s0 + $0x14] sm:$0xf0]  ;;  %v1340_v3 = vld [vmem:[%s1978_s0 + $0x18] sm:$0xf0] }
  0x14   :  { %v1401_v62 = vld [vmem:[%s1977_s1 + $0xc0] sm:$0xff]  ;;  %v1338_v4 = vld [vmem:[%s1978_s0 + $0xc] sm:$0xf]  ;;  %v1028_v9 = vor.u32 %v1340_v3, %v1027_v2  ;;  %v1047_v14 = vld [vmem:[%s1978_s0 + $0x30] sm:$0xf] }
  0x15   :  { %v1409_v63 = vld [vmem:[%s1977_s1 + $0x100] sm:$0xff]  ;;  %v1342_v12 = vld [vmem:[%s1978_s0 + $0x2c] sm:$0xf]  ;;  %v1352_v36 = vld [vmem:[%s1978_s0 + $0x7c] sm:$0xf] }
  0x16   :  { %1479 = vmatpush.bf16.msra.mxu1 %v1379_v5  ;;  %1480 = vmatpush.bf16.msra.mxu2 %v1379_v5  ;;  %v1337_v0 = vld [vmem:[%s1978_s0 + $0x4] sm:$0xf]  ;;  %v1041_v13 = vld [vmem:[%s1978_s0 + $0x3c] sm:$0xf0]  ;;  %v1081_v37 = vld [vmem:[%s1978_s0 + $0x8c] sm:$0xf0] }
  0x17   :  { %1481 = vmatpush.bf16.msra.mxu3 %v1379_v5  ;;  %634 = vmatpush.bf16.msra.mxu0 %v1379_v5  ;;  %v1029_v5 = vld [vmem:[%s1978_s0 + $0x1c] sm:$0xf0]  ;;  %v1024_v8 = vor.u32 %v1337_v0, %v1021_v1  ;;  %v1345_v15 = vld [vmem:[%s1978_s0 + $0x40] sm:$0xf0]  ;;  %v1355_v39 = vld [vmem:[%s1978_s0 + $0x90] sm:$0xf0] }
  0x18   :  { %v1032_v10 = vor.u32 %v1338_v4, %v1029_v5  ;;  %v1087_v38 = vld [vmem:[%s1978_s0 + $0x80] sm:$0xf]  ;;  %v1353_v40 = vld [vmem:[%s1978_s0 + $0x84] sm:$0xf]  ;;  %v1089_v41 = vld [vmem:[%s1978_s0 + $0x94] sm:$0xf0] }
  0x19   :  { %v1095_v42 = vld [vmem:[%s1978_s0 + $0x88] sm:$0xf]  ;;  %v1356_v43 = vld [vmem:[%s1978_s0 + $0x98] sm:$0xf0]  ;;  %v1363_v0 = vld [vmem:[%s1978_s0 + $0xd4] sm:$0xf] }
  0x1a   :  { %1482 = vmatpush.bf16.msra.mxu1 %v1378_v6  ;;  %1483 = vmatpush.bf16.msra.mxu2 %v1378_v6  ;;  %v1129_v1 = vld [vmem:[%s1978_s0 + $0xe4] sm:$0xf0]  ;;  %v1135_v2 = vld [vmem:[%s1978_s0 + $0xd8] sm:$0xf]  ;;  %v1366_v3 = vld [vmem:[%s1978_s0 + $0xe8] sm:$0xf0] }
  0x1b   :  { %1484 = vmatpush.bf16.msra.mxu3 %v1378_v6  ;;  %635 = vmatpush.bf16.msra.mxu0 %v1378_v6  ;;  %v1035_v6 = vld [vmem:[%s1978_s0 + $0x10] sm:$0xf] }
  0x1e   :  { %1485 = vmatpush.bf16.msra.mxu1 %v1377_v7  ;;  %1486 = vmatpush.bf16.msra.mxu2 %v1377_v7 }
  0x1f   :  { %1487 = vmatpush.bf16.msra.mxu3 %v1377_v7  ;;  %636 = vmatpush.bf16.msra.mxu0 %v1377_v7  ;;  %v1341_v7 = vld [vmem:[%s1978_s0 + $0x20] sm:$0xf0] }
  0x20   :  { %v1036_v11 = vor.u32 %v1341_v7, %v1035_v6  ;;  %v1132_v6 = vor.u32 %v1363_v0, %v1129_v1  ;;  %v1136_v7 = vor.u32 %v1366_v3, %v1135_v2  ;;  %v1908_v1 = vld [vmem:[%s1980_s3] ss:$0 sm:$0xff] }
  0x21   :  { %647 = vmatmul.bf16.vlgmr.msra.gmra.mxu1 %v1060_v18  ;;  %657 = vmatmul.bf16.vlgmr.msra.gmra.mxu2 %v1100_v19  ;;  %v1055_v18 = vld [vmem:[%s1978_s0 + $0x38] sm:$0xf]  ;;  %v1346_v19 = vld [vmem:[%s1978_s0 + $0x48] sm:$0xf0] }
  0x22   :  { %727 = vmatpush.bf16.msrb.mxu2 %v1400_v16  ;;  %678 = vmatpush.bf16.msrb.mxu1 %v1392_v17  ;;  %v1343_v16 = vld [vmem:[%s1978_s0 + $0x34] sm:$0xf]  ;;  %v1049_v17 = vld [vmem:[%s1978_s0 + $0x44] sm:$0xf0] }
  0x23   :  { %667 = vmatmul.bf16.vlgmr.msra.gmra.mxu3 %v1140_v20  ;;  %637 = vmatmul.bf16.vlgmr.msra.gmra.mxu0 %v1020_v21  ;;  %v1044_v20 = vor.u32 %v1342_v12, %v1041_v13  ;;  %v1048_v21 = vor.u32 %v1345_v15, %v1047_v14  ;;  %v1368_v12 = vld [vmem:[%s1978_s0 + $0xfc] sm:$0xf]  ;;  %v1149_v13 = vld [vmem:[%s1978_s0 + $0x10c] sm:$0xf0]  ;;  %v1155_v14 = vld [vmem:[%s1978_s0 + $0x100] sm:$0xf] }
  0x24   :  { %776 = vmatpush.bf16.msrb.mxu3 %v1408_v22  ;;  %825 = vmatpush.bf16.msrb.mxu0 %v1416_v23  ;;  %v1052_v22 = vor.u32 %v1343_v16, %v1049_v17  ;;  %v1056_v23 = vor.u32 %v1346_v19, %v1055_v18  ;;  %v1371_v15 = vld [vmem:[%s1978_s0 + $0x110] sm:$0xf0]  ;;  %v1152_v19 = vor.u32 %v1368_v12, %v1149_v13 }
  0x26   :  { %728 = vmatpush.bf16.msrb.mxu2 %v1399_v24  ;;  %679 = vmatpush.bf16.msrb.mxu1 %v1391_v25  ;;  %v1347_v24 = vld [vmem:[%s1978_s0 + $0x54] sm:$0xf]  ;;  %v1061_v25 = vld [vmem:[%s1978_s0 + $0x64] sm:$0xf0] }
  0x28   :  { %777 = vmatpush.bf16.msrb.mxu3 %v1407_v26  ;;  %826 = vmatpush.bf16.msrb.mxu0 %v1415_v27  ;;  %v1067_v26 = vld [vmem:[%s1978_s0 + $0x58] sm:$0xf]  ;;  %v1350_v27 = vld [vmem:[%s1978_s0 + $0x68] sm:$0xf0] }
  0x2a   :  { %729 = vmatpush.bf16.msrb.mxu2 %v1398_v28  ;;  %680 = vmatpush.bf16.msrb.mxu1 %v1390_v29  ;;  %v1348_v28 = vld [vmem:[%s1978_s0 + $0x5c] sm:$0xf]  ;;  %v1069_v29 = vld [vmem:[%s1978_s0 + $0x6c] sm:$0xf0] }
  0x2c   :  { %778 = vmatpush.bf16.msrb.mxu3 %v1406_v30  ;;  %827 = vmatpush.bf16.msrb.mxu0 %v1414_v31  ;;  %v1075_v30 = vld [vmem:[%s1978_s0 + $0x60] sm:$0xf]  ;;  %v1351_v31 = vld [vmem:[%s1978_s0 + $0x70] sm:$0xf0] }
  0x2e   :  { %730 = vmatpush.bf16.msrb.mxu2 %v1397_v32  ;;  %681 = vmatpush.bf16.msrb.mxu1 %v1389_v33  ;;  %v1064_v32 = vor.u32 %v1347_v24, %v1061_v25  ;;  %v1068_v33 = vor.u32 %v1350_v27, %v1067_v26  ;;  %v1372_v26 = vld [vmem:[%s1978_s0 + $0x11c] sm:$0xf]  ;;  %v1161_v27 = vld [vmem:[%s1978_s0 + $0x12c] sm:$0xf0] }
  0x30   :  { %779 = vmatpush.bf16.msrb.mxu3 %v1405_v34  ;;  %828 = vmatpush.bf16.msrb.mxu0 %v1413_v35  ;;  %v1072_v34 = vor.u32 %v1348_v28, %v1069_v29  ;;  %v1076_v35 = vor.u32 %v1351_v31, %v1075_v30  ;;  %v1167_v28 = vld [vmem:[%s1978_s0 + $0x120] sm:$0xf]  ;;  %v1375_v29 = vld [vmem:[%s1978_s0 + $0x130] sm:$0xf0]  ;;  %v1373_v30 = vld [vmem:[%s1978_s0 + $0x124] sm:$0xf] }
  0x31   :  { %652 = vmatmul.bf16.gmra.mxu1 %v1080_v46  ;;  %662 = vmatmul.bf16.gmra.mxu2 %v1120_v47  ;;  %v1092_v46 = vor.u32 %v1353_v40, %v1089_v41  ;;  %v1096_v47 = vor.u32 %v1356_v43, %v1095_v42  ;;  %v1169_v31 = vld [vmem:[%s1978_s0 + $0x134] sm:$0xf0] }
  0x32   :  { %731 = vmatpush.bf16.msrb.mxu2 %v1396_v44  ;;  %682 = vmatpush.bf16.msrb.mxu1 %v1388_v45  ;;  %v1084_v44 = vor.u32 %v1352_v36, %v1081_v37  ;;  %v1088_v45 = vor.u32 %v1355_v39, %v1087_v38  ;;  %v1164_v36 = vor.u32 %v1372_v26, %v1161_v27 }
  0x33   :  { %672 = vmatmul.bf16.gmra.mxu3 %v1160_v48  ;;  %642 = vmatmul.bf16.gmra.mxu0 %v1040_v49  ;;  %v1357_v48 = vld [vmem:[%s1978_s0 + $0xa4] sm:$0xf]  ;;  %v1101_v49 = vld [vmem:[%s1978_s0 + $0xb4] sm:$0xf0]  ;;  %v1168_v37 = vor.u32 %v1375_v29, %v1167_v28  ;;  %v1172_v39 = vor.u32 %v1373_v30, %v1169_v31 }
  0x34   :  { %780 = vmatpush.bf16.msrb.mxu3 %v1404_v50  ;;  %829 = vmatpush.bf16.msrb.mxu0 %v1412_v51  ;;  %v1107_v50 = vld [vmem:[%s1978_s0 + $0xa8] sm:$0xf]  ;;  %v1360_v51 = vld [vmem:[%s1978_s0 + $0xb8] sm:$0xf0] }
  0x36   :  { %732 = vmatpush.bf16.msrb.mxu2 %v1395_v52  ;;  %683 = vmatpush.bf16.msrb.mxu1 %v1387_v53  ;;  %v1358_v52 = vld [vmem:[%s1978_s0 + $0xac] sm:$0xf]  ;;  %v1109_v53 = vld [vmem:[%s1978_s0 + $0xbc] sm:$0xf0] }
  0x38   :  { %781 = vmatpush.bf16.msrb.mxu3 %v1403_v54  ;;  %830 = vmatpush.bf16.msrb.mxu0 %v1411_v55  ;;  %v1115_v54 = vld [vmem:[%s1978_s0 + $0xb0] sm:$0xf]  ;;  %v1361_v55 = vld [vmem:[%s1978_s0 + $0xc0] sm:$0xf0] }
  0x3a   :  { %733 = vmatpush.bf16.msrb.mxu2 %v1394_v56  ;;  %684 = vmatpush.bf16.msrb.mxu1 %v1386_v57  ;;  %v1104_v56 = vor.u32 %v1357_v48, %v1101_v49  ;;  %v1108_v57 = vor.u32 %v1360_v51, %v1107_v50 }
  0x3c   :  { %782 = vmatpush.bf16.msrb.mxu3 %v1402_v58  ;;  %831 = vmatpush.bf16.msrb.mxu0 %v1410_v59  ;;  %v1112_v58 = vor.u32 %v1358_v52, %v1109_v53  ;;  %v1116_v59 = vor.u32 %v1361_v55, %v1115_v54 }
  0x3e   :  { %734 = vmatpush.bf16.msrb.mxu2 %v1393_v60  ;;  %685 = vmatpush.bf16.msrb.mxu1 %v1385_v61  ;;  %v1362_v60 = vld [vmem:[%s1978_s0 + $0xcc] sm:$0xf]  ;;  %v1121_v61 = vld [vmem:[%s1978_s0 + $0xdc] sm:$0xf0] }
  0x3f   :  { %v1124_v4 = vor.u32 %v1362_v60, %v1121_v61 }
  0x40   :  { %783 = vmatpush.bf16.msrb.mxu3 %v1401_v62  ;;  %832 = vmatpush.bf16.msrb.mxu0 %v1409_v63  ;;  %v1127_v62 = vld [vmem:[%s1978_s0 + $0xd0] sm:$0xf]  ;;  %v1365_v63 = vld [vmem:[%s1978_s0 + $0xe0] sm:$0xf0] }
  0x41   :  { %686 = vmatmul.bf16.vlgmr.msrb.gmra.mxu1 %v1024_v8  ;;  %735 = vmatmul.bf16.vlgmr.msrb.gmra.mxu2 %v1028_v9  ;;  %v1128_v5 = vor.u32 %v1365_v63, %v1127_v62  ;;  %v1367_v8 = vld [vmem:[%s1978_s0 + $0xf4] sm:$0xf]  ;;  %v1141_v9 = vld [vmem:[%s1978_s0 + $0x104] sm:$0xf0] }
  0x42   :  { %v1144_v16 = vor.u32 %v1367_v8, %v1141_v9 }
  0x43   :  { %784 = vmatmul.bf16.vlgmr.msrb.gmra.mxu3 %v1032_v10  ;;  %833 = vmatmul.bf16.vlgmr.msrb.gmra.mxu0 %v1036_v11  ;;  %v1147_v10 = vld [vmem:[%s1978_s0 + $0xf8] sm:$0xf]  ;;  %v1370_v11 = vld [vmem:[%s1978_s0 + $0x108] sm:$0xf0] }
  0x44   :  { %v1148_v17 = vor.u32 %v1370_v11, %v1147_v10 }
  0x51   :  { %691 = vmatmul.bf16.gmra.mxu1 %v1044_v20  ;;  %740 = vmatmul.bf16.gmra.mxu2 %v1048_v21  ;;  %v1156_v20 = vor.u32 %v1371_v15, %v1155_v14 }
  0x53   :  { %789 = vmatmul.bf16.gmra.mxu3 %v1052_v22  ;;  %838 = vmatmul.bf16.gmra.mxu0 %v1056_v23 }
  0x61   :  { %696 = vmatmul.bf16.gmra.mxu1 %v1064_v32  ;;  %745 = vmatmul.bf16.gmra.mxu2 %v1068_v33  ;;  %v1175_v32 = vld [vmem:[%s1978_s0 + $0x128] sm:$0xf]  ;;  %v1376_v33 = vld [vmem:[%s1978_s0 + $0x138] sm:$0xf0] }
  0x62   :  { %v1176_v40 = vor.u32 %v1376_v33, %v1175_v32 }
  0x63   :  { %794 = vmatmul.bf16.gmra.mxu3 %v1072_v34  ;;  %843 = vmatmul.bf16.gmra.mxu0 %v1076_v35 }
  0x71   :  { %701 = vmatmul.bf16.gmra.mxu1 %v1084_v44  ;;  %750 = vmatmul.bf16.gmra.mxu2 %v1088_v45 }
  0x73   :  { %799 = vmatmul.bf16.gmra.mxu3 %v1092_v46  ;;  %848 = vmatmul.bf16.gmra.mxu0 %v1096_v47 }
  0x81   :  { %706 = vmatmul.bf16.gmra.mxu1 %v1104_v56  ;;  %755 = vmatmul.bf16.gmra.mxu2 %v1108_v57 }
  0x83   :  { %804 = vmatmul.bf16.gmra.mxu3 %v1112_v58  ;;  %853 = vmatmul.bf16.gmra.mxu0 %v1116_v59  ;;  %v1902_v58 = vld [vmem:[%s1979_s2] ss:$0 sm:$0xff] }
  0x91   :  { %711 = vmatmul.bf16.gmra.mxu1 %v1124_v4  ;;  %760 = vmatmul.bf16.gmra.mxu2 %v1128_v5 }
  0x93   :  { %809 = vmatmul.bf16.gmra.mxu3 %v1132_v6  ;;  %858 = vmatmul.bf16.gmra.mxu0 %v1136_v7 }
  0x9e   :  { %v1851_v18 = vpop.f32.mrf.mxu1 }
  0xa0   :  { %v638_v21 = vpop.f32.mrf.mxu0 }
  0xa1   :  { %716 = vmatmul.bf16.gmra.mxu1 %v1144_v16  ;;  %765 = vmatmul.bf16.gmra.mxu2 %v1148_v17 }
  0xa3   :  { %814 = vmatmul.bf16.gmra.mxu3 %v1152_v19  ;;  %863 = vmatmul.bf16.gmra.mxu0 %v1156_v20 }
  0xa4   :  { %v1853_v22 = vpop.f32.mrf.mxu2 }
  0xa6   :  { %v1855_v23 = vpop.f32.mrf.mxu3  ;;  %v1857_v24 = vpop.f32.mrf.mxu1 }
  0xa8   :  { %v640_v25 = vpop.f32.mrf.mxu0 }
  0xac   :  { %v1883_v34 = vpop.f32.mrf.mxu2 }
  0xae   :  { %v1885_v35 = vpop.f32.mrf.mxu3  ;;  %v1887_v38 = vpop.f32.mrf.mxu1 }
  0xb0   :  { %v643_v41 = vpop.f32.mrf.mxu0 }
  0xb1   :  { %721 = vmatmul.bf16.gmra.mxu1 %v1164_v36  ;;  %770 = vmatmul.bf16.gmra.mxu2 %v1168_v37 }
  0xb3   :  { %819 = vmatmul.bf16.gmra.mxu3 %v1172_v39  ;;  %868 = vmatmul.bf16.gmra.mxu0 %v1176_v40 }
  0xb4   :  { %v1889_v42 = vpop.f32.mrf.mxu2 }
  0xb6   :  { %v1891_v43 = vpop.f32.mrf.mxu3  ;;  %v1893_v44 = vpop.f32.mrf.mxu1 }
  0xb8   :  { %v645_v45 = vpop.f32.mrf.mxu0 }
  0xbc   :  { %v1895_v46 = vpop.f32.mrf.mxu2 }
  0xbe   :  { %v1897_v47 = vpop.f32.mrf.mxu3  ;;  %v687_v48 = vpop.f32.mrf.mxu1 }
  0xbf   :  { %v688_v50 = vadd.f32 %v687_v48, %v638_v21 }
  0xc0   :  { %v834_v49 = vpop.f32.mrf.mxu0 }
  0xc4   :  { %v736_v51 = vpop.f32.mrf.mxu2 }
  0xc5   :  { %v737_v52 = vadd.f32 %v736_v51, %v688_v50 }
  0xc6   :  { %v785_v53 = vpop.f32.mrf.mxu3  ;;  %v689_v54 = vpop.f32.mrf.mxu1 }
  0xc7   :  { %v786_v55 = vadd.f32 %v785_v53, %v737_v52  ;;  %v690_v59 = vadd.f32 %v689_v54, %v640_v25 }
  0xc8   :  { %v836_v56 = vpop.f32.mrf.mxu0 }
  0xc9   :  { %v835_v57 = vadd.f32 %v834_v49, %v786_v55 }
  0xcb   :  { %v929_v0 = vmul.f32 %v1902_v58, %v835_v57 }
  0xcc   :  { %v738_v60 = vpop.f32.mrf.mxu2 }
  0xcd   :  { %v739_v61 = vadd.f32 %v738_v60, %v690_v59  ;;  %v949_v5 = vadd.f32 %v1908_v1, %v929_v0 }
  0xce   :  { %v787_v62 = vpop.f32.mrf.mxu3  ;;  %v692_v63 = vpop.f32.mrf.mxu1 }
  0xcf   :  { %v788_v2 = vadd.f32 %v787_v62, %v739_v61  ;;  %v693_v7 = vadd.f32 %v692_v63, %v643_v41  ;;  %v965_v13 = vmax.f32 %v949_v5, 0.0 }
  0xd0   :  { %v839_v3 = vpop.f32.mrf.mxu0 }
  0xd1   :  { %v837_v4 = vadd.f32 %v836_v56, %v788_v2 }
  0xd3   :  { %v930_v6 = vmul.f32 %v1902_v58, %v837_v4 }
  0xd4   :  { %v741_v8 = vpop.f32.mrf.mxu2 }
  0xd5   :  { %v950_v9 = vadd.f32 %v1908_v1, %v930_v6  ;;  %v742_v10 = vadd.f32 %v741_v8, %v693_v7 }
  0xd6   :  { %v790_v11 = vpop.f32.mrf.mxu3  ;;  %v694_v12 = vpop.f32.mrf.mxu1 }
  0xd7   :  { %v966_v14 = vmax.f32 %v950_v9, 0.0  ;;  %v791_v15 = vadd.f32 %v790_v11, %v742_v10  ;;  %v695_v20 = vadd.f32 %v694_v12, %v645_v45 }
  0xd8   :  { %v841_v16 = vpop.f32.mrf.mxu0 }
  0xd9   :  { %v1420_v17 = vpack.c.bf16 %v966_v14, %v965_v13  ;;  %v840_v19 = vadd.f32 %v839_v3, %v791_v15 }
  0xdb   :  { %1421 = vst [vmem:[%s1981_s4] sm:$0xff] %v1420_v17   ;;  %v931_v28 = vmul.f32 %v1902_v58, %v840_v19 }
  0xdc   :  { %v743_v21 = vpop.f32.mrf.mxu2 }
  0xdd   :  { %v744_v25 = vadd.f32 %v743_v21, %v695_v20  ;;  %v951_v32 = vadd.f32 %v1908_v1, %v931_v28 }
  0xde   :  { %v792_v26 = vpop.f32.mrf.mxu3  ;;  %v697_v27 = vpop.f32.mrf.mxu1 }
  0xdf   :  { %v793_v29 = vadd.f32 %v792_v26, %v744_v25  ;;  %v698_v36 = vadd.f32 %v697_v27, %v1851_v18  ;;  %v967_v48 = vmax.f32 %v951_v32, 0.0 }
  0xe0   :  { %v844_v30 = vpop.f32.mrf.mxu0 }
  0xe1   :  { %v842_v31 = vadd.f32 %v841_v16, %v793_v29 }
  0xe3   :  { %v932_v33 = vmul.f32 %v1902_v58, %v842_v31 }
  0xe4   :  { %v746_v37 = vpop.f32.mrf.mxu2 }
  0xe5   :  { %v952_v39 = vadd.f32 %v1908_v1, %v932_v33  ;;  %v747_v40 = vadd.f32 %v746_v37, %v698_v36 }
  0xe6   :  { %v795_v41 = vpop.f32.mrf.mxu3  ;;  %v699_v45 = vpop.f32.mrf.mxu1 }
  0xe7   :  { %v968_v49 = vmax.f32 %v952_v39, 0.0  ;;  %v796_v50 = vadd.f32 %v795_v41, %v747_v40  ;;  %v700_v54 = vadd.f32 %v699_v45, %v1857_v24 }
  0xe8   :  { %v846_v51 = vpop.f32.mrf.mxu0 }
  0xe9   :  { %v1425_v52 = vpack.c.bf16 %v968_v49, %v967_v48  ;;  %v845_v53 = vadd.f32 %v844_v30, %v796_v50 }
  0xeb   :  { %1457 = vst [vmem:[%s1981_s4 + $0x8] sm:$0xff] %v1425_v52   ;;  %v933_v59 = vmul.f32 %v1902_v58, %v845_v53 }
  0xec   :  { %v748_v55 = vpop.f32.mrf.mxu2 }
  0xed   :  { %v749_v18 = vadd.f32 %v748_v55, %v700_v54  ;;  %v953_v63 = vadd.f32 %v1908_v1, %v933_v59 }
  0xee   :  { %v797_v56 = vpop.f32.mrf.mxu3  ;;  %v702_v57 = vpop.f32.mrf.mxu1 }
  0xef   :  { %v798_v60 = vadd.f32 %v797_v56, %v749_v18  ;;  %v703_v2 = vadd.f32 %v702_v57, %v1887_v38  ;;  %v969_v7 = vmax.f32 %v953_v63, 0.0 }
  0xf0   :  { %v849_v61 = vpop.f32.mrf.mxu0 }
  0xf1   :  { %v847_v62 = vadd.f32 %v846_v51, %v798_v60 }
  0xf3   :  { %v934_v0 = vmul.f32 %v1902_v58, %v847_v62 }
  0xf4   :  { %v751_v3 = vpop.f32.mrf.mxu2 }
  0xf5   :  { %v954_v4 = vadd.f32 %v1908_v1, %v934_v0  ;;  %v752_v5 = vadd.f32 %v751_v3, %v703_v2 }
  0xf6   :  { %v800_v24 = vpop.f32.mrf.mxu3  ;;  %v704_v6 = vpop.f32.mrf.mxu1 }
  0xf7   :  { %v970_v8 = vmax.f32 %v954_v4, 0.0  ;;  %v801_v9 = vadd.f32 %v800_v24, %v752_v5  ;;  %v705_v13 = vadd.f32 %v704_v6, %v1893_v44 }
  0xf8   :  { %v851_v10 = vpop.f32.mrf.mxu0 }
  0xf9   :  { %v1430_v11 = vpack.c.bf16 %v970_v8, %v969_v7  ;;  %v850_v12 = vadd.f32 %v849_v61, %v801_v9 }
  0xfb   :  { %1458 = vst [vmem:[%s1981_s4 + $0x10] sm:$0xff] %v1430_v11   ;;  %v935_v17 = vmul.f32 %v1902_v58, %v850_v12 }
  0xfc   :  { %v753_v14 = vpop.f32.mrf.mxu2 }
  0xfd   :  { %v754_v38 = vadd.f32 %v753_v14, %v705_v13  ;;  %v955_v25 = vadd.f32 %v1908_v1, %v935_v17 }
  0xfe   :  { %v802_v15 = vpop.f32.mrf.mxu3  ;;  %v707_v16 = vpop.f32.mrf.mxu1 }
  0xff   :  { %v803_v19 = vadd.f32 %v802_v15, %v754_v38  ;;  %v708_v27 = vadd.f32 %v707_v16, %v1853_v22  ;;  %v971_v32 = vmax.f32 %v955_v25, 0.0 }
 0x100   :  { %v854_v20 = vpop.f32.mrf.mxu0 }
 0x101   :  { %v852_v21 = vadd.f32 %v851_v10, %v803_v19 }
 0x103   :  { %v936_v26 = vmul.f32 %v1902_v58, %v852_v21 }
 0x104   :  { %v756_v28 = vpop.f32.mrf.mxu2 }
 0x105   :  { %v956_v29 = vadd.f32 %v1908_v1, %v936_v26  ;;  %v757_v30 = vadd.f32 %v756_v28, %v708_v27 }
 0x106   :  { %v805_v44 = vpop.f32.mrf.mxu3  ;;  %v709_v31 = vpop.f32.mrf.mxu1 }
 0x107   :  { %v972_v33 = vmax.f32 %v956_v29, 0.0  ;;  %v806_v36 = vadd.f32 %v805_v44, %v757_v30  ;;  %v710_v41 = vadd.f32 %v709_v31, %v1883_v34 }
 0x108   :  { %v856_v37 = vpop.f32.mrf.mxu0 }
 0x109   :  { %v1435_v39 = vpack.c.bf16 %v972_v33, %v971_v32  ;;  %v855_v40 = vadd.f32 %v854_v20, %v806_v36 }
 0x10b   :  { %1459 = vst [vmem:[%s1981_s4 + $0x18] sm:$0xff] %v1435_v39   ;;  %v937_v50 = vmul.f32 %v1902_v58, %v855_v40 }
 0x10c   :  { %v758_v45 = vpop.f32.mrf.mxu2 }
 0x10d   :  { %v759_v22 = vadd.f32 %v758_v45, %v710_v41  ;;  %v957_v54 = vadd.f32 %v1908_v1, %v937_v50 }
 0x10e   :  { %v807_v48 = vpop.f32.mrf.mxu3  ;;  %v712_v49 = vpop.f32.mrf.mxu1 }
 0x10f   :  { %v808_v51 = vadd.f32 %v807_v48, %v759_v22  ;;  %v713_v18 = vadd.f32 %v712_v49, %v1889_v42  ;;  %v973_v61 = vmax.f32 %v957_v54, 0.0 }
 0x110   :  { %v859_v52 = vpop.f32.mrf.mxu0 }
 0x111   :  { %v857_v53 = vadd.f32 %v856_v37, %v808_v51 }
 0x113   :  { %v938_v55 = vmul.f32 %v1902_v58, %v857_v53 }
 0x114   :  { %v761_v56 = vpop.f32.mrf.mxu2 }
 0x115   :  { %v958_v57 = vadd.f32 %v1908_v1, %v938_v55  ;;  %v762_v59 = vadd.f32 %v761_v56, %v713_v18 }
 0x116   :  { %v810_v34 = vpop.f32.mrf.mxu3  ;;  %v714_v60 = vpop.f32.mrf.mxu1 }
 0x117   :  { %v974_v62 = vmax.f32 %v958_v57, 0.0  ;;  %v811_v63 = vadd.f32 %v810_v34, %v762_v59  ;;  %v715_v4 = vadd.f32 %v714_v60, %v1895_v46 }
 0x118   :  { %v861_v0 = vpop.f32.mrf.mxu0 }
 0x119   :  { %v1440_v2 = vpack.c.bf16 %v974_v62, %v973_v61  ;;  %v860_v3 = vadd.f32 %v859_v52, %v811_v63 }
 0x11b   :  { %1460 = vst [vmem:[%s1981_s4 + $0x20] sm:$0xff] %v1440_v2   ;;  %v939_v7 = vmul.f32 %v1902_v58, %v860_v3 }
 0x11c   :  { %v763_v5 = vpop.f32.mrf.mxu2 }
 0x11d   :  { %v764_v42 = vadd.f32 %v763_v5, %v715_v4  ;;  %v959_v11 = vadd.f32 %v1908_v1, %v939_v7 }
 0x11e   :  { %v812_v24 = vpop.f32.mrf.mxu3  ;;  %v717_v6 = vpop.f32.mrf.mxu1 }
 0x11f   :  { %v813_v8 = vadd.f32 %v812_v24, %v764_v42  ;;  %v718_v13 = vadd.f32 %v717_v6, %v1855_v23  ;;  %v975_v17 = vmax.f32 %v959_v11, 0.0 }
 0x120   :  { %v864_v10 = vpop.f32.mrf.mxu0 }
 0x121   :  { %v862_v9 = vadd.f32 %v861_v0, %v813_v8 }
 0x123   :  { %v940_v12 = vmul.f32 %v1902_v58, %v862_v9 }
 0x124   :  { %v766_v14 = vpop.f32.mrf.mxu2 }
 0x125   :  { %v960_v38 = vadd.f32 %v1908_v1, %v940_v12  ;;  %v767_v15 = vadd.f32 %v766_v14, %v718_v13 }
 0x126   :  { %v815_v46 = vpop.f32.mrf.mxu3  ;;  %v719_v16 = vpop.f32.mrf.mxu1 }
 0x127   :  { %v976_v19 = vmax.f32 %v960_v38, 0.0  ;;  %v816_v20 = vadd.f32 %v815_v46, %v767_v15  ;;  %v720_v26 = vadd.f32 %v719_v16, %v1885_v35 }
 0x128   :  { %v866_v27 = vpop.f32.mrf.mxu0 }
 0x129   :  { %v1445_v21 = vpack.c.bf16 %v976_v19, %v975_v17  ;;  %v865_v25 = vadd.f32 %v864_v10, %v816_v20 }
 0x12b   :  { %1461 = vst [vmem:[%s1981_s4 + $0x28] sm:$0xff] %v1445_v21   ;;  %v941_v44 = vmul.f32 %v1902_v58, %v865_v25 }
 0x12c   :  { %v768_v28 = vpop.f32.mrf.mxu2 }
 0x12d   :  { %v769_v23 = vadd.f32 %v768_v28, %v720_v26  ;;  %v961_v33 = vadd.f32 %v1908_v1, %v941_v44 }
 0x12e   :  { %v817_v29 = vpop.f32.mrf.mxu3  ;;  %v722_v30 = vpop.f32.mrf.mxu1 }
 0x12f   :  { %v818_v31 = vadd.f32 %v817_v29, %v769_v23  ;;  %v723_v37 = vadd.f32 %v722_v30, %v1891_v43  ;;  %v977_v22 = vmax.f32 %v961_v33, 0.0 }
 0x130   :  { %v869_v45 = vpop.f32.mrf.mxu0 }
 0x131   :  { %v867_v32 = vadd.f32 %v866_v27, %v818_v31 }
 0x133   :  { %v942_v36 = vmul.f32 %v1902_v58, %v867_v32 }
 0x134   :  { %v771_v39 = vpop.f32.mrf.mxu2 }
 0x135   :  { %v962_v40 = vadd.f32 %v1908_v1, %v942_v36  ;;  %v772_v41 = vadd.f32 %v771_v39, %v723_v37 }
 0x136   :  { %v820_v35 = vpop.f32.mrf.mxu3  ;;  %v724_v50 = vpop.f32.mrf.mxu1 }
 0x137   :  { %v978_v48 = vmax.f32 %v962_v40, 0.0  ;;  %v821_v49 = vadd.f32 %v820_v35, %v772_v41  ;;  %v725_v53 = vadd.f32 %v724_v50, %v1897_v47 }
 0x138   :  { %v871_v57 = vpop.f32.mrf.mxu0 }
 0x139   :  { %v1450_v51 = vpack.c.bf16 %v978_v48, %v977_v22  ;;  %v870_v52 = vadd.f32 %v869_v45, %v821_v49 }
 0x13b   :  { %1462 = vst [vmem:[%s1981_s4 + $0x30] sm:$0xff] %v1450_v51   ;;  %v943_v18 = vmul.f32 %v1902_v58, %v870_v52 }
 0x13c   :  { %v773_v54 = vpop.f32.mrf.mxu2 }
 0x13d   :  { %v774_v43 = vadd.f32 %v773_v54, %v725_v53  ;;  %v963_v34 = vadd.f32 %v1908_v1, %v943_v18 }
 0x13e   :  { %v822_v55 = vpop.f32.mrf.mxu3 }
 0x13f   :  { %v823_v56 = vadd.f32 %v822_v55, %v774_v43  ;;  %v979_v62 = vmax.f32 %v963_v34, 0.0 }
 0x141   :  { %v872_v59 = vadd.f32 %v871_v57, %v823_v56 }
 0x143   :  { %v944_v60 = vmul.f32 %v1902_v58, %v872_v59 }
 0x145   :  { %v964_v61 = vadd.f32 %v1908_v1, %v944_v60 }
 0x147   :  { %v980_v63 = vmax.f32 %v964_v61, 0.0 }
 0x149   :  { %v1455_v0 = vpack.c.bf16 %v980_v63, %v979_v62 }
 0x14b   :  { %1463 = vst [vmem:[%s1981_s4 + $0x38] sm:$0xff] %v1455_v0  }

// kernel: _lambda_.25
= control target key start
LH: loop header
LB: loop body
LE: loop exit
PB: predicated region body
PF: predicated region fallthrough
CT: control target
= control target key end

     0   :  { %s2096_s1 = inlined_call_operand.vmem [shape: bf16[640,128], index: 1, kind: input, shape index: {}]   ;;  %s2097_s0 = inlined_call_operand.vmem [shape: bf16[128,640], index: 0, kind: input, shape index: {}]   ;;  %s2098_s2 = inlined_call_operand.vmem [shape: f32[1,128], index: 2, kind: input, shape index: {}]   ;;  %s2099_s3 = inlined_call_operand.vmem [shape: f32[1,128], index: 3, kind: input, shape index: {}]   ;;  %s2100_s4 = inlined_call_operand.vmem [shape: bf16[128,128], index: 4, kind: input, shape index: {}]   ;;  %s2101_s5 = inlined_call_operand.vmem [shape: bf16[128,128], index: 5, kind: output, shape index: {}]  }
   0x1   :  { %v1435_v0 = vld [vmem:[%s2096_s1 + $0x38] sm:$0xff]  ;;  %v1434_v1 = vld [vmem:[%s2096_s1 + $0x30] sm:$0xff]  ;;  %v1433_v2 = vld [vmem:[%s2096_s1 + $0x28] sm:$0xff] }
   0x2   :  { %1554 = vmatpush.bf16.msra.mxu1 %v1435_v0  ;;  %1555 = vmatpush.bf16.msra.mxu2 %v1435_v0  ;;  %v1432_v3 = vld [vmem:[%s2096_s1 + $0x20] sm:$0xff]  ;;  %v1431_v4 = vld [vmem:[%s2096_s1 + $0x18] sm:$0xff]  ;;  %v1430_v5 = vld [vmem:[%s2096_s1 + $0x10] sm:$0xff] }
   0x3   :  { %1556 = vmatpush.bf16.msra.mxu3 %v1435_v0  ;;  %632 = vmatpush.bf16.msra.mxu0 %v1435_v0  ;;  %v1429_v6 = vld [vmem:[%s2096_s1 + $0x8] sm:$0xff]  ;;  %v1428_v7 = vld [vmem:[%s2096_s1] sm:$0xff]  ;;  %v1110_v8 = vld [vmem:[%s2097_s0 + $0x50] sm:$0xf] }
   0x4   :  { %v1400_v9 = vld [vmem:[%s2097_s0 + $0x60] sm:$0xf0]  ;;  %v1150_v10 = vld [vmem:[%s2097_s0 + $0xa0] sm:$0xf]  ;;  %v1410_v11 = vld [vmem:[%s2097_s0 + $0xb0] sm:$0xf0] }
   0x5   :  { %v1190_v12 = vld [vmem:[%s2097_s0 + $0xf0] sm:$0xf]  ;;  %v1420_v13 = vld [vmem:[%s2097_s0 + $0x100] sm:$0xf0]  ;;  %v1070_v14 = vld [vmem:[%s2097_s0] sm:$0xf]  ;;  %v1111_v18 = vor.u32 %v1400_v9, %v1110_v8  ;;  %v1151_v19 = vor.u32 %v1410_v11, %v1150_v10 }
   0x6   :  { %1557 = vmatpush.bf16.msra.mxu1 %v1434_v1  ;;  %1558 = vmatpush.bf16.msra.mxu2 %v1434_v1  ;;  %v1390_v15 = vld [vmem:[%s2097_s0 + $0x10] sm:$0xf0]  ;;  %v1451_v16 = vld [vmem:[%s2096_s1 + $0xb8] sm:$0xff]  ;;  %v1191_v20 = vor.u32 %v1420_v13, %v1190_v12  ;;  %v1449_v28 = vld [vmem:[%s2096_s1 + $0xa8] sm:$0xff] }
   0x7   :  { %1559 = vmatpush.bf16.msra.mxu3 %v1434_v1  ;;  %633 = vmatpush.bf16.msra.mxu0 %v1434_v1  ;;  %v1443_v17 = vld [vmem:[%s2096_s1 + $0x78] sm:$0xff]  ;;  %v1071_v21 = vor.u32 %v1390_v15, %v1070_v14  ;;  %v1450_v24 = vld [vmem:[%s2096_s1 + $0xb0] sm:$0xff]  ;;  %v1441_v29 = vld [vmem:[%s2096_s1 + $0x68] sm:$0xff] }
   0x8   :  { %v1459_v22 = vld [vmem:[%s2096_s1 + $0xf8] sm:$0xff]  ;;  %v1442_v25 = vld [vmem:[%s2096_s1 + $0x70] sm:$0xff]  ;;  %v1457_v30 = vld [vmem:[%s2096_s1 + $0xe8] sm:$0xff] }
   0x9   :  { %v1467_v23 = vld [vmem:[%s2096_s1 + $0x138] sm:$0xff]  ;;  %v1458_v26 = vld [vmem:[%s2096_s1 + $0xf0] sm:$0xff]  ;;  %v1465_v31 = vld [vmem:[%s2096_s1 + $0x128] sm:$0xff] }
   0xa   :  { %1560 = vmatpush.bf16.msra.mxu1 %v1433_v2  ;;  %1561 = vmatpush.bf16.msra.mxu2 %v1433_v2  ;;  %v1466_v27 = vld [vmem:[%s2096_s1 + $0x130] sm:$0xff]  ;;  %v1448_v32 = vld [vmem:[%s2096_s1 + $0xa0] sm:$0xff]  ;;  %v1130_v36 = vld [vmem:[%s2097_s0 + $0x78] sm:$0xf] }
   0xb   :  { %1562 = vmatpush.bf16.msra.mxu3 %v1433_v2  ;;  %634 = vmatpush.bf16.msra.mxu0 %v1433_v2  ;;  %v1440_v33 = vld [vmem:[%s2096_s1 + $0x60] sm:$0xff]  ;;  %v1405_v37 = vld [vmem:[%s2097_s0 + $0x88] sm:$0xf0]  ;;  %v1170_v38 = vld [vmem:[%s2097_s0 + $0xc8] sm:$0xf] }
   0xc   :  { %v1456_v34 = vld [vmem:[%s2096_s1 + $0xe0] sm:$0xff]  ;;  %v1415_v39 = vld [vmem:[%s2097_s0 + $0xd8] sm:$0xf0]  ;;  %v1210_v40 = vld [vmem:[%s2097_s0 + $0x118] sm:$0xf]  ;;  %v1131_v46 = vor.u32 %v1405_v37, %v1130_v36 }
   0xd   :  { %v1464_v35 = vld [vmem:[%s2096_s1 + $0x120] sm:$0xff]  ;;  %v1425_v41 = vld [vmem:[%s2097_s0 + $0x128] sm:$0xf0]  ;;  %v1090_v42 = vld [vmem:[%s2097_s0 + $0x28] sm:$0xf]  ;;  %v1171_v47 = vor.u32 %v1415_v39, %v1170_v38 }
   0xe   :  { %1563 = vmatpush.bf16.msra.mxu1 %v1432_v3  ;;  %1564 = vmatpush.bf16.msra.mxu2 %v1432_v3  ;;  %v1395_v43 = vld [vmem:[%s2097_s0 + $0x38] sm:$0xf0]  ;;  %v1211_v48 = vor.u32 %v1425_v41, %v1210_v40  ;;  %v1446_v52 = vld [vmem:[%s2096_s1 + $0x90] sm:$0xff]  ;;  %v1445_v56 = vld [vmem:[%s2096_s1 + $0x88] sm:$0xff] }
   0xf   :  { %1565 = vmatpush.bf16.msra.mxu3 %v1432_v3  ;;  %635 = vmatpush.bf16.msra.mxu0 %v1432_v3  ;;  %v1447_v44 = vld [vmem:[%s2096_s1 + $0x98] sm:$0xff]  ;;  %v1091_v49 = vor.u32 %v1395_v43, %v1090_v42  ;;  %v1438_v53 = vld [vmem:[%s2096_s1 + $0x50] sm:$0xff]  ;;  %v1437_v57 = vld [vmem:[%s2096_s1 + $0x48] sm:$0xff] }
  0x10   :  { %v1439_v45 = vld [vmem:[%s2096_s1 + $0x58] sm:$0xff]  ;;  %v1454_v54 = vld [vmem:[%s2096_s1 + $0xd0] sm:$0xff]  ;;  %v1453_v58 = vld [vmem:[%s2096_s1 + $0xc8] sm:$0xff] }
  0x11   :  { %v1455_v50 = vld [vmem:[%s2096_s1 + $0xd8] sm:$0xff]  ;;  %v1462_v55 = vld [vmem:[%s2096_s1 + $0x110] sm:$0xff]  ;;  %v1461_v59 = vld [vmem:[%s2096_s1 + $0x108] sm:$0xff] }
  0x12   :  { %1566 = vmatpush.bf16.msra.mxu1 %v1431_v4  ;;  %1567 = vmatpush.bf16.msra.mxu2 %v1431_v4  ;;  %v1463_v51 = vld [vmem:[%s2096_s1 + $0x118] sm:$0xff]  ;;  %v1444_v60 = vld [vmem:[%s2096_s1 + $0x80] sm:$0xff]  ;;  %v1078_v2 = vld [vmem:[%s2097_s0 + $0x8] sm:$0xf] }
  0x13   :  { %1568 = vmatpush.bf16.msra.mxu3 %v1431_v4  ;;  %636 = vmatpush.bf16.msra.mxu0 %v1431_v4  ;;  %v1436_v61 = vld [vmem:[%s2096_s1 + $0x40] sm:$0xff]  ;;  %v1072_v1 = vld [vmem:[%s2097_s0 + $0x14] sm:$0xf0]  ;;  %v1391_v3 = vld [vmem:[%s2097_s0 + $0x18] sm:$0xf0] }
  0x14   :  { %v1452_v62 = vld [vmem:[%s2096_s1 + $0xc0] sm:$0xff]  ;;  %v1389_v4 = vld [vmem:[%s2097_s0 + $0xc] sm:$0xf]  ;;  %v1079_v9 = vor.u32 %v1391_v3, %v1078_v2  ;;  %v1098_v14 = vld [vmem:[%s2097_s0 + $0x30] sm:$0xf] }
  0x15   :  { %v1460_v63 = vld [vmem:[%s2096_s1 + $0x100] sm:$0xff]  ;;  %v1393_v12 = vld [vmem:[%s2097_s0 + $0x2c] sm:$0xf]  ;;  %v1403_v36 = vld [vmem:[%s2097_s0 + $0x7c] sm:$0xf] }
  0x16   :  { %1569 = vmatpush.bf16.msra.mxu1 %v1430_v5  ;;  %1570 = vmatpush.bf16.msra.mxu2 %v1430_v5  ;;  %v1388_v0 = vld [vmem:[%s2097_s0 + $0x4] sm:$0xf]  ;;  %v1092_v13 = vld [vmem:[%s2097_s0 + $0x3c] sm:$0xf0]  ;;  %v1132_v37 = vld [vmem:[%s2097_s0 + $0x8c] sm:$0xf0] }
  0x17   :  { %1571 = vmatpush.bf16.msra.mxu3 %v1430_v5  ;;  %637 = vmatpush.bf16.msra.mxu0 %v1430_v5  ;;  %v1080_v5 = vld [vmem:[%s2097_s0 + $0x1c] sm:$0xf0]  ;;  %v1075_v8 = vor.u32 %v1388_v0, %v1072_v1  ;;  %v1396_v15 = vld [vmem:[%s2097_s0 + $0x40] sm:$0xf0]  ;;  %v1406_v39 = vld [vmem:[%s2097_s0 + $0x90] sm:$0xf0] }
  0x18   :  { %v1083_v10 = vor.u32 %v1389_v4, %v1080_v5  ;;  %v1138_v38 = vld [vmem:[%s2097_s0 + $0x80] sm:$0xf]  ;;  %v1404_v40 = vld [vmem:[%s2097_s0 + $0x84] sm:$0xf]  ;;  %v1140_v41 = vld [vmem:[%s2097_s0 + $0x94] sm:$0xf0] }
  0x19   :  { %v1146_v42 = vld [vmem:[%s2097_s0 + $0x88] sm:$0xf]  ;;  %v1407_v43 = vld [vmem:[%s2097_s0 + $0x98] sm:$0xf0]  ;;  %v1414_v0 = vld [vmem:[%s2097_s0 + $0xd4] sm:$0xf] }
  0x1a   :  { %1572 = vmatpush.bf16.msra.mxu1 %v1429_v6  ;;  %1573 = vmatpush.bf16.msra.mxu2 %v1429_v6  ;;  %v1180_v1 = vld [vmem:[%s2097_s0 + $0xe4] sm:$0xf0]  ;;  %v1186_v2 = vld [vmem:[%s2097_s0 + $0xd8] sm:$0xf]  ;;  %v1417_v3 = vld [vmem:[%s2097_s0 + $0xe8] sm:$0xf0] }
  0x1b   :  { %1574 = vmatpush.bf16.msra.mxu3 %v1429_v6  ;;  %638 = vmatpush.bf16.msra.mxu0 %v1429_v6  ;;  %v1086_v6 = vld [vmem:[%s2097_s0 + $0x10] sm:$0xf] }
  0x1e   :  { %1575 = vmatpush.bf16.msra.mxu1 %v1428_v7  ;;  %1576 = vmatpush.bf16.msra.mxu2 %v1428_v7 }
  0x1f   :  { %1577 = vmatpush.bf16.msra.mxu3 %v1428_v7  ;;  %639 = vmatpush.bf16.msra.mxu0 %v1428_v7  ;;  %v1392_v7 = vld [vmem:[%s2097_s0 + $0x20] sm:$0xf0] }
  0x20   :  { %v1087_v11 = vor.u32 %v1392_v7, %v1086_v6  ;;  %v1183_v6 = vor.u32 %v1414_v0, %v1180_v1  ;;  %v1187_v7 = vor.u32 %v1417_v3, %v1186_v2  ;;  %v1469_v1 = vld [vmem:[%s2100_s4] sm:$0xff]  }
  0x21   :  { %650 = vmatmul.bf16.vlgmr.msra.gmra.mxu1 %v1111_v18  ;;  %660 = vmatmul.bf16.vlgmr.msra.gmra.mxu2 %v1151_v19  ;;  %v1106_v18 = vld [vmem:[%s2097_s0 + $0x38] sm:$0xf]  ;;  %v1397_v19 = vld [vmem:[%s2097_s0 + $0x48] sm:$0xf0] }
  0x22   :  { %730 = vmatpush.bf16.msrb.mxu2 %v1451_v16  ;;  %681 = vmatpush.bf16.msrb.mxu1 %v1443_v17  ;;  %v1394_v16 = vld [vmem:[%s2097_s0 + $0x34] sm:$0xf]  ;;  %v1100_v17 = vld [vmem:[%s2097_s0 + $0x44] sm:$0xf0] }
  0x23   :  { %670 = vmatmul.bf16.vlgmr.msra.gmra.mxu3 %v1191_v20  ;;  %640 = vmatmul.bf16.vlgmr.msra.gmra.mxu0 %v1071_v21  ;;  %v1095_v20 = vor.u32 %v1393_v12, %v1092_v13  ;;  %v1099_v21 = vor.u32 %v1396_v15, %v1098_v14  ;;  %v1419_v12 = vld [vmem:[%s2097_s0 + $0xfc] sm:$0xf]  ;;  %v1200_v13 = vld [vmem:[%s2097_s0 + $0x10c] sm:$0xf0]  ;;  %v1206_v14 = vld [vmem:[%s2097_s0 + $0x100] sm:$0xf] }
  0x24   :  { %779 = vmatpush.bf16.msrb.mxu3 %v1459_v22  ;;  %828 = vmatpush.bf16.msrb.mxu0 %v1467_v23  ;;  %v1103_v22 = vor.u32 %v1394_v16, %v1100_v17  ;;  %v1107_v23 = vor.u32 %v1397_v19, %v1106_v18  ;;  %v1422_v15 = vld [vmem:[%s2097_s0 + $0x110] sm:$0xf0]  ;;  %v1203_v19 = vor.u32 %v1419_v12, %v1200_v13 }
  0x26   :  { %731 = vmatpush.bf16.msrb.mxu2 %v1450_v24  ;;  %682 = vmatpush.bf16.msrb.mxu1 %v1442_v25  ;;  %v1398_v24 = vld [vmem:[%s2097_s0 + $0x54] sm:$0xf]  ;;  %v1112_v25 = vld [vmem:[%s2097_s0 + $0x64] sm:$0xf0] }
  0x28   :  { %780 = vmatpush.bf16.msrb.mxu3 %v1458_v26  ;;  %829 = vmatpush.bf16.msrb.mxu0 %v1466_v27  ;;  %v1118_v26 = vld [vmem:[%s2097_s0 + $0x58] sm:$0xf]  ;;  %v1401_v27 = vld [vmem:[%s2097_s0 + $0x68] sm:$0xf0] }
  0x2a   :  { %732 = vmatpush.bf16.msrb.mxu2 %v1449_v28  ;;  %683 = vmatpush.bf16.msrb.mxu1 %v1441_v29  ;;  %v1399_v28 = vld [vmem:[%s2097_s0 + $0x5c] sm:$0xf]  ;;  %v1120_v29 = vld [vmem:[%s2097_s0 + $0x6c] sm:$0xf0] }
  0x2c   :  { %781 = vmatpush.bf16.msrb.mxu3 %v1457_v30  ;;  %830 = vmatpush.bf16.msrb.mxu0 %v1465_v31  ;;  %v1126_v30 = vld [vmem:[%s2097_s0 + $0x60] sm:$0xf]  ;;  %v1402_v31 = vld [vmem:[%s2097_s0 + $0x70] sm:$0xf0] }
  0x2e   :  { %733 = vmatpush.bf16.msrb.mxu2 %v1448_v32  ;;  %684 = vmatpush.bf16.msrb.mxu1 %v1440_v33  ;;  %v1115_v32 = vor.u32 %v1398_v24, %v1112_v25  ;;  %v1119_v33 = vor.u32 %v1401_v27, %v1118_v26  ;;  %v1423_v26 = vld [vmem:[%s2097_s0 + $0x11c] sm:$0xf]  ;;  %v1212_v27 = vld [vmem:[%s2097_s0 + $0x12c] sm:$0xf0] }
  0x30   :  { %782 = vmatpush.bf16.msrb.mxu3 %v1456_v34  ;;  %831 = vmatpush.bf16.msrb.mxu0 %v1464_v35  ;;  %v1123_v34 = vor.u32 %v1399_v28, %v1120_v29  ;;  %v1127_v35 = vor.u32 %v1402_v31, %v1126_v30  ;;  %v1218_v28 = vld [vmem:[%s2097_s0 + $0x120] sm:$0xf]  ;;  %v1426_v29 = vld [vmem:[%s2097_s0 + $0x130] sm:$0xf0]  ;;  %v1424_v30 = vld [vmem:[%s2097_s0 + $0x124] sm:$0xf] }
  0x31   :  { %655 = vmatmul.bf16.gmra.mxu1 %v1131_v46  ;;  %665 = vmatmul.bf16.gmra.mxu2 %v1171_v47  ;;  %v1143_v46 = vor.u32 %v1404_v40, %v1140_v41  ;;  %v1147_v47 = vor.u32 %v1407_v43, %v1146_v42  ;;  %v1220_v31 = vld [vmem:[%s2097_s0 + $0x134] sm:$0xf0] }
  0x32   :  { %734 = vmatpush.bf16.msrb.mxu2 %v1447_v44  ;;  %685 = vmatpush.bf16.msrb.mxu1 %v1439_v45  ;;  %v1135_v44 = vor.u32 %v1403_v36, %v1132_v37  ;;  %v1139_v45 = vor.u32 %v1406_v39, %v1138_v38  ;;  %v1215_v36 = vor.u32 %v1423_v26, %v1212_v27 }
  0x33   :  { %675 = vmatmul.bf16.gmra.mxu3 %v1211_v48  ;;  %645 = vmatmul.bf16.gmra.mxu0 %v1091_v49  ;;  %v1408_v48 = vld [vmem:[%s2097_s0 + $0xa4] sm:$0xf]  ;;  %v1152_v49 = vld [vmem:[%s2097_s0 + $0xb4] sm:$0xf0]  ;;  %v1219_v37 = vor.u32 %v1426_v29, %v1218_v28  ;;  %v1223_v39 = vor.u32 %v1424_v30, %v1220_v31 }
  0x34   :  { %783 = vmatpush.bf16.msrb.mxu3 %v1455_v50  ;;  %832 = vmatpush.bf16.msrb.mxu0 %v1463_v51  ;;  %v1158_v50 = vld [vmem:[%s2097_s0 + $0xa8] sm:$0xf]  ;;  %v1411_v51 = vld [vmem:[%s2097_s0 + $0xb8] sm:$0xf0] }
  0x36   :  { %735 = vmatpush.bf16.msrb.mxu2 %v1446_v52  ;;  %686 = vmatpush.bf16.msrb.mxu1 %v1438_v53  ;;  %v1409_v52 = vld [vmem:[%s2097_s0 + $0xac] sm:$0xf]  ;;  %v1160_v53 = vld [vmem:[%s2097_s0 + $0xbc] sm:$0xf0] }
  0x38   :  { %784 = vmatpush.bf16.msrb.mxu3 %v1454_v54  ;;  %833 = vmatpush.bf16.msrb.mxu0 %v1462_v55  ;;  %v1166_v54 = vld [vmem:[%s2097_s0 + $0xb0] sm:$0xf]  ;;  %v1412_v55 = vld [vmem:[%s2097_s0 + $0xc0] sm:$0xf0] }
  0x3a   :  { %736 = vmatpush.bf16.msrb.mxu2 %v1445_v56  ;;  %687 = vmatpush.bf16.msrb.mxu1 %v1437_v57  ;;  %v1155_v56 = vor.u32 %v1408_v48, %v1152_v49  ;;  %v1159_v57 = vor.u32 %v1411_v51, %v1158_v50 }
  0x3c   :  { %785 = vmatpush.bf16.msrb.mxu3 %v1453_v58  ;;  %834 = vmatpush.bf16.msrb.mxu0 %v1461_v59  ;;  %v1163_v58 = vor.u32 %v1409_v52, %v1160_v53  ;;  %v1167_v59 = vor.u32 %v1412_v55, %v1166_v54 }
  0x3e   :  { %737 = vmatpush.bf16.msrb.mxu2 %v1444_v60  ;;  %688 = vmatpush.bf16.msrb.mxu1 %v1436_v61  ;;  %v1413_v60 = vld [vmem:[%s2097_s0 + $0xcc] sm:$0xf]  ;;  %v1172_v61 = vld [vmem:[%s2097_s0 + $0xdc] sm:$0xf0] }
  0x3f   :  { %v1175_v4 = vor.u32 %v1413_v60, %v1172_v61 }
  0x40   :  { %786 = vmatpush.bf16.msrb.mxu3 %v1452_v62  ;;  %835 = vmatpush.bf16.msrb.mxu0 %v1460_v63  ;;  %v1178_v62 = vld [vmem:[%s2097_s0 + $0xd0] sm:$0xf]  ;;  %v1416_v63 = vld [vmem:[%s2097_s0 + $0xe0] sm:$0xf0] }
  0x41   :  { %689 = vmatmul.bf16.vlgmr.msrb.gmra.mxu1 %v1075_v8  ;;  %738 = vmatmul.bf16.vlgmr.msrb.gmra.mxu2 %v1079_v9  ;;  %v1179_v5 = vor.u32 %v1416_v63, %v1178_v62  ;;  %v1418_v8 = vld [vmem:[%s2097_s0 + $0xf4] sm:$0xf]  ;;  %v1192_v9 = vld [vmem:[%s2097_s0 + $0x104] sm:$0xf0]  ;;  %v2003_v62 = vld [vmem:[%s2099_s3] ss:$0 sm:$0xff] }
  0x42   :  { %v1195_v16 = vor.u32 %v1418_v8, %v1192_v9  ;;  %v1471_v9 = vunpack.c.h.bf16 %v1469_v1 }
  0x43   :  { %787 = vmatmul.bf16.vlgmr.msrb.gmra.mxu3 %v1083_v10  ;;  %836 = vmatmul.bf16.vlgmr.msrb.gmra.mxu0 %v1087_v11  ;;  %v1198_v10 = vld [vmem:[%s2097_s0 + $0xf8] sm:$0xf]  ;;  %v1421_v11 = vld [vmem:[%s2097_s0 + $0x108] sm:$0xf0] }
  0x44   :  { %v1199_v17 = vor.u32 %v1421_v11, %v1198_v10 }
  0x51   :  { %694 = vmatmul.bf16.gmra.mxu1 %v1095_v20  ;;  %743 = vmatmul.bf16.gmra.mxu2 %v1099_v21  ;;  %v1207_v20 = vor.u32 %v1422_v15, %v1206_v14 }
  0x53   :  { %792 = vmatmul.bf16.gmra.mxu3 %v1103_v22  ;;  %841 = vmatmul.bf16.gmra.mxu0 %v1107_v23 }
  0x61   :  { %699 = vmatmul.bf16.gmra.mxu1 %v1115_v32  ;;  %748 = vmatmul.bf16.gmra.mxu2 %v1119_v33  ;;  %v1226_v32 = vld [vmem:[%s2097_s0 + $0x128] sm:$0xf]  ;;  %v1427_v33 = vld [vmem:[%s2097_s0 + $0x138] sm:$0xf0] }
  0x62   :  { %v1227_v40 = vor.u32 %v1427_v33, %v1226_v32  ;;  %v1540_v33 = vld [vmem:[%s2100_s4 + $0x8] sm:$0xff]  }
  0x63   :  { %797 = vmatmul.bf16.gmra.mxu3 %v1123_v34  ;;  %846 = vmatmul.bf16.gmra.mxu0 %v1127_v35 }
  0x71   :  { %704 = vmatmul.bf16.gmra.mxu1 %v1135_v44  ;;  %753 = vmatmul.bf16.gmra.mxu2 %v1139_v45 }
  0x73   :  { %802 = vmatmul.bf16.gmra.mxu3 %v1143_v46  ;;  %851 = vmatmul.bf16.gmra.mxu0 %v1147_v47 }
  0x81   :  { %709 = vmatmul.bf16.gmra.mxu1 %v1155_v56  ;;  %758 = vmatmul.bf16.gmra.mxu2 %v1159_v57 }
  0x83   :  { %807 = vmatmul.bf16.gmra.mxu3 %v1163_v58  ;;  %856 = vmatmul.bf16.gmra.mxu0 %v1167_v59  ;;  %v1997_v58 = vld [vmem:[%s2098_s2] ss:$0 sm:$0xff] }
  0x91   :  { %714 = vmatmul.bf16.gmra.mxu1 %v1175_v4  ;;  %763 = vmatmul.bf16.gmra.mxu2 %v1179_v5 }
  0x93   :  { %812 = vmatmul.bf16.gmra.mxu3 %v1183_v6  ;;  %861 = vmatmul.bf16.gmra.mxu0 %v1187_v7  ;;  %v1470_v6 = vunpack.c.l.bf16 %v1469_v1 }
  0x9e   :  { %v1946_v18 = vpop.f32.mrf.mxu1 }
  0xa0   :  { %v641_v21 = vpop.f32.mrf.mxu0 }
  0xa1   :  { %719 = vmatmul.bf16.gmra.mxu1 %v1195_v16  ;;  %768 = vmatmul.bf16.gmra.mxu2 %v1199_v17 }
  0xa3   :  { %817 = vmatmul.bf16.gmra.mxu3 %v1203_v19  ;;  %866 = vmatmul.bf16.gmra.mxu0 %v1207_v20 }
  0xa4   :  { %v1948_v22 = vpop.f32.mrf.mxu2 }
  0xa6   :  { %v1950_v23 = vpop.f32.mrf.mxu3  ;;  %v1952_v24 = vpop.f32.mrf.mxu1 }
  0xa8   :  { %v643_v25 = vpop.f32.mrf.mxu0 }
  0xac   :  { %v1978_v34 = vpop.f32.mrf.mxu2 }
  0xae   :  { %v1980_v35 = vpop.f32.mrf.mxu3  ;;  %v1982_v38 = vpop.f32.mrf.mxu1 }
  0xb0   :  { %v646_v41 = vpop.f32.mrf.mxu0 }
  0xb1   :  { %724 = vmatmul.bf16.gmra.mxu1 %v1215_v36  ;;  %773 = vmatmul.bf16.gmra.mxu2 %v1219_v37 }
  0xb3   :  { %822 = vmatmul.bf16.gmra.mxu3 %v1223_v39  ;;  %871 = vmatmul.bf16.gmra.mxu0 %v1227_v40 }
  0xb4   :  { %v1984_v42 = vpop.f32.mrf.mxu2 }
  0xb6   :  { %v1986_v43 = vpop.f32.mrf.mxu3  ;;  %v1988_v44 = vpop.f32.mrf.mxu1 }
  0xb8   :  { %v648_v45 = vpop.f32.mrf.mxu0 }
  0xbc   :  { %v1990_v46 = vpop.f32.mrf.mxu2 }
  0xbe   :  { %v1992_v47 = vpop.f32.mrf.mxu3  ;;  %v690_v48 = vpop.f32.mrf.mxu1 }
  0xbf   :  { %v691_v50 = vadd.f32 %v690_v48, %v641_v21 }
  0xc0   :  { %v837_v49 = vpop.f32.mrf.mxu0 }
  0xc4   :  { %v739_v51 = vpop.f32.mrf.mxu2 }
  0xc5   :  { %v740_v52 = vadd.f32 %v739_v51, %v691_v50 }
  0xc6   :  { %v788_v53 = vpop.f32.mrf.mxu3  ;;  %v692_v54 = vpop.f32.mrf.mxu1 }
  0xc7   :  { %v789_v55 = vadd.f32 %v788_v53, %v740_v52  ;;  %v693_v59 = vadd.f32 %v692_v54, %v643_v25 }
  0xc8   :  { %v839_v56 = vpop.f32.mrf.mxu0 }
  0xc9   :  { %v838_v57 = vadd.f32 %v837_v49, %v789_v55  ;;  %v1475_v49 = vunpack.c.h.bf16 %v1540_v33 }
  0xcb   :  { %v932_v61 = vmul.f32 %v1997_v58, %v838_v57 }
  0xcc   :  { %v741_v60 = vpop.f32.mrf.mxu2 }
  0xcd   :  { %v742_v63 = vadd.f32 %v741_v60, %v693_v59  ;;  %v952_v5 = vadd.f32 %v2003_v62, %v932_v61 }
  0xce   :  { %v790_v0 = vpop.f32.mrf.mxu3  ;;  %v695_v2 = vpop.f32.mrf.mxu1 }
  0xcf   :  { %v791_v3 = vadd.f32 %v790_v0, %v742_v63  ;;  %v696_v10 = vadd.f32 %v695_v2, %v646_v41  ;;  %v1000_v12 = vadd.f32 %v1470_v6, %v952_v5  ;;  %v1474_v41 = vunpack.c.l.bf16 %v1540_v33  ;;  %v1541_v6 = vld [vmem:[%s2100_s4 + $0x10] sm:$0xff]  }
  0xd0   :  { %v842_v4 = vpop.f32.mrf.mxu0 }
  0xd1   :  { %v840_v7 = vadd.f32 %v839_v56, %v791_v3  ;;  %v1016_v21 = vmax.f32 %v1000_v12, 0.0 }
  0xd3   :  { %v933_v8 = vmul.f32 %v1997_v58, %v840_v7 }
  0xd4   :  { %v744_v11 = vpop.f32.mrf.mxu2 }
  0xd5   :  { %v953_v13 = vadd.f32 %v2003_v62, %v933_v8  ;;  %v745_v14 = vadd.f32 %v744_v11, %v696_v10  ;;  %v1478_v11 = vunpack.c.l.bf16 %v1541_v6 }
  0xd6   :  { %v793_v15 = vpop.f32.mrf.mxu3  ;;  %v697_v16 = vpop.f32.mrf.mxu1 }
  0xd7   :  { %v1001_v17 = vadd.f32 %v1471_v9, %v953_v13  ;;  %v794_v19 = vadd.f32 %v793_v15, %v745_v14  ;;  %v698_v28 = vadd.f32 %v697_v16, %v648_v45  ;;  %v1479_v13 = vunpack.c.h.bf16 %v1541_v6 }
  0xd8   :  { %v844_v20 = vpop.f32.mrf.mxu0 }
  0xd9   :  { %v1017_v25 = vmax.f32 %v1001_v17, 0.0  ;;  %v843_v26 = vadd.f32 %v842_v4, %v794_v19 }
  0xdb   :  { %v1503_v27 = vpack.c.bf16 %v1017_v25, %v1016_v21  ;;  %v934_v30 = vmul.f32 %v1997_v58, %v843_v26 }
  0xdc   :  { %v746_v29 = vpop.f32.mrf.mxu2 }
  0xdd   :  { %1504 = vst [vmem:[%s2101_s5] sm:$0xff] %v1503_v27   ;;  %v747_v31 = vadd.f32 %v746_v29, %v698_v28  ;;  %v954_v40 = vadd.f32 %v2003_v62, %v934_v30 }
  0xde   :  { %v795_v32 = vpop.f32.mrf.mxu3  ;;  %v700_v36 = vpop.f32.mrf.mxu1 }
  0xdf   :  { %v796_v37 = vadd.f32 %v795_v32, %v747_v31  ;;  %v701_v50 = vadd.f32 %v700_v36, %v1946_v18  ;;  %v1002_v52 = vadd.f32 %v1474_v41, %v954_v40 }
  0xe0   :  { %v847_v39 = vpop.f32.mrf.mxu0 }
  0xe1   :  { %v845_v45 = vadd.f32 %v844_v20, %v796_v37  ;;  %v1018_v61 = vmax.f32 %v1002_v52, 0.0 }
  0xe3   :  { %v935_v48 = vmul.f32 %v1997_v58, %v845_v45 }
  0xe4   :  { %v749_v51 = vpop.f32.mrf.mxu2 }
  0xe5   :  { %v955_v53 = vadd.f32 %v2003_v62, %v935_v48  ;;  %v750_v54 = vadd.f32 %v749_v51, %v701_v50 }
  0xe6   :  { %v798_v55 = vpop.f32.mrf.mxu3  ;;  %v702_v56 = vpop.f32.mrf.mxu1 }
  0xe7   :  { %v1003_v57 = vadd.f32 %v1475_v49, %v955_v53  ;;  %v799_v59 = vadd.f32 %v798_v55, %v750_v54  ;;  %v703_v2 = vadd.f32 %v702_v56, %v1952_v24 }
  0xe8   :  { %v849_v60 = vpop.f32.mrf.mxu0 }
  0xe9   :  { %v1019_v63 = vmax.f32 %v1003_v57, 0.0  ;;  %v848_v0 = vadd.f32 %v847_v39, %v799_v59  ;;  %v1542_v39 = vld [vmem:[%s2100_s4 + $0x18] sm:$0xff]  }
  0xea   :  { %v1482_v49 = vunpack.c.l.bf16 %v1542_v39  ;;  %v1483_v51 = vunpack.c.h.bf16 %v1542_v39 }
  0xeb   :  { %v1508_v1 = vpack.c.bf16 %v1019_v63, %v1018_v61  ;;  %v936_v18 = vmul.f32 %v1997_v58, %v848_v0 }
  0xec   :  { %v751_v3 = vpop.f32.mrf.mxu2 }
  0xed   :  { %1547 = vst [vmem:[%s2101_s5 + $0x8] sm:$0xff] %v1508_v1   ;;  %v752_v4 = vadd.f32 %v751_v3, %v703_v2  ;;  %v956_v10 = vadd.f32 %v2003_v62, %v936_v18 }
  0xee   :  { %v800_v5 = vpop.f32.mrf.mxu3  ;;  %v705_v7 = vpop.f32.mrf.mxu1 }
  0xef   :  { %v801_v8 = vadd.f32 %v800_v5, %v752_v4  ;;  %v706_v14 = vadd.f32 %v705_v7, %v1982_v38  ;;  %v1004_v16 = vadd.f32 %v1478_v11, %v956_v10  ;;  %v1543_v7 = vld [vmem:[%s2100_s4 + $0x20] sm:$0xff]  }
  0xf0   :  { %v852_v9 = vpop.f32.mrf.mxu0 }
  0xf1   :  { %v850_v24 = vadd.f32 %v849_v60, %v801_v8  ;;  %v1020_v28 = vmax.f32 %v1004_v16, 0.0 }
  0xf3   :  { %v937_v12 = vmul.f32 %v1997_v58, %v850_v24  ;;  %v1486_v24 = vunpack.c.l.bf16 %v1543_v7 }
  0xf4   :  { %v754_v15 = vpop.f32.mrf.mxu2 }
  0xf5   :  { %v957_v17 = vadd.f32 %v2003_v62, %v937_v12  ;;  %v755_v19 = vadd.f32 %v754_v15, %v706_v14 }
  0xf6   :  { %v803_v20 = vpop.f32.mrf.mxu3  ;;  %v707_v21 = vpop.f32.mrf.mxu1 }
  0xf7   :  { %v1005_v25 = vadd.f32 %v1479_v13, %v957_v17  ;;  %v804_v26 = vadd.f32 %v803_v20, %v755_v19  ;;  %v708_v32 = vadd.f32 %v707_v21, %v1988_v44  ;;  %v1487_v13 = vunpack.c.h.bf16 %v1543_v7 }
  0xf8   :  { %v854_v27 = vpop.f32.mrf.mxu0 }
  0xf9   :  { %v1021_v29 = vmax.f32 %v1005_v25, 0.0  ;;  %v853_v30 = vadd.f32 %v852_v9, %v804_v26 }
  0xfb   :  { %v1513_v31 = vpack.c.bf16 %v1021_v29, %v1020_v28  ;;  %v938_v38 = vmul.f32 %v1997_v58, %v853_v30 }
  0xfc   :  { %v756_v33 = vpop.f32.mrf.mxu2 }
  0xfd   :  { %1548 = vst [vmem:[%s2101_s5 + $0x10] sm:$0xff] %v1513_v31   ;;  %v757_v36 = vadd.f32 %v756_v33, %v708_v32  ;;  %v958_v48 = vadd.f32 %v2003_v62, %v938_v38 }
  0xfe   :  { %v805_v37 = vpop.f32.mrf.mxu3  ;;  %v710_v40 = vpop.f32.mrf.mxu1 }
  0xff   :  { %v806_v41 = vadd.f32 %v805_v37, %v757_v36  ;;  %v711_v52 = vadd.f32 %v710_v40, %v1948_v22  ;;  %v1006_v54 = vadd.f32 %v1482_v49, %v958_v48  ;;  %v1544_v37 = vld [vmem:[%s2100_s4 + $0x28] sm:$0xff]  }
 0x100   :  { %v857_v45 = vpop.f32.mrf.mxu0 }
 0x101   :  { %v855_v44 = vadd.f32 %v854_v27, %v806_v41  ;;  %v1022_v0 = vmax.f32 %v1006_v54, 0.0 }
 0x103   :  { %v939_v50 = vmul.f32 %v1997_v58, %v855_v44  ;;  %v1491_v44 = vunpack.c.h.bf16 %v1544_v37 }
 0x104   :  { %v759_v53 = vpop.f32.mrf.mxu2 }
 0x105   :  { %v959_v55 = vadd.f32 %v2003_v62, %v939_v50  ;;  %v760_v56 = vadd.f32 %v759_v53, %v711_v52 }
 0x106   :  { %v808_v57 = vpop.f32.mrf.mxu3  ;;  %v712_v59 = vpop.f32.mrf.mxu1 }
 0x107   :  { %v1007_v60 = vadd.f32 %v1483_v51, %v959_v55  ;;  %v809_v61 = vadd.f32 %v808_v57, %v760_v56  ;;  %v713_v18 = vadd.f32 %v712_v59, %v1978_v34 }
 0x108   :  { %v859_v63 = vpop.f32.mrf.mxu0 }
 0x109   :  { %v1023_v1 = vmax.f32 %v1007_v60, 0.0  ;;  %v858_v2 = vadd.f32 %v857_v45, %v809_v61  ;;  %v1490_v45 = vunpack.c.l.bf16 %v1544_v37 }
 0x10b   :  { %v1518_v3 = vpack.c.bf16 %v1023_v1, %v1022_v0  ;;  %v940_v22 = vmul.f32 %v1997_v58, %v858_v2 }
 0x10c   :  { %v761_v4 = vpop.f32.mrf.mxu2 }
 0x10d   :  { %1549 = vst [vmem:[%s2101_s5 + $0x18] sm:$0xff] %v1518_v3   ;;  %v762_v5 = vadd.f32 %v761_v4, %v713_v18  ;;  %v960_v11 = vadd.f32 %v2003_v62, %v940_v22  ;;  %v1545_v22 = vld [vmem:[%s2100_s4 + $0x30] sm:$0xff]  }
 0x10e   :  { %v810_v6 = vpop.f32.mrf.mxu3  ;;  %v715_v8 = vpop.f32.mrf.mxu1 }
 0x10f   :  { %v811_v9 = vadd.f32 %v810_v6, %v762_v5  ;;  %v716_v14 = vadd.f32 %v715_v8, %v1984_v42  ;;  %v1008_v16 = vadd.f32 %v1486_v24, %v960_v11  ;;  %v1494_v8 = vunpack.c.l.bf16 %v1545_v22 }
 0x110   :  { %v862_v10 = vpop.f32.mrf.mxu0 }
 0x111   :  { %v860_v34 = vadd.f32 %v859_v63, %v811_v9  ;;  %v1024_v28 = vmax.f32 %v1008_v16, 0.0 }
 0x113   :  { %v941_v12 = vmul.f32 %v1997_v58, %v860_v34 }
 0x114   :  { %v764_v15 = vpop.f32.mrf.mxu2 }
 0x115   :  { %v961_v17 = vadd.f32 %v2003_v62, %v941_v12  ;;  %v765_v19 = vadd.f32 %v764_v15, %v716_v14 }
 0x116   :  { %v813_v20 = vpop.f32.mrf.mxu3  ;;  %v717_v21 = vpop.f32.mrf.mxu1 }
 0x117   :  { %v1009_v25 = vadd.f32 %v1487_v13, %v961_v17  ;;  %v814_v26 = vadd.f32 %v813_v20, %v765_v19  ;;  %v718_v32 = vadd.f32 %v717_v21, %v1990_v46 }
 0x118   :  { %v864_v27 = vpop.f32.mrf.mxu0 }
 0x119   :  { %v1025_v29 = vmax.f32 %v1009_v25, 0.0  ;;  %v863_v30 = vadd.f32 %v862_v10, %v814_v26  ;;  %v1495_v10 = vunpack.c.h.bf16 %v1545_v22 }
 0x11b   :  { %v1523_v31 = vpack.c.bf16 %v1025_v29, %v1024_v28  ;;  %v942_v42 = vmul.f32 %v1997_v58, %v863_v30  ;;  %v1546_v30 = vld [vmem:[%s2100_s4 + $0x38] sm:$0xff]  }
 0x11c   :  { %v766_v33 = vpop.f32.mrf.mxu2  ;;  %v1499_v37 = vunpack.c.h.bf16 %v1546_v30 }
 0x11d   :  { %1550 = vst [vmem:[%s2101_s5 + $0x20] sm:$0xff] %v1523_v31   ;;  %v767_v38 = vadd.f32 %v766_v33, %v718_v32  ;;  %v962_v41 = vadd.f32 %v2003_v62, %v942_v42 }
 0x11e   :  { %v815_v36 = vpop.f32.mrf.mxu3  ;;  %v720_v39 = vpop.f32.mrf.mxu1 }
 0x11f   :  { %v816_v40 = vadd.f32 %v815_v36, %v767_v38  ;;  %v721_v50 = vadd.f32 %v720_v39, %v1950_v23  ;;  %v1010_v52 = vadd.f32 %v1490_v45, %v962_v41  ;;  %v1498_v38 = vunpack.c.l.bf16 %v1546_v30 }
 0x120   :  { %v867_v46 = vpop.f32.mrf.mxu0 }
 0x121   :  { %v865_v48 = vadd.f32 %v864_v27, %v816_v40  ;;  %v1026_v60 = vmax.f32 %v1010_v52, 0.0 }
 0x123   :  { %v943_v49 = vmul.f32 %v1997_v58, %v865_v48 }
 0x124   :  { %v769_v51 = vpop.f32.mrf.mxu2 }
 0x125   :  { %v963_v53 = vadd.f32 %v2003_v62, %v943_v49  ;;  %v770_v54 = vadd.f32 %v769_v51, %v721_v50 }
 0x126   :  { %v818_v55 = vpop.f32.mrf.mxu3  ;;  %v722_v56 = vpop.f32.mrf.mxu1 }
 0x127   :  { %v1011_v57 = vadd.f32 %v1491_v44, %v963_v53  ;;  %v819_v59 = vadd.f32 %v818_v55, %v770_v54  ;;  %v723_v1 = vadd.f32 %v722_v56, %v1980_v35 }
 0x128   :  { %v869_v2 = vpop.f32.mrf.mxu0 }
 0x129   :  { %v1027_v61 = vmax.f32 %v1011_v57, 0.0  ;;  %v868_v63 = vadd.f32 %v867_v46, %v819_v59 }
 0x12b   :  { %v1528_v0 = vpack.c.bf16 %v1027_v61, %v1026_v60  ;;  %v944_v23 = vmul.f32 %v1997_v58, %v868_v63 }
 0x12c   :  { %v771_v3 = vpop.f32.mrf.mxu2 }
 0x12d   :  { %1551 = vst [vmem:[%s2101_s5 + $0x28] sm:$0xff] %v1528_v0   ;;  %v772_v18 = vadd.f32 %v771_v3, %v723_v1  ;;  %v964_v7 = vadd.f32 %v2003_v62, %v944_v23 }
 0x12e   :  { %v820_v4 = vpop.f32.mrf.mxu3  ;;  %v725_v5 = vpop.f32.mrf.mxu1 }
 0x12f   :  { %v821_v6 = vadd.f32 %v820_v4, %v772_v18  ;;  %v726_v11 = vadd.f32 %v725_v5, %v1986_v43  ;;  %v1012_v34 = vadd.f32 %v1494_v8, %v964_v7 }
 0x130   :  { %v872_v15 = vpop.f32.mrf.mxu0 }
 0x131   :  { %v870_v35 = vadd.f32 %v869_v2, %v821_v6  ;;  %v1028_v20 = vmax.f32 %v1012_v34, 0.0 }
 0x133   :  { %v945_v9 = vmul.f32 %v1997_v58, %v870_v35 }
 0x134   :  { %v774_v24 = vpop.f32.mrf.mxu2 }
 0x135   :  { %v965_v12 = vadd.f32 %v2003_v62, %v945_v9  ;;  %v775_v13 = vadd.f32 %v774_v24, %v726_v11 }
 0x136   :  { %v823_v14 = vpop.f32.mrf.mxu3  ;;  %v727_v19 = vpop.f32.mrf.mxu1 }
 0x137   :  { %v1013_v16 = vadd.f32 %v1495_v10, %v965_v12  ;;  %v824_v17 = vadd.f32 %v823_v14, %v775_v13  ;;  %v728_v27 = vadd.f32 %v727_v19, %v1992_v47 }
 0x138   :  { %v874_v33 = vpop.f32.mrf.mxu0 }
 0x139   :  { %v1029_v21 = vmax.f32 %v1013_v16, 0.0  ;;  %v873_v25 = vadd.f32 %v872_v15, %v824_v17 }
 0x13b   :  { %v1533_v26 = vpack.c.bf16 %v1029_v21, %v1028_v20  ;;  %v946_v43 = vmul.f32 %v1997_v58, %v873_v25 }
 0x13c   :  { %v776_v28 = vpop.f32.mrf.mxu2 }
 0x13d   :  { %1552 = vst [vmem:[%s2101_s5 + $0x30] sm:$0xff] %v1533_v26   ;;  %v777_v29 = vadd.f32 %v776_v28, %v728_v27  ;;  %v966_v42 = vadd.f32 %v2003_v62, %v946_v43 }
 0x13e   :  { %v825_v31 = vpop.f32.mrf.mxu3 }
 0x13f   :  { %v826_v32 = vadd.f32 %v825_v31, %v777_v29  ;;  %v1014_v39 = vadd.f32 %v1498_v38, %v966_v42 }
 0x141   :  { %v875_v36 = vadd.f32 %v874_v33, %v826_v32  ;;  %v1030_v45 = vmax.f32 %v1014_v39, 0.0 }
 0x143   :  { %v947_v47 = vmul.f32 %v1997_v58, %v875_v36 }
 0x145   :  { %v967_v40 = vadd.f32 %v2003_v62, %v947_v47 }
 0x147   :  { %v1015_v41 = vadd.f32 %v1499_v37, %v967_v40 }
 0x149   :  { %v1031_v48 = vmax.f32 %v1015_v41, 0.0 }
 0x14b   :  { %v1538_v46 = vpack.c.bf16 %v1031_v48, %v1030_v45 }
 0x14d   :  { %1553 = vst [vmem:[%s2101_s5 + $0x38] sm:$0xff] %v1538_v46  }

// kernel: _lambda_.30
= control target key start
LH: loop header
LB: loop body
LE: loop exit
PB: predicated region body
PF: predicated region fallthrough
CT: control target
= control target key end

     0   :  { %s1043_s1 = inlined_call_operand.vmem [shape: bf16[640,128], index: 1, kind: input, shape index: {}]   ;;  %s1044_s0 = inlined_call_operand.vmem [shape: bf16[32,640], index: 0, kind: input, shape index: {}]   ;;  %s1045_s2 = inlined_call_operand.vmem [shape: f32[1,128], index: 2, kind: input, shape index: {}]   ;;  %s1046_s3 = inlined_call_operand.vmem [shape: f32[1,128], index: 3, kind: input, shape index: {}]   ;;  %s1047_s4 = inlined_call_operand.vmem [shape: bf16[32,128], index: 4, kind: output, shape index: {}]  }
   0x1   :  { %v772_v0 = vld [vmem:[%s1043_s1 + $0x38] sm:$0xff]  ;;  %v771_v4 = vld [vmem:[%s1043_s1 + $0x30] sm:$0xff]  ;;  %v770_v8 = vld [vmem:[%s1043_s1 + $0x28] sm:$0xff] }
   0x2   :  { %v780_v1 = vld [vmem:[%s1043_s1 + $0x78] sm:$0xff]  ;;  %413 = vmatpush.bf16.msra.mxu0 %v772_v0  ;;  %v779_v5 = vld [vmem:[%s1043_s1 + $0x70] sm:$0xff]  ;;  %v778_v9 = vld [vmem:[%s1043_s1 + $0x68] sm:$0xff] }
   0x3   :  { %v788_v2 = vld [vmem:[%s1043_s1 + $0xb8] sm:$0xff]  ;;  %432 = vmatpush.bf16.msra.mxu1 %v780_v1  ;;  %v787_v6 = vld [vmem:[%s1043_s1 + $0xb0] sm:$0xff]  ;;  %v786_v10 = vld [vmem:[%s1043_s1 + $0xa8] sm:$0xff] }
   0x4   :  { %v796_v3 = vld [vmem:[%s1043_s1 + $0xf8] sm:$0xff]  ;;  %451 = vmatpush.bf16.msra.mxu2 %v788_v2  ;;  %v795_v7 = vld [vmem:[%s1043_s1 + $0xf0] sm:$0xff]  ;;  %v794_v11 = vld [vmem:[%s1043_s1 + $0xe8] sm:$0xff] }
   0x5   :  { %470 = vmatpush.bf16.msra.mxu3 %v796_v3  ;;  %v769_v12 = vld [vmem:[%s1043_s1 + $0x20] sm:$0xff]  ;;  %v768_v16 = vld [vmem:[%s1043_s1 + $0x18] sm:$0xff]  ;;  %v767_v20 = vld [vmem:[%s1043_s1 + $0x10] sm:$0xff] }
   0x6   :  { %414 = vmatpush.bf16.msra.mxu0 %v771_v4  ;;  %v777_v13 = vld [vmem:[%s1043_s1 + $0x60] sm:$0xff]  ;;  %v776_v17 = vld [vmem:[%s1043_s1 + $0x58] sm:$0xff]  ;;  %v775_v21 = vld [vmem:[%s1043_s1 + $0x50] sm:$0xff] }
   0x7   :  { %433 = vmatpush.bf16.msra.mxu1 %v779_v5  ;;  %v785_v14 = vld [vmem:[%s1043_s1 + $0xa0] sm:$0xff]  ;;  %v784_v18 = vld [vmem:[%s1043_s1 + $0x98] sm:$0xff]  ;;  %v783_v22 = vld [vmem:[%s1043_s1 + $0x90] sm:$0xff] }
   0x8   :  { %452 = vmatpush.bf16.msra.mxu2 %v787_v6  ;;  %v793_v15 = vld [vmem:[%s1043_s1 + $0xe0] sm:$0xff]  ;;  %v792_v19 = vld [vmem:[%s1043_s1 + $0xd8] sm:$0xff]  ;;  %v791_v23 = vld [vmem:[%s1043_s1 + $0xd0] sm:$0xff] }
   0x9   :  { %471 = vmatpush.bf16.msra.mxu3 %v795_v7  ;;  %v766_v24 = vld [vmem:[%s1043_s1 + $0x8] sm:$0xff]  ;;  %v765_v28 = vld [vmem:[%s1043_s1] sm:$0xff]  ;;  %v757_v33 = vld [vmem:[%s1044_s0 + $0x10] sm:$0xf0] }
   0xa   :  { %415 = vmatpush.bf16.msra.mxu0 %v770_v8  ;;  %v774_v25 = vld [vmem:[%s1043_s1 + $0x48] sm:$0xff]  ;;  %v773_v29 = vld [vmem:[%s1043_s1 + $0x40] sm:$0xff]  ;;  %v559_v35 = vld [vmem:[%s1044_s0 + $0x14] sm:$0xf0] }
   0xb   :  { %434 = vmatpush.bf16.msra.mxu1 %v778_v9  ;;  %v782_v26 = vld [vmem:[%s1043_s1 + $0x88] sm:$0xff]  ;;  %v781_v30 = vld [vmem:[%s1043_s1 + $0x80] sm:$0xff]  ;;  %v758_v37 = vld [vmem:[%s1044_s0 + $0x18] sm:$0xf0] }
   0xc   :  { %453 = vmatpush.bf16.msra.mxu2 %v786_v10  ;;  %v790_v27 = vld [vmem:[%s1043_s1 + $0xc8] sm:$0xff]  ;;  %v789_v31 = vld [vmem:[%s1043_s1 + $0xc0] sm:$0xff]  ;;  %v804_v40 = vld [vmem:[%s1043_s1 + $0x138] sm:$0xff] }
   0xd   :  { %472 = vmatpush.bf16.msra.mxu3 %v794_v11  ;;  %v557_v32 = vld [vmem:[%s1044_s0] sm:$0xf]  ;;  %v755_v34 = vld [vmem:[%s1044_s0 + $0x4] sm:$0xf]  ;;  %v565_v36 = vld [vmem:[%s1044_s0 + $0x8] sm:$0xf] }
   0xe   :  { %416 = vmatpush.bf16.msra.mxu0 %v769_v12  ;;  %v756_v38 = vld [vmem:[%s1044_s0 + $0xc] sm:$0xf]  ;;  %v567_v39 = vld [vmem:[%s1044_s0 + $0x1c] sm:$0xf0]  ;;  %v558_v41 = vor.u32 %v757_v33, %v557_v32  ;;  %v562_v42 = vor.u32 %v755_v34, %v559_v35  ;;  %v566_v43 = vor.u32 %v758_v37, %v565_v36  ;;  %v803_v45 = vld [vmem:[%s1043_s1 + $0x130] sm:$0xff] }
   0xf   :  { %435 = vmatpush.bf16.msra.mxu1 %v777_v13  ;;  %v570_v44 = vor.u32 %v756_v38, %v567_v39  ;;  %v802_v46 = vld [vmem:[%s1043_s1 + $0x128] sm:$0xff]  ;;  %v801_v47 = vld [vmem:[%s1043_s1 + $0x120] sm:$0xff]  ;;  %v762_v49 = vld [vmem:[%s1044_s0 + $0x38] sm:$0xf0] }
  0x10   :  { %454 = vmatpush.bf16.msra.mxu2 %v785_v14  ;;  %v577_v48 = vld [vmem:[%s1044_s0 + $0x28] sm:$0xf]  ;;  %v760_v50 = vld [vmem:[%s1044_s0 + $0x2c] sm:$0xf]  ;;  %v579_v51 = vld [vmem:[%s1044_s0 + $0x3c] sm:$0xf0] }
  0x11   :  { %473 = vmatpush.bf16.msra.mxu3 %v793_v15  ;;  %v585_v52 = vld [vmem:[%s1044_s0 + $0x30] sm:$0xf]  ;;  %v763_v53 = vld [vmem:[%s1044_s0 + $0x40] sm:$0xf0]  ;;  %v761_v54 = vld [vmem:[%s1044_s0 + $0x34] sm:$0xf]  ;;  %v578_v57 = vor.u32 %v762_v49, %v577_v48  ;;  %v582_v58 = vor.u32 %v760_v50, %v579_v51 }
  0x12   :  { %417 = vmatpush.bf16.msra.mxu0 %v768_v16  ;;  %v587_v55 = vld [vmem:[%s1044_s0 + $0x44] sm:$0xf0]  ;;  %v800_v56 = vld [vmem:[%s1043_s1 + $0x118] sm:$0xff]  ;;  %v586_v59 = vor.u32 %v763_v53, %v585_v52  ;;  %v799_v61 = vld [vmem:[%s1043_s1 + $0x110] sm:$0xff] }
  0x13   :  { %436 = vmatpush.bf16.msra.mxu1 %v776_v17  ;;  %v590_v60 = vor.u32 %v761_v54, %v587_v55  ;;  %v798_v62 = vld [vmem:[%s1043_s1 + $0x108] sm:$0xff]  ;;  %v797_v63 = vld [vmem:[%s1043_s1 + $0x100] sm:$0xff]  ;;  %v573_v0 = vld [vmem:[%s1044_s0 + $0x10] sm:$0xf] }
  0x14   :  { %455 = vmatpush.bf16.msra.mxu2 %v784_v18  ;;  %v759_v1 = vld [vmem:[%s1044_s0 + $0x20] sm:$0xf0]  ;;  %v593_v2 = vld [vmem:[%s1044_s0 + $0x38] sm:$0xf]  ;;  %v764_v3 = vld [vmem:[%s1044_s0 + $0x48] sm:$0xf0] }
  0x15   :  { %474 = vmatpush.bf16.msra.mxu3 %v792_v19  ;;  %v574_v4 = vor.u32 %v759_v1, %v573_v0  ;;  %v594_v5 = vor.u32 %v764_v3, %v593_v2  ;;  %v824_v34 = vld [vmem:[%s1045_s2] ss:$0 sm:$0xff] }
  0x16   :  { %418 = vmatpush.bf16.msra.mxu0 %v767_v20 }
  0x17   :  { %437 = vmatpush.bf16.msra.mxu1 %v775_v21 }
  0x18   :  { %456 = vmatpush.bf16.msra.mxu2 %v783_v22 }
  0x19   :  { %475 = vmatpush.bf16.msra.mxu3 %v791_v23 }
  0x1a   :  { %419 = vmatpush.bf16.msra.mxu0 %v766_v24 }
  0x1b   :  { %438 = vmatpush.bf16.msra.mxu1 %v774_v25 }
  0x1c   :  { %457 = vmatpush.bf16.msra.mxu2 %v782_v26 }
  0x1d   :  { %476 = vmatpush.bf16.msra.mxu3 %v790_v27 }
  0x1e   :  { %420 = vmatpush.bf16.msra.mxu0 %v765_v28 }
  0x1f   :  { %439 = vmatpush.bf16.msra.mxu1 %v773_v29 }
  0x20   :  { %458 = vmatpush.bf16.msra.mxu2 %v781_v30 }
  0x21   :  { %477 = vmatpush.bf16.msra.mxu3 %v789_v31  ;;  %421 = vmatmul.bf16.vlgmr.msra.gmra.mxu0 %v558_v41 }
  0x22   :  { %489 = vmatpush.bf16.msrb.mxu0 %v804_v40  ;;  %440 = vmatmul.bf16.vlgmr.msra.gmra.mxu1 %v562_v42 }
  0x23   :  { %816 = vmatpush.bf16.msrb.mxu1 %v804_v40  ;;  %459 = vmatmul.bf16.vlgmr.msra.gmra.mxu2 %v566_v43  ;;  %v825_v40 = vld [vmem:[%s1046_s3] ss:$0 sm:$0xff] }
  0x24   :  { %478 = vmatmul.bf16.vlgmr.msra.gmra.mxu3 %v570_v44 }
  0x26   :  { %490 = vmatpush.bf16.msrb.mxu0 %v803_v45 }
  0x27   :  { %817 = vmatpush.bf16.msrb.mxu1 %v803_v45 }
  0x2a   :  { %491 = vmatpush.bf16.msrb.mxu0 %v802_v46 }
  0x2b   :  { %818 = vmatpush.bf16.msrb.mxu1 %v802_v46 }
  0x2e   :  { %492 = vmatpush.bf16.msrb.mxu0 %v801_v47 }
  0x2f   :  { %819 = vmatpush.bf16.msrb.mxu1 %v801_v47 }
  0x31   :  { %426 = vmatmul.bf16.gmra.mxu0 %v578_v57 }
  0x32   :  { %493 = vmatpush.bf16.msrb.mxu0 %v800_v56  ;;  %445 = vmatmul.bf16.gmra.mxu1 %v582_v58 }
  0x33   :  { %820 = vmatpush.bf16.msrb.mxu1 %v800_v56  ;;  %464 = vmatmul.bf16.gmra.mxu2 %v586_v59 }
  0x34   :  { %483 = vmatmul.bf16.gmra.mxu3 %v590_v60 }
  0x36   :  { %494 = vmatpush.bf16.msrb.mxu0 %v799_v61 }
  0x37   :  { %821 = vmatpush.bf16.msrb.mxu1 %v799_v61 }
  0x3a   :  { %495 = vmatpush.bf16.msrb.mxu0 %v798_v62 }
  0x3b   :  { %822 = vmatpush.bf16.msrb.mxu1 %v798_v62 }
  0x3e   :  { %496 = vmatpush.bf16.msrb.mxu0 %v797_v63 }
  0x3f   :  { %823 = vmatpush.bf16.msrb.mxu1 %v797_v63 }
  0x41   :  { %497 = vmatmul.bf16.vlgmr.msrb.gmra.mxu0 %v574_v4 }
  0x42   :  { %502 = vmatmul.bf16.vlgmr.msrb.gmra.mxu1 %v594_v5 }
  0x9e   :  { %v422_v6 = vpop.f32.mrf.mxu0 }
  0x9f   :  { %v441_v7 = vpop.f32.mrf.mxu1 }
  0xa0   :  { %v442_v19 = vadd.f32 %v441_v7, %v422_v6 }
  0xa6   :  { %v460_v8 = vpop.f32.mrf.mxu2  ;;  %v424_v10 = vpop.f32.mrf.mxu0 }
  0xa7   :  { %v479_v9 = vpop.f32.mrf.mxu3  ;;  %v443_v11 = vpop.f32.mrf.mxu1  ;;  %v461_v22 = vadd.f32 %v460_v8, %v442_v19 }
  0xa8   :  { %v444_v28 = vadd.f32 %v443_v11, %v424_v10 }
  0xa9   :  { %v480_v27 = vadd.f32 %v479_v9, %v461_v22 }
  0xae   :  { %v462_v12 = vpop.f32.mrf.mxu2  ;;  %v427_v13 = vpop.f32.mrf.mxu0 }
  0xaf   :  { %v446_v14 = vpop.f32.mrf.mxu1  ;;  %v481_v15 = vpop.f32.mrf.mxu3  ;;  %v463_v31 = vadd.f32 %v462_v12, %v444_v28 }
  0xb0   :  { %v447_v20 = vadd.f32 %v446_v14, %v427_v13 }
  0xb1   :  { %v482_v37 = vadd.f32 %v481_v15, %v463_v31 }
  0xb6   :  { %v465_v16 = vpop.f32.mrf.mxu2  ;;  %v429_v17 = vpop.f32.mrf.mxu0 }
  0xb7   :  { %v448_v18 = vpop.f32.mrf.mxu1  ;;  %v484_v21 = vpop.f32.mrf.mxu3  ;;  %v466_v23 = vadd.f32 %v465_v16, %v447_v20 }
  0xb8   :  { %v449_v30 = vadd.f32 %v448_v18, %v429_v17 }
  0xb9   :  { %v485_v29 = vadd.f32 %v484_v21, %v466_v23 }
  0xbe   :  { %v467_v24 = vpop.f32.mrf.mxu2  ;;  %v498_v25 = vpop.f32.mrf.mxu0 }
  0xbf   :  { %v503_v26 = vpop.f32.mrf.mxu1  ;;  %v468_v32 = vadd.f32 %v467_v24, %v449_v30  ;;  %v499_v33 = vadd.f32 %v498_v25, %v480_v27  ;;  %v486_v36 = vpop.f32.mrf.mxu3 }
  0xc0   :  { %v504_v35 = vadd.f32 %v503_v26, %v485_v29 }
  0xc1   :  { %v487_v38 = vadd.f32 %v486_v36, %v468_v32  ;;  %v527_v39 = vmul.f32 %v824_v34, %v499_v33 }
  0xc2   :  { %v529_v41 = vmul.f32 %v824_v34, %v504_v35 }
  0xc3   :  { %v535_v46 = vadd.f32 %v825_v40, %v527_v39 }
  0xc4   :  { %v537_v47 = vadd.f32 %v825_v40, %v529_v41 }
  0xc5   :  { %v539_v52 = vmax.f32 %v535_v46, 0.0 }
  0xc6   :  { %v500_v42 = vpop.f32.mrf.mxu0  ;;  %v541_v53 = vmax.f32 %v537_v47, 0.0 }
  0xc7   :  { %v505_v43 = vpop.f32.mrf.mxu1  ;;  %v501_v44 = vadd.f32 %v500_v42, %v482_v37 }
  0xc8   :  { %v506_v45 = vadd.f32 %v505_v43, %v487_v38 }
  0xc9   :  { %v528_v48 = vmul.f32 %v824_v34, %v501_v44 }
  0xca   :  { %v530_v49 = vmul.f32 %v824_v34, %v506_v45 }
  0xcb   :  { %v536_v50 = vadd.f32 %v825_v40, %v528_v48 }
  0xcc   :  { %v538_v51 = vadd.f32 %v825_v40, %v530_v49 }
  0xcd   :  { %v540_v54 = vmax.f32 %v536_v50, 0.0 }
  0xce   :  { %v542_v55 = vmax.f32 %v538_v51, 0.0 }
  0xcf   :  { %v808_v56 = vpack.c.bf16 %v540_v54, %v539_v52 }
  0xd0   :  { %v813_v57 = vpack.c.bf16 %v542_v55, %v541_v53 }
  0xd1   :  { %809 = vst [vmem:[%s1047_s4] sm:$0xff] %v808_v56  }
  0xd2   :  { %815 = vst [vmem:[%s1047_s4 + $0x8] sm:$0xff] %v813_v57  }

// kernel: _lambda_.40
= control target key start
LH: loop header
LB: loop body
LE: loop exit
PB: predicated region body
PF: predicated region fallthrough
CT: control target
= control target key end

     0   :  { %vm112_vm0 = vcmask 1041409   ;;  %vm114_vm1 = vcmask 1042434   ;;  %vm116_vm2 = vcmask 1043459   ;;  %vm118_vm3 = vcmask 1044484   ;;  %s210_s0 = inlined_call_operand.vmem [shape: bf16[8,16,128], index: 0, kind: input, shape index: {}]   ;;  %s211_s1 = inlined_call_operand.vmem [shape: f32[8,128], index: 1, kind: output, shape index: {}]  }
   0x1   :  { %v133_v0 = vld [vmem:[%s210_s0] sm:$0xff]   ;;  %v164_v1 = vld [vmem:[%s210_s0 + $0x8] sm:$0xff]   ;;  %v165_v2 = vld [vmem:[%s210_s0 + $0x10] sm:$0xff]   ;;  %vm120_vm4 = vcmask 1045509   ;;  %vm122_vm5 = vcmask 1046534   ;;  %vm124_vm6 = vcmask 1047559  }
   0x2   :  { %v134_v3 = vunpack.c.l.bf16 %v133_v0  ;;  %v135_v4 = vunpack.c.h.bf16 %v133_v0  ;;  %v138_v5 = vunpack.c.l.bf16 %v164_v1  ;;  %v139_v6 = vunpack.c.h.bf16 %v164_v1  ;;  %v166_v7 = vld [vmem:[%s210_s0 + $0x18] sm:$0xff]   ;;  %v167_v8 = vld [vmem:[%s210_s0 + $0x20] sm:$0xff]   ;;  %v168_v9 = vld [vmem:[%s210_s0 + $0x28] sm:$0xff]  }
   0x3   :  { %v142_v10 = vunpack.c.l.bf16 %v165_v2  ;;  %v143_v11 = vunpack.c.h.bf16 %v165_v2  ;;  %v146_v12 = vunpack.c.l.bf16 %v166_v7  ;;  %v147_v13 = vunpack.c.h.bf16 %v166_v7  ;;  %v169_v14 = vld [vmem:[%s210_s0 + $0x30] sm:$0xff]   ;;  %v170_v15 = vld [vmem:[%s210_s0 + $0x38] sm:$0xff]  }
   0x4   :  { %v150_v16 = vunpack.c.l.bf16 %v167_v8  ;;  %v151_v17 = vunpack.c.h.bf16 %v167_v8  ;;  %v154_v18 = vunpack.c.l.bf16 %v168_v9  ;;  %v155_v19 = vunpack.c.h.bf16 %v168_v9 }
   0x5   :  { %v158_v20 = vunpack.c.l.bf16 %v169_v14  ;;  %v159_v21 = vunpack.c.h.bf16 %v169_v14  ;;  %v162_v22 = vunpack.c.l.bf16 %v170_v15  ;;  %v163_v23 = vunpack.c.h.bf16 %v170_v15 }
   0x6   :  { %v40_v24 = vadd.f32 %v135_v4, %v134_v3  ;;  %v47_v25 = vadd.f32 %v139_v6, %v138_v5  ;;  %v54_v26 = vadd.f32 %v143_v11, %v142_v10  ;;  %v61_v27 = vadd.f32 %v147_v13, %v146_v12 }
   0x7   :  { %v68_v28 = vadd.f32 %v151_v17, %v150_v16  ;;  %v75_v29 = vadd.f32 %v155_v19, %v154_v18  ;;  %v82_v30 = vadd.f32 %v159_v21, %v158_v20  ;;  %v89_v31 = vadd.f32 %v163_v23, %v162_v22 }
   0x8   :  { %v41_v32 = vrot.slane %v40_v24, 4  ;;  %v48_v33 = vrot.slane %v47_v25, 4  ;;  %v55_v34 = vrot.slane %v54_v26, 4  ;;  %v62_v35 = vrot.slane %v61_v27, 4 }
   0x9   :  { %v69_v36 = vrot.slane %v68_v28, 4  ;;  %v76_v37 = vrot.slane %v75_v29, 4  ;;  %v83_v38 = vrot.slane %v82_v30, 4  ;;  %v90_v39 = vrot.slane %v89_v31, 4 }
   0xa   :  { %v42_v40 = vadd.f32 %v41_v32, %v40_v24  ;;  %v49_v41 = vadd.f32 %v48_v33, %v47_v25  ;;  %v56_v42 = vadd.f32 %v55_v34, %v54_v26  ;;  %v63_v43 = vadd.f32 %v62_v35, %v61_v27 }
   0xb   :  { %v70_v44 = vadd.f32 %v69_v36, %v68_v28  ;;  %v77_v45 = vadd.f32 %v76_v37, %v75_v29  ;;  %v84_v46 = vadd.f32 %v83_v38, %v82_v30  ;;  %v91_v47 = vadd.f32 %v90_v39, %v89_v31 }
   0xc   :  { %v43_v48 = vrot.slane %v42_v40, 2  ;;  %v50_v49 = vrot.slane %v49_v41, 2  ;;  %v57_v50 = vrot.slane %v56_v42, 2  ;;  %v64_v51 = vrot.slane %v63_v43, 2 }
   0xd   :  { %v71_v52 = vrot.slane %v70_v44, 2  ;;  %v78_v53 = vrot.slane %v77_v45, 2  ;;  %v85_v54 = vrot.slane %v84_v46, 2  ;;  %v92_v55 = vrot.slane %v91_v47, 2 }
   0xe   :  { %v44_v56 = vadd.f32 %v43_v48, %v42_v40  ;;  %v51_v57 = vadd.f32 %v50_v49, %v49_v41  ;;  %v58_v58 = vadd.f32 %v57_v50, %v56_v42  ;;  %v65_v59 = vadd.f32 %v64_v51, %v63_v43 }
   0xf   :  { %v72_v60 = vadd.f32 %v71_v52, %v70_v44  ;;  %v79_v61 = vadd.f32 %v78_v53, %v77_v45  ;;  %v86_v62 = vadd.f32 %v85_v54, %v84_v46  ;;  %v93_v63 = vadd.f32 %v92_v55, %v91_v47 }
  0x10   :  { %v45_v0 = vrot.slane %v44_v56, 1  ;;  %v52_v1 = vrot.slane %v51_v57, 1  ;;  %v59_v2 = vrot.slane %v58_v58, 1  ;;  %v66_v3 = vrot.slane %v65_v59, 1 }
  0x11   :  { %v73_v4 = vrot.slane %v72_v60, 1  ;;  %v80_v5 = vrot.slane %v79_v61, 1  ;;  %v87_v6 = vrot.slane %v86_v62, 1  ;;  %v94_v7 = vrot.slane %v93_v63, 1 }
  0x12   :  { %v46_v8 = vadd.f32 %v45_v0, %v44_v56  ;;  %v53_v9 = vadd.f32 %v52_v1, %v51_v57  ;;  %v60_v10 = vadd.f32 %v59_v2, %v58_v58  ;;  %v67_v11 = vadd.f32 %v66_v3, %v65_v59 }
  0x13   :  { %v74_v12 = vadd.f32 %v73_v4, %v72_v60  ;;  %v81_v13 = vadd.f32 %v80_v5, %v79_v61  ;;  %v88_v14 = vadd.f32 %v87_v6, %v86_v62  ;;  %v95_v15 = vadd.f32 %v94_v7, %v93_v63 }
  0x14   :  { %v96_v16 = vmul.f32 0.0625, %v46_v8  ;;  %v97_v17 = vmul.f32 0.0625, %v53_v9  ;;  %v98_v18 = vmul.f32 0.0625, %v60_v10  ;;  %v99_v19 = vmul.f32 0.0625, %v67_v11 }
  0x15   :  { %v100_v20 = vmul.f32 0.0625, %v74_v12  ;;  %v101_v21 = vmul.f32 0.0625, %v81_v13  ;;  %v102_v23 = vmul.f32 0.0625, %v88_v14  ;;  %v103_v25 = vmul.f32 0.0625, %v95_v15 }
  0x16   :  { %v113_v22 = vsel %vm112_vm0, %v97_v17, %v96_v16 }
  0x17   :  { %v115_v24 = vsel %vm114_vm1, %v98_v18, %v113_v22 }
  0x18   :  { %v117_v26 = vsel %vm116_vm2, %v99_v19, %v115_v24 }
  0x19   :  { %v119_v27 = vsel %vm118_vm3, %v100_v20, %v117_v26 }
  0x1a   :  { %v121_v28 = vsel %vm120_vm4, %v101_v21, %v119_v27 }
  0x1b   :  { %v123_v29 = vsel %vm122_vm5, %v102_v23, %v121_v28 }
  0x1c   :  { %v125_v30 = vsel %vm124_vm6, %v103_v25, %v123_v29 }
  0x1d   :  { %127 = vst [vmem:[%s211_s1] sm:$0xff] %v125_v30 }

// kernel: _lambda_.32
= control target key start
LH: loop header
LB: loop body
LE: loop exit
PB: predicated region body
PF: predicated region fallthrough
CT: control target
= control target key end

     0   :  { %s1802_s1 = inlined_call_operand.vmem [shape: bf16[1152,128], index: 1, kind: input, shape index: {}]   ;;  %s1803_s0 = inlined_call_operand.vmem [shape: bf16[32,1152], index: 0, kind: input, shape index: {}]   ;;  %s1804_s2 = inlined_call_operand.vmem [shape: f32[1,128], index: 2, kind: input, shape index: {}]   ;;  %s1805_s3 = inlined_call_operand.vmem [shape: f32[1,128], index: 3, kind: input, shape index: {}]   ;;  %s1806_s4 = inlined_call_operand.vmem [shape: bf16[32,128], index: 4, kind: input, shape index: {}]   ;;  %s1807_s5 = inlined_call_operand.vmem [shape: bf16[32,128], index: 5, kind: output, shape index: {}]  }
   0x1   :  { %v1335_v0 = vld [vmem:[%s1802_s1 + $0x38] sm:$0xff]  ;;  %v1334_v4 = vld [vmem:[%s1802_s1 + $0x30] sm:$0xff]  ;;  %v1333_v8 = vld [vmem:[%s1802_s1 + $0x28] sm:$0xff] }
   0x2   :  { %v1343_v1 = vld [vmem:[%s1802_s1 + $0x78] sm:$0xff]  ;;  %720 = vmatpush.bf16.msra.mxu0 %v1335_v0  ;;  %v1342_v5 = vld [vmem:[%s1802_s1 + $0x70] sm:$0xff]  ;;  %v1341_v9 = vld [vmem:[%s1802_s1 + $0x68] sm:$0xff] }
   0x3   :  { %v1351_v2 = vld [vmem:[%s1802_s1 + $0xb8] sm:$0xff]  ;;  %739 = vmatpush.bf16.msra.mxu1 %v1343_v1  ;;  %v1350_v6 = vld [vmem:[%s1802_s1 + $0xb0] sm:$0xff]  ;;  %v1349_v10 = vld [vmem:[%s1802_s1 + $0xa8] sm:$0xff] }
   0x4   :  { %v1359_v3 = vld [vmem:[%s1802_s1 + $0xf8] sm:$0xff]  ;;  %758 = vmatpush.bf16.msra.mxu2 %v1351_v2  ;;  %v1358_v7 = vld [vmem:[%s1802_s1 + $0xf0] sm:$0xff]  ;;  %v1357_v11 = vld [vmem:[%s1802_s1 + $0xe8] sm:$0xff] }
   0x5   :  { %777 = vmatpush.bf16.msra.mxu3 %v1359_v3  ;;  %v1332_v12 = vld [vmem:[%s1802_s1 + $0x20] sm:$0xff]  ;;  %v1331_v16 = vld [vmem:[%s1802_s1 + $0x18] sm:$0xff]  ;;  %v1330_v20 = vld [vmem:[%s1802_s1 + $0x10] sm:$0xff] }
   0x6   :  { %721 = vmatpush.bf16.msra.mxu0 %v1334_v4  ;;  %v1340_v13 = vld [vmem:[%s1802_s1 + $0x60] sm:$0xff]  ;;  %v1339_v17 = vld [vmem:[%s1802_s1 + $0x58] sm:$0xff]  ;;  %v1338_v21 = vld [vmem:[%s1802_s1 + $0x50] sm:$0xff] }
   0x7   :  { %740 = vmatpush.bf16.msra.mxu1 %v1342_v5  ;;  %v1348_v14 = vld [vmem:[%s1802_s1 + $0xa0] sm:$0xff]  ;;  %v1347_v18 = vld [vmem:[%s1802_s1 + $0x98] sm:$0xff]  ;;  %v1346_v22 = vld [vmem:[%s1802_s1 + $0x90] sm:$0xff] }
   0x8   :  { %759 = vmatpush.bf16.msra.mxu2 %v1350_v6  ;;  %v1356_v15 = vld [vmem:[%s1802_s1 + $0xe0] sm:$0xff]  ;;  %v1355_v19 = vld [vmem:[%s1802_s1 + $0xd8] sm:$0xff]  ;;  %v1354_v23 = vld [vmem:[%s1802_s1 + $0xd0] sm:$0xff] }
   0x9   :  { %778 = vmatpush.bf16.msra.mxu3 %v1358_v7  ;;  %v1329_v24 = vld [vmem:[%s1802_s1 + $0x8] sm:$0xff]  ;;  %v1328_v28 = vld [vmem:[%s1802_s1] sm:$0xff]  ;;  %v962_v39 = vld [vmem:[%s1803_s0 + $0x2c] sm:$0xf0] }
   0xa   :  { %722 = vmatpush.bf16.msra.mxu0 %v1333_v8  ;;  %v1337_v25 = vld [vmem:[%s1802_s1 + $0x48] sm:$0xff]  ;;  %v1336_v29 = vld [vmem:[%s1802_s1 + $0x40] sm:$0xff]  ;;  %v1367_v40 = vld [vmem:[%s1802_s1 + $0x138] sm:$0xff] }
   0xb   :  { %741 = vmatpush.bf16.msra.mxu1 %v1341_v9  ;;  %v1345_v26 = vld [vmem:[%s1802_s1 + $0x88] sm:$0xff]  ;;  %v1344_v30 = vld [vmem:[%s1802_s1 + $0x80] sm:$0xff]  ;;  %v1375_v41 = vld [vmem:[%s1802_s1 + $0x178] sm:$0xff] }
   0xc   :  { %760 = vmatpush.bf16.msra.mxu2 %v1349_v10  ;;  %v1353_v27 = vld [vmem:[%s1802_s1 + $0xc8] sm:$0xff]  ;;  %v1352_v31 = vld [vmem:[%s1802_s1 + $0xc0] sm:$0xff]  ;;  %v1383_v46 = vld [vmem:[%s1802_s1 + $0x1b8] sm:$0xff] }
   0xd   :  { %779 = vmatpush.bf16.msra.mxu3 %v1357_v11  ;;  %v952_v32 = vld [vmem:[%s1803_s0] sm:$0xf]  ;;  %v1314_v33 = vld [vmem:[%s1803_s0 + $0x20] sm:$0xf0]  ;;  %v954_v35 = vld [vmem:[%s1803_s0 + $0x24] sm:$0xf0] }
   0xe   :  { %723 = vmatpush.bf16.msra.mxu0 %v1332_v12  ;;  %v1310_v34 = vld [vmem:[%s1803_s0 + $0x4] sm:$0xf]  ;;  %v960_v36 = vld [vmem:[%s1803_s0 + $0x8] sm:$0xf]  ;;  %v1315_v37 = vld [vmem:[%s1803_s0 + $0x28] sm:$0xf0]  ;;  %v953_v42 = vor.u32 %v1314_v33, %v952_v32 }
   0xf   :  { %742 = vmatpush.bf16.msra.mxu1 %v1340_v13  ;;  %v1311_v38 = vld [vmem:[%s1803_s0 + $0xc] sm:$0xf]  ;;  %v957_v43 = vor.u32 %v1310_v34, %v954_v35  ;;  %v961_v44 = vor.u32 %v1315_v37, %v960_v36  ;;  %v1391_v47 = vld [vmem:[%s1802_s1 + $0x1f8] sm:$0xff]  ;;  %v1366_v48 = vld [vmem:[%s1802_s1 + $0x130] sm:$0xff] }
  0x10   :  { %761 = vmatpush.bf16.msra.mxu2 %v1348_v14  ;;  %v965_v45 = vor.u32 %v1311_v38, %v962_v39  ;;  %v1374_v49 = vld [vmem:[%s1802_s1 + $0x170] sm:$0xff]  ;;  %v1365_v52 = vld [vmem:[%s1802_s1 + $0x128] sm:$0xff]  ;;  %v1364_v56 = vld [vmem:[%s1802_s1 + $0x120] sm:$0xff] }
  0x11   :  { %780 = vmatpush.bf16.msra.mxu3 %v1356_v15  ;;  %v1382_v50 = vld [vmem:[%s1802_s1 + $0x1b0] sm:$0xff]  ;;  %v1373_v53 = vld [vmem:[%s1802_s1 + $0x168] sm:$0xff]  ;;  %v1372_v57 = vld [vmem:[%s1802_s1 + $0x160] sm:$0xff] }
  0x12   :  { %724 = vmatpush.bf16.msra.mxu0 %v1331_v16  ;;  %v1390_v51 = vld [vmem:[%s1802_s1 + $0x1f0] sm:$0xff]  ;;  %v1381_v54 = vld [vmem:[%s1802_s1 + $0x1a8] sm:$0xff]  ;;  %v1380_v58 = vld [vmem:[%s1802_s1 + $0x1a0] sm:$0xff] }
  0x13   :  { %743 = vmatpush.bf16.msra.mxu1 %v1339_v17  ;;  %v1389_v55 = vld [vmem:[%s1802_s1 + $0x1e8] sm:$0xff]  ;;  %v1388_v59 = vld [vmem:[%s1802_s1 + $0x1e0] sm:$0xff]  ;;  %v990_v63 = vld [vmem:[%s1803_s0 + $0x6c] sm:$0xf0] }
  0x14   :  { %762 = vmatpush.bf16.msra.mxu2 %v1347_v18  ;;  %v988_v60 = vld [vmem:[%s1803_s0 + $0x48] sm:$0xf]  ;;  %v1323_v61 = vld [vmem:[%s1803_s0 + $0x68] sm:$0xf0]  ;;  %v996_v0 = vld [vmem:[%s1803_s0 + $0x50] sm:$0xf] }
  0x15   :  { %781 = vmatpush.bf16.msra.mxu3 %v1355_v19  ;;  %v1319_v62 = vld [vmem:[%s1803_s0 + $0x4c] sm:$0xf]  ;;  %v1324_v1 = vld [vmem:[%s1803_s0 + $0x70] sm:$0xf0]  ;;  %v998_v3 = vld [vmem:[%s1803_s0 + $0x74] sm:$0xf0]  ;;  %v989_v6 = vor.u32 %v1323_v61, %v988_v60 }
  0x16   :  { %725 = vmatpush.bf16.msra.mxu0 %v1330_v20  ;;  %v1320_v2 = vld [vmem:[%s1803_s0 + $0x54] sm:$0xf]  ;;  %v1363_v4 = vld [vmem:[%s1802_s1 + $0x118] sm:$0xff]  ;;  %v993_v7 = vor.u32 %v1319_v62, %v990_v63  ;;  %v997_v8 = vor.u32 %v1324_v1, %v996_v0  ;;  %v1361_v16 = vld [vmem:[%s1802_s1 + $0x108] sm:$0xff] }
  0x17   :  { %744 = vmatpush.bf16.msra.mxu1 %v1338_v21  ;;  %v1371_v5 = vld [vmem:[%s1802_s1 + $0x158] sm:$0xff]  ;;  %v1001_v9 = vor.u32 %v1320_v2, %v998_v3  ;;  %v1362_v12 = vld [vmem:[%s1802_s1 + $0x110] sm:$0xff]  ;;  %v1369_v17 = vld [vmem:[%s1802_s1 + $0x148] sm:$0xff] }
  0x18   :  { %763 = vmatpush.bf16.msra.mxu2 %v1346_v22  ;;  %v1379_v10 = vld [vmem:[%s1802_s1 + $0x198] sm:$0xff]  ;;  %v1370_v13 = vld [vmem:[%s1802_s1 + $0x150] sm:$0xff]  ;;  %v1377_v18 = vld [vmem:[%s1802_s1 + $0x188] sm:$0xff] }
  0x19   :  { %782 = vmatpush.bf16.msra.mxu3 %v1354_v23  ;;  %v1387_v11 = vld [vmem:[%s1802_s1 + $0x1d8] sm:$0xff]  ;;  %v1378_v14 = vld [vmem:[%s1802_s1 + $0x190] sm:$0xff]  ;;  %v1385_v19 = vld [vmem:[%s1802_s1 + $0x1c8] sm:$0xff] }
  0x1a   :  { %726 = vmatpush.bf16.msra.mxu0 %v1329_v24  ;;  %v1386_v15 = vld [vmem:[%s1802_s1 + $0x1d0] sm:$0xff]  ;;  %v1360_v20 = vld [vmem:[%s1802_s1 + $0x100] sm:$0xff]  ;;  %v1397_v38 = vld [vmem:[%s1802_s1 + $0x228] sm:$0xff] }
  0x1b   :  { %745 = vmatpush.bf16.msra.mxu1 %v1337_v25  ;;  %v1368_v21 = vld [vmem:[%s1802_s1 + $0x140] sm:$0xff]  ;;  %v968_v24 = vld [vmem:[%s1803_s0 + $0x10] sm:$0xf]  ;;  %v1316_v25 = vld [vmem:[%s1803_s0 + $0x30] sm:$0xf0] }
  0x1c   :  { %764 = vmatpush.bf16.msra.mxu2 %v1345_v26  ;;  %v1376_v22 = vld [vmem:[%s1802_s1 + $0x180] sm:$0xff]  ;;  %v1399_v26 = vld [vmem:[%s1802_s1 + $0x238] sm:$0xff]  ;;  %v969_v33 = vor.u32 %v1316_v25, %v968_v24  ;;  %v1398_v37 = vld [vmem:[%s1802_s1 + $0x230] sm:$0xff] }
  0x1d   :  { %783 = vmatpush.bf16.msra.mxu3 %v1353_v27  ;;  %v1384_v23 = vld [vmem:[%s1802_s1 + $0x1c0] sm:$0xff]  ;;  %v1312_v27 = vld [vmem:[%s1803_s0 + $0x14] sm:$0xf] }
  0x1e   :  { %727 = vmatpush.bf16.msra.mxu0 %v1328_v28  ;;  %v970_v28 = vld [vmem:[%s1803_s0 + $0x34] sm:$0xf0]  ;;  %v978_v32 = vld [vmem:[%s1803_s0 + $0x3c] sm:$0xf0] }
  0x1f   :  { %746 = vmatpush.bf16.msra.mxu1 %v1336_v29  ;;  %v976_v29 = vld [vmem:[%s1803_s0 + $0x18] sm:$0xf]  ;;  %v973_v34 = vor.u32 %v1312_v27, %v970_v28  ;;  %v1396_v39 = vld [vmem:[%s1802_s1 + $0x220] sm:$0xff] }
  0x20   :  { %765 = vmatpush.bf16.msra.mxu2 %v1344_v30  ;;  %v1317_v30 = vld [vmem:[%s1803_s0 + $0x38] sm:$0xf0] }
  0x21   :  { %784 = vmatpush.bf16.msra.mxu3 %v1352_v31  ;;  %728 = vmatmul.bf16.vlgmr.msra.gmra.mxu0 %v953_v42  ;;  %v1313_v31 = vld [vmem:[%s1803_s0 + $0x1c] sm:$0xf]  ;;  %v977_v35 = vor.u32 %v1317_v30, %v976_v29 }
  0x22   :  { %796 = vmatpush.bf16.msrb.mxu0 %v1367_v40  ;;  %747 = vmatmul.bf16.vlgmr.msra.gmra.mxu1 %v957_v43  ;;  %v981_v36 = vor.u32 %v1313_v31, %v978_v32  ;;  %v1004_v40 = vld [vmem:[%s1803_s0 + $0x58] sm:$0xf]  ;;  %v1321_v42 = vld [vmem:[%s1803_s0 + $0x5c] sm:$0xf]  ;;  %v1006_v43 = vld [vmem:[%s1803_s0 + $0x7c] sm:$0xf0] }
  0x23   :  { %815 = vmatpush.bf16.msrb.mxu1 %v1375_v41  ;;  %766 = vmatmul.bf16.vlgmr.msra.gmra.mxu2 %v961_v44  ;;  %v1325_v41 = vld [vmem:[%s1803_s0 + $0x78] sm:$0xf0]  ;;  %v1012_v44 = vld [vmem:[%s1803_s0 + $0x60] sm:$0xf] }
  0x24   :  { %785 = vmatmul.bf16.vlgmr.msra.gmra.mxu3 %v965_v45  ;;  %834 = vmatpush.bf16.msrb.mxu2 %v1383_v46  ;;  %v1326_v45 = vld [vmem:[%s1803_s0 + $0x80] sm:$0xf0] }
  0x25   :  { %853 = vmatpush.bf16.msrb.mxu3 %v1391_v47  ;;  %v1322_v46 = vld [vmem:[%s1803_s0 + $0x64] sm:$0xf]  ;;  %v1014_v47 = vld [vmem:[%s1803_s0 + $0x84] sm:$0xf0] }
  0x26   :  { %797 = vmatpush.bf16.msrb.mxu0 %v1366_v48  ;;  %v1395_v48 = vld [vmem:[%s1802_s1 + $0x218] sm:$0xff] }
  0x27   :  { %816 = vmatpush.bf16.msrb.mxu1 %v1374_v49  ;;  %v1005_v49 = vor.u32 %v1325_v41, %v1004_v40 }
  0x28   :  { %835 = vmatpush.bf16.msrb.mxu2 %v1382_v50  ;;  %v1009_v50 = vor.u32 %v1321_v42, %v1006_v43 }
  0x29   :  { %854 = vmatpush.bf16.msrb.mxu3 %v1390_v51  ;;  %v1013_v51 = vor.u32 %v1326_v45, %v1012_v44 }
  0x2a   :  { %798 = vmatpush.bf16.msrb.mxu0 %v1365_v52  ;;  %v1017_v52 = vor.u32 %v1322_v46, %v1014_v47 }
  0x2b   :  { %817 = vmatpush.bf16.msrb.mxu1 %v1373_v53  ;;  %v1394_v53 = vld [vmem:[%s1802_s1 + $0x210] sm:$0xff] }
  0x2c   :  { %836 = vmatpush.bf16.msrb.mxu2 %v1381_v54  ;;  %v1393_v54 = vld [vmem:[%s1802_s1 + $0x208] sm:$0xff] }
  0x2d   :  { %855 = vmatpush.bf16.msrb.mxu3 %v1389_v55  ;;  %v1392_v55 = vld [vmem:[%s1802_s1 + $0x200] sm:$0xff] }
  0x2e   :  { %799 = vmatpush.bf16.msrb.mxu0 %v1364_v56  ;;  %v984_v56 = vld [vmem:[%s1803_s0 + $0x20] sm:$0xf] }
  0x2f   :  { %818 = vmatpush.bf16.msrb.mxu1 %v1372_v57  ;;  %v1318_v57 = vld [vmem:[%s1803_s0 + $0x40] sm:$0xf0] }
  0x30   :  { %837 = vmatpush.bf16.msrb.mxu2 %v1380_v58  ;;  %v1020_v58 = vld [vmem:[%s1803_s0 + $0x68] sm:$0xf]  ;;  %v985_v60 = vor.u32 %v1318_v57, %v984_v56  ;;  %v1428_v56 = vld [vmem:[%s1804_s2] ss:$0 sm:$0xff] }
  0x31   :  { %856 = vmatpush.bf16.msrb.mxu3 %v1388_v59  ;;  %733 = vmatmul.bf16.gmra.mxu0 %v989_v6  ;;  %v1327_v59 = vld [vmem:[%s1803_s0 + $0x88] sm:$0xf0] }
  0x32   :  { %800 = vmatpush.bf16.msrb.mxu0 %v1363_v4  ;;  %752 = vmatmul.bf16.gmra.mxu1 %v993_v7  ;;  %v1021_v61 = vor.u32 %v1327_v59, %v1020_v58 }
  0x33   :  { %819 = vmatpush.bf16.msrb.mxu1 %v1371_v5  ;;  %771 = vmatmul.bf16.gmra.mxu2 %v997_v8 }
  0x34   :  { %790 = vmatmul.bf16.gmra.mxu3 %v1001_v9  ;;  %838 = vmatpush.bf16.msrb.mxu2 %v1379_v10 }
  0x35   :  { %857 = vmatpush.bf16.msrb.mxu3 %v1387_v11 }
  0x36   :  { %801 = vmatpush.bf16.msrb.mxu0 %v1362_v12 }
  0x37   :  { %820 = vmatpush.bf16.msrb.mxu1 %v1370_v13 }
  0x38   :  { %839 = vmatpush.bf16.msrb.mxu2 %v1378_v14 }
  0x39   :  { %858 = vmatpush.bf16.msrb.mxu3 %v1386_v15 }
  0x3a   :  { %802 = vmatpush.bf16.msrb.mxu0 %v1361_v16 }
  0x3b   :  { %821 = vmatpush.bf16.msrb.mxu1 %v1369_v17 }
  0x3c   :  { %840 = vmatpush.bf16.msrb.mxu2 %v1377_v18 }
  0x3d   :  { %859 = vmatpush.bf16.msrb.mxu3 %v1385_v19 }
  0x3e   :  { %803 = vmatpush.bf16.msrb.mxu0 %v1360_v20 }
  0x3f   :  { %822 = vmatpush.bf16.msrb.mxu1 %v1368_v21 }
  0x40   :  { %841 = vmatpush.bf16.msrb.mxu2 %v1376_v22 }
  0x41   :  { %860 = vmatpush.bf16.msrb.mxu3 %v1384_v23  ;;  %804 = vmatmul.bf16.vlgmr.msrb.gmra.mxu0 %v969_v33 }
  0x42   :  { %872 = vmatpush.bf16.msra.mxu0 %v1399_v26  ;;  %823 = vmatmul.bf16.vlgmr.msrb.gmra.mxu1 %v973_v34 }
  0x43   :  { %1420 = vmatpush.bf16.msra.mxu1 %v1399_v26  ;;  %842 = vmatmul.bf16.vlgmr.msrb.gmra.mxu2 %v977_v35 }
  0x44   :  { %861 = vmatmul.bf16.vlgmr.msrb.gmra.mxu3 %v981_v36 }
  0x46   :  { %873 = vmatpush.bf16.msra.mxu0 %v1398_v37 }
  0x47   :  { %1421 = vmatpush.bf16.msra.mxu1 %v1398_v37 }
  0x4a   :  { %874 = vmatpush.bf16.msra.mxu0 %v1397_v38 }
  0x4b   :  { %1422 = vmatpush.bf16.msra.mxu1 %v1397_v38 }
  0x4e   :  { %875 = vmatpush.bf16.msra.mxu0 %v1396_v39 }
  0x4f   :  { %1423 = vmatpush.bf16.msra.mxu1 %v1396_v39 }
  0x51   :  { %809 = vmatmul.bf16.gmra.mxu0 %v1005_v49 }
  0x52   :  { %876 = vmatpush.bf16.msra.mxu0 %v1395_v48  ;;  %828 = vmatmul.bf16.gmra.mxu1 %v1009_v50 }
  0x53   :  { %1424 = vmatpush.bf16.msra.mxu1 %v1395_v48  ;;  %847 = vmatmul.bf16.gmra.mxu2 %v1013_v51 }
  0x54   :  { %866 = vmatmul.bf16.gmra.mxu3 %v1017_v52 }
  0x56   :  { %877 = vmatpush.bf16.msra.mxu0 %v1394_v53 }
  0x57   :  { %1425 = vmatpush.bf16.msra.mxu1 %v1394_v53 }
  0x5a   :  { %878 = vmatpush.bf16.msra.mxu0 %v1393_v54 }
  0x5b   :  { %1426 = vmatpush.bf16.msra.mxu1 %v1393_v54 }
  0x5e   :  { %879 = vmatpush.bf16.msra.mxu0 %v1392_v55 }
  0x5f   :  { %1427 = vmatpush.bf16.msra.mxu1 %v1392_v55 }
  0x61   :  { %880 = vmatmul.bf16.vlgmr.msra.gmra.mxu0 %v985_v60 }
  0x62   :  { %885 = vmatmul.bf16.vlgmr.msra.gmra.mxu1 %v1021_v61  ;;  %v1429_v61 = vld [vmem:[%s1805_s3] ss:$0 sm:$0xff] }
  0x9e   :  { %v729_v62 = vpop.f32.mrf.mxu0 }
  0x9f   :  { %v748_v63 = vpop.f32.mrf.mxu1 }
  0xa0   :  { %v749_v20 = vadd.f32 %v748_v63, %v729_v62  ;;  %v1401_v62 = vld [vmem:[%s1806_s4] sm:$0xff]  }
  0xa6   :  { %v767_v0 = vpop.f32.mrf.mxu2  ;;  %v731_v2 = vpop.f32.mrf.mxu0 }
  0xa7   :  { %v786_v1 = vpop.f32.mrf.mxu3  ;;  %v750_v3 = vpop.f32.mrf.mxu1  ;;  %v768_v22 = vadd.f32 %v767_v0, %v749_v20  ;;  %v1418_v0 = vld [vmem:[%s1806_s4 + $0x8] sm:$0xff]  }
  0xa8   :  { %v751_v30 = vadd.f32 %v750_v3, %v731_v2 }
  0xa9   :  { %v787_v28 = vadd.f32 %v786_v1, %v768_v22 }
  0xae   :  { %v769_v4 = vpop.f32.mrf.mxu2  ;;  %v734_v6 = vpop.f32.mrf.mxu0 }
  0xaf   :  { %v788_v5 = vpop.f32.mrf.mxu3  ;;  %v753_v7 = vpop.f32.mrf.mxu1  ;;  %v770_v34 = vadd.f32 %v769_v4, %v751_v30  ;;  %v1402_v4 = vunpack.c.l.bf16 %v1401_v62 }
  0xb0   :  { %v754_v21 = vadd.f32 %v753_v7, %v734_v6 }
  0xb1   :  { %v789_v41 = vadd.f32 %v788_v5, %v770_v34  ;;  %v1406_v5 = vunpack.c.l.bf16 %v1418_v0 }
  0xb6   :  { %v772_v8 = vpop.f32.mrf.mxu2  ;;  %v736_v10 = vpop.f32.mrf.mxu0 }
  0xb7   :  { %v791_v9 = vpop.f32.mrf.mxu3  ;;  %v755_v11 = vpop.f32.mrf.mxu1  ;;  %v773_v23 = vadd.f32 %v772_v8, %v754_v21 }
  0xb8   :  { %v756_v31 = vadd.f32 %v755_v11, %v736_v10 }
  0xb9   :  { %v792_v29 = vadd.f32 %v791_v9, %v773_v23 }
  0xbe   :  { %v774_v12 = vpop.f32.mrf.mxu2  ;;  %v805_v14 = vpop.f32.mrf.mxu0 }
  0xbf   :  { %v793_v13 = vpop.f32.mrf.mxu3  ;;  %v824_v15 = vpop.f32.mrf.mxu1  ;;  %v806_v32 = vadd.f32 %v805_v14, %v787_v28  ;;  %v775_v35 = vadd.f32 %v774_v12, %v756_v31 }
  0xc1   :  { %v825_v39 = vadd.f32 %v824_v15, %v806_v32  ;;  %v794_v42 = vadd.f32 %v793_v13, %v775_v35  ;;  %v1403_v13 = vunpack.c.h.bf16 %v1401_v62  ;;  %v1407_v15 = vunpack.c.h.bf16 %v1418_v0 }
  0xc6   :  { %v843_v16 = vpop.f32.mrf.mxu2  ;;  %v807_v18 = vpop.f32.mrf.mxu0 }
  0xc7   :  { %v862_v17 = vpop.f32.mrf.mxu3  ;;  %v826_v19 = vpop.f32.mrf.mxu1  ;;  %v844_v43 = vadd.f32 %v843_v16, %v825_v39  ;;  %v808_v46 = vadd.f32 %v807_v18, %v789_v41 }
  0xc9   :  { %v863_v48 = vadd.f32 %v862_v17, %v844_v43  ;;  %v827_v53 = vadd.f32 %v826_v19, %v808_v46 }
  0xce   :  { %v845_v24 = vpop.f32.mrf.mxu2  ;;  %v810_v25 = vpop.f32.mrf.mxu0 }
  0xcf   :  { %v829_v26 = vpop.f32.mrf.mxu1  ;;  %v864_v27 = vpop.f32.mrf.mxu3  ;;  %v811_v33 = vadd.f32 %v810_v25, %v792_v29  ;;  %v846_v58 = vadd.f32 %v845_v24, %v827_v53 }
  0xd1   :  { %v830_v40 = vadd.f32 %v829_v26, %v811_v33  ;;  %v865_v2 = vadd.f32 %v864_v27, %v846_v58 }
  0xd6   :  { %v848_v36 = vpop.f32.mrf.mxu2  ;;  %v812_v37 = vpop.f32.mrf.mxu0 }
  0xd7   :  { %v831_v38 = vpop.f32.mrf.mxu1  ;;  %v849_v44 = vadd.f32 %v848_v36, %v830_v40  ;;  %v867_v45 = vpop.f32.mrf.mxu3  ;;  %v813_v47 = vadd.f32 %v812_v37, %v794_v42 }
  0xd9   :  { %v868_v49 = vadd.f32 %v867_v45, %v849_v44  ;;  %v832_v54 = vadd.f32 %v831_v38, %v813_v47 }
  0xde   :  { %v850_v50 = vpop.f32.mrf.mxu2  ;;  %v881_v51 = vpop.f32.mrf.mxu0 }
  0xdf   :  { %v886_v52 = vpop.f32.mrf.mxu1  ;;  %v882_v55 = vadd.f32 %v881_v51, %v863_v48  ;;  %v851_v59 = vadd.f32 %v850_v50, %v832_v54  ;;  %v869_v1 = vpop.f32.mrf.mxu3 }
  0xe0   :  { %v887_v57 = vadd.f32 %v886_v52, %v868_v49 }
  0xe1   :  { %v910_v60 = vmul.f32 %v1428_v56, %v882_v55  ;;  %v870_v3 = vadd.f32 %v869_v1, %v851_v59 }
  0xe2   :  { %v912_v63 = vmul.f32 %v1428_v56, %v887_v57 }
  0xe3   :  { %v918_v8 = vadd.f32 %v1429_v61, %v910_v60 }
  0xe4   :  { %v920_v9 = vadd.f32 %v1429_v61, %v912_v63 }
  0xe5   :  { %v930_v16 = vadd.f32 %v1402_v4, %v918_v8 }
  0xe6   :  { %v883_v6 = vpop.f32.mrf.mxu0  ;;  %v932_v17 = vadd.f32 %v1406_v5, %v920_v9 }
  0xe7   :  { %v888_v7 = vpop.f32.mrf.mxu1  ;;  %v884_v10 = vadd.f32 %v883_v6, %v865_v2  ;;  %v934_v22 = vmax.f32 %v930_v16, 0.0 }
  0xe8   :  { %v889_v11 = vadd.f32 %v888_v7, %v870_v3  ;;  %v936_v23 = vmax.f32 %v932_v17, 0.0 }
  0xe9   :  { %v911_v12 = vmul.f32 %v1428_v56, %v884_v10 }
  0xea   :  { %v913_v14 = vmul.f32 %v1428_v56, %v889_v11 }
  0xeb   :  { %v919_v18 = vadd.f32 %v1429_v61, %v911_v12 }
  0xec   :  { %v921_v19 = vadd.f32 %v1429_v61, %v913_v14 }
  0xed   :  { %v931_v20 = vadd.f32 %v1403_v13, %v919_v18 }
  0xee   :  { %v933_v21 = vadd.f32 %v1407_v15, %v921_v19 }
  0xef   :  { %v935_v24 = vmax.f32 %v931_v20, 0.0 }
  0xf0   :  { %v937_v25 = vmax.f32 %v933_v21, 0.0 }
  0xf1   :  { %v1411_v26 = vpack.c.bf16 %v935_v24, %v934_v22 }
  0xf2   :  { %v1416_v27 = vpack.c.bf16 %v937_v25, %v936_v23 }
  0xf3   :  { %1412 = vst [vmem:[%s1807_s5] sm:$0xff] %v1411_v26  }
  0xf4   :  { %1419 = vst [vmem:[%s1807_s5 + $0x8] sm:$0xff] %v1416_v27  }

// kernel: _lambda_.41
= control target key start
LH: loop header
LB: loop body
LE: loop exit
PB: predicated region body
PF: predicated region fallthrough
CT: control target
= control target key end

     0   :  { %s394_s1 = inlined_call_operand.vmem [shape: bf16[128,256], index: 1, kind: input, shape index: {}]   ;;  %s395_s0 = inlined_call_operand.vmem [shape: bf16[8,128], index: 0, kind: input, shape index: {}]   ;;  %s396_s2 = inlined_call_operand.vmem [shape: f32[1,256], index: 2, kind: input, shape index: {}]   ;;  %s397_s3 = inlined_call_operand.vmem [shape: f32[1,256], index: 3, kind: input, shape index: {}]   ;;  %s398_s4 = inlined_call_operand.vmem [shape: bf16[8,256], index: 4, kind: output, shape index: {}]  }
   0x1   :  { %v239_v0 = vld [vmem:[%s394_s1 + $0x70] sm:$0xf]  ;;  %v260_v1 = vld [vmem:[%s394_s1 + $0x74] sm:$0xf0]  ;;  %v259_v2 = vld [vmem:[%s394_s1 + $0x74] sm:$0xf] }
   0x2   :  { %v240_v3 = vor.u32 %v260_v1, %v239_v0  ;;  %v241_v4 = vld [vmem:[%s394_s1 + $0x78] sm:$0xf0]  ;;  %v231_v5 = vld [vmem:[%s394_s1 + $0x60] sm:$0xf]  ;;  %v258_v6 = vld [vmem:[%s394_s1 + $0x64] sm:$0xf0] }
   0x3   :  { %v244_v7 = vor.u32 %v259_v2, %v241_v4  ;;  %v257_v8 = vld [vmem:[%s394_s1 + $0x64] sm:$0xf]  ;;  %v233_v9 = vld [vmem:[%s394_s1 + $0x68] sm:$0xf0]  ;;  %v232_v10 = vor.u32 %v258_v6, %v231_v5  ;;  %v223_v12 = vld [vmem:[%s394_s1 + $0x50] sm:$0xf] }
   0x4   :  { %122 = vmatpush.bf16.msra.mxu0 %v240_v3  ;;  %v236_v11 = vor.u32 %v257_v8, %v233_v9  ;;  %v256_v13 = vld [vmem:[%s394_s1 + $0x54] sm:$0xf0]  ;;  %v255_v14 = vld [vmem:[%s394_s1 + $0x54] sm:$0xf]  ;;  %v225_v15 = vld [vmem:[%s394_s1 + $0x58] sm:$0xf0] }
   0x5   :  { %135 = vmatpush.bf16.msra.mxu1 %v244_v7  ;;  %v224_v16 = vor.u32 %v256_v13, %v223_v12  ;;  %v228_v17 = vor.u32 %v255_v14, %v225_v15  ;;  %v215_v18 = vld [vmem:[%s394_s1 + $0x40] sm:$0xf]  ;;  %v254_v19 = vld [vmem:[%s394_s1 + $0x44] sm:$0xf0]  ;;  %v253_v20 = vld [vmem:[%s394_s1 + $0x44] sm:$0xf] }
   0x6   :  { %v217_v21 = vld [vmem:[%s394_s1 + $0x48] sm:$0xf0]  ;;  %v216_v22 = vor.u32 %v254_v19, %v215_v18  ;;  %v207_v24 = vld [vmem:[%s394_s1 + $0x30] sm:$0xf]  ;;  %v252_v25 = vld [vmem:[%s394_s1 + $0x34] sm:$0xf0] }
   0x7   :  { %v220_v23 = vor.u32 %v253_v20, %v217_v21  ;;  %v251_v26 = vld [vmem:[%s394_s1 + $0x34] sm:$0xf]  ;;  %v209_v27 = vld [vmem:[%s394_s1 + $0x38] sm:$0xf0]  ;;  %v208_v28 = vor.u32 %v252_v25, %v207_v24  ;;  %v199_v30 = vld [vmem:[%s394_s1 + $0x20] sm:$0xf] }
   0x8   :  { %123 = vmatpush.bf16.msra.mxu0 %v232_v10  ;;  %v212_v29 = vor.u32 %v251_v26, %v209_v27  ;;  %v250_v31 = vld [vmem:[%s394_s1 + $0x24] sm:$0xf0]  ;;  %v249_v32 = vld [vmem:[%s394_s1 + $0x24] sm:$0xf]  ;;  %v201_v33 = vld [vmem:[%s394_s1 + $0x28] sm:$0xf0] }
   0x9   :  { %136 = vmatpush.bf16.msra.mxu1 %v236_v11  ;;  %v200_v34 = vor.u32 %v250_v31, %v199_v30  ;;  %v204_v35 = vor.u32 %v249_v32, %v201_v33  ;;  %v191_v36 = vld [vmem:[%s394_s1 + $0x10] sm:$0xf]  ;;  %v248_v37 = vld [vmem:[%s394_s1 + $0x14] sm:$0xf0]  ;;  %v247_v38 = vld [vmem:[%s394_s1 + $0x14] sm:$0xf] }
   0xa   :  { %v193_v39 = vld [vmem:[%s394_s1 + $0x18] sm:$0xf0]  ;;  %v192_v40 = vor.u32 %v248_v37, %v191_v36  ;;  %v183_v42 = vld [vmem:[%s394_s1] sm:$0xf]  ;;  %v246_v43 = vld [vmem:[%s394_s1 + $0x4] sm:$0xf0] }
   0xb   :  { %v196_v41 = vor.u32 %v247_v38, %v193_v39  ;;  %v245_v44 = vld [vmem:[%s394_s1 + $0x4] sm:$0xf]  ;;  %v185_v45 = vld [vmem:[%s394_s1 + $0x8] sm:$0xf0]  ;;  %v184_v46 = vor.u32 %v246_v43, %v183_v42  ;;  %v25_v48 = vld [vmem:[%s395_s0] sm:$0xf] }
   0xc   :  { %124 = vmatpush.bf16.msra.mxu0 %v224_v16  ;;  %v188_v47 = vor.u32 %v245_v44, %v185_v45  ;;  %v157_v49 = vld [vmem:[%s396_s2] sm:$0x3] }
   0xd   :  { %137 = vmatpush.bf16.msra.mxu1 %v228_v17  ;;  %v165_v50 = vld [vmem:[%s397_s3] sm:$0x3]  ;;  %v159_v51 = vperm.slane %v157_v49, 0  ;;  %v160_v52 = vperm.slane %v157_v49, 1 }
   0xe   :  { %v167_v53 = vperm.slane %v165_v50, 0  ;;  %v168_v55 = vperm.slane %v165_v50, 1 }
  0x10   :  { %125 = vmatpush.bf16.msra.mxu0 %v216_v22 }
  0x11   :  { %138 = vmatpush.bf16.msra.mxu1 %v220_v23 }
  0x14   :  { %126 = vmatpush.bf16.msra.mxu0 %v208_v28 }
  0x15   :  { %139 = vmatpush.bf16.msra.mxu1 %v212_v29 }
  0x18   :  { %127 = vmatpush.bf16.msra.mxu0 %v200_v34 }
  0x19   :  { %140 = vmatpush.bf16.msra.mxu1 %v204_v35 }
  0x1c   :  { %128 = vmatpush.bf16.msra.mxu0 %v192_v40 }
  0x1d   :  { %141 = vmatpush.bf16.msra.mxu1 %v196_v41 }
  0x20   :  { %129 = vmatpush.bf16.msra.mxu0 %v184_v46 }
  0x21   :  { %142 = vmatpush.bf16.msra.mxu1 %v188_v47 }
  0x23   :  { %130 = vmatmul.bf16.vlgmr.msra.gmra.mxu0 %v25_v48 }
  0x24   :  { %143 = vmatmul.bf16.vlgmr.msra.gmra.mxu1 %v25_v48 }
  0xa0   :  { %v131_v54 = vpop.f32.mrf.mxu0 }
  0xa1   :  { %v163_v56 = vmul.f32 %v159_v51, %v131_v54  ;;  %v144_v57 = vpop.f32.mrf.mxu1 }
  0xa2   :  { %v164_v58 = vmul.f32 %v160_v52, %v144_v57 }
  0xa3   :  { %v171_v59 = vadd.f32 %v167_v53, %v163_v56 }
  0xa4   :  { %v172_v60 = vadd.f32 %v168_v55, %v164_v58 }
  0xa5   :  { %v173_v61 = vmax.f32 %v171_v59, 0.0 }
  0xa6   :  { %v174_v62 = vmax.f32 %v172_v60, 0.0 }
  0xa8   :  { %v175_v63 = vpack.c.bf16 %v174_v62, %v173_v61  ;;  %v133_v0 = vpop.f32.mrf.mxu0 }
  0xa9   :  { %v146_v1 = vpop.f32.mrf.mxu1 }
  0xaa   :  { %176 = vst [vmem:[%s398_s4] sm:$0xff] %v175_v63 }

// kernel: _lambda_.33
= control target key start
LH: loop header
LB: loop body
LE: loop exit
PB: predicated region body
PF: predicated region fallthrough
CT: control target
= control target key end

     0   :  { %s1767_s1 = inlined_call_operand.vmem [shape: bf16[1152,128], index: 1, kind: input, shape index: {}]   ;;  %s1768_s0 = inlined_call_operand.vmem [shape: bf16[32,1152], index: 0, kind: input, shape index: {}]   ;;  %s1769_s2 = inlined_call_operand.vmem [shape: f32[1,128], index: 2, kind: input, shape index: {}]   ;;  %s1770_s3 = inlined_call_operand.vmem [shape: f32[1,128], index: 3, kind: input, shape index: {}]   ;;  %s1771_s4 = inlined_call_operand.vmem [shape: bf16[32,128], index: 4, kind: output, shape index: {}]  }
   0x1   :  { %v1320_v0 = vld [vmem:[%s1767_s1 + $0x38] sm:$0xff]  ;;  %v1319_v4 = vld [vmem:[%s1767_s1 + $0x30] sm:$0xff]  ;;  %v1318_v8 = vld [vmem:[%s1767_s1 + $0x28] sm:$0xff] }
   0x2   :  { %v1328_v1 = vld [vmem:[%s1767_s1 + $0x78] sm:$0xff]  ;;  %717 = vmatpush.bf16.msra.mxu0 %v1320_v0  ;;  %v1327_v5 = vld [vmem:[%s1767_s1 + $0x70] sm:$0xff]  ;;  %v1326_v9 = vld [vmem:[%s1767_s1 + $0x68] sm:$0xff] }
   0x3   :  { %v1336_v2 = vld [vmem:[%s1767_s1 + $0xb8] sm:$0xff]  ;;  %736 = vmatpush.bf16.msra.mxu1 %v1328_v1  ;;  %v1335_v6 = vld [vmem:[%s1767_s1 + $0xb0] sm:$0xff]  ;;  %v1334_v10 = vld [vmem:[%s1767_s1 + $0xa8] sm:$0xff] }
   0x4   :  { %v1344_v3 = vld [vmem:[%s1767_s1 + $0xf8] sm:$0xff]  ;;  %755 = vmatpush.bf16.msra.mxu2 %v1336_v2  ;;  %v1343_v7 = vld [vmem:[%s1767_s1 + $0xf0] sm:$0xff]  ;;  %v1342_v11 = vld [vmem:[%s1767_s1 + $0xe8] sm:$0xff] }
   0x5   :  { %774 = vmatpush.bf16.msra.mxu3 %v1344_v3  ;;  %v1317_v12 = vld [vmem:[%s1767_s1 + $0x20] sm:$0xff]  ;;  %v1316_v16 = vld [vmem:[%s1767_s1 + $0x18] sm:$0xff]  ;;  %v1315_v20 = vld [vmem:[%s1767_s1 + $0x10] sm:$0xff] }
   0x6   :  { %718 = vmatpush.bf16.msra.mxu0 %v1319_v4  ;;  %v1325_v13 = vld [vmem:[%s1767_s1 + $0x60] sm:$0xff]  ;;  %v1324_v17 = vld [vmem:[%s1767_s1 + $0x58] sm:$0xff]  ;;  %v1323_v21 = vld [vmem:[%s1767_s1 + $0x50] sm:$0xff] }
   0x7   :  { %737 = vmatpush.bf16.msra.mxu1 %v1327_v5  ;;  %v1333_v14 = vld [vmem:[%s1767_s1 + $0xa0] sm:$0xff]  ;;  %v1332_v18 = vld [vmem:[%s1767_s1 + $0x98] sm:$0xff]  ;;  %v1331_v22 = vld [vmem:[%s1767_s1 + $0x90] sm:$0xff] }
   0x8   :  { %756 = vmatpush.bf16.msra.mxu2 %v1335_v6  ;;  %v1341_v15 = vld [vmem:[%s1767_s1 + $0xe0] sm:$0xff]  ;;  %v1340_v19 = vld [vmem:[%s1767_s1 + $0xd8] sm:$0xff]  ;;  %v1339_v23 = vld [vmem:[%s1767_s1 + $0xd0] sm:$0xff] }
   0x9   :  { %775 = vmatpush.bf16.msra.mxu3 %v1343_v7  ;;  %v1314_v24 = vld [vmem:[%s1767_s1 + $0x8] sm:$0xff]  ;;  %v1313_v28 = vld [vmem:[%s1767_s1] sm:$0xff]  ;;  %v947_v39 = vld [vmem:[%s1768_s0 + $0x2c] sm:$0xf0] }
   0xa   :  { %719 = vmatpush.bf16.msra.mxu0 %v1318_v8  ;;  %v1322_v25 = vld [vmem:[%s1767_s1 + $0x48] sm:$0xff]  ;;  %v1321_v29 = vld [vmem:[%s1767_s1 + $0x40] sm:$0xff]  ;;  %v1352_v40 = vld [vmem:[%s1767_s1 + $0x138] sm:$0xff] }
   0xb   :  { %738 = vmatpush.bf16.msra.mxu1 %v1326_v9  ;;  %v1330_v26 = vld [vmem:[%s1767_s1 + $0x88] sm:$0xff]  ;;  %v1329_v30 = vld [vmem:[%s1767_s1 + $0x80] sm:$0xff]  ;;  %v1360_v41 = vld [vmem:[%s1767_s1 + $0x178] sm:$0xff] }
   0xc   :  { %757 = vmatpush.bf16.msra.mxu2 %v1334_v10  ;;  %v1338_v27 = vld [vmem:[%s1767_s1 + $0xc8] sm:$0xff]  ;;  %v1337_v31 = vld [vmem:[%s1767_s1 + $0xc0] sm:$0xff]  ;;  %v1368_v46 = vld [vmem:[%s1767_s1 + $0x1b8] sm:$0xff] }
   0xd   :  { %776 = vmatpush.bf16.msra.mxu3 %v1342_v11  ;;  %v937_v32 = vld [vmem:[%s1768_s0] sm:$0xf]  ;;  %v1299_v33 = vld [vmem:[%s1768_s0 + $0x20] sm:$0xf0]  ;;  %v939_v35 = vld [vmem:[%s1768_s0 + $0x24] sm:$0xf0] }
   0xe   :  { %720 = vmatpush.bf16.msra.mxu0 %v1317_v12  ;;  %v1295_v34 = vld [vmem:[%s1768_s0 + $0x4] sm:$0xf]  ;;  %v945_v36 = vld [vmem:[%s1768_s0 + $0x8] sm:$0xf]  ;;  %v1300_v37 = vld [vmem:[%s1768_s0 + $0x28] sm:$0xf0]  ;;  %v938_v42 = vor.u32 %v1299_v33, %v937_v32 }
   0xf   :  { %739 = vmatpush.bf16.msra.mxu1 %v1325_v13  ;;  %v1296_v38 = vld [vmem:[%s1768_s0 + $0xc] sm:$0xf]  ;;  %v942_v43 = vor.u32 %v1295_v34, %v939_v35  ;;  %v946_v44 = vor.u32 %v1300_v37, %v945_v36  ;;  %v1376_v47 = vld [vmem:[%s1767_s1 + $0x1f8] sm:$0xff]  ;;  %v1351_v48 = vld [vmem:[%s1767_s1 + $0x130] sm:$0xff] }
  0x10   :  { %758 = vmatpush.bf16.msra.mxu2 %v1333_v14  ;;  %v950_v45 = vor.u32 %v1296_v38, %v947_v39  ;;  %v1359_v49 = vld [vmem:[%s1767_s1 + $0x170] sm:$0xff]  ;;  %v1350_v52 = vld [vmem:[%s1767_s1 + $0x128] sm:$0xff]  ;;  %v1349_v56 = vld [vmem:[%s1767_s1 + $0x120] sm:$0xff] }
  0x11   :  { %777 = vmatpush.bf16.msra.mxu3 %v1341_v15  ;;  %v1367_v50 = vld [vmem:[%s1767_s1 + $0x1b0] sm:$0xff]  ;;  %v1358_v53 = vld [vmem:[%s1767_s1 + $0x168] sm:$0xff]  ;;  %v1357_v57 = vld [vmem:[%s1767_s1 + $0x160] sm:$0xff] }
  0x12   :  { %721 = vmatpush.bf16.msra.mxu0 %v1316_v16  ;;  %v1375_v51 = vld [vmem:[%s1767_s1 + $0x1f0] sm:$0xff]  ;;  %v1366_v54 = vld [vmem:[%s1767_s1 + $0x1a8] sm:$0xff]  ;;  %v1365_v58 = vld [vmem:[%s1767_s1 + $0x1a0] sm:$0xff] }
  0x13   :  { %740 = vmatpush.bf16.msra.mxu1 %v1324_v17  ;;  %v1374_v55 = vld [vmem:[%s1767_s1 + $0x1e8] sm:$0xff]  ;;  %v1373_v59 = vld [vmem:[%s1767_s1 + $0x1e0] sm:$0xff]  ;;  %v975_v63 = vld [vmem:[%s1768_s0 + $0x6c] sm:$0xf0] }
  0x14   :  { %759 = vmatpush.bf16.msra.mxu2 %v1332_v18  ;;  %v973_v60 = vld [vmem:[%s1768_s0 + $0x48] sm:$0xf]  ;;  %v1308_v61 = vld [vmem:[%s1768_s0 + $0x68] sm:$0xf0]  ;;  %v981_v0 = vld [vmem:[%s1768_s0 + $0x50] sm:$0xf] }
  0x15   :  { %778 = vmatpush.bf16.msra.mxu3 %v1340_v19  ;;  %v1304_v62 = vld [vmem:[%s1768_s0 + $0x4c] sm:$0xf]  ;;  %v1309_v1 = vld [vmem:[%s1768_s0 + $0x70] sm:$0xf0]  ;;  %v983_v3 = vld [vmem:[%s1768_s0 + $0x74] sm:$0xf0]  ;;  %v974_v6 = vor.u32 %v1308_v61, %v973_v60 }
  0x16   :  { %722 = vmatpush.bf16.msra.mxu0 %v1315_v20  ;;  %v1305_v2 = vld [vmem:[%s1768_s0 + $0x54] sm:$0xf]  ;;  %v1348_v4 = vld [vmem:[%s1767_s1 + $0x118] sm:$0xff]  ;;  %v978_v7 = vor.u32 %v1304_v62, %v975_v63  ;;  %v982_v8 = vor.u32 %v1309_v1, %v981_v0  ;;  %v1346_v16 = vld [vmem:[%s1767_s1 + $0x108] sm:$0xff] }
  0x17   :  { %741 = vmatpush.bf16.msra.mxu1 %v1323_v21  ;;  %v1356_v5 = vld [vmem:[%s1767_s1 + $0x158] sm:$0xff]  ;;  %v986_v9 = vor.u32 %v1305_v2, %v983_v3  ;;  %v1347_v12 = vld [vmem:[%s1767_s1 + $0x110] sm:$0xff]  ;;  %v1354_v17 = vld [vmem:[%s1767_s1 + $0x148] sm:$0xff] }
  0x18   :  { %760 = vmatpush.bf16.msra.mxu2 %v1331_v22  ;;  %v1364_v10 = vld [vmem:[%s1767_s1 + $0x198] sm:$0xff]  ;;  %v1355_v13 = vld [vmem:[%s1767_s1 + $0x150] sm:$0xff]  ;;  %v1362_v18 = vld [vmem:[%s1767_s1 + $0x188] sm:$0xff] }
  0x19   :  { %779 = vmatpush.bf16.msra.mxu3 %v1339_v23  ;;  %v1372_v11 = vld [vmem:[%s1767_s1 + $0x1d8] sm:$0xff]  ;;  %v1363_v14 = vld [vmem:[%s1767_s1 + $0x190] sm:$0xff]  ;;  %v1370_v19 = vld [vmem:[%s1767_s1 + $0x1c8] sm:$0xff] }
  0x1a   :  { %723 = vmatpush.bf16.msra.mxu0 %v1314_v24  ;;  %v1371_v15 = vld [vmem:[%s1767_s1 + $0x1d0] sm:$0xff]  ;;  %v1345_v20 = vld [vmem:[%s1767_s1 + $0x100] sm:$0xff]  ;;  %v1382_v38 = vld [vmem:[%s1767_s1 + $0x228] sm:$0xff] }
  0x1b   :  { %742 = vmatpush.bf16.msra.mxu1 %v1322_v25  ;;  %v1353_v21 = vld [vmem:[%s1767_s1 + $0x140] sm:$0xff]  ;;  %v953_v24 = vld [vmem:[%s1768_s0 + $0x10] sm:$0xf]  ;;  %v1301_v25 = vld [vmem:[%s1768_s0 + $0x30] sm:$0xf0] }
  0x1c   :  { %761 = vmatpush.bf16.msra.mxu2 %v1330_v26  ;;  %v1361_v22 = vld [vmem:[%s1767_s1 + $0x180] sm:$0xff]  ;;  %v1384_v26 = vld [vmem:[%s1767_s1 + $0x238] sm:$0xff]  ;;  %v954_v33 = vor.u32 %v1301_v25, %v953_v24  ;;  %v1383_v37 = vld [vmem:[%s1767_s1 + $0x230] sm:$0xff] }
  0x1d   :  { %780 = vmatpush.bf16.msra.mxu3 %v1338_v27  ;;  %v1369_v23 = vld [vmem:[%s1767_s1 + $0x1c0] sm:$0xff]  ;;  %v1297_v27 = vld [vmem:[%s1768_s0 + $0x14] sm:$0xf] }
  0x1e   :  { %724 = vmatpush.bf16.msra.mxu0 %v1313_v28  ;;  %v955_v28 = vld [vmem:[%s1768_s0 + $0x34] sm:$0xf0]  ;;  %v963_v32 = vld [vmem:[%s1768_s0 + $0x3c] sm:$0xf0] }
  0x1f   :  { %743 = vmatpush.bf16.msra.mxu1 %v1321_v29  ;;  %v961_v29 = vld [vmem:[%s1768_s0 + $0x18] sm:$0xf]  ;;  %v958_v34 = vor.u32 %v1297_v27, %v955_v28  ;;  %v1381_v39 = vld [vmem:[%s1767_s1 + $0x220] sm:$0xff] }
  0x20   :  { %762 = vmatpush.bf16.msra.mxu2 %v1329_v30  ;;  %v1302_v30 = vld [vmem:[%s1768_s0 + $0x38] sm:$0xf0] }
  0x21   :  { %781 = vmatpush.bf16.msra.mxu3 %v1337_v31  ;;  %725 = vmatmul.bf16.vlgmr.msra.gmra.mxu0 %v938_v42  ;;  %v1298_v31 = vld [vmem:[%s1768_s0 + $0x1c] sm:$0xf]  ;;  %v962_v35 = vor.u32 %v1302_v30, %v961_v29 }
  0x22   :  { %793 = vmatpush.bf16.msrb.mxu0 %v1352_v40  ;;  %744 = vmatmul.bf16.vlgmr.msra.gmra.mxu1 %v942_v43  ;;  %v966_v36 = vor.u32 %v1298_v31, %v963_v32  ;;  %v989_v40 = vld [vmem:[%s1768_s0 + $0x58] sm:$0xf]  ;;  %v1306_v42 = vld [vmem:[%s1768_s0 + $0x5c] sm:$0xf]  ;;  %v991_v43 = vld [vmem:[%s1768_s0 + $0x7c] sm:$0xf0] }
  0x23   :  { %812 = vmatpush.bf16.msrb.mxu1 %v1360_v41  ;;  %763 = vmatmul.bf16.vlgmr.msra.gmra.mxu2 %v946_v44  ;;  %v1310_v41 = vld [vmem:[%s1768_s0 + $0x78] sm:$0xf0]  ;;  %v997_v44 = vld [vmem:[%s1768_s0 + $0x60] sm:$0xf] }
  0x24   :  { %782 = vmatmul.bf16.vlgmr.msra.gmra.mxu3 %v950_v45  ;;  %831 = vmatpush.bf16.msrb.mxu2 %v1368_v46  ;;  %v1311_v45 = vld [vmem:[%s1768_s0 + $0x80] sm:$0xf0] }
  0x25   :  { %850 = vmatpush.bf16.msrb.mxu3 %v1376_v47  ;;  %v1307_v46 = vld [vmem:[%s1768_s0 + $0x64] sm:$0xf]  ;;  %v999_v47 = vld [vmem:[%s1768_s0 + $0x84] sm:$0xf0] }
  0x26   :  { %794 = vmatpush.bf16.msrb.mxu0 %v1351_v48  ;;  %v1380_v48 = vld [vmem:[%s1767_s1 + $0x218] sm:$0xff] }
  0x27   :  { %813 = vmatpush.bf16.msrb.mxu1 %v1359_v49  ;;  %v990_v49 = vor.u32 %v1310_v41, %v989_v40 }
  0x28   :  { %832 = vmatpush.bf16.msrb.mxu2 %v1367_v50  ;;  %v994_v50 = vor.u32 %v1306_v42, %v991_v43 }
  0x29   :  { %851 = vmatpush.bf16.msrb.mxu3 %v1375_v51  ;;  %v998_v51 = vor.u32 %v1311_v45, %v997_v44 }
  0x2a   :  { %795 = vmatpush.bf16.msrb.mxu0 %v1350_v52  ;;  %v1002_v52 = vor.u32 %v1307_v46, %v999_v47 }
  0x2b   :  { %814 = vmatpush.bf16.msrb.mxu1 %v1358_v53  ;;  %v1379_v53 = vld [vmem:[%s1767_s1 + $0x210] sm:$0xff] }
  0x2c   :  { %833 = vmatpush.bf16.msrb.mxu2 %v1366_v54  ;;  %v1378_v54 = vld [vmem:[%s1767_s1 + $0x208] sm:$0xff] }
  0x2d   :  { %852 = vmatpush.bf16.msrb.mxu3 %v1374_v55  ;;  %v1377_v55 = vld [vmem:[%s1767_s1 + $0x200] sm:$0xff] }
  0x2e   :  { %796 = vmatpush.bf16.msrb.mxu0 %v1349_v56  ;;  %v969_v56 = vld [vmem:[%s1768_s0 + $0x20] sm:$0xf] }
  0x2f   :  { %815 = vmatpush.bf16.msrb.mxu1 %v1357_v57  ;;  %v1303_v57 = vld [vmem:[%s1768_s0 + $0x40] sm:$0xf0] }
  0x30   :  { %834 = vmatpush.bf16.msrb.mxu2 %v1365_v58  ;;  %v1005_v58 = vld [vmem:[%s1768_s0 + $0x68] sm:$0xf]  ;;  %v970_v60 = vor.u32 %v1303_v57, %v969_v56 }
  0x31   :  { %853 = vmatpush.bf16.msrb.mxu3 %v1373_v59  ;;  %730 = vmatmul.bf16.gmra.mxu0 %v974_v6  ;;  %v1312_v59 = vld [vmem:[%s1768_s0 + $0x88] sm:$0xf0] }
  0x32   :  { %797 = vmatpush.bf16.msrb.mxu0 %v1348_v4  ;;  %749 = vmatmul.bf16.gmra.mxu1 %v978_v7  ;;  %v1006_v61 = vor.u32 %v1312_v59, %v1005_v58  ;;  %v1404_v58 = vld [vmem:[%s1769_s2] ss:$0 sm:$0xff] }
  0x33   :  { %816 = vmatpush.bf16.msrb.mxu1 %v1356_v5  ;;  %768 = vmatmul.bf16.gmra.mxu2 %v982_v8 }
  0x34   :  { %787 = vmatmul.bf16.gmra.mxu3 %v986_v9  ;;  %835 = vmatpush.bf16.msrb.mxu2 %v1364_v10 }
  0x35   :  { %854 = vmatpush.bf16.msrb.mxu3 %v1372_v11 }
  0x36   :  { %798 = vmatpush.bf16.msrb.mxu0 %v1347_v12 }
  0x37   :  { %817 = vmatpush.bf16.msrb.mxu1 %v1355_v13 }
  0x38   :  { %836 = vmatpush.bf16.msrb.mxu2 %v1363_v14 }
  0x39   :  { %855 = vmatpush.bf16.msrb.mxu3 %v1371_v15 }
  0x3a   :  { %799 = vmatpush.bf16.msrb.mxu0 %v1346_v16 }
  0x3b   :  { %818 = vmatpush.bf16.msrb.mxu1 %v1354_v17 }
  0x3c   :  { %837 = vmatpush.bf16.msrb.mxu2 %v1362_v18 }
  0x3d   :  { %856 = vmatpush.bf16.msrb.mxu3 %v1370_v19 }
  0x3e   :  { %800 = vmatpush.bf16.msrb.mxu0 %v1345_v20 }
  0x3f   :  { %819 = vmatpush.bf16.msrb.mxu1 %v1353_v21 }
  0x40   :  { %838 = vmatpush.bf16.msrb.mxu2 %v1361_v22 }
  0x41   :  { %857 = vmatpush.bf16.msrb.mxu3 %v1369_v23  ;;  %801 = vmatmul.bf16.vlgmr.msrb.gmra.mxu0 %v954_v33 }
  0x42   :  { %869 = vmatpush.bf16.msra.mxu0 %v1384_v26  ;;  %820 = vmatmul.bf16.vlgmr.msrb.gmra.mxu1 %v958_v34 }
  0x43   :  { %1396 = vmatpush.bf16.msra.mxu1 %v1384_v26  ;;  %839 = vmatmul.bf16.vlgmr.msrb.gmra.mxu2 %v962_v35 }
  0x44   :  { %858 = vmatmul.bf16.vlgmr.msrb.gmra.mxu3 %v966_v36 }
  0x46   :  { %870 = vmatpush.bf16.msra.mxu0 %v1383_v37 }
  0x47   :  { %1397 = vmatpush.bf16.msra.mxu1 %v1383_v37 }
  0x4a   :  { %871 = vmatpush.bf16.msra.mxu0 %v1382_v38 }
  0x4b   :  { %1398 = vmatpush.bf16.msra.mxu1 %v1382_v38 }
  0x4e   :  { %872 = vmatpush.bf16.msra.mxu0 %v1381_v39 }
  0x4f   :  { %1399 = vmatpush.bf16.msra.mxu1 %v1381_v39 }
  0x51   :  { %806 = vmatmul.bf16.gmra.mxu0 %v990_v49 }
  0x52   :  { %873 = vmatpush.bf16.msra.mxu0 %v1380_v48  ;;  %825 = vmatmul.bf16.gmra.mxu1 %v994_v50 }
  0x53   :  { %1400 = vmatpush.bf16.msra.mxu1 %v1380_v48  ;;  %844 = vmatmul.bf16.gmra.mxu2 %v998_v51 }
  0x54   :  { %863 = vmatmul.bf16.gmra.mxu3 %v1002_v52 }
  0x56   :  { %874 = vmatpush.bf16.msra.mxu0 %v1379_v53 }
  0x57   :  { %1401 = vmatpush.bf16.msra.mxu1 %v1379_v53 }
  0x5a   :  { %875 = vmatpush.bf16.msra.mxu0 %v1378_v54 }
  0x5b   :  { %1402 = vmatpush.bf16.msra.mxu1 %v1378_v54 }
  0x5e   :  { %876 = vmatpush.bf16.msra.mxu0 %v1377_v55 }
  0x5f   :  { %1403 = vmatpush.bf16.msra.mxu1 %v1377_v55 }
  0x61   :  { %877 = vmatmul.bf16.vlgmr.msra.gmra.mxu0 %v970_v60 }
  0x62   :  { %882 = vmatmul.bf16.vlgmr.msra.gmra.mxu1 %v1006_v61 }
  0x9e   :  { %v726_v62 = vpop.f32.mrf.mxu0 }
  0x9f   :  { %v745_v63 = vpop.f32.mrf.mxu1 }
  0xa0   :  { %v746_v20 = vadd.f32 %v745_v63, %v726_v62 }
  0xa6   :  { %v764_v0 = vpop.f32.mrf.mxu2  ;;  %v728_v2 = vpop.f32.mrf.mxu0 }
  0xa7   :  { %v783_v1 = vpop.f32.mrf.mxu3  ;;  %v747_v3 = vpop.f32.mrf.mxu1  ;;  %v765_v25 = vadd.f32 %v764_v0, %v746_v20  ;;  %v1405_v0 = vld [vmem:[%s1770_s3] ss:$0 sm:$0xff] }
  0xa8   :  { %v748_v29 = vadd.f32 %v747_v3, %v728_v2 }
  0xa9   :  { %v784_v28 = vadd.f32 %v783_v1, %v765_v25 }
  0xae   :  { %v766_v4 = vpop.f32.mrf.mxu2  ;;  %v731_v6 = vpop.f32.mrf.mxu0 }
  0xaf   :  { %v785_v5 = vpop.f32.mrf.mxu3  ;;  %v750_v7 = vpop.f32.mrf.mxu1  ;;  %v767_v32 = vadd.f32 %v766_v4, %v748_v29 }
  0xb0   :  { %v751_v21 = vadd.f32 %v750_v7, %v731_v6 }
  0xb1   :  { %v786_v39 = vadd.f32 %v785_v5, %v767_v32 }
  0xb6   :  { %v769_v8 = vpop.f32.mrf.mxu2  ;;  %v733_v10 = vpop.f32.mrf.mxu0 }
  0xb7   :  { %v788_v9 = vpop.f32.mrf.mxu3  ;;  %v752_v11 = vpop.f32.mrf.mxu1  ;;  %v770_v26 = vadd.f32 %v769_v8, %v751_v21 }
  0xb8   :  { %v753_v31 = vadd.f32 %v752_v11, %v733_v10 }
  0xb9   :  { %v789_v30 = vadd.f32 %v788_v9, %v770_v26 }
  0xbe   :  { %v771_v12 = vpop.f32.mrf.mxu2  ;;  %v802_v14 = vpop.f32.mrf.mxu0 }
  0xbf   :  { %v790_v13 = vpop.f32.mrf.mxu3  ;;  %v821_v15 = vpop.f32.mrf.mxu1  ;;  %v772_v33 = vadd.f32 %v771_v12, %v753_v31  ;;  %v803_v34 = vadd.f32 %v802_v14, %v784_v28 }
  0xc1   :  { %v791_v40 = vadd.f32 %v790_v13, %v772_v33  ;;  %v822_v41 = vadd.f32 %v821_v15, %v803_v34 }
  0xc6   :  { %v840_v16 = vpop.f32.mrf.mxu2  ;;  %v804_v18 = vpop.f32.mrf.mxu0 }
  0xc7   :  { %v859_v17 = vpop.f32.mrf.mxu3  ;;  %v823_v19 = vpop.f32.mrf.mxu1  ;;  %v841_v44 = vadd.f32 %v840_v16, %v822_v41  ;;  %v805_v45 = vadd.f32 %v804_v18, %v786_v39 }
  0xc9   :  { %v860_v51 = vadd.f32 %v859_v17, %v841_v44  ;;  %v824_v52 = vadd.f32 %v823_v19, %v805_v45 }
  0xce   :  { %v842_v22 = vpop.f32.mrf.mxu2  ;;  %v807_v23 = vpop.f32.mrf.mxu0 }
  0xcf   :  { %v826_v24 = vpop.f32.mrf.mxu1  ;;  %v861_v27 = vpop.f32.mrf.mxu3  ;;  %v808_v35 = vadd.f32 %v807_v23, %v789_v30  ;;  %v843_v55 = vadd.f32 %v842_v22, %v824_v52 }
  0xd1   :  { %v827_v42 = vadd.f32 %v826_v24, %v808_v35  ;;  %v862_v61 = vadd.f32 %v861_v27, %v843_v55 }
  0xd6   :  { %v845_v36 = vpop.f32.mrf.mxu2  ;;  %v809_v37 = vpop.f32.mrf.mxu0 }
  0xd7   :  { %v828_v38 = vpop.f32.mrf.mxu1  ;;  %v864_v43 = vpop.f32.mrf.mxu3  ;;  %v846_v46 = vadd.f32 %v845_v36, %v827_v42  ;;  %v810_v47 = vadd.f32 %v809_v37, %v791_v40 }
  0xd9   :  { %v865_v53 = vadd.f32 %v864_v43, %v846_v46  ;;  %v829_v54 = vadd.f32 %v828_v38, %v810_v47 }
  0xde   :  { %v847_v48 = vpop.f32.mrf.mxu2  ;;  %v878_v49 = vpop.f32.mrf.mxu0 }
  0xdf   :  { %v883_v50 = vpop.f32.mrf.mxu1  ;;  %v848_v56 = vadd.f32 %v847_v48, %v829_v54  ;;  %v879_v57 = vadd.f32 %v878_v49, %v860_v51  ;;  %v866_v60 = vpop.f32.mrf.mxu3 }
  0xe0   :  { %v884_v59 = vadd.f32 %v883_v50, %v865_v53 }
  0xe1   :  { %v867_v62 = vadd.f32 %v866_v60, %v848_v56  ;;  %v907_v63 = vmul.f32 %v1404_v58, %v879_v57 }
  0xe2   :  { %v909_v1 = vmul.f32 %v1404_v58, %v884_v59 }
  0xe3   :  { %v915_v6 = vadd.f32 %v1405_v0, %v907_v63 }
  0xe4   :  { %v917_v7 = vadd.f32 %v1405_v0, %v909_v1 }
  0xe5   :  { %v919_v12 = vmax.f32 %v915_v6, 0.0 }
  0xe6   :  { %v880_v2 = vpop.f32.mrf.mxu0  ;;  %v921_v13 = vmax.f32 %v917_v7, 0.0 }
  0xe7   :  { %v885_v3 = vpop.f32.mrf.mxu1  ;;  %v881_v4 = vadd.f32 %v880_v2, %v862_v61 }
  0xe8   :  { %v886_v5 = vadd.f32 %v885_v3, %v867_v62 }
  0xe9   :  { %v908_v8 = vmul.f32 %v1404_v58, %v881_v4 }
  0xea   :  { %v910_v9 = vmul.f32 %v1404_v58, %v886_v5 }
  0xeb   :  { %v916_v10 = vadd.f32 %v1405_v0, %v908_v8 }
  0xec   :  { %v918_v11 = vadd.f32 %v1405_v0, %v910_v9 }
  0xed   :  { %v920_v14 = vmax.f32 %v916_v10, 0.0 }
  0xee   :  { %v922_v15 = vmax.f32 %v918_v11, 0.0 }
  0xef   :  { %v1388_v16 = vpack.c.bf16 %v920_v14, %v919_v12 }
  0xf0   :  { %v1393_v17 = vpack.c.bf16 %v922_v15, %v921_v13 }
  0xf1   :  { %1389 = vst [vmem:[%s1771_s4] sm:$0xff] %v1388_v16  }
  0xf2   :  { %1395 = vst [vmem:[%s1771_s4 + $0x8] sm:$0xff] %v1393_v17  }

// kernel: _lambda_.39
= control target key start
LH: loop header
LB: loop body
LE: loop exit
PB: predicated region body
PF: predicated region fallthrough
CT: control target
= control target key end

     0   :  { %s1029_s15 = smov 0   ;;  %s1031_s16 = smov 0   ;;  %s1180_s0 = inlined_call_operand.vmem [shape: bf16[32,128], index: 0, kind: input, shape index: {}]   ;;  %s1181_s1 = inlined_call_operand.vmem [shape: bf16[128,1024], index: 1, kind: input, shape index: {}]   ;;  %s1182_s2 = inlined_call_operand.vmem [shape: f32[1,1024], index: 2, kind: input, shape index: {}]   ;;  %s1183_s3 = inlined_call_operand.vmem [shape: f32[1,1024], index: 3, kind: input, shape index: {}]   ;;  %s1184_s4 = inlined_call_operand.vmem [shape: bf16[32,1024], index: 4, kind: output, shape index: {}]  }
   0x1   :  { %s1033_s17 = smov 0   ;;  %s1035_s18 = smov 0  }
   0x2   :  { %s1037_s19 = smov 0  }
   0x3 LB: > { %s29_s20 = sadd.s32 1, %s998_s18  ;;  %s798_s21 = sadd.s32 4294967295, %s1002_s19   ;;  %s1002_s19 = sphi %s1037_s19, %s14_s19   ;;  %s998_s18 = sphi %s1035_s18, %s1189_s18   ;;  %s994_s17 = sphi %s1033_s17, %s1188_s17   ;;  %s990_s16 = sphi %s1031_s16, %s1187_s16   ;;  %s986_s15 = sphi %s1029_s15, %s1186_s15  }
   0x4   : > { %p31_p0 = scmp.ge.s32.totalorder %s29_s20, 4  ;;  %p77_p1 = scmp.ne.s32.totalorder %s990_s16, %s986_s15 }
   0x5   : > { %p78_p2 = scmp.eq.s32.totalorder %s1002_s19, 0  ;;  %p161_p4 = scmp.eq.s32.totalorder %s798_s21, 3 }
   0x6   : > { %s1191_s20 = smov (%p31_p0, %s29_s20), 0  ;;  %s70_s23 = sadd.s32 1, %s990_s16 }
   0x7   : > { %p79_p3 = por %p78_p2, %p77_p1  ;;  %s66_s22 = ssub.s32 %s998_s18, %s1191_s20 }
   0x8   : > { %p68_p5 = scmp.eq.s32.totalorder %s66_s22, 0  ;;  %p1064_p6 = por %p161_p4, %p77_p1 }
   0x9   : > { %p802_p7 = scmp.ge.s32.totalorder %s1002_s19, 4 }
   0xa   : > { %s1069_s25 = scalar_select %p68_p5, %s990_s16, %s70_s23  }
   0xb   : > { %195 = sbr.rel (%p802_p7) target bundleno = 36 (0x24), region = 20 }
  0x10   : > { %198 = sbr.rel (!%p79_p3) target bundleno = 36 (0x24), region = 24  ;;  %s200_s26 = sand.u32 (%p79_p3), 1, %s990_s16  }
  0x11   : > { %s888_s27 = sshll.u32 (%p79_p3), %s998_s18, 3  ;;  %s803_s28 = sshll.u32 (%p79_p3), %s200_s26, 7 }
  0x12   : > { %s1077_s5 = scalar_lea.vmem (%p79_p3), %s1181_s1, %s888_s27  ;;  %s202_s6 = scalar_lea.vmem (%p79_p3), [#allocation3], %s803_s28 }
  0x13   : > { %v267_v0 = vld [vmem:[%s1077_s5] sm:$0xff] (%p79_p3) }
  0x14   : > { %v269_v1 = vld [vmem:[%s1077_s5 + $0x20] sm:$0xff] (%p79_p3)  ;;  %268 = vst [vmem:[%s202_s6] sm:$0xff] (%p79_p3), %v267_v0 }
  0x15   : > { %v271_v2 = vld [vmem:[%s1077_s5 + $0x40] sm:$0xff]  ;;  %270 = vst [vmem:[%s202_s6 + $0x8] sm:$0xff] %v269_v1 }
  0x16   : > { %v273_v3 = vld [vmem:[%s1077_s5 + $0x60] sm:$0xff]  ;;  %272 = vst [vmem:[%s202_s6 + $0x10] sm:$0xff] %v271_v2 }
  0x17   : > { %v275_v4 = vld [vmem:[%s1077_s5 + $0x80] sm:$0xff]  ;;  %274 = vst [vmem:[%s202_s6 + $0x18] sm:$0xff] %v273_v3 }
  0x18   : > { %v277_v5 = vld [vmem:[%s1077_s5 + $0xa0] sm:$0xff]  ;;  %276 = vst [vmem:[%s202_s6 + $0x20] sm:$0xff] %v275_v4 }
  0x19   : > { %v279_v6 = vld [vmem:[%s1077_s5 + $0xc0] sm:$0xff]  ;;  %278 = vst [vmem:[%s202_s6 + $0x28] sm:$0xff] %v277_v5 }
  0x1a   : > { %v281_v7 = vld [vmem:[%s1077_s5 + $0xe0] sm:$0xff]  ;;  %280 = vst [vmem:[%s202_s6 + $0x30] sm:$0xff] %v279_v6 }
  0x1b   : > { %v283_v8 = vld [vmem:[%s1077_s5 + $0x100] sm:$0xff]  ;;  %282 = vst [vmem:[%s202_s6 + $0x38] sm:$0xff] %v281_v7 }
  0x1c   : > { %v285_v9 = vld [vmem:[%s1077_s5 + $0x120] sm:$0xff]  ;;  %284 = vst [vmem:[%s202_s6 + $0x40] sm:$0xff] %v283_v8 }
  0x1d   : > { %v287_v10 = vld [vmem:[%s1077_s5 + $0x140] sm:$0xff]  ;;  %286 = vst [vmem:[%s202_s6 + $0x48] sm:$0xff] %v285_v9 }
  0x1e   : > { %v289_v11 = vld [vmem:[%s1077_s5 + $0x160] sm:$0xff]  ;;  %288 = vst [vmem:[%s202_s6 + $0x50] sm:$0xff] %v287_v10 }
  0x1f   : > { %v291_v12 = vld [vmem:[%s1077_s5 + $0x180] sm:$0xff]  ;;  %290 = vst [vmem:[%s202_s6 + $0x58] sm:$0xff] %v289_v11 }
  0x20   : > { %v293_v13 = vld [vmem:[%s1077_s5 + $0x1a0] sm:$0xff]  ;;  %292 = vst [vmem:[%s202_s6 + $0x60] sm:$0xff] %v291_v12 }
  0x21   : > { %v295_v14 = vld [vmem:[%s1077_s5 + $0x1c0] sm:$0xff]  ;;  %294 = vst [vmem:[%s202_s6 + $0x68] sm:$0xff] %v293_v13 }
  0x22   : > { %v297_v15 = vld [vmem:[%s1077_s5 + $0x1e0] sm:$0xff]  ;;  %296 = vst [vmem:[%s202_s6 + $0x70] sm:$0xff] %v295_v14 }
  0x23   : > { %298 = vst [vmem:[%s202_s6 + $0x78] sm:$0xff] %v297_v15 }
  0x24 PF: > { %p806_p8 = scmp.ge.s32.totalorder %s1002_s19, 1  ;;  %p319_p9 = scmp.lt.s32.totalorder %s1002_s19, 5 }
  0x26   : > { %p320_p10 = pnand %p806_p8, %p319_p9 }
  0x27   : > { %s326_s7 = sand.u32 (!%p320_p10), 1, %s986_s15   ;;  %s809_s14 = sshll.u32 (!%p320_p10), %s994_s17, 1 }
  0x28   : > { %323 = sbr.rel (%p320_p10) target bundleno = 237 (0xed), region = 70  ;;  %s807_s8 = sshll.u32 (!%p320_p10), %s326_s7, 7 }
  0x29   : > { %s1100_s9 = scalar_lea.vmem (!%p320_p10), [#allocation3], %s807_s8  ;;  %p378_p11 = scmp.lt.s32.totalorder (!%p320_p10), %s809_s14, 7 }
  0x2a   : > { %s808_s29 = sshll.u32 (!%p320_p10), %s326_s7, 5 }
  0x2b   : > { %s1149_s30 = scalar_lea.vmem (!%p320_p10), [#allocation4], %s808_s29 }
  0x2d   : > { %v877_v16 = vld [vmem:[%s1100_s9 + $0x70] sm:$0xf]  ;;  %v906_v17 = vld [vmem:[%s1100_s9 + $0x74] sm:$0xf0]  ;;  %v905_v18 = vld [vmem:[%s1100_s9 + $0x74] sm:$0xf] }
  0x2e   : > { %v878_v19 = vor.u32 %v906_v17, %v877_v16  ;;  %v879_v20 = vld [vmem:[%s1100_s9 + $0x78] sm:$0xf0]  ;;  %v869_v21 = vld [vmem:[%s1100_s9 + $0x60] sm:$0xf]  ;;  %v904_v22 = vld [vmem:[%s1100_s9 + $0x64] sm:$0xf0] }
  0x2f   : > { %v882_v23 = vor.u32 %v905_v18, %v879_v20  ;;  %v903_v24 = vld [vmem:[%s1100_s9 + $0x64] sm:$0xf]  ;;  %v871_v25 = vld [vmem:[%s1100_s9 + $0x68] sm:$0xf0]  ;;  %v870_v26 = vor.u32 %v904_v22, %v869_v21  ;;  %v861_v28 = vld [vmem:[%s1100_s9 + $0x50] sm:$0xf] }
  0x30   : > { %521 = vmatpush.bf16.msra.mxu0 %v878_v19  ;;  %908 = vmatpush.bf16.msra.mxu2 %v878_v19  ;;  %v874_v27 = vor.u32 %v903_v24, %v871_v25  ;;  %v902_v29 = vld [vmem:[%s1100_s9 + $0x54] sm:$0xf0]  ;;  %v901_v30 = vld [vmem:[%s1100_s9 + $0x54] sm:$0xf]  ;;  %v863_v31 = vld [vmem:[%s1100_s9 + $0x58] sm:$0xf0] }
  0x31   : > { %540 = vmatpush.bf16.msra.mxu1 %v882_v23  ;;  %916 = vmatpush.bf16.msra.mxu3 %v882_v23  ;;  %v862_v32 = vor.u32 %v902_v29, %v861_v28  ;;  %v866_v33 = vor.u32 %v901_v30, %v863_v31  ;;  %v853_v34 = vld [vmem:[%s1100_s9 + $0x40] sm:$0xf]  ;;  %v900_v35 = vld [vmem:[%s1100_s9 + $0x44] sm:$0xf0]  ;;  %v899_v36 = vld [vmem:[%s1100_s9 + $0x44] sm:$0xf] }
  0x32   : > { %v855_v37 = vld [vmem:[%s1100_s9 + $0x48] sm:$0xf0]  ;;  %v854_v38 = vor.u32 %v900_v35, %v853_v34  ;;  %v845_v40 = vld [vmem:[%s1100_s9 + $0x30] sm:$0xf]  ;;  %v898_v41 = vld [vmem:[%s1100_s9 + $0x34] sm:$0xf0] }
  0x33   : > { %v858_v39 = vor.u32 %v899_v36, %v855_v37  ;;  %v897_v42 = vld [vmem:[%s1100_s9 + $0x34] sm:$0xf]  ;;  %v847_v43 = vld [vmem:[%s1100_s9 + $0x38] sm:$0xf0]  ;;  %v846_v44 = vor.u32 %v898_v41, %v845_v40  ;;  %v837_v46 = vld [vmem:[%s1100_s9 + $0x20] sm:$0xf] }
  0x34   : > { %522 = vmatpush.bf16.msra.mxu0 %v870_v26  ;;  %909 = vmatpush.bf16.msra.mxu2 %v870_v26  ;;  %v850_v45 = vor.u32 %v897_v42, %v847_v43  ;;  %v896_v47 = vld [vmem:[%s1100_s9 + $0x24] sm:$0xf0]  ;;  %v895_v48 = vld [vmem:[%s1100_s9 + $0x24] sm:$0xf]  ;;  %v839_v49 = vld [vmem:[%s1100_s9 + $0x28] sm:$0xf0] }
  0x35   : > { %541 = vmatpush.bf16.msra.mxu1 %v874_v27  ;;  %917 = vmatpush.bf16.msra.mxu3 %v874_v27  ;;  %v838_v50 = vor.u32 %v896_v47, %v837_v46  ;;  %v842_v51 = vor.u32 %v895_v48, %v839_v49  ;;  %v829_v52 = vld [vmem:[%s1100_s9 + $0x10] sm:$0xf]  ;;  %v894_v53 = vld [vmem:[%s1100_s9 + $0x14] sm:$0xf0]  ;;  %v893_v54 = vld [vmem:[%s1100_s9 + $0x14] sm:$0xf] }
  0x36   : > { %v831_v55 = vld [vmem:[%s1100_s9 + $0x18] sm:$0xf0]  ;;  %v830_v56 = vor.u32 %v894_v53, %v829_v52  ;;  %v821_v58 = vld [vmem:[%s1100_s9] sm:$0xf]  ;;  %v892_v59 = vld [vmem:[%s1100_s9 + $0x4] sm:$0xf0] }
  0x37   : > { %v834_v57 = vor.u32 %v893_v54, %v831_v55  ;;  %v891_v60 = vld [vmem:[%s1100_s9 + $0x4] sm:$0xf]  ;;  %v823_v61 = vld [vmem:[%s1100_s9 + $0x8] sm:$0xf0]  ;;  %v822_v62 = vor.u32 %v892_v59, %v821_v58  ;;  %s1193_s14 = smov (!%p378_p11, %s809_s14), 7  ;;  %s907_s15 = sshll.u32 (%p1064_p6), %s994_s17, 3 }
  0x38   : > { %523 = vmatpush.bf16.msra.mxu0 %v862_v32  ;;  %910 = vmatpush.bf16.msra.mxu2 %v862_v32  ;;  %v826_v63 = vor.u32 %v891_v60, %v823_v61  ;;  %v889_v0 = vld [vmem:[%s1180_s0] sm:$0xff]  ;;  %v890_v1 = vld [vmem:[%s1180_s0 + $0x8] sm:$0xff]  ;;  %s380_s23 = scalar_lea.vmem %s1182_s2, %s1193_s14  ;;  %s385_s28 = scalar_lea.vmem %s1183_s3, %s1193_s14 }
  0x39   : > { %542 = vmatpush.bf16.msra.mxu1 %v866_v33  ;;  %918 = vmatpush.bf16.msra.mxu3 %v866_v33  ;;  %v586_v2 = vld [vmem:[%s380_s23] sm:$0x3]  ;;  %s642_s7 = scalar_lea.vmem (%p1064_p6), %s1184_s4, %s907_s15 }
  0x3a   : > { %v600_v3 = vld [vmem:[%s385_s28] sm:$0x3]  ;;  %v588_v4 = vperm.slane %v586_v2, 0  ;;  %v589_v5 = vperm.slane %v586_v2, 1 }
  0x3b   : > { %v602_v6 = vperm.slane %v600_v3, 0  ;;  %v603_v8 = vperm.slane %v600_v3, 1 }
  0x3c   : > { %524 = vmatpush.bf16.msra.mxu0 %v854_v38  ;;  %911 = vmatpush.bf16.msra.mxu2 %v854_v38 }
  0x3d   : > { %543 = vmatpush.bf16.msra.mxu1 %v858_v39  ;;  %919 = vmatpush.bf16.msra.mxu3 %v858_v39 }
  0x40   : > { %525 = vmatpush.bf16.msra.mxu0 %v846_v44  ;;  %912 = vmatpush.bf16.msra.mxu2 %v846_v44 }
  0x41   : > { %544 = vmatpush.bf16.msra.mxu1 %v850_v45  ;;  %920 = vmatpush.bf16.msra.mxu3 %v850_v45 }
  0x44   : > { %526 = vmatpush.bf16.msra.mxu0 %v838_v50  ;;  %913 = vmatpush.bf16.msra.mxu2 %v838_v50 }
  0x45   : > { %545 = vmatpush.bf16.msra.mxu1 %v842_v51  ;;  %921 = vmatpush.bf16.msra.mxu3 %v842_v51 }
  0x48   : > { %527 = vmatpush.bf16.msra.mxu0 %v830_v56  ;;  %914 = vmatpush.bf16.msra.mxu2 %v830_v56 }
  0x49   : > { %546 = vmatpush.bf16.msra.mxu1 %v834_v57  ;;  %922 = vmatpush.bf16.msra.mxu3 %v834_v57 }
  0x4c   : > { %528 = vmatpush.bf16.msra.mxu0 %v822_v62  ;;  %915 = vmatpush.bf16.msra.mxu2 %v822_v62 }
  0x4d   : > { %547 = vmatpush.bf16.msra.mxu1 %v826_v63  ;;  %923 = vmatpush.bf16.msra.mxu3 %v826_v63 }
  0x4f   : > { %529 = vmatmul.bf16.vlgmr.msra.gmra.mxu0 %v889_v0  ;;  %534 = vmatmul.bf16.vlgmr.msra.gmra.mxu2 %v890_v1 }
  0x50   : > { %548 = vmatmul.bf16.vlgmr.msra.gmra.mxu1 %v889_v0  ;;  %553 = vmatmul.bf16.vlgmr.msra.gmra.mxu3 %v890_v1 }
  0xcc   : > { %v530_v7 = vpop.f32.mrf.mxu0 }
  0xcd   : > { %v592_v9 = vmul.f32 %v588_v4, %v530_v7  ;;  %v549_v10 = vpop.f32.mrf.mxu1 }
  0xce   : > { %v593_v11 = vmul.f32 %v589_v5, %v549_v10 }
  0xcf   : > { %v606_v12 = vadd.f32 %v602_v6, %v592_v9 }
  0xd0   : > { %v607_v13 = vadd.f32 %v603_v8, %v593_v11 }
  0xd1   : > { %v614_v14 = vmax.f32 %v606_v12, 0.0 }
  0xd2   : > { %v615_v15 = vmax.f32 %v607_v13, 0.0  ;;  %v535_v16 = vpop.f32.mrf.mxu2 }
  0xd3   : > { %v596_v17 = vmul.f32 %v588_v4, %v535_v16  ;;  %v554_v18 = vpop.f32.mrf.mxu3 }
  0xd4   : > { %v622_v19 = vpack.c.bf16 %v615_v15, %v614_v14  ;;  %v597_v20 = vmul.f32 %v589_v5, %v554_v18  ;;  %v532_v21 = vpop.f32.mrf.mxu0 }
  0xd5   : > { %v610_v22 = vadd.f32 %v602_v6, %v596_v17  ;;  %v594_v23 = vmul.f32 %v588_v4, %v532_v21  ;;  %v551_v24 = vpop.f32.mrf.mxu1 }
  0xd6   : > { %626 = vst [vmem:[%s1149_s30] sm:$0xff] %v622_v19  ;;  %v611_v25 = vadd.f32 %v603_v8, %v597_v20  ;;  %v595_v26 = vmul.f32 %v589_v5, %v551_v24 }
  0xd7   : > { %v618_v27 = vmax.f32 %v610_v22, 0.0  ;;  %v608_v28 = vadd.f32 %v602_v6, %v594_v23 }
  0xd8   : > { %v619_v29 = vmax.f32 %v611_v25, 0.0  ;;  %v609_v30 = vadd.f32 %v603_v8, %v595_v26 }
  0xd9   : > { %v616_v31 = vmax.f32 %v608_v28, 0.0 }
  0xda   : > { %v624_v32 = vpack.c.bf16 %v619_v29, %v618_v27  ;;  %v617_v33 = vmax.f32 %v609_v30, 0.0  ;;  %v537_v34 = vpop.f32.mrf.mxu2 }
  0xdb   : > { %v598_v35 = vmul.f32 %v588_v4, %v537_v34  ;;  %v556_v36 = vpop.f32.mrf.mxu3 }
  0xdc   : > { %628 = vst [vmem:[%s1149_s30 + $0x10] sm:$0xff] %v624_v32  ;;  %v623_v37 = vpack.c.bf16 %v617_v33, %v616_v31  ;;  %v599_v38 = vmul.f32 %v589_v5, %v556_v36 }
  0xdd   : > { %v612_v39 = vadd.f32 %v602_v6, %v598_v35  ;;  %v677_v44 = vld [vmem:[%s1149_s30] sm:$0xff] (%p1064_p6) }
  0xde   : > { %627 = vst [vmem:[%s1149_s30 + $0x8] sm:$0xff] %v623_v37  ;;  %v613_v40 = vadd.f32 %v603_v8, %v599_v38 }
  0xdf   : > { %v620_v41 = vmax.f32 %v612_v39, 0.0  ;;  %678 = vst [vmem:[%s642_s7] sm:$0xff] (%p1064_p6), %v677_v44 }
  0xe0   : > { %v621_v42 = vmax.f32 %v613_v40, 0.0  ;;  %636 = sbr.rel (!%p1064_p6) target bundleno = 237 (0xed), region = 86 }
  0xe2   : > { %v625_v43 = vpack.c.bf16 %v621_v42, %v620_v41 }
  0xe3   : > { %v681_v46 = vld [vmem:[%s1149_s30 + $0x10] sm:$0xff] (%p1064_p6) }
  0xe4   : > { %629 = vst [vmem:[%s1149_s30 + $0x18] sm:$0xff] %v625_v43 }
  0xe5   : > { %v679_v45 = vld [vmem:[%s1149_s30 + $0x8] sm:$0xff]  ;;  %682 = vst [vmem:[%s642_s7 + $0x40] sm:$0xff] %v681_v46 }
  0xe6   : > { %680 = vst [vmem:[%s642_s7 + $0x20] sm:$0xff] %v679_v45 }
  0xeb   : > { %v683_v47 = vld [vmem:[%s1149_s30 + $0x18] sm:$0xff] }
  0xec   : > { %684 = vst [vmem:[%s642_s7 + $0x60] sm:$0xff] %v683_v47 }
  0xed PF: > { %s14_s19 = sadd.s32 1, %s1002_s19   ;;  %s1186_s15 = smov %s990_s16 }
  0xee   : > { %p11_p12 = scmp.ge.s32.totalorder %s14_s19, 6   ;;  %s1187_s16 = smov %s1069_s25 }
  0xef   : > { %s1188_s17 = smov %s998_s18  ;;  %s1189_s18 = smov %s1191_s20 }
  0xf0   :  { %13 = sbr.rel (!%p11_p12) target bundleno = 3 (0x3), region = 164 }

// kernel: _lambda_.42
= control target key start
LH: loop header
LB: loop body
LE: loop exit
PB: predicated region body
PF: predicated region fallthrough
CT: control target
= control target key end

     0   :  { %s3696_s1 = inlined_call_operand.vmem [shape: bf16[1280,256], index: 1, kind: input, shape index: {}]   ;;  %s3697_s0 = inlined_call_operand.vmem [shape: bf16[32,1280], index: 0, kind: input, shape index: {}]   ;;  %s3698_s2 = inlined_call_operand.vmem [shape: f32[1,256], index: 2, kind: input, shape index: {}]   ;;  %s3699_s3 = inlined_call_operand.vmem [shape: f32[1,256], index: 3, kind: input, shape index: {}]   ;;  %s3700_s4 = inlined_call_operand.vmem [shape: bf16[32,256], index: 4, kind: output, shape index: {}]  }
   0x1   :  { %v1710_v0 = vld [vmem:[%s3696_s1 + $0x70] sm:$0xf]  ;;  %v2327_v1 = vld [vmem:[%s3696_s1 + $0x74] sm:$0xf0]  ;;  %v1702_v11 = vld [vmem:[%s3696_s1 + $0x60] sm:$0xf] }
   0x2   :  { %v1774_v2 = vld [vmem:[%s3696_s1 + $0xf0] sm:$0xf]  ;;  %v1711_v3 = vor.u32 %v2327_v1, %v1710_v0  ;;  %v2343_v4 = vld [vmem:[%s3696_s1 + $0xf4] sm:$0xf0]  ;;  %v2325_v13 = vld [vmem:[%s3696_s1 + $0x64] sm:$0xf0] }
   0x3   :  { %v1838_v5 = vld [vmem:[%s3696_s1 + $0x170] sm:$0xf]  ;;  %v2359_v6 = vld [vmem:[%s3696_s1 + $0x174] sm:$0xf0]  ;;  %v1775_v7 = vor.u32 %v2343_v4, %v1774_v2  ;;  %v1766_v14 = vld [vmem:[%s3696_s1 + $0xe0] sm:$0xf]  ;;  %v1703_v16 = vor.u32 %v2325_v13, %v1702_v11 }
   0x4   :  { %v1839_v8 = vor.u32 %v2359_v6, %v1838_v5  ;;  %v1902_v9 = vld [vmem:[%s3696_s1 + $0x1f0] sm:$0xf]  ;;  %v2375_v10 = vld [vmem:[%s3696_s1 + $0x1f4] sm:$0xf0]  ;;  %1117 = vmatpush.bf16.msra.mxu0 %v1711_v3  ;;  %v2341_v15 = vld [vmem:[%s3696_s1 + $0xe4] sm:$0xf0] }
   0x5   :  { %v1903_v12 = vor.u32 %v2375_v10, %v1902_v9  ;;  %1136 = vmatpush.bf16.msra.mxu1 %v1775_v7  ;;  %v1767_v17 = vor.u32 %v2341_v15, %v1766_v14  ;;  %v1830_v18 = vld [vmem:[%s3696_s1 + $0x160] sm:$0xf]  ;;  %v2357_v19 = vld [vmem:[%s3696_s1 + $0x164] sm:$0xf0]  ;;  %v1694_v23 = vld [vmem:[%s3696_s1 + $0x50] sm:$0xf] }
   0x6   :  { %1155 = vmatpush.bf16.msra.mxu2 %v1839_v8  ;;  %v1894_v20 = vld [vmem:[%s3696_s1 + $0x1e0] sm:$0xf]  ;;  %v1831_v21 = vor.u32 %v2357_v19, %v1830_v18  ;;  %v2373_v22 = vld [vmem:[%s3696_s1 + $0x1e4] sm:$0xf0]  ;;  %v2323_v24 = vld [vmem:[%s3696_s1 + $0x54] sm:$0xf0] }
   0x7   :  { %1174 = vmatpush.bf16.msra.mxu3 %v1903_v12  ;;  %v1895_v25 = vor.u32 %v2373_v22, %v1894_v20  ;;  %v1758_v26 = vld [vmem:[%s3696_s1 + $0xd0] sm:$0xf]  ;;  %v2339_v27 = vld [vmem:[%s3696_s1 + $0xd4] sm:$0xf0]  ;;  %v1695_v29 = vor.u32 %v2323_v24, %v1694_v23  ;;  %v1686_v35 = vld [vmem:[%s3696_s1 + $0x40] sm:$0xf] }
   0x8   :  { %v1822_v28 = vld [vmem:[%s3696_s1 + $0x150] sm:$0xf]  ;;  %1118 = vmatpush.bf16.msra.mxu0 %v1703_v16  ;;  %v2355_v30 = vld [vmem:[%s3696_s1 + $0x154] sm:$0xf0]  ;;  %v1759_v33 = vor.u32 %v2339_v27, %v1758_v26  ;;  %v2321_v36 = vld [vmem:[%s3696_s1 + $0x44] sm:$0xf0] }
   0x9   :  { %v1886_v31 = vld [vmem:[%s3696_s1 + $0x1d0] sm:$0xf]  ;;  %v2371_v32 = vld [vmem:[%s3696_s1 + $0x1d4] sm:$0xf0]  ;;  %1137 = vmatpush.bf16.msra.mxu1 %v1767_v17  ;;  %v1823_v34 = vor.u32 %v2355_v30, %v1822_v28  ;;  %v1750_v37 = vld [vmem:[%s3696_s1 + $0xc0] sm:$0xf]  ;;  %v1687_v44 = vor.u32 %v2321_v36, %v1686_v35 }
   0xa   :  { %1156 = vmatpush.bf16.msra.mxu2 %v1831_v21  ;;  %v1887_v38 = vor.u32 %v2371_v32, %v1886_v31  ;;  %v2337_v39 = vld [vmem:[%s3696_s1 + $0xc4] sm:$0xf0]  ;;  %v1814_v40 = vld [vmem:[%s3696_s1 + $0x140] sm:$0xf]  ;;  %v1678_v47 = vld [vmem:[%s3696_s1 + $0x30] sm:$0xf] }
   0xb   :  { %1175 = vmatpush.bf16.msra.mxu3 %v1895_v25  ;;  %v2353_v41 = vld [vmem:[%s3696_s1 + $0x144] sm:$0xf0]  ;;  %v1878_v42 = vld [vmem:[%s3696_s1 + $0x1c0] sm:$0xf]  ;;  %v1751_v45 = vor.u32 %v2337_v39, %v1750_v37  ;;  %v2319_v48 = vld [vmem:[%s3696_s1 + $0x34] sm:$0xf0] }
   0xc   :  { %v2369_v43 = vld [vmem:[%s3696_s1 + $0x1c4] sm:$0xf0]  ;;  %1119 = vmatpush.bf16.msra.mxu0 %v1695_v29  ;;  %v1815_v46 = vor.u32 %v2353_v41, %v1814_v40  ;;  %v1742_v49 = vld [vmem:[%s3696_s1 + $0xb0] sm:$0xf]  ;;  %v2335_v51 = vld [vmem:[%s3696_s1 + $0xb4] sm:$0xf0]  ;;  %v1679_v56 = vor.u32 %v2319_v48, %v1678_v47 }
   0xd   :  { %1138 = vmatpush.bf16.msra.mxu1 %v1759_v33  ;;  %v1879_v50 = vor.u32 %v2369_v43, %v1878_v42  ;;  %v1806_v52 = vld [vmem:[%s3696_s1 + $0x130] sm:$0xf]  ;;  %v2351_v53 = vld [vmem:[%s3696_s1 + $0x134] sm:$0xf0]  ;;  %v1743_v57 = vor.u32 %v2335_v51, %v1742_v49  ;;  %v1670_v59 = vld [vmem:[%s3696_s1 + $0x20] sm:$0xf] }
   0xe   :  { %1157 = vmatpush.bf16.msra.mxu2 %v1823_v34  ;;  %v1870_v54 = vld [vmem:[%s3696_s1 + $0x1b0] sm:$0xf]  ;;  %v2367_v55 = vld [vmem:[%s3696_s1 + $0x1b4] sm:$0xf0]  ;;  %v1807_v58 = vor.u32 %v2351_v53, %v1806_v52  ;;  %v2317_v60 = vld [vmem:[%s3696_s1 + $0x24] sm:$0xf0] }
   0xf   :  { %1176 = vmatpush.bf16.msra.mxu3 %v1887_v38  ;;  %v1734_v61 = vld [vmem:[%s3696_s1 + $0xa0] sm:$0xf]  ;;  %v1871_v62 = vor.u32 %v2367_v55, %v1870_v54  ;;  %v2333_v63 = vld [vmem:[%s3696_s1 + $0xa4] sm:$0xf0]  ;;  %v1671_v4 = vor.u32 %v2317_v60, %v1670_v59  ;;  %v1662_v7 = vld [vmem:[%s3696_s1 + $0x10] sm:$0xf] }
  0x10   :  { %1120 = vmatpush.bf16.msra.mxu0 %v1687_v44  ;;  %v1798_v0 = vld [vmem:[%s3696_s1 + $0x120] sm:$0xf]  ;;  %v2349_v1 = vld [vmem:[%s3696_s1 + $0x124] sm:$0xf0]  ;;  %v1735_v5 = vor.u32 %v2333_v63, %v1734_v61  ;;  %v2315_v8 = vld [vmem:[%s3696_s1 + $0x14] sm:$0xf0] }
  0x11   :  { %1139 = vmatpush.bf16.msra.mxu1 %v1751_v45  ;;  %v1862_v2 = vld [vmem:[%s3696_s1 + $0x1a0] sm:$0xf]  ;;  %v2365_v3 = vld [vmem:[%s3696_s1 + $0x1a4] sm:$0xf0]  ;;  %v1799_v6 = vor.u32 %v2349_v1, %v1798_v0  ;;  %v1726_v9 = vld [vmem:[%s3696_s1 + $0x90] sm:$0xf]  ;;  %v1663_v17 = vor.u32 %v2315_v8, %v1662_v7 }
  0x12   :  { %1158 = vmatpush.bf16.msra.mxu2 %v1815_v46  ;;  %v1863_v10 = vor.u32 %v2365_v3, %v1862_v2  ;;  %v2331_v11 = vld [vmem:[%s3696_s1 + $0x94] sm:$0xf0]  ;;  %v1790_v12 = vld [vmem:[%s3696_s1 + $0x110] sm:$0xf]  ;;  %v1654_v16 = vld [vmem:[%s3696_s1] sm:$0xf] }
  0x13   :  { %1177 = vmatpush.bf16.msra.mxu3 %v1879_v50  ;;  %v2347_v13 = vld [vmem:[%s3696_s1 + $0x114] sm:$0xf0]  ;;  %v1854_v14 = vld [vmem:[%s3696_s1 + $0x190] sm:$0xf]  ;;  %v2313_v18 = vld [vmem:[%s3696_s1 + $0x4] sm:$0xf0]  ;;  %v1727_v21 = vor.u32 %v2331_v11, %v1726_v9 }
  0x14   :  { %1121 = vmatpush.bf16.msra.mxu0 %v1679_v56  ;;  %v2363_v15 = vld [vmem:[%s3696_s1 + $0x194] sm:$0xf0]  ;;  %v1718_v19 = vld [vmem:[%s3696_s1 + $0x80] sm:$0xf]  ;;  %v2329_v20 = vld [vmem:[%s3696_s1 + $0x84] sm:$0xf0]  ;;  %v1791_v22 = vor.u32 %v2347_v13, %v1790_v12  ;;  %v1655_v34 = vor.u32 %v2313_v18, %v1654_v16 }
  0x15   :  { %1140 = vmatpush.bf16.msra.mxu1 %v1743_v57  ;;  %v1782_v23 = vld [vmem:[%s3696_s1 + $0x100] sm:$0xf]  ;;  %v2345_v24 = vld [vmem:[%s3696_s1 + $0x104] sm:$0xf0]  ;;  %v1855_v26 = vor.u32 %v2363_v15, %v1854_v14  ;;  %v2292_v30 = vld [vmem:[%s3697_s0 + $0x4] sm:$0xf]  ;;  %v1719_v38 = vor.u32 %v2329_v20, %v1718_v19 }
  0x16   :  { %1159 = vmatpush.bf16.msra.mxu2 %v1807_v58  ;;  %v1846_v25 = vld [vmem:[%s3696_s1 + $0x180] sm:$0xf]  ;;  %v2361_v27 = vld [vmem:[%s3696_s1 + $0x184] sm:$0xf0]  ;;  %v1576_v31 = vld [vmem:[%s3697_s0 + $0x28] sm:$0xf0]  ;;  %v1783_v39 = vor.u32 %v2345_v24, %v1782_v23 }
  0x17   :  { %1178 = vmatpush.bf16.msra.mxu3 %v1871_v62  ;;  %v1574_v28 = vld [vmem:[%s3697_s0] sm:$0xf]  ;;  %v2297_v29 = vld [vmem:[%s3697_s0 + $0x24] sm:$0xf0]  ;;  %v2094_v32 = vld [vmem:[%s3696_s1 + $0x370] sm:$0xf]  ;;  %v1847_v43 = vor.u32 %v2361_v27, %v1846_v25  ;;  %v2745_v53 = vor.u32 %v2292_v30, %v1576_v31 }
  0x18   :  { %1122 = vmatpush.bf16.msra.mxu0 %v1671_v4  ;;  %v2423_v33 = vld [vmem:[%s3696_s1 + $0x374] sm:$0xf0]  ;;  %v1582_v35 = vld [vmem:[%s3697_s0 + $0x8] sm:$0xf]  ;;  %v2030_v36 = vld [vmem:[%s3696_s1 + $0x2f0] sm:$0xf]  ;;  %v2734_v48 = vor.u32 %v2297_v29, %v1574_v28 }
  0x19   :  { %1141 = vmatpush.bf16.msra.mxu1 %v1735_v5  ;;  %v2407_v37 = vld [vmem:[%s3696_s1 + $0x2f4] sm:$0xf0]  ;;  %v2298_v40 = vld [vmem:[%s3697_s0 + $0x2c] sm:$0xf0]  ;;  %v2293_v41 = vld [vmem:[%s3697_s0 + $0xc] sm:$0xf]  ;;  %v2095_v44 = vor.u32 %v2423_v33, %v2094_v32 }
  0x1a   :  { %1160 = vmatpush.bf16.msra.mxu2 %v1799_v6  ;;  %v1584_v42 = vld [vmem:[%s3697_s0 + $0x30] sm:$0xf0]  ;;  %v1966_v45 = vld [vmem:[%s3696_s1 + $0x270] sm:$0xf]  ;;  %v2391_v46 = vld [vmem:[%s3696_s1 + $0x274] sm:$0xf0]  ;;  %v2031_v49 = vor.u32 %v2407_v37, %v2030_v36  ;;  %v2747_v54 = vor.u32 %v2298_v40, %v1582_v35 }
  0x1b   :  { %1179 = vmatpush.bf16.msra.mxu3 %v1863_v10  ;;  %v2158_v47 = vld [vmem:[%s3696_s1 + $0x3f0] sm:$0xf]  ;;  %v2439_v50 = vld [vmem:[%s3696_s1 + $0x3f4] sm:$0xf0]  ;;  %v2086_v51 = vld [vmem:[%s3696_s1 + $0x360] sm:$0xf]  ;;  %v2755_v57 = vor.u32 %v2293_v41, %v1584_v42  ;;  %v1967_v58 = vor.u32 %v2391_v46, %v1966_v45 }
  0x1c   :  { %1123 = vmatpush.bf16.msra.mxu0 %v1663_v17  ;;  %v2421_v52 = vld [vmem:[%s3696_s1 + $0x364] sm:$0xf0]  ;;  %v2022_v55 = vld [vmem:[%s3696_s1 + $0x2e0] sm:$0xf]  ;;  %v2159_v59 = vor.u32 %v2439_v50, %v2158_v47  ;;  %v2078_v2 = vld [vmem:[%s3696_s1 + $0x350] sm:$0xf] }
  0x1d   :  { %1142 = vmatpush.bf16.msra.mxu1 %v1727_v21  ;;  %v2405_v56 = vld [vmem:[%s3696_s1 + $0x2e4] sm:$0xf0]  ;;  %v2087_v60 = vor.u32 %v2421_v52, %v2086_v51  ;;  %v1958_v61 = vld [vmem:[%s3696_s1 + $0x260] sm:$0xf]  ;;  %v2419_v3 = vld [vmem:[%s3696_s1 + $0x354] sm:$0xf0] }
  0x1e   :  { %1161 = vmatpush.bf16.msra.mxu2 %v1791_v22  ;;  %v2389_v62 = vld [vmem:[%s3696_s1 + $0x264] sm:$0xf0]  ;;  %v2150_v63 = vld [vmem:[%s3696_s1 + $0x3e0] sm:$0xf]  ;;  %v2023_v0 = vor.u32 %v2405_v56, %v2022_v55  ;;  %v2014_v4 = vld [vmem:[%s3696_s1 + $0x2d0] sm:$0xf]  ;;  %v2079_v8 = vor.u32 %v2419_v3, %v2078_v2 }
  0x1f   :  { %1180 = vmatpush.bf16.msra.mxu3 %v1855_v26  ;;  %v2437_v1 = vld [vmem:[%s3696_s1 + $0x3e4] sm:$0xf0]  ;;  %v2403_v5 = vld [vmem:[%s3696_s1 + $0x2d4] sm:$0xf0]  ;;  %v1959_v6 = vor.u32 %v2389_v62, %v1958_v61  ;;  %v1950_v9 = vld [vmem:[%s3696_s1 + $0x250] sm:$0xf] }
  0x20   :  { %1124 = vmatpush.bf16.msra.mxu0 %v1655_v34  ;;  %v2151_v7 = vor.u32 %v2437_v1, %v2150_v63  ;;  %v2387_v10 = vld [vmem:[%s3696_s1 + $0x254] sm:$0xf0]  ;;  %v2142_v11 = vld [vmem:[%s3696_s1 + $0x3d0] sm:$0xf]  ;;  %v2015_v12 = vor.u32 %v2403_v5, %v2014_v4  ;;  %v2070_v14 = vld [vmem:[%s3696_s1 + $0x340] sm:$0xf] }
  0x21   :  { %1143 = vmatpush.bf16.msra.mxu1 %v1719_v38  ;;  %v2435_v13 = vld [vmem:[%s3696_s1 + $0x3d4] sm:$0xf0]  ;;  %v2417_v15 = vld [vmem:[%s3696_s1 + $0x344] sm:$0xf0]  ;;  %v2006_v16 = vld [vmem:[%s3696_s1 + $0x2c0] sm:$0xf]  ;;  %v1951_v18 = vor.u32 %v2387_v10, %v1950_v9 }
  0x22   :  { %1162 = vmatpush.bf16.msra.mxu2 %v1783_v39  ;;  %v2401_v17 = vld [vmem:[%s3696_s1 + $0x2c4] sm:$0xf0]  ;;  %v1942_v19 = vld [vmem:[%s3696_s1 + $0x240] sm:$0xf]  ;;  %v2143_v22 = vor.u32 %v2435_v13, %v2142_v11  ;;  %v2071_v23 = vor.u32 %v2417_v15, %v2070_v14  ;;  %v1614_v25 = vld [vmem:[%s3697_s0 + $0x50] sm:$0xf] }
  0x23   :  { %1181 = vmatpush.bf16.msra.mxu3 %v1847_v43  ;;  %1125 = vmatmul.bf16.vlgmr.msra.gmra.mxu0 %v2734_v48  ;;  %v2385_v20 = vld [vmem:[%s3696_s1 + $0x244] sm:$0xf0]  ;;  %v2134_v21 = vld [vmem:[%s3696_s1 + $0x3c0] sm:$0xf]  ;;  %v2307_v26 = vld [vmem:[%s3697_s0 + $0x74] sm:$0xf0]  ;;  %v2007_v27 = vor.u32 %v2401_v17, %v2006_v16 }
  0x24   :  { %1144 = vmatmul.bf16.vlgmr.msra.gmra.mxu1 %v2745_v53  ;;  %1193 = vmatpush.bf16.msrb.mxu0 %v1967_v58  ;;  %v2433_v24 = vld [vmem:[%s3696_s1 + $0x3c4] sm:$0xf0]  ;;  %v2302_v28 = vld [vmem:[%s3697_s0 + $0x54] sm:$0xf]  ;;  %v1616_v29 = vld [vmem:[%s3697_s0 + $0x78] sm:$0xf0]  ;;  %v1943_v35 = vor.u32 %v2385_v20, %v1942_v19 }
  0x25   :  { %1212 = vmatpush.bf16.msrb.mxu1 %v2031_v49  ;;  %1163 = vmatmul.bf16.vlgmr.msra.gmra.mxu2 %v2747_v54  ;;  %v2062_v30 = vld [vmem:[%s3696_s1 + $0x330] sm:$0xf]  ;;  %v2415_v31 = vld [vmem:[%s3696_s1 + $0x334] sm:$0xf0]  ;;  %v2308_v36 = vld [vmem:[%s3697_s0 + $0x7c] sm:$0xf0]  ;;  %v2135_v39 = vor.u32 %v2433_v24, %v2134_v21  ;;  %v2877_v50 = vor.u32 %v2302_v28, %v1616_v29 }
  0x26   :  { %1231 = vmatpush.bf16.msrb.mxu2 %v2095_v44  ;;  %1182 = vmatmul.bf16.vlgmr.msra.gmra.mxu3 %v2755_v57  ;;  %v1622_v32 = vld [vmem:[%s3697_s0 + $0x58] sm:$0xf]  ;;  %v1998_v33 = vld [vmem:[%s3696_s1 + $0x2b0] sm:$0xf]  ;;  %v2303_v37 = vld [vmem:[%s3697_s0 + $0x5c] sm:$0xf]  ;;  %v2063_v40 = vor.u32 %v2415_v31, %v2062_v30  ;;  %v2866_v44 = vor.u32 %v2307_v26, %v1614_v25 }
  0x27   :  { %1250 = vmatpush.bf16.msrb.mxu3 %v2159_v59  ;;  %v2399_v34 = vld [vmem:[%s3696_s1 + $0x2b4] sm:$0xf0]  ;;  %v1624_v38 = vld [vmem:[%s3697_s0 + $0x80] sm:$0xf0]  ;;  %v1934_v41 = vld [vmem:[%s3696_s1 + $0x230] sm:$0xf]  ;;  %v2879_v51 = vor.u32 %v2308_v36, %v1622_v32 }
  0x28   :  { %1194 = vmatpush.bf16.msrb.mxu0 %v1959_v6  ;;  %v2383_v42 = vld [vmem:[%s3696_s1 + $0x234] sm:$0xf0]  ;;  %v2126_v43 = vld [vmem:[%s3696_s1 + $0x3b0] sm:$0xf]  ;;  %v1999_v45 = vor.u32 %v2399_v34, %v1998_v33  ;;  %v2054_v47 = vld [vmem:[%s3696_s1 + $0x320] sm:$0xf]  ;;  %v2887_v56 = vor.u32 %v2303_v37, %v1624_v38 }
  0x29   :  { %1213 = vmatpush.bf16.msrb.mxu1 %v2023_v0  ;;  %v2431_v46 = vld [vmem:[%s3696_s1 + $0x3b4] sm:$0xf0]  ;;  %v2413_v49 = vld [vmem:[%s3696_s1 + $0x324] sm:$0xf0]  ;;  %v1990_v52 = vld [vmem:[%s3696_s1 + $0x2a0] sm:$0xf]  ;;  %v1935_v58 = vor.u32 %v2383_v42, %v1934_v41 }
  0x2a   :  { %1232 = vmatpush.bf16.msrb.mxu2 %v2087_v60  ;;  %v2397_v55 = vld [vmem:[%s3696_s1 + $0x2a4] sm:$0xf0]  ;;  %v2127_v59 = vor.u32 %v2431_v46, %v2126_v43  ;;  %v2055_v60 = vor.u32 %v2413_v49, %v2054_v47  ;;  %v1926_v61 = vld [vmem:[%s3696_s1 + $0x220] sm:$0xf]  ;;  %v2046_v2 = vld [vmem:[%s3696_s1 + $0x310] sm:$0xf] }
  0x2b   :  { %1251 = vmatpush.bf16.msrb.mxu3 %v2151_v7  ;;  %v2381_v62 = vld [vmem:[%s3696_s1 + $0x224] sm:$0xf0]  ;;  %v2118_v63 = vld [vmem:[%s3696_s1 + $0x3a0] sm:$0xf]  ;;  %v1991_v0 = vor.u32 %v2397_v55, %v1990_v52  ;;  %v2411_v3 = vld [vmem:[%s3696_s1 + $0x314] sm:$0xf0] }
  0x2c   :  { %1195 = vmatpush.bf16.msrb.mxu0 %v1951_v18  ;;  %v2429_v1 = vld [vmem:[%s3696_s1 + $0x3a4] sm:$0xf0]  ;;  %v1982_v4 = vld [vmem:[%s3696_s1 + $0x290] sm:$0xf]  ;;  %v2395_v5 = vld [vmem:[%s3696_s1 + $0x294] sm:$0xf0]  ;;  %v1927_v6 = vor.u32 %v2381_v62, %v1926_v61  ;;  %v2047_v9 = vor.u32 %v2411_v3, %v2046_v2 }
  0x2d   :  { %1214 = vmatpush.bf16.msrb.mxu1 %v2015_v12  ;;  %v1918_v7 = vld [vmem:[%s3696_s1 + $0x210] sm:$0xf]  ;;  %v2379_v10 = vld [vmem:[%s3696_s1 + $0x214] sm:$0xf0]  ;;  %v1983_v13 = vor.u32 %v2395_v5, %v1982_v4  ;;  %v2038_v14 = vld [vmem:[%s3696_s1 + $0x300] sm:$0xf] }
  0x2e   :  { %1233 = vmatpush.bf16.msrb.mxu2 %v2079_v8  ;;  %v2119_v8 = vor.u32 %v2429_v1, %v2118_v63  ;;  %v2110_v11 = vld [vmem:[%s3696_s1 + $0x390] sm:$0xf]  ;;  %v2427_v12 = vld [vmem:[%s3696_s1 + $0x394] sm:$0xf0]  ;;  %v2409_v15 = vld [vmem:[%s3696_s1 + $0x304] sm:$0xf0]  ;;  %v1919_v20 = vor.u32 %v2379_v10, %v1918_v7 }
  0x2f   :  { %1252 = vmatpush.bf16.msrb.mxu3 %v2143_v22  ;;  %v1974_v16 = vld [vmem:[%s3696_s1 + $0x280] sm:$0xf]  ;;  %v2393_v17 = vld [vmem:[%s3696_s1 + $0x284] sm:$0xf0]  ;;  %v2326_v18 = vld [vmem:[%s3696_s1 + $0x74] sm:$0xf]  ;;  %v2111_v24 = vor.u32 %v2427_v12, %v2110_v11  ;;  %v2039_v25 = vor.u32 %v2409_v15, %v2038_v14 }
  0x30   :  { %1196 = vmatpush.bf16.msrb.mxu0 %v1943_v35  ;;  %v1712_v19 = vld [vmem:[%s3696_s1 + $0x78] sm:$0xf0]  ;;  %v1910_v21 = vld [vmem:[%s3696_s1 + $0x200] sm:$0xf]  ;;  %v2286_v22 = vld [vmem:[%s3696_s1 + $0x4f0] sm:$0xf]  ;;  %v1975_v29 = vor.u32 %v2393_v17, %v1974_v16 }
  0x31   :  { %1215 = vmatpush.bf16.msrb.mxu1 %v2007_v27  ;;  %v2377_v26 = vld [vmem:[%s3696_s1 + $0x204] sm:$0xf0]  ;;  %v2102_v27 = vld [vmem:[%s3696_s1 + $0x380] sm:$0xf]  ;;  %v1590_v30 = vld [vmem:[%s3697_s0 + $0x10] sm:$0xf]  ;;  %v1715_v34 = vor.u32 %v2326_v18, %v1712_v19 }
  0x32   :  { %1234 = vmatpush.bf16.msrb.mxu2 %v2071_v23  ;;  %v2471_v23 = vld [vmem:[%s3696_s1 + $0x4f4] sm:$0xf0]  ;;  %v2425_v28 = vld [vmem:[%s3696_s1 + $0x384] sm:$0xf0]  ;;  %v2294_v32 = vld [vmem:[%s3697_s0 + $0x14] sm:$0xf]  ;;  %v1911_v42 = vor.u32 %v2377_v26, %v1910_v21 }
  0x33   :  { %1253 = vmatpush.bf16.msrb.mxu3 %v2135_v39  ;;  %1130 = vmatmul.bf16.gmra.mxu0 %v2866_v44  ;;  %v2299_v31 = vld [vmem:[%s3697_s0 + $0x34] sm:$0xf0]  ;;  %v1592_v33 = vld [vmem:[%s3697_s0 + $0x38] sm:$0xf0]  ;;  %v2222_v35 = vld [vmem:[%s3696_s1 + $0x470] sm:$0xf]  ;;  %v2287_v38 = vor.u32 %v2471_v23, %v2286_v22  ;;  %v2103_v47 = vor.u32 %v2425_v28, %v2102_v27 }
  0x34   :  { %1149 = vmatmul.bf16.gmra.mxu1 %v2877_v50  ;;  %1197 = vmatpush.bf16.msrb.mxu0 %v1935_v58  ;;  %v2455_v36 = vld [vmem:[%s3696_s1 + $0x474] sm:$0xf0]  ;;  %v2342_v37 = vld [vmem:[%s3696_s1 + $0xf4] sm:$0xf]  ;;  %v1776_v39 = vld [vmem:[%s3696_s1 + $0xf8] sm:$0xf0]  ;;  %v3024_v1 = vor.u32 %v2294_v32, %v1592_v33 }
  0x35   :  { %1216 = vmatpush.bf16.msrb.mxu1 %v1999_v45  ;;  %1168 = vmatmul.bf16.gmra.mxu2 %v2879_v51  ;;  %v1704_v41 = vld [vmem:[%s3696_s1 + $0x68] sm:$0xf0]  ;;  %v1598_v43 = vld [vmem:[%s3697_s0 + $0x18] sm:$0xf]  ;;  %v2300_v45 = vld [vmem:[%s3697_s0 + $0x3c] sm:$0xf0]  ;;  %v2223_v52 = vor.u32 %v2455_v36, %v2222_v35 }
  0x36   :  { %1235 = vmatpush.bf16.msrb.mxu2 %v2063_v40  ;;  %1187 = vmatmul.bf16.gmra.mxu3 %v2887_v56  ;;  %v2324_v40 = vld [vmem:[%s3696_s1 + $0x64] sm:$0xf]  ;;  %v2295_v46 = vld [vmem:[%s3697_s0 + $0x1c] sm:$0xf]  ;;  %v2214_v55 = vld [vmem:[%s3696_s1 + $0x460] sm:$0xf]  ;;  %v3035_v5 = vor.u32 %v2300_v45, %v1598_v43 }
  0x37   :  { %1254 = vmatpush.bf16.msrb.mxu3 %v2127_v59  ;;  %v1600_v49 = vld [vmem:[%s3697_s0 + $0x40] sm:$0xf0]  ;;  %v2453_v58 = vld [vmem:[%s3696_s1 + $0x464] sm:$0xf0]  ;;  %v1779_v59 = vor.u32 %v2342_v37, %v1776_v39  ;;  %v2278_v61 = vld [vmem:[%s3696_s1 + $0x4e0] sm:$0xf] }
  0x38   :  { %1198 = vmatpush.bf16.msrb.mxu0 %v1927_v6  ;;  %v2469_v62 = vld [vmem:[%s3696_s1 + $0x4e4] sm:$0xf0]  ;;  %v2340_v63 = vld [vmem:[%s3696_s1 + $0xe4] sm:$0xf]  ;;  %v1768_v2 = vld [vmem:[%s3696_s1 + $0xe8] sm:$0xf0]  ;;  %v3037_v6 = vor.u32 %v2295_v46, %v1600_v49  ;;  %v2215_v7 = vor.u32 %v2453_v58, %v2214_v55 }
  0x39   :  { %1217 = vmatpush.bf16.msrb.mxu1 %v1991_v0  ;;  %v3022_v0 = vor.u32 %v2299_v31, %v1590_v30  ;;  %v2322_v3 = vld [vmem:[%s3696_s1 + $0x54] sm:$0xf]  ;;  %v1696_v4 = vld [vmem:[%s3696_s1 + $0x58] sm:$0xf0]  ;;  %v2451_v10 = vld [vmem:[%s3696_s1 + $0x454] sm:$0xf0]  ;;  %v1771_v11 = vor.u32 %v2340_v63, %v1768_v2 }
  0x3a   :  { %1236 = vmatpush.bf16.msrb.mxu2 %v2055_v60  ;;  %v1707_v60 = vor.u32 %v2324_v40, %v1704_v41  ;;  %v1699_v12 = vor.u32 %v2322_v3, %v1696_v4  ;;  %v2467_v14 = vld [vmem:[%s3696_s1 + $0x4d4] sm:$0xf0]  ;;  %v2338_v15 = vld [vmem:[%s3696_s1 + $0xd4] sm:$0xf]  ;;  %v1760_v16 = vld [vmem:[%s3696_s1 + $0xd8] sm:$0xf0] }
  0x3b   :  { %1255 = vmatpush.bf16.msrb.mxu3 %v2119_v8  ;;  %v2279_v8 = vor.u32 %v2469_v62, %v2278_v61  ;;  %v2320_v17 = vld [vmem:[%s3696_s1 + $0x44] sm:$0xf]  ;;  %v1688_v18 = vld [vmem:[%s3696_s1 + $0x48] sm:$0xf0]  ;;  %v2198_v21 = vld [vmem:[%s3696_s1 + $0x440] sm:$0xf]  ;;  %v1763_v23 = vor.u32 %v2338_v15, %v1760_v16 }
  0x3c   :  { %1199 = vmatpush.bf16.msrb.mxu0 %v1919_v20  ;;  %v2449_v22 = vld [vmem:[%s3696_s1 + $0x444] sm:$0xf0]  ;;  %v2336_v27 = vld [vmem:[%s3696_s1 + $0xc4] sm:$0xf]  ;;  %v1752_v28 = vld [vmem:[%s3696_s1 + $0xc8] sm:$0xf0] }
  0x3d   :  { %1218 = vmatpush.bf16.msrb.mxu1 %v1983_v13  ;;  %v2270_v13 = vld [vmem:[%s3696_s1 + $0x4d0] sm:$0xf]  ;;  %v2465_v26 = vld [vmem:[%s3696_s1 + $0x4c4] sm:$0xf0]  ;;  %v1680_v30 = vld [vmem:[%s3696_s1 + $0x38] sm:$0xf0]  ;;  %v2199_v31 = vor.u32 %v2449_v22, %v2198_v21  ;;  %v1755_v35 = vor.u32 %v2336_v27, %v1752_v28 }
  0x3e   :  { %1237 = vmatpush.bf16.msrb.mxu2 %v2047_v9  ;;  %v2206_v9 = vld [vmem:[%s3696_s1 + $0x450] sm:$0xf]  ;;  %v2271_v20 = vor.u32 %v2467_v14, %v2270_v13  ;;  %v1630_v36 = vld [vmem:[%s3697_s0 + $0x60] sm:$0xf]  ;;  %v2309_v37 = vld [vmem:[%s3697_s0 + $0x84] sm:$0xf0] }
  0x3f   :  { %1256 = vmatpush.bf16.msrb.mxu3 %v2111_v24  ;;  %v2207_v19 = vor.u32 %v2451_v10, %v2206_v9  ;;  %v1691_v24 = vor.u32 %v2320_v17, %v1688_v18  ;;  %v2190_v33 = vld [vmem:[%s3696_s1 + $0x430] sm:$0xf]  ;;  %v1632_v39 = vld [vmem:[%s3697_s0 + $0x88] sm:$0xf0]  ;;  %v2334_v43 = vld [vmem:[%s3696_s1 + $0xb4] sm:$0xf] }
  0x40   :  { %1200 = vmatpush.bf16.msrb.mxu0 %v1911_v42  ;;  %v2254_v41 = vld [vmem:[%s3696_s1 + $0x4b0] sm:$0xf]  ;;  %v2463_v42 = vld [vmem:[%s3696_s1 + $0x4b4] sm:$0xf0]  ;;  %v1744_v45 = vld [vmem:[%s3696_s1 + $0xb8] sm:$0xf0] }
  0x41   :  { %1219 = vmatpush.bf16.msrb.mxu1 %v1975_v29  ;;  %v2318_v29 = vld [vmem:[%s3696_s1 + $0x34] sm:$0xf]  ;;  %v2316_v46 = vld [vmem:[%s3696_s1 + $0x24] sm:$0xf]  ;;  %v1638_v49 = vld [vmem:[%s3697_s0 + $0x68] sm:$0xf]  ;;  %v1747_v63 = vor.u32 %v2334_v43, %v1744_v45 }
  0x42   :  { %1238 = vmatpush.bf16.msrb.mxu2 %v2039_v25  ;;  %v2262_v25 = vld [vmem:[%s3696_s1 + $0x4c0] sm:$0xf]  ;;  %v1683_v40 = vor.u32 %v2318_v29, %v1680_v30  ;;  %v2305_v55 = vld [vmem:[%s3697_s0 + $0x6c] sm:$0xf]  ;;  %v1640_v58 = vld [vmem:[%s3697_s0 + $0x90] sm:$0xf0] }
  0x43   :  { %1257 = vmatpush.bf16.msrb.mxu3 %v2103_v47  ;;  %1201 = vmatmul.bf16.vlgmr.msrb.gmra.mxu0 %v3022_v0  ;;  %v2263_v32 = vor.u32 %v2465_v26, %v2262_v25  ;;  %v1672_v47 = vld [vmem:[%s3696_s1 + $0x28] sm:$0xf0]  ;;  %v2182_v61 = vld [vmem:[%s3696_s1 + $0x420] sm:$0xf]  ;;  %v2445_v62 = vld [vmem:[%s3696_s1 + $0x424] sm:$0xf0]  ;;  %v3169_v14 = vor.u32 %v2305_v55, %v1640_v58 }
  0x44   :  { %1269 = vmatpush.bf16.msra.mxu0 %v2223_v52  ;;  %1220 = vmatmul.bf16.vlgmr.msrb.gmra.mxu1 %v3024_v1  ;;  %v2310_v52 = vld [vmem:[%s3697_s0 + $0x8c] sm:$0xf0]  ;;  %v1675_v2 = vor.u32 %v2316_v46, %v1672_v47  ;;  %v2246_v3 = vld [vmem:[%s3696_s1 + $0x4a0] sm:$0xf]  ;;  %v2461_v4 = vld [vmem:[%s3696_s1 + $0x4a4] sm:$0xf0]  ;;  %v2183_v15 = vor.u32 %v2445_v62, %v2182_v61 }
  0x45   :  { %1288 = vmatpush.bf16.msra.mxu1 %v2287_v38  ;;  %1239 = vmatmul.bf16.vlgmr.msrb.gmra.mxu2 %v3035_v5  ;;  %v2304_v38 = vld [vmem:[%s3697_s0 + $0x64] sm:$0xf]  ;;  %v1736_v10 = vld [vmem:[%s3696_s1 + $0xa8] sm:$0xf0]  ;;  %v3167_v13 = vor.u32 %v2310_v52, %v1638_v49  ;;  %v2247_v16 = vor.u32 %v2461_v4, %v2246_v3  ;;  %v2174_v17 = vld [vmem:[%s3696_s1 + $0x410] sm:$0xf] }
  0x46   :  { %1307 = vmatpush.bf16.msra.mxu2 %v1715_v34  ;;  %1258 = vmatmul.bf16.vlgmr.msrb.gmra.mxu3 %v3037_v6  ;;  %v2447_v34 = vld [vmem:[%s3696_s1 + $0x434] sm:$0xf0]  ;;  %v3156_v9 = vor.u32 %v2304_v38, %v1632_v39  ;;  %v2238_v21 = vld [vmem:[%s3696_s1 + $0x490] sm:$0xf]  ;;  %v2312_v25 = vld [vmem:[%s3696_s1 + $0x4] sm:$0xf] }
  0x47   :  { %1326 = vmatpush.bf16.msra.mxu3 %v1779_v59  ;;  %v2191_v59 = vor.u32 %v2447_v34, %v2190_v33  ;;  %v2443_v18 = vld [vmem:[%s3696_s1 + $0x414] sm:$0xf0]  ;;  %v1656_v26 = vld [vmem:[%s3696_s1 + $0x8] sm:$0xf0]  ;;  %v2390_v27 = vld [vmem:[%s3696_s1 + $0x274] sm:$0xf] }
  0x48   :  { %1270 = vmatpush.bf16.msra.mxu0 %v2215_v7  ;;  %v2332_v7 = vld [vmem:[%s3696_s1 + $0xa4] sm:$0xf]  ;;  %v2459_v22 = vld [vmem:[%s3696_s1 + $0x494] sm:$0xf0]  ;;  %v1968_v28 = vld [vmem:[%s3696_s1 + $0x278] sm:$0xf0]  ;;  %v2175_v29 = vor.u32 %v2443_v18, %v2174_v17 }
  0x49   :  { %1289 = vmatpush.bf16.msra.mxu1 %v2279_v8  ;;  %v3154_v8 = vor.u32 %v2309_v37, %v1630_v36  ;;  %v2239_v30 = vor.u32 %v2459_v22, %v2238_v21  ;;  %v2230_v33 = vld [vmem:[%s3696_s1 + $0x480] sm:$0xf]  ;;  %v2457_v36 = vld [vmem:[%s3696_s1 + $0x484] sm:$0xf0]  ;;  %v2328_v37 = vld [vmem:[%s3696_s1 + $0x84] sm:$0xf]  ;;  %v1971_v39 = vor.u32 %v2390_v27, %v1968_v28 }
  0x4a   :  { %1308 = vmatpush.bf16.msra.mxu2 %v1707_v60  ;;  %v2255_v60 = vor.u32 %v2463_v42, %v2254_v41  ;;  %v1720_v38 = vld [vmem:[%s3696_s1 + $0x88] sm:$0xf0]  ;;  %v1840_v41 = vld [vmem:[%s3696_s1 + $0x178] sm:$0xf0]  ;;  %v2374_v42 = vld [vmem:[%s3696_s1 + $0x1f4] sm:$0xf]  ;;  %v2231_v49 = vor.u32 %v2457_v36, %v2230_v33 }
  0x4b   :  { %1327 = vmatpush.bf16.msra.mxu3 %v1771_v11  ;;  %v2314_v11 = vld [vmem:[%s3696_s1 + $0x14] sm:$0xf]  ;;  %v1904_v43 = vld [vmem:[%s3696_s1 + $0x1f8] sm:$0xf0]  ;;  %v2388_v52 = vld [vmem:[%s3696_s1 + $0x264] sm:$0xf]  ;;  %v1723_v58 = vor.u32 %v2328_v37, %v1720_v38 }
  0x4c   :  { %1271 = vmatpush.bf16.msra.mxu0 %v2207_v19  ;;  %v1739_v19 = vor.u32 %v2332_v7, %v1736_v10  ;;  %v2406_v45 = vld [vmem:[%s3696_s1 + $0x2f4] sm:$0xf]  ;;  %v2032_v46 = vld [vmem:[%s3696_s1 + $0x2f8] sm:$0xf0]  ;;  %v1960_v55 = vld [vmem:[%s3696_s1 + $0x268] sm:$0xf0]  ;;  %v1907_v61 = vor.u32 %v2374_v42, %v1904_v43 }
  0x4d   :  { %1290 = vmatpush.bf16.msra.mxu1 %v2271_v20  ;;  %v2035_v62 = vor.u32 %v2406_v45, %v2032_v46  ;;  %v2301_v3 = vld [vmem:[%s3697_s0 + $0x44] sm:$0xf0]  ;;  %v2296_v4 = vld [vmem:[%s3697_s0 + $0x24] sm:$0xf]  ;;  %v1608_v7 = vld [vmem:[%s3697_s0 + $0x48] sm:$0xf0]  ;;  %v1963_v10 = vor.u32 %v2388_v52, %v1960_v55 }
  0x4e   :  { %1309 = vmatpush.bf16.msra.mxu2 %v1699_v12  ;;  %v1664_v12 = vld [vmem:[%s3696_s1 + $0x18] sm:$0xf0]  ;;  %v2024_v17 = vld [vmem:[%s3696_s1 + $0x2e8] sm:$0xf0]  ;;  %v2386_v18 = vld [vmem:[%s3696_s1 + $0x254] sm:$0xf] }
  0x4f   :  { %1328 = vmatpush.bf16.msra.mxu3 %v1763_v23  ;;  %v1667_v20 = vor.u32 %v2314_v11, %v1664_v12  ;;  %v2330_v23 = vld [vmem:[%s3696_s1 + $0x94] sm:$0xf]  ;;  %v2372_v11 = vld [vmem:[%s3696_s1 + $0x1e4] sm:$0xf]  ;;  %v1896_v12 = vld [vmem:[%s3696_s1 + $0x1e8] sm:$0xf0] }
  0x50   :  { %1272 = vmatpush.bf16.msra.mxu0 %v2199_v31  ;;  %v2166_v31 = vld [vmem:[%s3696_s1 + $0x400] sm:$0xf]  ;;  %v1952_v21 = vld [vmem:[%s3696_s1 + $0x258] sm:$0xf0]  ;;  %v2354_v22 = vld [vmem:[%s3696_s1 + $0x154] sm:$0xf] }
  0x51   :  { %1291 = vmatpush.bf16.msra.mxu1 %v2263_v32  ;;  %v2441_v32 = vld [vmem:[%s3696_s1 + $0x404] sm:$0xf0]  ;;  %v1888_v27 = vld [vmem:[%s3696_s1 + $0x1d8] sm:$0xf0]  ;;  %v1955_v28 = vor.u32 %v2386_v18, %v1952_v21  ;;  %v1944_v33 = vld [vmem:[%s3696_s1 + $0x248] sm:$0xf0] }
  0x52   :  { %1310 = vmatpush.bf16.msra.mxu2 %v1691_v24  ;;  %v1728_v24 = vld [vmem:[%s3696_s1 + $0x98] sm:$0xf0]  ;;  %v2167_v47 = vor.u32 %v2441_v32, %v2166_v31  ;;  %v2384_v32 = vld [vmem:[%s3696_s1 + $0x244] sm:$0xf]  ;;  %v2382_v42 = vld [vmem:[%s3696_s1 + $0x234] sm:$0xf] }
  0x53   :  { %1329 = vmatpush.bf16.msra.mxu3 %v1755_v35  ;;  %1206 = vmatmul.bf16.gmra.mxu0 %v3154_v8  ;;  %v1731_v34 = vor.u32 %v2330_v23, %v1728_v24  ;;  %v1659_v35 = vor.u32 %v2312_v25, %v1656_v26  ;;  %v1824_v23 = vld [vmem:[%s3696_s1 + $0x158] sm:$0xf0]  ;;  %v1899_v24 = vor.u32 %v2372_v11, %v1896_v12  ;;  %v2370_v26 = vld [vmem:[%s3696_s1 + $0x1d4] sm:$0xf]  ;;  %v2368_v38 = vld [vmem:[%s3696_s1 + $0x1c4] sm:$0xf] }
  0x54   :  { %1273 = vmatpush.bf16.msra.mxu0 %v2191_v59  ;;  %1225 = vmatmul.bf16.gmra.mxu1 %v3156_v9  ;;  %v2016_v31 = vld [vmem:[%s3696_s1 + $0x2d8] sm:$0xf0]  ;;  %v1891_v36 = vor.u32 %v2370_v26, %v1888_v27  ;;  %v2350_v45 = vld [vmem:[%s3696_s1 + $0x134] sm:$0xf] }
  0x55   :  { %1292 = vmatpush.bf16.msra.mxu1 %v2255_v60  ;;  %1244 = vmatmul.bf16.gmra.mxu2 %v3167_v13  ;;  %v1606_v60 = vld [vmem:[%s3697_s0 + $0x20] sm:$0xf]  ;;  %v1936_v43 = vld [vmem:[%s3696_s1 + $0x238] sm:$0xf0]  ;;  %v2366_v52 = vld [vmem:[%s3696_s1 + $0x1b4] sm:$0xf] }
  0x56   :  { %1311 = vmatpush.bf16.msra.mxu2 %v1683_v40  ;;  %1263 = vmatmul.bf16.gmra.mxu3 %v3169_v14  ;;  %v2358_v40 = vld [vmem:[%s3696_s1 + $0x174] sm:$0xf]  ;;  %v1808_v46 = vld [vmem:[%s3696_s1 + $0x138] sm:$0xf0] }
  0x57   :  { %1330 = vmatpush.bf16.msra.mxu3 %v1747_v63  ;;  %v1843_v59 = vor.u32 %v2358_v40, %v1840_v41  ;;  %v2356_v63 = vld [vmem:[%s3696_s1 + $0x164] sm:$0xf]  ;;  %v1947_v40 = vor.u32 %v2384_v32, %v1944_v33  ;;  %v1872_v55 = vld [vmem:[%s3696_s1 + $0x1b8] sm:$0xf0]  ;;  %v2362_v32 = vld [vmem:[%s3696_s1 + $0x194] sm:$0xf] }
  0x58   :  { %1274 = vmatpush.bf16.msra.mxu0 %v2183_v15  ;;  %v1648_v11 = vld [vmem:[%s3697_s0 + $0x98] sm:$0xf0]  ;;  %v1875_v12 = vor.u32 %v2366_v52, %v1872_v55  ;;  %v1976_v55 = vld [vmem:[%s3696_s1 + $0x288] sm:$0xf0] }
  0x59   :  { %1293 = vmatpush.bf16.msra.mxu1 %v2247_v16  ;;  %v2404_v16 = vld [vmem:[%s3696_s1 + $0x2e4] sm:$0xf]  ;;  %v1920_v27 = vld [vmem:[%s3696_s1 + $0x218] sm:$0xf0] }
  0x5a   :  { %1312 = vmatpush.bf16.msra.mxu2 %v1675_v2  ;;  %v1832_v2 = vld [vmem:[%s3696_s1 + $0x168] sm:$0xf0]  ;;  %v2027_v25 = vor.u32 %v2404_v16, %v2024_v17  ;;  %v2364_v16 = vld [vmem:[%s3696_s1 + $0x1a4] sm:$0xf]  ;;  %v1856_v33 = vld [vmem:[%s3696_s1 + $0x198] sm:$0xf0] }
  0x5b   :  { %1331 = vmatpush.bf16.msra.mxu3 %v1739_v19  ;;  %v1835_v15 = vor.u32 %v2356_v63, %v1832_v2  ;;  %v3280_v19 = vor.u32 %v2301_v3, %v1606_v60  ;;  %v1811_v60 = vor.u32 %v2350_v45, %v1808_v46  ;;  %v2380_v63 = vld [vmem:[%s3696_s1 + $0x224] sm:$0xf]  ;;  %v1928_v2 = vld [vmem:[%s3696_s1 + $0x228] sm:$0xf0]  ;;  %v1859_v45 = vor.u32 %v2362_v32, %v1856_v33  ;;  %v2434_v32 = vld [vmem:[%s3696_s1 + $0x3d4] sm:$0xf] }
  0x5c   :  { %1275 = vmatpush.bf16.msra.mxu0 %v2175_v29  ;;  %v1827_v29 = vor.u32 %v2354_v22, %v1824_v23  ;;  %v2348_v3 = vld [vmem:[%s3696_s1 + $0x124] sm:$0xf]  ;;  %v1864_v17 = vld [vmem:[%s3696_s1 + $0x1a8] sm:$0xf0]  ;;  %v1931_v18 = vor.u32 %v2380_v63, %v1928_v2  ;;  %v2288_v63 = vld [vmem:[%s3696_s1 + $0x4f8] sm:$0xf0] }
  0x5d   :  { %1294 = vmatpush.bf16.msra.mxu1 %v2239_v30  ;;  %v2402_v30 = vld [vmem:[%s3696_s1 + $0x2d4] sm:$0xf]  ;;  %v2396_v22 = vld [vmem:[%s3696_s1 + $0x2a4] sm:$0xf]  ;;  %v1992_v23 = vld [vmem:[%s3696_s1 + $0x2a8] sm:$0xf0] }
  0x5e   :  { %1313 = vmatpush.bf16.msra.mxu2 %v1667_v20  ;;  %v3282_v20 = vor.u32 %v2296_v4, %v1608_v7  ;;  %v2019_v37 = vor.u32 %v2402_v30, %v2016_v31  ;;  %v1800_v4 = vld [vmem:[%s3696_s1 + $0x128] sm:$0xf0]  ;;  %v2311_v7 = vld [vmem:[%s3697_s0 + $0x94] sm:$0xf0]  ;;  %v1867_v30 = vor.u32 %v2364_v16, %v1864_v17  ;;  %v1995_v31 = vor.u32 %v2396_v22, %v1992_v23  ;;  %v2452_v2 = vld [vmem:[%s3696_s1 + $0x464] sm:$0xf] }
  0x5f   :  { %1332 = vmatpush.bf16.msra.mxu3 %v1731_v34  ;;  %v2352_v34 = vld [vmem:[%s3696_s1 + $0x144] sm:$0xf]  ;;  %v1803_v21 = vor.u32 %v2348_v3, %v1800_v4  ;;  %v2216_v3 = vld [vmem:[%s3696_s1 + $0x468] sm:$0xf0]  ;;  %v2144_v33 = vld [vmem:[%s3696_s1 + $0x3d8] sm:$0xf0] }
  0x60   :  { %1276 = vmatpush.bf16.msra.mxu0 %v2167_v47  ;;  %v2420_v4 = vld [vmem:[%s3696_s1 + $0x364] sm:$0xf]  ;;  %v2219_v17 = vor.u32 %v2452_v2, %v2216_v3  ;;  %v2280_v23 = vld [vmem:[%s3696_s1 + $0x4e8] sm:$0xf0] }
  0x61   :  { %1295 = vmatpush.bf16.msra.mxu1 %v2231_v49  ;;  %v2436_v16 = vld [vmem:[%s3696_s1 + $0x3e4] sm:$0xf] }
  0x62   :  { %1314 = vmatpush.bf16.msra.mxu2 %v1659_v35  ;;  %v1816_v35 = vld [vmem:[%s3696_s1 + $0x148] sm:$0xf0]  ;;  %v2468_v22 = vld [vmem:[%s3696_s1 + $0x4e4] sm:$0xf] }
  0x63   :  { %1333 = vmatpush.bf16.msra.mxu3 %v1723_v58  ;;  %1277 = vmatmul.bf16.vlgmr.msra.gmra.mxu0 %v3280_v19  ;;  %v1819_v41 = vor.u32 %v2352_v34, %v1816_v35  ;;  %v1646_v58 = vld [vmem:[%s3697_s0 + $0x70] sm:$0xf]  ;;  %v2394_v34 = vld [vmem:[%s3696_s1 + $0x294] sm:$0xf] }
  0x64   :  { %1345 = vmatpush.bf16.msrb.mxu0 %v1843_v59  ;;  %1296 = vmatmul.bf16.vlgmr.msra.gmra.mxu1 %v3282_v20  ;;  %v1939_v59 = vor.u32 %v2382_v42, %v1936_v43  ;;  %v2422_v42 = vld [vmem:[%s3696_s1 + $0x374] sm:$0xf]  ;;  %v2096_v43 = vld [vmem:[%s3696_s1 + $0x378] sm:$0xf0] }
  0x65   :  { %1364 = vmatpush.bf16.msrb.mxu1 %v1907_v61  ;;  %1315 = vmatmul.bf16.vlgmr.msra.gmra.mxu2 %v2734_v48  ;;  %v2400_v48 = vld [vmem:[%s3696_s1 + $0x2c4] sm:$0xf]  ;;  %v2398_v61 = vld [vmem:[%s3696_s1 + $0x2b4] sm:$0xf] }
  0x66   :  { %1383 = vmatpush.bf16.msrb.mxu2 %v1971_v39  ;;  %1334 = vmatmul.bf16.vlgmr.msra.gmra.mxu3 %v2745_v53  ;;  %v1880_v39 = vld [vmem:[%s3696_s1 + $0x1c8] sm:$0xf0] }
  0x67   :  { %1402 = vmatpush.bf16.msrb.mxu3 %v2035_v62  ;;  %v2008_v53 = vld [vmem:[%s3696_s1 + $0x2c8] sm:$0xf0]  ;;  %v1883_v47 = vor.u32 %v2368_v38, %v1880_v39  ;;  %v2000_v62 = vld [vmem:[%s3696_s1 + $0x2b8] sm:$0xf0]  ;;  %v2376_v38 = vld [vmem:[%s3696_s1 + $0x204] sm:$0xf] }
  0x68   :  { %1346 = vmatpush.bf16.msrb.mxu0 %v1835_v15  ;;  %v2011_v49 = vor.u32 %v2400_v48, %v2008_v53  ;;  %v2003_v15 = vor.u32 %v2398_v61, %v2000_v62  ;;  %v1912_v39 = vld [vmem:[%s3696_s1 + $0x208] sm:$0xf0]  ;;  %v2454_v48 = vld [vmem:[%s3696_s1 + $0x474] sm:$0xf]  ;;  %v2224_v53 = vld [vmem:[%s3696_s1 + $0x478] sm:$0xf0]  ;;  %v2099_v61 = vor.u32 %v2422_v42, %v2096_v43 }
  0x69   :  { %1365 = vmatpush.bf16.msrb.mxu1 %v1899_v24  ;;  %v2378_v24 = vld [vmem:[%s3696_s1 + $0x214] sm:$0xf]  ;;  %v2432_v42 = vld [vmem:[%s3696_s1 + $0x3c4] sm:$0xf]  ;;  %v2136_v43 = vld [vmem:[%s3696_s1 + $0x3c8] sm:$0xf0] }
  0x6a   :  { %1384 = vmatpush.bf16.msrb.mxu2 %v1963_v10  ;;  %v2306_v10 = vld [vmem:[%s3697_s0 + $0x74] sm:$0xf]  ;;  %v1923_v35 = vor.u32 %v2378_v24, %v1920_v27  ;;  %v2208_v27 = vld [vmem:[%s3696_s1 + $0x458] sm:$0xf0] }
  0x6b   :  { %1403 = vmatpush.bf16.msrb.mxu3 %v2027_v25  ;;  %v3396_v25 = vor.u32 %v2311_v7, %v1646_v58  ;;  %v3398_v26 = vor.u32 %v2306_v10, %v1648_v11  ;;  %v2438_v58 = vld [vmem:[%s3696_s1 + $0x3f4] sm:$0xf]  ;;  %v2088_v7 = vld [vmem:[%s3696_s1 + $0x368] sm:$0xf0] }
  0x6c   :  { %1347 = vmatpush.bf16.msrb.mxu0 %v1827_v29  ;;  %v1792_v29 = vld [vmem:[%s3696_s1 + $0x118] sm:$0xf0]  ;;  %v2470_v62 = vld [vmem:[%s3696_s1 + $0x4f4] sm:$0xf] }
  0x6d   :  { %1366 = vmatpush.bf16.msrb.mxu1 %v1891_v36  ;;  %v2450_v24 = vld [vmem:[%s3696_s1 + $0x454] sm:$0xf] }
  0x6e   :  { %1385 = vmatpush.bf16.msrb.mxu2 %v1955_v28  ;;  %v2346_v28 = vld [vmem:[%s3696_s1 + $0x114] sm:$0xf] }
  0x6f   :  { %1404 = vmatpush.bf16.msrb.mxu3 %v2019_v37  ;;  %v1795_v36 = vor.u32 %v2346_v28, %v1792_v29  ;;  %v1984_v37 = vld [vmem:[%s3696_s1 + $0x298] sm:$0xf0]  ;;  %v2283_v29 = vor.u32 %v2468_v22, %v2280_v23 }
  0x70   :  { %1348 = vmatpush.bf16.msrb.mxu0 %v1819_v41  ;;  %v1784_v41 = vld [vmem:[%s3696_s1 + $0x108] sm:$0xf0]  ;;  %v1987_v46 = vor.u32 %v2394_v34, %v1984_v37  ;;  %v2466_v34 = vld [vmem:[%s3696_s1 + $0x4d4] sm:$0xf] }
  0x71   :  { %1367 = vmatpush.bf16.msrb.mxu1 %v1883_v47  ;;  %v2392_v47 = vld [vmem:[%s3696_s1 + $0x284] sm:$0xf] }
  0x72   :  { %1386 = vmatpush.bf16.msrb.mxu2 %v1947_v40  ;;  %v2344_v40 = vld [vmem:[%s3696_s1 + $0x104] sm:$0xf]  ;;  %v1979_v11 = vor.u32 %v2392_v47, %v1976_v55  ;;  %v2139_v47 = vor.u32 %v2432_v42, %v2136_v43  ;;  %v2128_v55 = vld [vmem:[%s3696_s1 + $0x3b8] sm:$0xf0] }
  0x73   :  { %1405 = vmatpush.bf16.msrb.mxu3 %v2011_v49  ;;  %1282 = vmatmul.bf16.gmra.mxu0 %v3396_v25  ;;  %v1915_v49 = vor.u32 %v2376_v38, %v1912_v39  ;;  %v1787_v52 = vor.u32 %v2344_v40, %v1784_v41  ;;  %v2448_v38 = vld [vmem:[%s3696_s1 + $0x444] sm:$0xf]  ;;  %v2200_v39 = vld [vmem:[%s3696_s1 + $0x448] sm:$0xf0]  ;;  %v2147_v40 = vor.u32 %v2434_v32, %v2144_v33 }
  0x74   :  { %1349 = vmatpush.bf16.msrb.mxu0 %v1811_v60  ;;  %1301 = vmatmul.bf16.gmra.mxu1 %v3398_v26  ;;  %v2227_v60 = vor.u32 %v2454_v48, %v2224_v53  ;;  %v2416_v48 = vld [vmem:[%s3696_s1 + $0x344] sm:$0xf]  ;;  %v2072_v53 = vld [vmem:[%s3696_s1 + $0x348] sm:$0xf0] }
  0x75   :  { %1368 = vmatpush.bf16.msrb.mxu1 %v1875_v12  ;;  %1320 = vmatmul.bf16.gmra.mxu2 %v2866_v44  ;;  %v2360_v44 = vld [vmem:[%s3696_s1 + $0x184] sm:$0xf] }
  0x76   :  { %1387 = vmatpush.bf16.msrb.mxu2 %v1939_v59  ;;  %1339 = vmatmul.bf16.gmra.mxu3 %v2877_v50  ;;  %v1848_v50 = vld [vmem:[%s3696_s1 + $0x188] sm:$0xf0]  ;;  %v2160_v59 = vld [vmem:[%s3696_s1 + $0x3f8] sm:$0xf0] }
  0x77   :  { %1406 = vmatpush.bf16.msrb.mxu3 %v2003_v15  ;;  %v1851_v10 = vor.u32 %v2360_v44, %v1848_v50  ;;  %v2163_v12 = vor.u32 %v2438_v58, %v2160_v59  ;;  %v2291_v15 = vor.u32 %v2470_v62, %v2288_v63  ;;  %v2446_v44 = vld [vmem:[%s3696_s1 + $0x434] sm:$0xf]  ;;  %v2192_v50 = vld [vmem:[%s3696_s1 + $0x438] sm:$0xf0]  ;;  %v2444_v62 = vld [vmem:[%s3696_s1 + $0x424] sm:$0xf] }
  0x78   :  { %1350 = vmatpush.bf16.msrb.mxu0 %v1803_v21  ;;  %v2152_v21 = vld [vmem:[%s3696_s1 + $0x3e8] sm:$0xf0]  ;;  %v2462_v58 = vld [vmem:[%s3696_s1 + $0x4b4] sm:$0xf]  ;;  %v2256_v59 = vld [vmem:[%s3696_s1 + $0x4b8] sm:$0xf0] }
  0x79   :  { %1369 = vmatpush.bf16.msrb.mxu1 %v1867_v30  ;;  %v2155_v28 = vor.u32 %v2436_v16, %v2152_v21  ;;  %v2418_v30 = vld [vmem:[%s3696_s1 + $0x354] sm:$0xf]  ;;  %v2184_v63 = vld [vmem:[%s3696_s1 + $0x428] sm:$0xf0]  ;;  %v2259_v3 = vor.u32 %v2462_v58, %v2256_v59  ;;  %v2176_v21 = vld [vmem:[%s3696_s1 + $0x418] sm:$0xf0] }
  0x7a   :  { %1388 = vmatpush.bf16.msrb.mxu2 %v1931_v18  ;;  %v2091_v18 = vor.u32 %v2420_v4, %v2088_v7  ;;  %v2412_v4 = vld [vmem:[%s3696_s1 + $0x324] sm:$0xf]  ;;  %v2056_v7 = vld [vmem:[%s3696_s1 + $0x328] sm:$0xf0]  ;;  %v2187_v16 = vor.u32 %v2444_v62, %v2184_v63 }
  0x7b   :  { %1407 = vmatpush.bf16.msrb.mxu3 %v1995_v31  ;;  %v2080_v31 = vld [vmem:[%s3696_s1 + $0x358] sm:$0xf0] }
  0x7c   :  { %1351 = vmatpush.bf16.msrb.mxu0 %v1795_v36  ;;  %v2211_v36 = vor.u32 %v2450_v24, %v2208_v27  ;;  %v2083_v37 = vor.u32 %v2418_v30, %v2080_v31  ;;  %v2410_v24 = vld [vmem:[%s3696_s1 + $0x314] sm:$0xf]  ;;  %v2048_v27 = vld [vmem:[%s3696_s1 + $0x318] sm:$0xf0] }
  0x7d   :  { %1370 = vmatpush.bf16.msrb.mxu1 %v1859_v45  ;;  %v2464_v45 = vld [vmem:[%s3696_s1 + $0x4c4] sm:$0xf]  ;;  %v2458_v30 = vld [vmem:[%s3696_s1 + $0x494] sm:$0xf]  ;;  %v2240_v31 = vld [vmem:[%s3696_s1 + $0x498] sm:$0xf0]  ;;  %v2051_v33 = vor.u32 %v2410_v24, %v2048_v27 }
  0x7e   :  { %1389 = vmatpush.bf16.msrb.mxu2 %v1923_v35  ;;  %v2272_v35 = vld [vmem:[%s3696_s1 + $0x4d8] sm:$0xf0] }
  0x7f   :  { %1408 = vmatpush.bf16.msrb.mxu3 %v1987_v46  ;;  %v2275_v41 = vor.u32 %v2466_v34, %v2272_v35  ;;  %v2264_v46 = vld [vmem:[%s3696_s1 + $0x4c8] sm:$0xf0]  ;;  %v2440_v34 = vld [vmem:[%s3696_s1 + $0x404] sm:$0xf] }
  0x80   :  { %1352 = vmatpush.bf16.msrb.mxu0 %v1787_v52  ;;  %v2430_v52 = vld [vmem:[%s3696_s1 + $0x3b4] sm:$0xf]  ;;  %v2168_v35 = vld [vmem:[%s3696_s1 + $0x408] sm:$0xf0] }
  0x81   :  { %1371 = vmatpush.bf16.msrb.mxu1 %v1851_v10  ;;  %v2131_v2 = vor.u32 %v2430_v52, %v2128_v55  ;;  %v2428_v10 = vld [vmem:[%s3696_s1 + $0x3a4] sm:$0xf] }
  0x82   :  { %1390 = vmatpush.bf16.msrb.mxu2 %v1915_v49  ;;  %v2267_v49 = vor.u32 %v2464_v45, %v2264_v46 }
  0x83   :  { %1409 = vmatpush.bf16.msrb.mxu3 %v1979_v11  ;;  %1353 = vmatmul.bf16.vlgmr.msrb.gmra.mxu0 %v2747_v54  ;;  %v2203_v54 = vor.u32 %v2448_v38, %v2200_v39  ;;  %v2120_v11 = vld [vmem:[%s3696_s1 + $0x3a8] sm:$0xf0]  ;;  %v2408_v38 = vld [vmem:[%s3696_s1 + $0x304] sm:$0xf] }
  0x84   :  { %1421 = vmatpush.bf16.msra.mxu0 %v2099_v61  ;;  %1372 = vmatmul.bf16.vlgmr.msrb.gmra.mxu1 %v2755_v57  ;;  %v2075_v57 = vor.u32 %v2416_v48, %v2072_v53  ;;  %v2123_v22 = vor.u32 %v2428_v10, %v2120_v11  ;;  %v2040_v39 = vld [vmem:[%s3696_s1 + $0x308] sm:$0xf0]  ;;  %v2456_v48 = vld [vmem:[%s3696_s1 + $0x484] sm:$0xf] }
  0x85   :  { %1440 = vmatpush.bf16.msra.mxu1 %v2163_v12  ;;  %1391 = vmatmul.bf16.vlgmr.msrb.gmra.mxu2 %v3022_v0  ;;  %v2414_v0 = vld [vmem:[%s3696_s1 + $0x334] sm:$0xf]  ;;  %v2460_v12 = vld [vmem:[%s3696_s1 + $0x4a4] sm:$0xf]  ;;  %v2232_v53 = vld [vmem:[%s3696_s1 + $0x488] sm:$0xf0] }
  0x86   :  { %1459 = vmatpush.bf16.msra.mxu2 %v2227_v60  ;;  %1410 = vmatmul.bf16.vlgmr.msrb.gmra.mxu3 %v3024_v1  ;;  %v2064_v1 = vld [vmem:[%s3696_s1 + $0x338] sm:$0xf0]  ;;  %v2195_v60 = vor.u32 %v2446_v44, %v2192_v50  ;;  %v2235_v43 = vor.u32 %v2456_v48, %v2232_v53 }
  0x87   :  { %1478 = vmatpush.bf16.msra.mxu3 %v2291_v15  ;;  %v2067_v61 = vor.u32 %v2414_v0, %v2064_v1  ;;  %v2248_v15 = vld [vmem:[%s3696_s1 + $0x4a8] sm:$0xf0] }
  0x88   :  { %1422 = vmatpush.bf16.msra.mxu0 %v2091_v18  ;;  %v2442_v18 = vld [vmem:[%s3696_s1 + $0x414] sm:$0xf]  ;;  %v2251_v23 = vor.u32 %v2460_v12, %v2248_v15 }
  0x89   :  { %1441 = vmatpush.bf16.msra.mxu1 %v2155_v28  ;;  %v2426_v28 = vld [vmem:[%s3696_s1 + $0x394] sm:$0xf]  ;;  %v2179_v32 = vor.u32 %v2442_v18, %v2176_v21 }
  0x8a   :  { %1460 = vmatpush.bf16.msra.mxu2 %v2219_v17  ;;  %v2059_v17 = vor.u32 %v2412_v4, %v2056_v7 }
  0x8b   :  { %1479 = vmatpush.bf16.msra.mxu3 %v2283_v29  ;;  %v2112_v29 = vld [vmem:[%s3696_s1 + $0x398] sm:$0xf0] }
  0x8c   :  { %1423 = vmatpush.bf16.msra.mxu0 %v2083_v37  ;;  %v2243_v37 = vor.u32 %v2458_v30, %v2240_v31 }
  0x8d   :  { %1442 = vmatpush.bf16.msra.mxu1 %v2147_v40  ;;  %v2424_v40 = vld [vmem:[%s3696_s1 + $0x384] sm:$0xf] }
  0x8e   :  { %1461 = vmatpush.bf16.msra.mxu2 %v2211_v36  ;;  %v2115_v36 = vor.u32 %v2426_v28, %v2112_v29 }
  0x8f   :  { %1480 = vmatpush.bf16.msra.mxu3 %v2275_v41  ;;  %v2104_v41 = vld [vmem:[%s3696_s1 + $0x388] sm:$0xf0] }
  0x90   :  { %1424 = vmatpush.bf16.msra.mxu0 %v2075_v57  ;;  %v2107_v42 = vor.u32 %v2424_v40, %v2104_v41 }
  0x91   :  { %1443 = vmatpush.bf16.msra.mxu1 %v2139_v47 }
  0x92   :  { %1462 = vmatpush.bf16.msra.mxu2 %v2203_v54 }
  0x93   :  { %1481 = vmatpush.bf16.msra.mxu3 %v2267_v49  ;;  %1358 = vmatmul.bf16.gmra.mxu0 %v2879_v51  ;;  %v2171_v51 = vor.u32 %v2440_v34, %v2168_v35 }
  0x94   :  { %1425 = vmatpush.bf16.msra.mxu0 %v2067_v61  ;;  %1377 = vmatmul.bf16.gmra.mxu1 %v2887_v56  ;;  %v2043_v56 = vor.u32 %v2408_v38, %v2040_v39 }
  0x95   :  { %1444 = vmatpush.bf16.msra.mxu1 %v2131_v2  ;;  %1396 = vmatmul.bf16.gmra.mxu2 %v3154_v8 }
  0x96   :  { %1463 = vmatpush.bf16.msra.mxu2 %v2195_v60  ;;  %1415 = vmatmul.bf16.gmra.mxu3 %v3156_v9 }
  0x97   :  { %1482 = vmatpush.bf16.msra.mxu3 %v2259_v3 }
  0x98   :  { %1426 = vmatpush.bf16.msra.mxu0 %v2059_v17 }
  0x99   :  { %1445 = vmatpush.bf16.msra.mxu1 %v2123_v22 }
  0x9a   :  { %1464 = vmatpush.bf16.msra.mxu2 %v2187_v16 }
  0x9b   :  { %1483 = vmatpush.bf16.msra.mxu3 %v2251_v23 }
  0x9c   :  { %1427 = vmatpush.bf16.msra.mxu0 %v2051_v33 }
  0x9d   :  { %1446 = vmatpush.bf16.msra.mxu1 %v2115_v36 }
  0x9e   :  { %1465 = vmatpush.bf16.msra.mxu2 %v2179_v32 }
  0x9f   :  { %1484 = vmatpush.bf16.msra.mxu3 %v2243_v37 }
  0xa0   :  { %1428 = vmatpush.bf16.msra.mxu0 %v2043_v56  ;;  %v1126_v45 = vpop.f32.mrf.mxu0 }
  0xa1   :  { %1447 = vmatpush.bf16.msra.mxu1 %v2107_v42  ;;  %v1145_v46 = vpop.f32.mrf.mxu1 }
  0xa2   :  { %1466 = vmatpush.bf16.msra.mxu2 %v2171_v51  ;;  %v1146_v54 = vadd.f32 %v1145_v46, %v1126_v45 }
  0xa3   :  { %1485 = vmatpush.bf16.msra.mxu3 %v2235_v43  ;;  %1429 = vmatmul.bf16.vlgmr.msra.gmra.mxu0 %v3035_v5 }
  0xa4   :  { %1448 = vmatmul.bf16.vlgmr.msra.gmra.mxu1 %v3037_v6 }
  0xa5   :  { %1467 = vmatmul.bf16.vlgmr.msra.gmra.mxu2 %v3280_v19 }
  0xa6   :  { %1486 = vmatmul.bf16.vlgmr.msra.gmra.mxu3 %v3282_v20 }
  0xa8   :  { %v1164_v8 = vpop.f32.mrf.mxu2  ;;  %v1128_v44 = vpop.f32.mrf.mxu0 }
  0xa9   :  { %v1165_v9 = vadd.f32 %v1164_v8, %v1146_v54  ;;  %v1183_v57 = vpop.f32.mrf.mxu3  ;;  %v1147_v50 = vpop.f32.mrf.mxu1 }
  0xaa   :  { %v1148_v49 = vadd.f32 %v1147_v50, %v1128_v44 }
  0xab   :  { %v1184_v47 = vadd.f32 %v1183_v57, %v1165_v9 }
  0xb0   :  { %v1166_v0 = vpop.f32.mrf.mxu2  ;;  %v1131_v55 = vpop.f32.mrf.mxu0 }
  0xb1   :  { %v1167_v1 = vadd.f32 %v1166_v0, %v1148_v49  ;;  %v1185_v52 = vpop.f32.mrf.mxu3  ;;  %v1150_v58 = vpop.f32.mrf.mxu1 }
  0xb2   :  { %v1151_v5 = vadd.f32 %v1150_v58, %v1131_v55 }
  0xb3   :  { %v1186_v59 = vadd.f32 %v1185_v52, %v1167_v1  ;;  %1434 = vmatmul.bf16.gmra.mxu0 %v3167_v13 }
  0xb4   :  { %1453 = vmatmul.bf16.gmra.mxu1 %v3169_v14 }
  0xb5   :  { %1472 = vmatmul.bf16.gmra.mxu2 %v3396_v25 }
  0xb6   :  { %1491 = vmatmul.bf16.gmra.mxu3 %v3398_v26 }
  0xb8   :  { %v1169_v6 = vpop.f32.mrf.mxu2  ;;  %v1133_v60 = vpop.f32.mrf.mxu0 }
  0xb9   :  { %v1170_v19 = vadd.f32 %v1169_v6, %v1151_v5  ;;  %v1188_v20 = vpop.f32.mrf.mxu3  ;;  %v1152_v61 = vpop.f32.mrf.mxu1 }
  0xba   :  { %v1153_v63 = vadd.f32 %v1152_v61, %v1133_v60 }
  0xbb   :  { %v1189_v62 = vadd.f32 %v1188_v20, %v1170_v19 }
  0xc0   :  { %v1171_v2 = vpop.f32.mrf.mxu2  ;;  %v1202_v7 = vpop.f32.mrf.mxu0 }
  0xc1   :  { %v1172_v3 = vadd.f32 %v1171_v2, %v1153_v63  ;;  %v1190_v4 = vpop.f32.mrf.mxu3  ;;  %v1221_v10 = vpop.f32.mrf.mxu1  ;;  %v1203_v13 = vadd.f32 %v1202_v7, %v1184_v47 }
  0xc3   :  { %v1191_v11 = vadd.f32 %v1190_v4, %v1172_v3  ;;  %v1222_v12 = vadd.f32 %v1221_v10, %v1203_v13 }
  0xc8   :  { %v1240_v14 = vpop.f32.mrf.mxu2  ;;  %v1204_v16 = vpop.f32.mrf.mxu0 }
  0xc9   :  { %v1259_v15 = vpop.f32.mrf.mxu3  ;;  %v1241_v25 = vadd.f32 %v1240_v14, %v1222_v12  ;;  %v1223_v26 = vpop.f32.mrf.mxu1  ;;  %v1205_v17 = vadd.f32 %v1204_v16, %v1186_v59 }
  0xcb   :  { %v1260_v18 = vadd.f32 %v1259_v15, %v1241_v25  ;;  %v1224_v21 = vadd.f32 %v1223_v26, %v1205_v17 }
  0xd0   :  { %v1242_v22 = vpop.f32.mrf.mxu2  ;;  %v1207_v27 = vpop.f32.mrf.mxu0 }
  0xd1   :  { %v1261_v23 = vpop.f32.mrf.mxu3  ;;  %v1243_v24 = vadd.f32 %v1242_v22, %v1224_v21  ;;  %v1226_v28 = vpop.f32.mrf.mxu1  ;;  %v1208_v29 = vadd.f32 %v1207_v27, %v1189_v62 }
  0xd3   :  { %v1262_v30 = vadd.f32 %v1261_v23, %v1243_v24  ;;  %v1227_v31 = vadd.f32 %v1226_v28, %v1208_v29  ;;  %v1524_v29 = vld [vmem:[%s3698_s2] sm:$0x3] }
  0xd8   :  { %v1245_v32 = vpop.f32.mrf.mxu2  ;;  %v1209_v35 = vpop.f32.mrf.mxu0 }
  0xd9   :  { %v1264_v33 = vpop.f32.mrf.mxu3  ;;  %v1246_v34 = vadd.f32 %v1245_v32, %v1227_v31  ;;  %v1228_v36 = vpop.f32.mrf.mxu1  ;;  %v1210_v37 = vadd.f32 %v1209_v35, %v1191_v11  ;;  %v3666_v32 = vperm.slane %v1524_v29, 0 }
  0xdb   :  { %v1265_v38 = vadd.f32 %v1264_v33, %v1246_v34  ;;  %v1229_v39 = vadd.f32 %v1228_v36, %v1210_v37  ;;  %v1538_v33 = vld [vmem:[%s3699_s3] sm:$0x3] }
  0xe0   :  { %v1247_v40 = vpop.f32.mrf.mxu2  ;;  %v1278_v53 = vpop.f32.mrf.mxu0 }
  0xe1   :  { %v1266_v41 = vpop.f32.mrf.mxu3  ;;  %v1248_v48 = vadd.f32 %v1247_v40, %v1229_v39  ;;  %v1297_v51 = vpop.f32.mrf.mxu1  ;;  %v1279_v56 = vadd.f32 %v1278_v53, %v1260_v18 }
  0xe3   :  { %v1267_v42 = vadd.f32 %v1266_v41, %v1248_v48  ;;  %v1298_v43 = vadd.f32 %v1297_v51, %v1279_v56  ;;  %v1527_v51 = vperm.slane %v1524_v29, 1 }
  0xe5   :  { %v1530_v41 = vmul.f32 %v3666_v32, %v1298_v43 }
  0xe8   :  { %v1316_v45 = vpop.f32.mrf.mxu2  ;;  %v1280_v54 = vpop.f32.mrf.mxu0 }
  0xe9   :  { %v1335_v46 = vpop.f32.mrf.mxu3  ;;  %v1299_v8 = vpop.f32.mrf.mxu1  ;;  %v1281_v9 = vadd.f32 %v1280_v54, %v1262_v30  ;;  %v1541_v54 = vperm.slane %v1538_v33, 1 }
  0xea   :  { %v1336_v13 = vadd.f32 %v1335_v46, %v1316_v45 }
  0xeb   :  { %v3657_v57 = vadd.f32 %v1299_v8, %v1281_v9 }
  0xed   :  { %v1532_v43 = vmul.f32 %v3666_v32, %v3657_v57 }
  0xf0   :  { %v1318_v44 = vpop.f32.mrf.mxu2  ;;  %v1283_v47 = vpop.f32.mrf.mxu0 }
  0xf1   :  { %v1337_v50 = vpop.f32.mrf.mxu3  ;;  %v1302_v49 = vpop.f32.mrf.mxu1  ;;  %v1284_v0 = vadd.f32 %v1283_v47, %v1265_v38  ;;  %v3671_v38 = vperm.slane %v1538_v33, 0 }
  0xf2   :  { %v1338_v17 = vadd.f32 %v1337_v50, %v1318_v44 }
  0xf3   :  { %v3659_v1 = vadd.f32 %v1302_v49, %v1284_v0  ;;  %v1544_v9 = vadd.f32 %v3671_v38, %v1530_v41 }
  0xf8   :  { %v1321_v52 = vpop.f32.mrf.mxu2  ;;  %v1285_v58 = vpop.f32.mrf.mxu0 }
  0xf9   :  { %v1340_v55 = vpop.f32.mrf.mxu3  ;;  %v1304_v59 = vpop.f32.mrf.mxu1  ;;  %v1286_v5 = vadd.f32 %v1285_v58, %v1267_v42 }
  0xfa   :  { %v1341_v34 = vadd.f32 %v1340_v55, %v1321_v52 }
  0xfb   :  { %v3661_v6 = vadd.f32 %v1304_v59, %v1286_v5  ;;  %v1552_v59 = vmax.f32 %v1544_v9, 0.0 }
 0x100   :  { %v1323_v19 = vpop.f32.mrf.mxu2  ;;  %v1354_v60 = vpop.f32.mrf.mxu0 }
 0x101   :  { %v1342_v20 = vpop.f32.mrf.mxu3  ;;  %v1373_v61 = vpop.f32.mrf.mxu1  ;;  %v1355_v12 = vadd.f32 %v1354_v60, %v1336_v13 }
 0x102   :  { %v1343_v44 = vadd.f32 %v1342_v20, %v1323_v19  ;;  %v1546_v19 = vadd.f32 %v3671_v38, %v1532_v43 }
 0x103   :  { %v1374_v26 = vadd.f32 %v1373_v61, %v1355_v12 }
 0x104   :  { %v1554_v13 = vmax.f32 %v1546_v19, 0.0 }
 0x108   :  { %v1392_v62 = vpop.f32.mrf.mxu2  ;;  %v1356_v2 = vpop.f32.mrf.mxu0 }
 0x109   :  { %v1411_v63 = vpop.f32.mrf.mxu3  ;;  %v1375_v3 = vpop.f32.mrf.mxu1  ;;  %v1393_v18 = vadd.f32 %v1392_v62, %v1374_v26  ;;  %v1357_v21 = vadd.f32 %v1356_v2, %v1338_v17 }
 0x10b   :  { %v1412_v24 = vadd.f32 %v1411_v63, %v1393_v18  ;;  %v1376_v30 = vadd.f32 %v1375_v3, %v1357_v21 }
 0x110   :  { %v1394_v4 = vpop.f32.mrf.mxu2  ;;  %v1359_v10 = vpop.f32.mrf.mxu0 }
 0x111   :  { %v1413_v7 = vpop.f32.mrf.mxu3  ;;  %v1378_v11 = vpop.f32.mrf.mxu1  ;;  %v1395_v35 = vadd.f32 %v1394_v4, %v1376_v30  ;;  %v1360_v36 = vadd.f32 %v1359_v10, %v1341_v34 }
 0x113   :  { %v1414_v48 = vadd.f32 %v1413_v7, %v1395_v35  ;;  %v1379_v45 = vadd.f32 %v1378_v11, %v1360_v36 }
 0x118   :  { %v1397_v14 = vpop.f32.mrf.mxu2  ;;  %v1361_v25 = vpop.f32.mrf.mxu0 }
 0x119   :  { %v1416_v15 = vpop.f32.mrf.mxu3  ;;  %v1380_v16 = vpop.f32.mrf.mxu1  ;;  %v1398_v50 = vadd.f32 %v1397_v14, %v1379_v45  ;;  %v1362_v49 = vadd.f32 %v1361_v25, %v1343_v44 }
 0x11b   :  { %v1417_v5 = vadd.f32 %v1416_v15, %v1398_v50  ;;  %v1381_v63 = vadd.f32 %v1380_v16, %v1362_v49  ;;  %v1534_v15 = vmul.f32 %v3666_v32, %v3659_v1  ;;  %v1536_v1 = vmul.f32 %v3666_v32, %v3661_v6 }
 0x120   :  { %v1399_v22 = vpop.f32.mrf.mxu2  ;;  %v1430_v27 = vpop.f32.mrf.mxu0 }
 0x121   :  { %v1418_v23 = vpop.f32.mrf.mxu3  ;;  %v1449_v28 = vpop.f32.mrf.mxu1  ;;  %v1431_v31 = vadd.f32 %v1430_v27, %v1412_v24  ;;  %v1400_v7 = vadd.f32 %v1399_v22, %v1381_v63  ;;  %v1548_v24 = vadd.f32 %v3671_v38, %v1534_v15 }
 0x123   :  { %v1450_v37 = vadd.f32 %v1449_v28, %v1431_v31  ;;  %v1419_v25 = vadd.f32 %v1418_v23, %v1400_v7  ;;  %v1556_v33 = vmax.f32 %v1548_v24, 0.0 }
 0x128   :  { %v1468_v39 = vpop.f32.mrf.mxu2  ;;  %v1432_v56 = vpop.f32.mrf.mxu0 }
 0x129   :  { %v1487_v40 = vpop.f32.mrf.mxu3  ;;  %v1469_v53 = vadd.f32 %v1468_v39, %v1450_v37  ;;  %v1451_v42 = vpop.f32.mrf.mxu1  ;;  %v1433_v8 = vadd.f32 %v1432_v56, %v1414_v48  ;;  %v1550_v39 = vadd.f32 %v3671_v38, %v1536_v1 }
 0x12b   :  { %v1488_v46 = vadd.f32 %v1487_v40, %v1469_v53  ;;  %v1452_v52 = vadd.f32 %v1451_v42, %v1433_v8  ;;  %v1558_v48 = vmax.f32 %v1550_v39, 0.0 }
 0x12d   :  { %v1531_v47 = vmul.f32 %v1527_v51, %v1488_v46 }
 0x12f   :  { %v1545_v0 = vadd.f32 %v1541_v54, %v1531_v47 }
 0x130   :  { %v1470_v55 = vpop.f32.mrf.mxu2  ;;  %v1435_v62 = vpop.f32.mrf.mxu0 }
 0x131   :  { %v1489_v58 = vpop.f32.mrf.mxu3  ;;  %v1553_v60 = vmax.f32 %v1545_v0, 0.0  ;;  %v1471_v61 = vadd.f32 %v1470_v55, %v1452_v52  ;;  %v1436_v4 = vadd.f32 %v1435_v62, %v1417_v5  ;;  %v1454_v20 = vpop.f32.mrf.mxu1 }
 0x133   :  { %v1560_v2 = vpack.c.bf16 %v1553_v60, %v1552_v59  ;;  %v1490_v3 = vadd.f32 %v1489_v58, %v1471_v61  ;;  %v1455_v11 = vadd.f32 %v1454_v20, %v1436_v4 }
 0x135   :  { %1564 = vst [vmem:[%s3700_s4] sm:$0xff] %v1560_v2  ;;  %v1533_v57 = vmul.f32 %v1527_v51, %v1490_v3 }
 0x137   :  { %v1547_v10 = vadd.f32 %v1541_v54, %v1533_v57 }
 0x138   :  { %v1473_v12 = vpop.f32.mrf.mxu2  ;;  %v1437_v17 = vpop.f32.mrf.mxu0 }
 0x139   :  { %v1492_v14 = vpop.f32.mrf.mxu3  ;;  %v1555_v16 = vmax.f32 %v1547_v10, 0.0  ;;  %v1474_v26 = vadd.f32 %v1473_v12, %v1455_v11  ;;  %v1438_v22 = vadd.f32 %v1437_v17, %v1419_v25  ;;  %v1456_v28 = vpop.f32.mrf.mxu1 }
 0x13b   :  { %v1561_v18 = vpack.c.bf16 %v1555_v16, %v1554_v13  ;;  %v1493_v21 = vadd.f32 %v1492_v14, %v1474_v26  ;;  %v1457_v30 = vadd.f32 %v1456_v28, %v1438_v22 }
 0x13d   :  { %1565 = vst [vmem:[%s3700_s4 + $0x8] sm:$0xff] %v1561_v18  ;;  %v1535_v27 = vmul.f32 %v1527_v51, %v1493_v21 }
 0x13f   :  { %v1549_v29 = vadd.f32 %v1541_v54, %v1535_v27 }
 0x140   :  { %v1475_v31 = vpop.f32.mrf.mxu2 }
 0x141   :  { %v1557_v23 = vmax.f32 %v1549_v29, 0.0  ;;  %v1476_v34 = vadd.f32 %v1475_v31, %v1457_v30  ;;  %v1494_v35 = vpop.f32.mrf.mxu3 }
 0x143   :  { %v1562_v36 = vpack.c.bf16 %v1557_v23, %v1556_v33  ;;  %v1495_v37 = vadd.f32 %v1494_v35, %v1476_v34 }
 0x145   :  { %1566 = vst [vmem:[%s3700_s4 + $0x10] sm:$0xff] %v1562_v36  ;;  %v1537_v40 = vmul.f32 %v1527_v51, %v1495_v37 }
 0x147   :  { %v1551_v41 = vadd.f32 %v1541_v54, %v1537_v40 }
 0x149   :  { %v1559_v53 = vmax.f32 %v1551_v41, 0.0 }
 0x14b   :  { %v1563_v56 = vpack.c.bf16 %v1559_v53, %v1558_v48 }
 0x14d   :  { %1567 = vst [vmem:[%s3700_s4 + $0x18] sm:$0xff] %v1563_v56 }

// kernel: _lambda_.43
= control target key start
LH: loop header
LB: loop body
LE: loop exit
PB: predicated region body
PF: predicated region fallthrough
CT: control target
= control target key end

     0   :  { %s6557_s1 = inlined_call_operand.vmem [shape: bf16[2304,256], index: 1, kind: input, shape index: {}]   ;;  %s6558_s0 = inlined_call_operand.vmem [shape: bf16[32,2304], index: 0, kind: input, shape index: {}]   ;;  %s6559_s2 = inlined_call_operand.vmem [shape: f32[1,256], index: 2, kind: input, shape index: {}]   ;;  %s6560_s3 = inlined_call_operand.vmem [shape: f32[1,256], index: 3, kind: input, shape index: {}]   ;;  %s6561_s4 = inlined_call_operand.vmem [shape: bf16[32,256], index: 4, kind: output, shape index: {}]  }
   0x1   :  { %v2942_v0 = vld [vmem:[%s6557_s1 + $0x70] sm:$0xf]  ;;  %v4087_v1 = vld [vmem:[%s6557_s1 + $0x74] sm:$0xf0]  ;;  %v2934_v11 = vld [vmem:[%s6557_s1 + $0x60] sm:$0xf] }
   0x2   :  { %v3006_v2 = vld [vmem:[%s6557_s1 + $0xf0] sm:$0xf]  ;;  %v2943_v3 = vor.u32 %v4087_v1, %v2942_v0  ;;  %v4103_v4 = vld [vmem:[%s6557_s1 + $0xf4] sm:$0xf0]  ;;  %v4085_v13 = vld [vmem:[%s6557_s1 + $0x64] sm:$0xf0] }
   0x3   :  { %v3070_v5 = vld [vmem:[%s6557_s1 + $0x170] sm:$0xf]  ;;  %v4119_v6 = vld [vmem:[%s6557_s1 + $0x174] sm:$0xf0]  ;;  %v3007_v7 = vor.u32 %v4103_v4, %v3006_v2  ;;  %v2998_v14 = vld [vmem:[%s6557_s1 + $0xe0] sm:$0xf]  ;;  %v2935_v16 = vor.u32 %v4085_v13, %v2934_v11 }
   0x4   :  { %v3071_v8 = vor.u32 %v4119_v6, %v3070_v5  ;;  %v3134_v9 = vld [vmem:[%s6557_s1 + $0x1f0] sm:$0xf]  ;;  %v4135_v10 = vld [vmem:[%s6557_s1 + $0x1f4] sm:$0xf0]  ;;  %1981 = vmatpush.bf16.msra.mxu0 %v2943_v3  ;;  %v4101_v15 = vld [vmem:[%s6557_s1 + $0xe4] sm:$0xf0] }
   0x5   :  { %v3135_v12 = vor.u32 %v4135_v10, %v3134_v9  ;;  %2000 = vmatpush.bf16.msra.mxu1 %v3007_v7  ;;  %v2999_v17 = vor.u32 %v4101_v15, %v2998_v14  ;;  %v3062_v18 = vld [vmem:[%s6557_s1 + $0x160] sm:$0xf]  ;;  %v4117_v19 = vld [vmem:[%s6557_s1 + $0x164] sm:$0xf0]  ;;  %v2926_v23 = vld [vmem:[%s6557_s1 + $0x50] sm:$0xf] }
   0x6   :  { %2019 = vmatpush.bf16.msra.mxu2 %v3071_v8  ;;  %v3126_v20 = vld [vmem:[%s6557_s1 + $0x1e0] sm:$0xf]  ;;  %v3063_v21 = vor.u32 %v4117_v19, %v3062_v18  ;;  %v4133_v22 = vld [vmem:[%s6557_s1 + $0x1e4] sm:$0xf0]  ;;  %v4083_v24 = vld [vmem:[%s6557_s1 + $0x54] sm:$0xf0] }
   0x7   :  { %2038 = vmatpush.bf16.msra.mxu3 %v3135_v12  ;;  %v3127_v25 = vor.u32 %v4133_v22, %v3126_v20  ;;  %v2990_v26 = vld [vmem:[%s6557_s1 + $0xd0] sm:$0xf]  ;;  %v4099_v27 = vld [vmem:[%s6557_s1 + $0xd4] sm:$0xf0]  ;;  %v2927_v29 = vor.u32 %v4083_v24, %v2926_v23  ;;  %v2918_v35 = vld [vmem:[%s6557_s1 + $0x40] sm:$0xf] }
   0x8   :  { %v3054_v28 = vld [vmem:[%s6557_s1 + $0x150] sm:$0xf]  ;;  %1982 = vmatpush.bf16.msra.mxu0 %v2935_v16  ;;  %v4115_v30 = vld [vmem:[%s6557_s1 + $0x154] sm:$0xf0]  ;;  %v2991_v33 = vor.u32 %v4099_v27, %v2990_v26  ;;  %v4081_v36 = vld [vmem:[%s6557_s1 + $0x44] sm:$0xf0] }
   0x9   :  { %v3118_v31 = vld [vmem:[%s6557_s1 + $0x1d0] sm:$0xf]  ;;  %v4131_v32 = vld [vmem:[%s6557_s1 + $0x1d4] sm:$0xf0]  ;;  %2001 = vmatpush.bf16.msra.mxu1 %v2999_v17  ;;  %v3055_v34 = vor.u32 %v4115_v30, %v3054_v28  ;;  %v2982_v37 = vld [vmem:[%s6557_s1 + $0xc0] sm:$0xf]  ;;  %v2919_v44 = vor.u32 %v4081_v36, %v2918_v35 }
   0xa   :  { %2020 = vmatpush.bf16.msra.mxu2 %v3063_v21  ;;  %v3119_v38 = vor.u32 %v4131_v32, %v3118_v31  ;;  %v4097_v39 = vld [vmem:[%s6557_s1 + $0xc4] sm:$0xf0]  ;;  %v3046_v40 = vld [vmem:[%s6557_s1 + $0x140] sm:$0xf]  ;;  %v2910_v47 = vld [vmem:[%s6557_s1 + $0x30] sm:$0xf] }
   0xb   :  { %2039 = vmatpush.bf16.msra.mxu3 %v3127_v25  ;;  %v4113_v41 = vld [vmem:[%s6557_s1 + $0x144] sm:$0xf0]  ;;  %v3110_v42 = vld [vmem:[%s6557_s1 + $0x1c0] sm:$0xf]  ;;  %v2983_v45 = vor.u32 %v4097_v39, %v2982_v37  ;;  %v4079_v48 = vld [vmem:[%s6557_s1 + $0x34] sm:$0xf0] }
   0xc   :  { %v4129_v43 = vld [vmem:[%s6557_s1 + $0x1c4] sm:$0xf0]  ;;  %1983 = vmatpush.bf16.msra.mxu0 %v2927_v29  ;;  %v3047_v46 = vor.u32 %v4113_v41, %v3046_v40  ;;  %v2974_v49 = vld [vmem:[%s6557_s1 + $0xb0] sm:$0xf]  ;;  %v4095_v51 = vld [vmem:[%s6557_s1 + $0xb4] sm:$0xf0]  ;;  %v2911_v56 = vor.u32 %v4079_v48, %v2910_v47 }
   0xd   :  { %2002 = vmatpush.bf16.msra.mxu1 %v2991_v33  ;;  %v3111_v50 = vor.u32 %v4129_v43, %v3110_v42  ;;  %v3038_v52 = vld [vmem:[%s6557_s1 + $0x130] sm:$0xf]  ;;  %v4111_v53 = vld [vmem:[%s6557_s1 + $0x134] sm:$0xf0]  ;;  %v2975_v57 = vor.u32 %v4095_v51, %v2974_v49  ;;  %v2902_v59 = vld [vmem:[%s6557_s1 + $0x20] sm:$0xf] }
   0xe   :  { %2021 = vmatpush.bf16.msra.mxu2 %v3055_v34  ;;  %v3102_v54 = vld [vmem:[%s6557_s1 + $0x1b0] sm:$0xf]  ;;  %v4127_v55 = vld [vmem:[%s6557_s1 + $0x1b4] sm:$0xf0]  ;;  %v3039_v58 = vor.u32 %v4111_v53, %v3038_v52  ;;  %v4077_v60 = vld [vmem:[%s6557_s1 + $0x24] sm:$0xf0] }
   0xf   :  { %2040 = vmatpush.bf16.msra.mxu3 %v3119_v38  ;;  %v2966_v61 = vld [vmem:[%s6557_s1 + $0xa0] sm:$0xf]  ;;  %v3103_v62 = vor.u32 %v4127_v55, %v3102_v54  ;;  %v4093_v63 = vld [vmem:[%s6557_s1 + $0xa4] sm:$0xf0]  ;;  %v2903_v4 = vor.u32 %v4077_v60, %v2902_v59  ;;  %v2894_v7 = vld [vmem:[%s6557_s1 + $0x10] sm:$0xf] }
  0x10   :  { %1984 = vmatpush.bf16.msra.mxu0 %v2919_v44  ;;  %v3030_v0 = vld [vmem:[%s6557_s1 + $0x120] sm:$0xf]  ;;  %v4109_v1 = vld [vmem:[%s6557_s1 + $0x124] sm:$0xf0]  ;;  %v2967_v5 = vor.u32 %v4093_v63, %v2966_v61  ;;  %v4075_v8 = vld [vmem:[%s6557_s1 + $0x14] sm:$0xf0] }
  0x11   :  { %2003 = vmatpush.bf16.msra.mxu1 %v2983_v45  ;;  %v3094_v2 = vld [vmem:[%s6557_s1 + $0x1a0] sm:$0xf]  ;;  %v4125_v3 = vld [vmem:[%s6557_s1 + $0x1a4] sm:$0xf0]  ;;  %v3031_v6 = vor.u32 %v4109_v1, %v3030_v0  ;;  %v2958_v9 = vld [vmem:[%s6557_s1 + $0x90] sm:$0xf]  ;;  %v2895_v17 = vor.u32 %v4075_v8, %v2894_v7 }
  0x12   :  { %2022 = vmatpush.bf16.msra.mxu2 %v3047_v46  ;;  %v3095_v10 = vor.u32 %v4125_v3, %v3094_v2  ;;  %v4091_v11 = vld [vmem:[%s6557_s1 + $0x94] sm:$0xf0]  ;;  %v3022_v12 = vld [vmem:[%s6557_s1 + $0x110] sm:$0xf]  ;;  %v2886_v16 = vld [vmem:[%s6557_s1] sm:$0xf] }
  0x13   :  { %2041 = vmatpush.bf16.msra.mxu3 %v3111_v50  ;;  %v4107_v13 = vld [vmem:[%s6557_s1 + $0x114] sm:$0xf0]  ;;  %v3086_v14 = vld [vmem:[%s6557_s1 + $0x190] sm:$0xf]  ;;  %v4073_v18 = vld [vmem:[%s6557_s1 + $0x4] sm:$0xf0]  ;;  %v2959_v21 = vor.u32 %v4091_v11, %v2958_v9 }
  0x14   :  { %1985 = vmatpush.bf16.msra.mxu0 %v2911_v56  ;;  %v4123_v15 = vld [vmem:[%s6557_s1 + $0x194] sm:$0xf0]  ;;  %v2950_v19 = vld [vmem:[%s6557_s1 + $0x80] sm:$0xf]  ;;  %v4089_v20 = vld [vmem:[%s6557_s1 + $0x84] sm:$0xf0]  ;;  %v3023_v22 = vor.u32 %v4107_v13, %v3022_v12  ;;  %v2887_v34 = vor.u32 %v4073_v18, %v2886_v16 }
  0x15   :  { %2004 = vmatpush.bf16.msra.mxu1 %v2975_v57  ;;  %v3014_v23 = vld [vmem:[%s6557_s1 + $0x100] sm:$0xf]  ;;  %v4105_v24 = vld [vmem:[%s6557_s1 + $0x104] sm:$0xf0]  ;;  %v3087_v26 = vor.u32 %v4123_v15, %v3086_v14  ;;  %v4036_v30 = vld [vmem:[%s6558_s0 + $0x4] sm:$0xf]  ;;  %v2951_v38 = vor.u32 %v4089_v20, %v2950_v19 }
  0x16   :  { %2023 = vmatpush.bf16.msra.mxu2 %v3039_v58  ;;  %v3078_v25 = vld [vmem:[%s6557_s1 + $0x180] sm:$0xf]  ;;  %v4121_v27 = vld [vmem:[%s6557_s1 + $0x184] sm:$0xf0]  ;;  %v2744_v31 = vld [vmem:[%s6558_s0 + $0x48] sm:$0xf0]  ;;  %v3015_v39 = vor.u32 %v4105_v24, %v3014_v23 }
  0x17   :  { %2042 = vmatpush.bf16.msra.mxu3 %v3103_v62  ;;  %v2742_v28 = vld [vmem:[%s6558_s0] sm:$0xf]  ;;  %v4045_v29 = vld [vmem:[%s6558_s0 + $0x44] sm:$0xf0]  ;;  %v3326_v32 = vld [vmem:[%s6557_s1 + $0x370] sm:$0xf]  ;;  %v3079_v43 = vor.u32 %v4121_v27, %v3078_v25  ;;  %v4633_v53 = vor.u32 %v4036_v30, %v2744_v31 }
  0x18   :  { %1986 = vmatpush.bf16.msra.mxu0 %v2903_v4  ;;  %v4183_v33 = vld [vmem:[%s6557_s1 + $0x374] sm:$0xf0]  ;;  %v2750_v35 = vld [vmem:[%s6558_s0 + $0x8] sm:$0xf]  ;;  %v3262_v36 = vld [vmem:[%s6557_s1 + $0x2f0] sm:$0xf]  ;;  %v4622_v48 = vor.u32 %v4045_v29, %v2742_v28 }
  0x19   :  { %2005 = vmatpush.bf16.msra.mxu1 %v2967_v5  ;;  %v4167_v37 = vld [vmem:[%s6557_s1 + $0x2f4] sm:$0xf0]  ;;  %v4046_v40 = vld [vmem:[%s6558_s0 + $0x4c] sm:$0xf0]  ;;  %v4037_v41 = vld [vmem:[%s6558_s0 + $0xc] sm:$0xf]  ;;  %v3327_v44 = vor.u32 %v4183_v33, %v3326_v32 }
  0x1a   :  { %2024 = vmatpush.bf16.msra.mxu2 %v3031_v6  ;;  %v2752_v42 = vld [vmem:[%s6558_s0 + $0x50] sm:$0xf0]  ;;  %v3198_v45 = vld [vmem:[%s6557_s1 + $0x270] sm:$0xf]  ;;  %v4151_v46 = vld [vmem:[%s6557_s1 + $0x274] sm:$0xf0]  ;;  %v3263_v49 = vor.u32 %v4167_v37, %v3262_v36  ;;  %v4635_v54 = vor.u32 %v4046_v40, %v2750_v35 }
  0x1b   :  { %2043 = vmatpush.bf16.msra.mxu3 %v3095_v10  ;;  %v3390_v47 = vld [vmem:[%s6557_s1 + $0x3f0] sm:$0xf]  ;;  %v4199_v50 = vld [vmem:[%s6557_s1 + $0x3f4] sm:$0xf0]  ;;  %v3318_v51 = vld [vmem:[%s6557_s1 + $0x360] sm:$0xf]  ;;  %v4643_v57 = vor.u32 %v4037_v41, %v2752_v42  ;;  %v3199_v58 = vor.u32 %v4151_v46, %v3198_v45 }
  0x1c   :  { %1987 = vmatpush.bf16.msra.mxu0 %v2895_v17  ;;  %v4181_v52 = vld [vmem:[%s6557_s1 + $0x364] sm:$0xf0]  ;;  %v3254_v55 = vld [vmem:[%s6557_s1 + $0x2e0] sm:$0xf]  ;;  %v3391_v59 = vor.u32 %v4199_v50, %v3390_v47  ;;  %v3310_v2 = vld [vmem:[%s6557_s1 + $0x350] sm:$0xf] }
  0x1d   :  { %2006 = vmatpush.bf16.msra.mxu1 %v2959_v21  ;;  %v4165_v56 = vld [vmem:[%s6557_s1 + $0x2e4] sm:$0xf0]  ;;  %v3319_v60 = vor.u32 %v4181_v52, %v3318_v51  ;;  %v3190_v61 = vld [vmem:[%s6557_s1 + $0x260] sm:$0xf]  ;;  %v4179_v3 = vld [vmem:[%s6557_s1 + $0x354] sm:$0xf0] }
  0x1e   :  { %2025 = vmatpush.bf16.msra.mxu2 %v3023_v22  ;;  %v4149_v62 = vld [vmem:[%s6557_s1 + $0x264] sm:$0xf0]  ;;  %v3382_v63 = vld [vmem:[%s6557_s1 + $0x3e0] sm:$0xf]  ;;  %v3255_v0 = vor.u32 %v4165_v56, %v3254_v55  ;;  %v3246_v4 = vld [vmem:[%s6557_s1 + $0x2d0] sm:$0xf]  ;;  %v3311_v8 = vor.u32 %v4179_v3, %v3310_v2 }
  0x1f   :  { %2044 = vmatpush.bf16.msra.mxu3 %v3087_v26  ;;  %v4197_v1 = vld [vmem:[%s6557_s1 + $0x3e4] sm:$0xf0]  ;;  %v4163_v5 = vld [vmem:[%s6557_s1 + $0x2d4] sm:$0xf0]  ;;  %v3191_v6 = vor.u32 %v4149_v62, %v3190_v61  ;;  %v3182_v9 = vld [vmem:[%s6557_s1 + $0x250] sm:$0xf] }
  0x20   :  { %1988 = vmatpush.bf16.msra.mxu0 %v2887_v34  ;;  %v3383_v7 = vor.u32 %v4197_v1, %v3382_v63  ;;  %v4147_v10 = vld [vmem:[%s6557_s1 + $0x254] sm:$0xf0]  ;;  %v3374_v11 = vld [vmem:[%s6557_s1 + $0x3d0] sm:$0xf]  ;;  %v3247_v12 = vor.u32 %v4163_v5, %v3246_v4  ;;  %v3302_v14 = vld [vmem:[%s6557_s1 + $0x340] sm:$0xf] }
  0x21   :  { %2007 = vmatpush.bf16.msra.mxu1 %v2951_v38  ;;  %v4195_v13 = vld [vmem:[%s6557_s1 + $0x3d4] sm:$0xf0]  ;;  %v4177_v15 = vld [vmem:[%s6557_s1 + $0x344] sm:$0xf0]  ;;  %v3238_v16 = vld [vmem:[%s6557_s1 + $0x2c0] sm:$0xf]  ;;  %v3183_v18 = vor.u32 %v4147_v10, %v3182_v9 }
  0x22   :  { %2026 = vmatpush.bf16.msra.mxu2 %v3015_v39  ;;  %v4161_v17 = vld [vmem:[%s6557_s1 + $0x2c4] sm:$0xf0]  ;;  %v3174_v19 = vld [vmem:[%s6557_s1 + $0x240] sm:$0xf]  ;;  %v3375_v22 = vor.u32 %v4195_v13, %v3374_v11  ;;  %v3303_v23 = vor.u32 %v4177_v15, %v3302_v14  ;;  %v2814_v25 = vld [vmem:[%s6558_s0 + $0x90] sm:$0xf] }
  0x23   :  { %2045 = vmatpush.bf16.msra.mxu3 %v3079_v43  ;;  %1989 = vmatmul.bf16.vlgmr.msra.gmra.mxu0 %v4622_v48  ;;  %v4145_v20 = vld [vmem:[%s6557_s1 + $0x244] sm:$0xf0]  ;;  %v3366_v21 = vld [vmem:[%s6557_s1 + $0x3c0] sm:$0xf]  ;;  %v4063_v26 = vld [vmem:[%s6558_s0 + $0xd4] sm:$0xf0]  ;;  %v3239_v27 = vor.u32 %v4161_v17, %v3238_v16 }
  0x24   :  { %2008 = vmatmul.bf16.vlgmr.msra.gmra.mxu1 %v4633_v53  ;;  %2057 = vmatpush.bf16.msrb.mxu0 %v3199_v58  ;;  %v4193_v24 = vld [vmem:[%s6557_s1 + $0x3c4] sm:$0xf0]  ;;  %v4054_v28 = vld [vmem:[%s6558_s0 + $0x94] sm:$0xf]  ;;  %v2816_v29 = vld [vmem:[%s6558_s0 + $0xd8] sm:$0xf0]  ;;  %v3175_v35 = vor.u32 %v4145_v20, %v3174_v19 }
  0x25   :  { %2076 = vmatpush.bf16.msrb.mxu1 %v3263_v49  ;;  %2027 = vmatmul.bf16.vlgmr.msra.gmra.mxu2 %v4635_v54  ;;  %v3294_v30 = vld [vmem:[%s6557_s1 + $0x330] sm:$0xf]  ;;  %v4175_v31 = vld [vmem:[%s6557_s1 + $0x334] sm:$0xf0]  ;;  %v4064_v36 = vld [vmem:[%s6558_s0 + $0xdc] sm:$0xf0]  ;;  %v3367_v39 = vor.u32 %v4193_v24, %v3366_v21  ;;  %v4765_v50 = vor.u32 %v4054_v28, %v2816_v29 }
  0x26   :  { %2095 = vmatpush.bf16.msrb.mxu2 %v3327_v44  ;;  %2046 = vmatmul.bf16.vlgmr.msra.gmra.mxu3 %v4643_v57  ;;  %v2822_v32 = vld [vmem:[%s6558_s0 + $0x98] sm:$0xf]  ;;  %v3230_v33 = vld [vmem:[%s6557_s1 + $0x2b0] sm:$0xf]  ;;  %v4055_v37 = vld [vmem:[%s6558_s0 + $0x9c] sm:$0xf]  ;;  %v3295_v40 = vor.u32 %v4175_v31, %v3294_v30  ;;  %v4754_v44 = vor.u32 %v4063_v26, %v2814_v25 }
  0x27   :  { %2114 = vmatpush.bf16.msrb.mxu3 %v3391_v59  ;;  %v4159_v34 = vld [vmem:[%s6557_s1 + $0x2b4] sm:$0xf0]  ;;  %v2824_v38 = vld [vmem:[%s6558_s0 + $0xe0] sm:$0xf0]  ;;  %v3166_v41 = vld [vmem:[%s6557_s1 + $0x230] sm:$0xf]  ;;  %v4767_v51 = vor.u32 %v4064_v36, %v2822_v32 }
  0x28   :  { %2058 = vmatpush.bf16.msrb.mxu0 %v3191_v6  ;;  %v4143_v42 = vld [vmem:[%s6557_s1 + $0x234] sm:$0xf0]  ;;  %v3358_v43 = vld [vmem:[%s6557_s1 + $0x3b0] sm:$0xf]  ;;  %v3231_v45 = vor.u32 %v4159_v34, %v3230_v33  ;;  %v3286_v47 = vld [vmem:[%s6557_s1 + $0x320] sm:$0xf]  ;;  %v4775_v56 = vor.u32 %v4055_v37, %v2824_v38 }
  0x29   :  { %2077 = vmatpush.bf16.msrb.mxu1 %v3255_v0  ;;  %v4191_v46 = vld [vmem:[%s6557_s1 + $0x3b4] sm:$0xf0]  ;;  %v4173_v49 = vld [vmem:[%s6557_s1 + $0x324] sm:$0xf0]  ;;  %v3222_v52 = vld [vmem:[%s6557_s1 + $0x2a0] sm:$0xf]  ;;  %v3167_v58 = vor.u32 %v4143_v42, %v3166_v41 }
  0x2a   :  { %2096 = vmatpush.bf16.msrb.mxu2 %v3319_v60  ;;  %v4157_v55 = vld [vmem:[%s6557_s1 + $0x2a4] sm:$0xf0]  ;;  %v3359_v59 = vor.u32 %v4191_v46, %v3358_v43  ;;  %v3287_v60 = vor.u32 %v4173_v49, %v3286_v47  ;;  %v3158_v61 = vld [vmem:[%s6557_s1 + $0x220] sm:$0xf]  ;;  %v3278_v2 = vld [vmem:[%s6557_s1 + $0x310] sm:$0xf] }
  0x2b   :  { %2115 = vmatpush.bf16.msrb.mxu3 %v3383_v7  ;;  %v4141_v62 = vld [vmem:[%s6557_s1 + $0x224] sm:$0xf0]  ;;  %v3350_v63 = vld [vmem:[%s6557_s1 + $0x3a0] sm:$0xf]  ;;  %v3223_v0 = vor.u32 %v4157_v55, %v3222_v52  ;;  %v4171_v3 = vld [vmem:[%s6557_s1 + $0x314] sm:$0xf0] }
  0x2c   :  { %2059 = vmatpush.bf16.msrb.mxu0 %v3183_v18  ;;  %v4189_v1 = vld [vmem:[%s6557_s1 + $0x3a4] sm:$0xf0]  ;;  %v3214_v4 = vld [vmem:[%s6557_s1 + $0x290] sm:$0xf]  ;;  %v4155_v5 = vld [vmem:[%s6557_s1 + $0x294] sm:$0xf0]  ;;  %v3159_v6 = vor.u32 %v4141_v62, %v3158_v61  ;;  %v3279_v9 = vor.u32 %v4171_v3, %v3278_v2 }
  0x2d   :  { %2078 = vmatpush.bf16.msrb.mxu1 %v3247_v12  ;;  %v3150_v7 = vld [vmem:[%s6557_s1 + $0x210] sm:$0xf]  ;;  %v4139_v10 = vld [vmem:[%s6557_s1 + $0x214] sm:$0xf0]  ;;  %v3215_v13 = vor.u32 %v4155_v5, %v3214_v4  ;;  %v3270_v14 = vld [vmem:[%s6557_s1 + $0x300] sm:$0xf] }
  0x2e   :  { %2097 = vmatpush.bf16.msrb.mxu2 %v3311_v8  ;;  %v3351_v8 = vor.u32 %v4189_v1, %v3350_v63  ;;  %v3342_v11 = vld [vmem:[%s6557_s1 + $0x390] sm:$0xf]  ;;  %v4187_v12 = vld [vmem:[%s6557_s1 + $0x394] sm:$0xf0]  ;;  %v4169_v15 = vld [vmem:[%s6557_s1 + $0x304] sm:$0xf0]  ;;  %v3151_v20 = vor.u32 %v4139_v10, %v3150_v7 }
  0x2f   :  { %2116 = vmatpush.bf16.msrb.mxu3 %v3375_v22  ;;  %v3206_v16 = vld [vmem:[%s6557_s1 + $0x280] sm:$0xf]  ;;  %v4153_v17 = vld [vmem:[%s6557_s1 + $0x284] sm:$0xf0]  ;;  %v3582_v18 = vld [vmem:[%s6557_s1 + $0x570] sm:$0xf]  ;;  %v3343_v24 = vor.u32 %v4187_v12, %v3342_v11  ;;  %v3271_v25 = vor.u32 %v4169_v15, %v3270_v14 }
  0x30   :  { %2060 = vmatpush.bf16.msrb.mxu0 %v3175_v35  ;;  %v4247_v19 = vld [vmem:[%s6557_s1 + $0x574] sm:$0xf0]  ;;  %v3142_v21 = vld [vmem:[%s6557_s1 + $0x200] sm:$0xf]  ;;  %v3518_v22 = vld [vmem:[%s6557_s1 + $0x4f0] sm:$0xf]  ;;  %v3207_v29 = vor.u32 %v4153_v17, %v3206_v16 }
  0x31   :  { %2079 = vmatpush.bf16.msrb.mxu1 %v3239_v27  ;;  %v4137_v26 = vld [vmem:[%s6557_s1 + $0x204] sm:$0xf0]  ;;  %v3334_v27 = vld [vmem:[%s6557_s1 + $0x380] sm:$0xf]  ;;  %v2758_v30 = vld [vmem:[%s6558_s0 + $0x10] sm:$0xf]  ;;  %v3583_v34 = vor.u32 %v4247_v19, %v3582_v18 }
  0x32   :  { %2098 = vmatpush.bf16.msrb.mxu2 %v3303_v23  ;;  %v4231_v23 = vld [vmem:[%s6557_s1 + $0x4f4] sm:$0xf0]  ;;  %v4185_v28 = vld [vmem:[%s6557_s1 + $0x384] sm:$0xf0]  ;;  %v4038_v32 = vld [vmem:[%s6558_s0 + $0x14] sm:$0xf]  ;;  %v3143_v42 = vor.u32 %v4137_v26, %v3142_v21 }
  0x33   :  { %2117 = vmatpush.bf16.msrb.mxu3 %v3367_v39  ;;  %1994 = vmatmul.bf16.gmra.mxu0 %v4754_v44  ;;  %v4047_v31 = vld [vmem:[%s6558_s0 + $0x54] sm:$0xf0]  ;;  %v2760_v33 = vld [vmem:[%s6558_s0 + $0x58] sm:$0xf0]  ;;  %v3454_v35 = vld [vmem:[%s6557_s1 + $0x470] sm:$0xf]  ;;  %v3519_v38 = vor.u32 %v4231_v23, %v3518_v22  ;;  %v3335_v47 = vor.u32 %v4185_v28, %v3334_v27 }
  0x34   :  { %2013 = vmatmul.bf16.gmra.mxu1 %v4765_v50  ;;  %2061 = vmatpush.bf16.msrb.mxu0 %v3167_v58  ;;  %v4215_v36 = vld [vmem:[%s6557_s1 + $0x474] sm:$0xf0]  ;;  %v3646_v37 = vld [vmem:[%s6557_s1 + $0x5f0] sm:$0xf]  ;;  %v4245_v41 = vld [vmem:[%s6557_s1 + $0x564] sm:$0xf0]  ;;  %v4912_v1 = vor.u32 %v4038_v32, %v2760_v33 }
  0x35   :  { %2080 = vmatpush.bf16.msrb.mxu1 %v3231_v45  ;;  %2032 = vmatmul.bf16.gmra.mxu2 %v4767_v51  ;;  %v4263_v39 = vld [vmem:[%s6557_s1 + $0x5f4] sm:$0xf0]  ;;  %v4048_v45 = vld [vmem:[%s6558_s0 + $0x5c] sm:$0xf0]  ;;  %v4039_v46 = vld [vmem:[%s6558_s0 + $0x1c] sm:$0xf]  ;;  %v3455_v52 = vor.u32 %v4215_v36, %v3454_v35 }
  0x36   :  { %2099 = vmatpush.bf16.msrb.mxu2 %v3295_v40  ;;  %2051 = vmatmul.bf16.gmra.mxu3 %v4775_v56  ;;  %v3574_v40 = vld [vmem:[%s6557_s1 + $0x560] sm:$0xf]  ;;  %v2766_v43 = vld [vmem:[%s6558_s0 + $0x18] sm:$0xf]  ;;  %v2768_v49 = vld [vmem:[%s6558_s0 + $0x60] sm:$0xf0] }
  0x37   :  { %2118 = vmatpush.bf16.msrb.mxu3 %v3359_v59  ;;  %v3446_v55 = vld [vmem:[%s6557_s1 + $0x460] sm:$0xf]  ;;  %v4213_v58 = vld [vmem:[%s6557_s1 + $0x464] sm:$0xf0]  ;;  %v3647_v59 = vor.u32 %v4263_v39, %v3646_v37  ;;  %v3566_v3 = vld [vmem:[%s6557_s1 + $0x550] sm:$0xf]  ;;  %v4923_v5 = vor.u32 %v4048_v45, %v2766_v43 }
  0x38   :  { %2062 = vmatpush.bf16.msrb.mxu0 %v3159_v6  ;;  %v3510_v61 = vld [vmem:[%s6557_s1 + $0x4e0] sm:$0xf]  ;;  %v4229_v62 = vld [vmem:[%s6557_s1 + $0x4e4] sm:$0xf0]  ;;  %v4243_v4 = vld [vmem:[%s6557_s1 + $0x554] sm:$0xf0]  ;;  %v4925_v6 = vor.u32 %v4039_v46, %v2768_v49  ;;  %v3447_v7 = vor.u32 %v4213_v58, %v3446_v55 }
  0x39   :  { %2081 = vmatpush.bf16.msrb.mxu1 %v3223_v0  ;;  %v3638_v63 = vld [vmem:[%s6557_s1 + $0x5e0] sm:$0xf]  ;;  %v4910_v0 = vor.u32 %v4047_v31, %v2758_v30  ;;  %v4261_v2 = vld [vmem:[%s6557_s1 + $0x5e4] sm:$0xf0]  ;;  %v4211_v10 = vld [vmem:[%s6557_s1 + $0x454] sm:$0xf0]  ;;  %v3567_v12 = vor.u32 %v4243_v4, %v3566_v3 }
  0x3a   :  { %2100 = vmatpush.bf16.msrb.mxu2 %v3287_v60  ;;  %v3575_v60 = vor.u32 %v4245_v41, %v3574_v40  ;;  %v3639_v11 = vor.u32 %v4261_v2, %v3638_v63  ;;  %v4227_v14 = vld [vmem:[%s6557_s1 + $0x4d4] sm:$0xf0]  ;;  %v3630_v15 = vld [vmem:[%s6557_s1 + $0x5d0] sm:$0xf]  ;;  %v3558_v17 = vld [vmem:[%s6557_s1 + $0x540] sm:$0xf] }
  0x3b   :  { %2119 = vmatpush.bf16.msrb.mxu3 %v3351_v8  ;;  %v3511_v8 = vor.u32 %v4229_v62, %v3510_v61  ;;  %v4259_v16 = vld [vmem:[%s6557_s1 + $0x5d4] sm:$0xf0]  ;;  %v4241_v18 = vld [vmem:[%s6557_s1 + $0x544] sm:$0xf0]  ;;  %v3430_v21 = vld [vmem:[%s6557_s1 + $0x440] sm:$0xf] }
  0x3c   :  { %2063 = vmatpush.bf16.msrb.mxu0 %v3151_v20  ;;  %v4209_v22 = vld [vmem:[%s6557_s1 + $0x444] sm:$0xf0]  ;;  %v3631_v23 = vor.u32 %v4259_v16, %v3630_v15  ;;  %v3622_v27 = vld [vmem:[%s6557_s1 + $0x5c0] sm:$0xf]  ;;  %v4239_v30 = vld [vmem:[%s6557_s1 + $0x534] sm:$0xf0] }
  0x3d   :  { %2082 = vmatpush.bf16.msrb.mxu1 %v3215_v13  ;;  %v3502_v13 = vld [vmem:[%s6557_s1 + $0x4d0] sm:$0xf]  ;;  %v4225_v26 = vld [vmem:[%s6557_s1 + $0x4c4] sm:$0xf0]  ;;  %v3431_v31 = vor.u32 %v4209_v22, %v3430_v21  ;;  %v2830_v36 = vld [vmem:[%s6558_s0 + $0xa0] sm:$0xf] }
  0x3e   :  { %2101 = vmatpush.bf16.msrb.mxu2 %v3279_v9  ;;  %v3438_v9 = vld [vmem:[%s6557_s1 + $0x450] sm:$0xf]  ;;  %v3503_v20 = vor.u32 %v4227_v14, %v3502_v13  ;;  %v4257_v28 = vld [vmem:[%s6557_s1 + $0x5c4] sm:$0xf0]  ;;  %v2832_v39 = vld [vmem:[%s6558_s0 + $0xe8] sm:$0xf0] }
  0x3f   :  { %2120 = vmatpush.bf16.msrb.mxu3 %v3343_v24  ;;  %v3439_v19 = vor.u32 %v4211_v10, %v3438_v9  ;;  %v3559_v24 = vor.u32 %v4241_v18, %v3558_v17  ;;  %v3422_v33 = vld [vmem:[%s6557_s1 + $0x430] sm:$0xf]  ;;  %v3623_v35 = vor.u32 %v4257_v28, %v3622_v27  ;;  %v4065_v37 = vld [vmem:[%s6558_s0 + $0xe4] sm:$0xf0]  ;;  %v4255_v45 = vld [vmem:[%s6557_s1 + $0x5b4] sm:$0xf0] }
  0x40   :  { %2064 = vmatpush.bf16.msrb.mxu0 %v3143_v42  ;;  %v3486_v41 = vld [vmem:[%s6557_s1 + $0x4b0] sm:$0xf]  ;;  %v4223_v42 = vld [vmem:[%s6557_s1 + $0x4b4] sm:$0xf0]  ;;  %v3542_v46 = vld [vmem:[%s6557_s1 + $0x520] sm:$0xf] }
  0x41   :  { %2083 = vmatpush.bf16.msrb.mxu1 %v3207_v29  ;;  %v3550_v29 = vld [vmem:[%s6557_s1 + $0x530] sm:$0xf]  ;;  %v2838_v49 = vld [vmem:[%s6558_s0 + $0xa8] sm:$0xf]  ;;  %v4057_v55 = vld [vmem:[%s6558_s0 + $0xac] sm:$0xf] }
  0x42   :  { %2102 = vmatpush.bf16.msrb.mxu2 %v3271_v25  ;;  %v3494_v25 = vld [vmem:[%s6557_s1 + $0x4c0] sm:$0xf]  ;;  %v3551_v40 = vor.u32 %v4239_v30, %v3550_v29  ;;  %v3614_v43 = vld [vmem:[%s6557_s1 + $0x5b0] sm:$0xf]  ;;  %v2840_v58 = vld [vmem:[%s6558_s0 + $0xf0] sm:$0xf0] }
  0x43   :  { %2121 = vmatpush.bf16.msrb.mxu3 %v3335_v47  ;;  %2065 = vmatmul.bf16.vlgmr.msrb.gmra.mxu0 %v4910_v0  ;;  %v3495_v32 = vor.u32 %v4225_v26, %v3494_v25  ;;  %v4237_v47 = vld [vmem:[%s6557_s1 + $0x524] sm:$0xf0]  ;;  %v3414_v61 = vld [vmem:[%s6557_s1 + $0x420] sm:$0xf]  ;;  %v3615_v63 = vor.u32 %v4255_v45, %v3614_v43  ;;  %v5057_v14 = vor.u32 %v4057_v55, %v2840_v58  ;;  %v3406_v17 = vld [vmem:[%s6557_s1 + $0x410] sm:$0xf] }
  0x44   :  { %2133 = vmatpush.bf16.msra.mxu0 %v3455_v52  ;;  %2084 = vmatmul.bf16.vlgmr.msrb.gmra.mxu1 %v4912_v1  ;;  %v4066_v52 = vld [vmem:[%s6558_s0 + $0xec] sm:$0xf0]  ;;  %v4205_v62 = vld [vmem:[%s6557_s1 + $0x424] sm:$0xf0]  ;;  %v3543_v2 = vor.u32 %v4237_v47, %v3542_v46  ;;  %v3478_v3 = vld [vmem:[%s6557_s1 + $0x4a0] sm:$0xf] }
  0x45   :  { %2152 = vmatpush.bf16.msra.mxu1 %v3519_v38  ;;  %2103 = vmatmul.bf16.vlgmr.msrb.gmra.mxu2 %v4923_v5  ;;  %v4056_v38 = vld [vmem:[%s6558_s0 + $0xa4] sm:$0xf]  ;;  %v4221_v4 = vld [vmem:[%s6557_s1 + $0x4a4] sm:$0xf0]  ;;  %v5055_v13 = vor.u32 %v4066_v52, %v2838_v49  ;;  %v3415_v15 = vor.u32 %v4205_v62, %v3414_v61  ;;  %v4203_v18 = vld [vmem:[%s6557_s1 + $0x414] sm:$0xf0] }
  0x46   :  { %2171 = vmatpush.bf16.msra.mxu2 %v3583_v34  ;;  %2122 = vmatmul.bf16.vlgmr.msrb.gmra.mxu3 %v4925_v6  ;;  %v4207_v34 = vld [vmem:[%s6557_s1 + $0x434] sm:$0xf0]  ;;  %v5044_v9 = vor.u32 %v4056_v38, %v2832_v39  ;;  %v4253_v10 = vld [vmem:[%s6557_s1 + $0x5a4] sm:$0xf0]  ;;  %v3479_v16 = vor.u32 %v4221_v4, %v3478_v3  ;;  %v3470_v21 = vld [vmem:[%s6557_s1 + $0x490] sm:$0xf]  ;;  %v3407_v29 = vor.u32 %v4203_v18, %v3406_v17 }
  0x47   :  { %2190 = vmatpush.bf16.msra.mxu3 %v3647_v59  ;;  %v3423_v59 = vor.u32 %v4207_v34, %v3422_v33  ;;  %v4219_v22 = vld [vmem:[%s6557_s1 + $0x494] sm:$0xf0]  ;;  %v3526_v25 = vld [vmem:[%s6557_s1 + $0x500] sm:$0xf]  ;;  %v4233_v26 = vld [vmem:[%s6557_s1 + $0x504] sm:$0xf0] }
  0x48   :  { %2134 = vmatpush.bf16.msra.mxu0 %v3447_v7  ;;  %v3606_v7 = vld [vmem:[%s6557_s1 + $0x5a0] sm:$0xf]  ;;  %v3838_v27 = vld [vmem:[%s6557_s1 + $0x770] sm:$0xf]  ;;  %v4311_v28 = vld [vmem:[%s6557_s1 + $0x774] sm:$0xf0]  ;;  %v3471_v30 = vor.u32 %v4219_v22, %v3470_v21 }
  0x49   :  { %2153 = vmatpush.bf16.msra.mxu1 %v3511_v8  ;;  %v5042_v8 = vor.u32 %v4065_v37, %v2830_v36  ;;  %v3462_v33 = vld [vmem:[%s6557_s1 + $0x480] sm:$0xf]  ;;  %v4217_v36 = vld [vmem:[%s6557_s1 + $0x484] sm:$0xf0]  ;;  %v3839_v39 = vor.u32 %v4311_v28, %v3838_v27  ;;  %v4295_v43 = vld [vmem:[%s6557_s1 + $0x6f4] sm:$0xf0] }
  0x4a   :  { %2172 = vmatpush.bf16.msra.mxu2 %v3575_v60  ;;  %v3487_v60 = vor.u32 %v4223_v42, %v3486_v41  ;;  %v3590_v37 = vld [vmem:[%s6557_s1 + $0x580] sm:$0xf]  ;;  %v4249_v38 = vld [vmem:[%s6557_s1 + $0x584] sm:$0xf0]  ;;  %v4279_v41 = vld [vmem:[%s6557_s1 + $0x674] sm:$0xf0]  ;;  %v3463_v49 = vor.u32 %v4217_v36, %v3462_v33 }
  0x4b   :  { %2191 = vmatpush.bf16.msra.mxu3 %v3639_v11  ;;  %v3534_v11 = vld [vmem:[%s6557_s1 + $0x510] sm:$0xf]  ;;  %v4327_v46 = vld [vmem:[%s6557_s1 + $0x7f4] sm:$0xf0]  ;;  %v3830_v52 = vld [vmem:[%s6557_s1 + $0x760] sm:$0xf]  ;;  %v3591_v58 = vor.u32 %v4249_v38, %v3590_v37 }
  0x4c   :  { %2135 = vmatpush.bf16.msra.mxu0 %v3439_v19  ;;  %v3607_v19 = vor.u32 %v4253_v10, %v3606_v7  ;;  %v3774_v42 = vld [vmem:[%s6557_s1 + $0x6f0] sm:$0xf]  ;;  %v4309_v55 = vld [vmem:[%s6557_s1 + $0x764] sm:$0xf0]  ;;  %v4040_v61 = vld [vmem:[%s6558_s0 + $0x24] sm:$0xf] }
  0x4d   :  { %2154 = vmatpush.bf16.msra.mxu1 %v3503_v20  ;;  %v3902_v45 = vld [vmem:[%s6557_s1 + $0x7f0] sm:$0xf]  ;;  %v3702_v4 = vld [vmem:[%s6557_s1 + $0x660] sm:$0xf]  ;;  %v4277_v7 = vld [vmem:[%s6557_s1 + $0x664] sm:$0xf0] }
  0x4e   :  { %2173 = vmatpush.bf16.msra.mxu2 %v3567_v12  ;;  %v4235_v12 = vld [vmem:[%s6557_s1 + $0x514] sm:$0xf0]  ;;  %v3903_v3 = vor.u32 %v4327_v46, %v3902_v45  ;;  %v2782_v10 = vld [vmem:[%s6558_s0 + $0x28] sm:$0xf]  ;;  %v3766_v17 = vld [vmem:[%s6557_s1 + $0x6e0] sm:$0xf] }
  0x4f   :  { %2192 = vmatpush.bf16.msra.mxu3 %v3631_v23  ;;  %v3535_v20 = vor.u32 %v4235_v12, %v3534_v11  ;;  %v3598_v23 = vld [vmem:[%s6557_s1 + $0x590] sm:$0xf]  ;;  %v4041_v12 = vld [vmem:[%s6558_s0 + $0x2c] sm:$0xf]  ;;  %v4293_v18 = vld [vmem:[%s6557_s1 + $0x6e4] sm:$0xf0] }
  0x50   :  { %2136 = vmatpush.bf16.msra.mxu0 %v3431_v31  ;;  %v3398_v31 = vld [vmem:[%s6557_s1 + $0x400] sm:$0xf]  ;;  %v4050_v11 = vld [vmem:[%s6558_s0 + $0x6c] sm:$0xf0]  ;;  %v4325_v21 = vld [vmem:[%s6557_s1 + $0x7e4] sm:$0xf0] }
  0x51   :  { %2155 = vmatpush.bf16.msra.mxu1 %v3495_v32  ;;  %v4201_v32 = vld [vmem:[%s6557_s1 + $0x404] sm:$0xf0]  ;;  %v3822_v22 = vld [vmem:[%s6557_s1 + $0x750] sm:$0xf]  ;;  %v4275_v27 = vld [vmem:[%s6557_s1 + $0x654] sm:$0xf0]  ;;  %v5193_v28 = vor.u32 %v4050_v11, %v2782_v10 }
  0x52   :  { %2174 = vmatpush.bf16.msra.mxu2 %v3559_v24  ;;  %v4251_v24 = vld [vmem:[%s6557_s1 + $0x594] sm:$0xf0]  ;;  %v3399_v47 = vor.u32 %v4201_v32, %v3398_v31  ;;  %v3758_v32 = vld [vmem:[%s6557_s1 + $0x6d0] sm:$0xf]  ;;  %v3814_v38 = vld [vmem:[%s6557_s1 + $0x740] sm:$0xf] }
  0x53   :  { %2193 = vmatpush.bf16.msra.mxu3 %v3623_v35  ;;  %2070 = vmatmul.bf16.gmra.mxu0 %v5042_v8  ;;  %v3599_v34 = vor.u32 %v4251_v24, %v3598_v23  ;;  %v3527_v35 = vor.u32 %v4233_v26, %v3526_v25  ;;  %v4307_v25 = vld [vmem:[%s6557_s1 + $0x754] sm:$0xf0]  ;;  %v3694_v26 = vld [vmem:[%s6557_s1 + $0x650] sm:$0xf]  ;;  %v3750_v45 = vld [vmem:[%s6557_s1 + $0x6c0] sm:$0xf] }
  0x54   :  { %2137 = vmatpush.bf16.msra.mxu0 %v3423_v59  ;;  %2089 = vmatmul.bf16.gmra.mxu1 %v5044_v9  ;;  %v2774_v59 = vld [vmem:[%s6558_s0 + $0x20] sm:$0xf]  ;;  %v4291_v33 = vld [vmem:[%s6557_s1 + $0x6d4] sm:$0xf0]  ;;  %v3886_v36 = vld [vmem:[%s6557_s1 + $0x7d0] sm:$0xf] }
  0x55   :  { %2156 = vmatpush.bf16.msra.mxu1 %v3487_v60  ;;  %2108 = vmatmul.bf16.gmra.mxu2 %v5055_v13  ;;  %v4049_v60 = vld [vmem:[%s6558_s0 + $0x64] sm:$0xf0]  ;;  %v4323_v37 = vld [vmem:[%s6557_s1 + $0x7d4] sm:$0xf0]  ;;  %v4058_v10 = vld [vmem:[%s6558_s0 + $0xb4] sm:$0xf] }
  0x56   :  { %2175 = vmatpush.bf16.msra.mxu2 %v3551_v40  ;;  %2127 = vmatmul.bf16.gmra.mxu3 %v5057_v14  ;;  %v3710_v40 = vld [vmem:[%s6557_s1 + $0x670] sm:$0xf]  ;;  %v5180_v23 = vor.u32 %v4049_v60, %v2774_v59  ;;  %v4289_v46 = vld [vmem:[%s6557_s1 + $0x6c4] sm:$0xf0]  ;;  %v4303_v59 = vld [vmem:[%s6557_s1 + $0x734] sm:$0xf0] }
  0x57   :  { %2194 = vmatpush.bf16.msra.mxu3 %v3615_v63  ;;  %v3711_v62 = vor.u32 %v4279_v41, %v3710_v40  ;;  %v2776_v63 = vld [vmem:[%s6558_s0 + $0x68] sm:$0xf0]  ;;  %v3686_v40 = vld [vmem:[%s6557_s1 + $0x640] sm:$0xf]  ;;  %v4273_v41 = vld [vmem:[%s6557_s1 + $0x644] sm:$0xf0] }
  0x58   :  { %2138 = vmatpush.bf16.msra.mxu0 %v3415_v15  ;;  %v3831_v15 = vor.u32 %v4309_v55, %v3830_v52  ;;  %v5182_v24 = vor.u32 %v4040_v61, %v2776_v63  ;;  %v3878_v52 = vld [vmem:[%s6557_s1 + $0x7c0] sm:$0xf]  ;;  %v4321_v55 = vld [vmem:[%s6557_s1 + $0x7c4] sm:$0xf0]  ;;  %v3678_v60 = vld [vmem:[%s6557_s1 + $0x630] sm:$0xf] }
  0x59   :  { %2157 = vmatpush.bf16.msra.mxu1 %v3479_v16  ;;  %v2784_v16 = vld [vmem:[%s6558_s0 + $0x70] sm:$0xf0]  ;;  %v4271_v61 = vld [vmem:[%s6557_s1 + $0x634] sm:$0xf0]  ;;  %v3879_v63 = vor.u32 %v4321_v55, %v3878_v52  ;;  %v2848_v11 = vld [vmem:[%s6558_s0 + $0xf8] sm:$0xf0] }
  0x5a   :  { %2176 = vmatpush.bf16.msra.mxu2 %v3543_v2  ;;  %v3775_v2 = vor.u32 %v4295_v43, %v3774_v42  ;;  %v3759_v42 = vor.u32 %v4291_v33, %v3758_v32  ;;  %v3887_v43 = vor.u32 %v4323_v37, %v3886_v36  ;;  %v3734_v32 = vld [vmem:[%s6557_s1 + $0x6a0] sm:$0xf]  ;;  %v4285_v33 = vld [vmem:[%s6557_s1 + $0x6a4] sm:$0xf0]  ;;  %v3726_v52 = vld [vmem:[%s6557_s1 + $0x690] sm:$0xf] }
  0x5b   :  { %2195 = vmatpush.bf16.msra.mxu3 %v3607_v19  ;;  %v3703_v19 = vor.u32 %v4277_v7, %v3702_v4  ;;  %v2846_v4 = vld [vmem:[%s6558_s0 + $0xb0] sm:$0xf]  ;;  %v4067_v7 = vld [vmem:[%s6558_s0 + $0xf4] sm:$0xf0]  ;;  %v3862_v36 = vld [vmem:[%s6557_s1 + $0x7a0] sm:$0xf] }
  0x5c   :  { %2139 = vmatpush.bf16.msra.mxu0 %v3407_v29  ;;  %v5195_v29 = vor.u32 %v4041_v12, %v2784_v16  ;;  %v3870_v16 = vld [vmem:[%s6557_s1 + $0x7b0] sm:$0xf]  ;;  %v4317_v37 = vld [vmem:[%s6557_s1 + $0x7a4] sm:$0xf0]  ;;  %v4283_v55 = vld [vmem:[%s6557_s1 + $0x694] sm:$0xf0] }
  0x5d   :  { %2158 = vmatpush.bf16.msra.mxu1 %v3471_v30  ;;  %v3767_v30 = vor.u32 %v4293_v18, %v3766_v17  ;;  %v4319_v17 = vld [vmem:[%s6557_s1 + $0x7b4] sm:$0xf0]  ;;  %v3798_v18 = vld [vmem:[%s6557_s1 + $0x720] sm:$0xf] }
  0x5e   :  { %2177 = vmatpush.bf16.msra.mxu2 %v3535_v20  ;;  %v3894_v20 = vld [vmem:[%s6557_s1 + $0x7e0] sm:$0xf] }
  0x5f   :  { %2196 = vmatpush.bf16.msra.mxu3 %v3599_v34  ;;  %v3895_v31 = vor.u32 %v4325_v21, %v3894_v20  ;;  %v3823_v34 = vor.u32 %v4307_v25, %v3822_v22  ;;  %v3670_v20 = vld [vmem:[%s6557_s1 + $0x620] sm:$0xf]  ;;  %v4269_v21 = vld [vmem:[%s6557_s1 + $0x624] sm:$0xf0]  ;;  %v2854_v22 = vld [vmem:[%s6558_s0 + $0xb8] sm:$0xf] }
  0x60   :  { %2140 = vmatpush.bf16.msra.mxu0 %v3399_v47  ;;  %v4068_v25 = vld [vmem:[%s6558_s0 + $0xfc] sm:$0xf0] }
  0x61   :  { %2159 = vmatpush.bf16.msra.mxu1 %v3463_v49  ;;  %v3687_v49 = vor.u32 %v4273_v41, %v3686_v40  ;;  %v5314_v40 = vor.u32 %v4058_v10, %v2848_v11  ;;  %v4299_v41 = vld [vmem:[%s6557_s1 + $0x714] sm:$0xf0]  ;;  %v3966_v10 = vld [vmem:[%s6557_s1 + $0x870] sm:$0xf] }
  0x62   :  { %2178 = vmatpush.bf16.msra.mxu2 %v3527_v35  ;;  %v3695_v35 = vor.u32 %v4275_v27, %v3694_v26  ;;  %v4059_v26 = vld [vmem:[%s6558_s0 + $0xbc] sm:$0xf]  ;;  %v2856_v27 = vld [vmem:[%s6558_s0 + $0x100] sm:$0xf0]  ;;  %v4343_v11 = vld [vmem:[%s6557_s1 + $0x874] sm:$0xf0] }
  0x63   :  { %2197 = vmatpush.bf16.msra.mxu3 %v3591_v58  ;;  %2141 = vmatmul.bf16.vlgmr.msra.gmra.mxu0 %v5180_v23  ;;  %v3806_v58 = vld [vmem:[%s6557_s1 + $0x730] sm:$0xf] }
  0x64   :  { %2209 = vmatpush.bf16.msrb.mxu0 %v3711_v62  ;;  %2160 = vmatmul.bf16.vlgmr.msra.gmra.mxu1 %v5182_v24  ;;  %v3751_v62 = vor.u32 %v4289_v46, %v3750_v45  ;;  %v3807_v12 = vor.u32 %v4303_v59, %v3806_v58  ;;  %v5325_v45 = vor.u32 %v4068_v25, %v2854_v22  ;;  %v3854_v58 = vld [vmem:[%s6557_s1 + $0x790] sm:$0xf]  ;;  %v4359_v25 = vld [vmem:[%s6557_s1 + $0x8f4] sm:$0xf0] }
  0x65   :  { %2228 = vmatpush.bf16.msrb.mxu1 %v3775_v2  ;;  %2179 = vmatmul.bf16.vlgmr.msra.gmra.mxu2 %v5193_v28  ;;  %v3742_v2 = vld [vmem:[%s6557_s1 + $0x6b0] sm:$0xf]  ;;  %v5327_v46 = vor.u32 %v4059_v26, %v2856_v27  ;;  %v3967_v27 = vor.u32 %v4343_v11, %v3966_v10 }
  0x66   :  { %2247 = vmatpush.bf16.msrb.mxu2 %v3839_v39  ;;  %v4305_v39 = vld [vmem:[%s6557_s1 + $0x744] sm:$0xf0]  ;;  %2198 = vmatmul.bf16.vlgmr.msra.gmra.mxu3 %v5195_v29  ;;  %v4030_v22 = vld [vmem:[%s6557_s1 + $0x8f0] sm:$0xf] }
  0x67   :  { %2266 = vmatpush.bf16.msrb.mxu3 %v3903_v3  ;;  %v3815_v47 = vor.u32 %v4305_v39, %v3814_v38  ;;  %v4287_v3 = vld [vmem:[%s6557_s1 + $0x6b4] sm:$0xf0]  ;;  %v3790_v38 = vld [vmem:[%s6557_s1 + $0x710] sm:$0xf]  ;;  %v5312_v39 = vor.u32 %v4067_v7, %v2846_v4  ;;  %v4086_v4 = vld [vmem:[%s6557_s1 + $0x74] sm:$0xf] }
  0x68   :  { %2210 = vmatpush.bf16.msrb.mxu0 %v3703_v19  ;;  %v4301_v19 = vld [vmem:[%s6557_s1 + $0x724] sm:$0xf0]  ;;  %v3791_v59 = vor.u32 %v4299_v41, %v3790_v38  ;;  %v2944_v7 = vld [vmem:[%s6557_s1 + $0x78] sm:$0xf0]  ;;  %v2790_v38 = vld [vmem:[%s6558_s0 + $0x30] sm:$0xf] }
  0x69   :  { %2229 = vmatpush.bf16.msrb.mxu1 %v3767_v30  ;;  %v3743_v30 = vor.u32 %v4287_v3, %v3742_v2  ;;  %v3654_v2 = vld [vmem:[%s6557_s1 + $0x600] sm:$0xf]  ;;  %v4265_v3 = vld [vmem:[%s6557_s1 + $0x604] sm:$0xf0]  ;;  %v2947_v26 = vor.u32 %v4086_v4, %v2944_v7  ;;  %v4051_v41 = vld [vmem:[%s6558_s0 + $0x74] sm:$0xf0] }
  0x6a   :  { %2248 = vmatpush.bf16.msrb.mxu2 %v3831_v15  ;;  %v3679_v15 = vor.u32 %v4271_v61, %v3678_v60  ;;  %v4315_v61 = vld [vmem:[%s6557_s1 + $0x794] sm:$0xf0]  ;;  %v4082_v4 = vld [vmem:[%s6557_s1 + $0x54] sm:$0xf]  ;;  %v2928_v7 = vld [vmem:[%s6557_s1 + $0x58] sm:$0xf0] }
  0x6b   :  { %2267 = vmatpush.bf16.msrb.mxu3 %v3895_v31  ;;  %v3871_v31 = vor.u32 %v4319_v17, %v3870_v16  ;;  %v3718_v16 = vld [vmem:[%s6557_s1 + $0x680] sm:$0xf]  ;;  %v4281_v17 = vld [vmem:[%s6557_s1 + $0x684] sm:$0xf0] }
  0x6c   :  { %2211 = vmatpush.bf16.msrb.mxu0 %v3695_v35  ;;  %v3671_v35 = vor.u32 %v4269_v21, %v3670_v20  ;;  %v3655_v20 = vor.u32 %v4265_v3, %v3654_v2  ;;  %v4313_v21 = vld [vmem:[%s6557_s1 + $0x784] sm:$0xf0]  ;;  %v4043_v2 = vld [vmem:[%s6558_s0 + $0x3c] sm:$0xf]  ;;  %v2800_v3 = vld [vmem:[%s6558_s0 + $0x80] sm:$0xf0] }
  0x6d   :  { %2230 = vmatpush.bf16.msrb.mxu1 %v3759_v42  ;;  %v3662_v42 = vld [vmem:[%s6557_s1 + $0x610] sm:$0xf] }
  0x6e   :  { %2249 = vmatpush.bf16.msrb.mxu2 %v3823_v34  ;;  %v3799_v34 = vor.u32 %v4301_v19, %v3798_v18  ;;  %v3846_v18 = vld [vmem:[%s6557_s1 + $0x780] sm:$0xf] }
  0x6f   :  { %2268 = vmatpush.bf16.msrb.mxu3 %v3887_v43  ;;  %v4267_v43 = vld [vmem:[%s6557_s1 + $0x614] sm:$0xf0] }
  0x70   :  { %2212 = vmatpush.bf16.msrb.mxu0 %v3687_v49  ;;  %v3863_v49 = vor.u32 %v4317_v37, %v3862_v36  ;;  %v3663_v60 = vor.u32 %v4267_v43, %v3662_v42  ;;  %v3719_v36 = vor.u32 %v4281_v17, %v3718_v16  ;;  %v3847_v37 = vor.u32 %v4313_v21, %v3846_v18  ;;  %v4042_v42 = vld [vmem:[%s6558_s0 + $0x34] sm:$0xf]  ;;  %v2792_v43 = vld [vmem:[%s6558_s0 + $0x78] sm:$0xf0]  ;;  %v4014_v16 = vld [vmem:[%s6557_s1 + $0x8d0] sm:$0xf] }
  0x71   :  { %2231 = vmatpush.bf16.msrb.mxu1 %v3751_v62  ;;  %v3782_v62 = vld [vmem:[%s6557_s1 + $0x700] sm:$0xf]  ;;  %v5456_v17 = vor.u32 %v4051_v41, %v2790_v38  ;;  %v5458_v18 = vor.u32 %v4042_v42, %v2792_v43  ;;  %v2992_v21 = vld [vmem:[%s6557_s1 + $0xd8] sm:$0xf0]  ;;  %v4096_v38 = vld [vmem:[%s6557_s1 + $0xc4] sm:$0xf] }
  0x72   :  { %2250 = vmatpush.bf16.msrb.mxu2 %v3815_v47  ;;  %v3735_v47 = vor.u32 %v4285_v33, %v3734_v32  ;;  %v4084_v32 = vld [vmem:[%s6557_s1 + $0x64] sm:$0xf]  ;;  %v2936_v33 = vld [vmem:[%s6557_s1 + $0x68] sm:$0xf0] }
  0x73   :  { %2269 = vmatpush.bf16.msrb.mxu3 %v3879_v63  ;;  %v4297_v63 = vld [vmem:[%s6557_s1 + $0x704] sm:$0xf0]  ;;  %2146 = vmatmul.bf16.gmra.mxu0 %v5312_v39  ;;  %v2984_v41 = vld [vmem:[%s6557_s1 + $0xc8] sm:$0xf0] }
  0x74   :  { %2213 = vmatpush.bf16.msrb.mxu0 %v3679_v15  ;;  %2165 = vmatmul.bf16.gmra.mxu1 %v5314_v40  ;;  %v3855_v15 = vor.u32 %v4315_v61, %v3854_v58  ;;  %v3783_v19 = vor.u32 %v4297_v63, %v3782_v62  ;;  %v3000_v61 = vld [vmem:[%s6557_s1 + $0xe8] sm:$0xf0]  ;;  %v2798_v62 = vld [vmem:[%s6558_s0 + $0x38] sm:$0xf]  ;;  %v4052_v63 = vld [vmem:[%s6558_s0 + $0x7c] sm:$0xf0] }
  0x75   :  { %2232 = vmatpush.bf16.msrb.mxu1 %v3743_v30  ;;  %2184 = vmatmul.bf16.gmra.mxu2 %v5325_v45  ;;  %v4102_v30 = vld [vmem:[%s6557_s1 + $0xf4] sm:$0xf] }
  0x76   :  { %2251 = vmatpush.bf16.msrb.mxu2 %v3807_v12  ;;  %2203 = vmatmul.bf16.gmra.mxu3 %v5327_v46  ;;  %v3727_v12 = vor.u32 %v4283_v55, %v3726_v52  ;;  %v4022_v52 = vld [vmem:[%s6557_s1 + $0x8e0] sm:$0xf]  ;;  %v2939_v55 = vor.u32 %v4084_v32, %v2936_v33 }
  0x77   :  { %2270 = vmatpush.bf16.msrb.mxu3 %v3871_v31  ;;  %v3008_v31 = vld [vmem:[%s6557_s1 + $0xf8] sm:$0xf0] }
  0x78   :  { %2214 = vmatpush.bf16.msrb.mxu0 %v3671_v35  ;;  %v4341_v35 = vld [vmem:[%s6557_s1 + $0x864] sm:$0xf0] }
  0x79   :  { %2233 = vmatpush.bf16.msrb.mxu1 %v3735_v47  ;;  %v4031_v47 = vor.u32 %v4359_v25, %v4030_v22  ;;  %v5469_v22 = vor.u32 %v4052_v63, %v2798_v62  ;;  %v5471_v25 = vor.u32 %v4043_v2, %v2800_v3  ;;  %v4094_v62 = vld [vmem:[%s6557_s1 + $0xb4] sm:$0xf]  ;;  %v2976_v63 = vld [vmem:[%s6557_s1 + $0xb8] sm:$0xf0] }
  0x7a   :  { %2252 = vmatpush.bf16.msrb.mxu2 %v3799_v34  ;;  %v3958_v34 = vld [vmem:[%s6557_s1 + $0x860] sm:$0xf] }
  0x7b   :  { %2271 = vmatpush.bf16.msrb.mxu3 %v3863_v49  ;;  %v3011_v49 = vor.u32 %v4102_v30, %v3008_v31  ;;  %v3959_v58 = vor.u32 %v4341_v35, %v3958_v34  ;;  %v4080_v30 = vld [vmem:[%s6557_s1 + $0x44] sm:$0xf]  ;;  %v2920_v31 = vld [vmem:[%s6557_s1 + $0x48] sm:$0xf0]  ;;  %v3942_v34 = vld [vmem:[%s6557_s1 + $0x840] sm:$0xf] }
  0x7c   :  { %2215 = vmatpush.bf16.msrb.mxu0 %v3663_v60  ;;  %v4100_v60 = vld [vmem:[%s6557_s1 + $0xe4] sm:$0xf]  ;;  %v4337_v35 = vld [vmem:[%s6557_s1 + $0x844] sm:$0xf0]  ;;  %v2923_v42 = vor.u32 %v4080_v30, %v2920_v31  ;;  %v2968_v31 = vld [vmem:[%s6557_s1 + $0xa8] sm:$0xf0] }
  0x7d   :  { %2234 = vmatpush.bf16.msrb.mxu1 %v3727_v12  ;;  %v3003_v11 = vor.u32 %v4100_v60, %v3000_v61  ;;  %v3950_v12 = vld [vmem:[%s6557_s1 + $0x850] sm:$0xf]  ;;  %v3943_v43 = vor.u32 %v4337_v35, %v3942_v34  ;;  %v4351_v61 = vld [vmem:[%s6557_s1 + $0x8b4] sm:$0xf0]  ;;  %v4092_v30 = vld [vmem:[%s6557_s1 + $0xa4] sm:$0xf] }
  0x7e   :  { %2253 = vmatpush.bf16.msrb.mxu2 %v3791_v59  ;;  %v4357_v59 = vld [vmem:[%s6557_s1 + $0x8e4] sm:$0xf0]  ;;  %v3998_v60 = vld [vmem:[%s6557_s1 + $0x8b0] sm:$0xf]  ;;  %v4061_v34 = vld [vmem:[%s6558_s0 + $0xcc] sm:$0xf] }
  0x7f   :  { %2272 = vmatpush.bf16.msrb.mxu3 %v3855_v15  ;;  %v4023_v10 = vor.u32 %v4357_v59, %v4022_v52  ;;  %v4339_v15 = vld [vmem:[%s6557_s1 + $0x854] sm:$0xf0]  ;;  %v2872_v35 = vld [vmem:[%s6558_s0 + $0x110] sm:$0xf0] }
  0x80   :  { %2216 = vmatpush.bf16.msrb.mxu0 %v3655_v20  ;;  %v4098_v20 = vld [vmem:[%s6557_s1 + $0xd4] sm:$0xf]  ;;  %v4335_v59 = vld [vmem:[%s6557_s1 + $0x834] sm:$0xf0] }
  0x81   :  { %2235 = vmatpush.bf16.msrb.mxu1 %v3719_v36  ;;  %v2995_v33 = vor.u32 %v4098_v20, %v2992_v21  ;;  %v4006_v36 = vld [vmem:[%s6557_s1 + $0x8c0] sm:$0xf]  ;;  %v4333_v21 = vld [vmem:[%s6557_s1 + $0x824] sm:$0xf0] }
  0x82   :  { %2254 = vmatpush.bf16.msrb.mxu2 %v3783_v19  ;;  %v4355_v19 = vld [vmem:[%s6557_s1 + $0x8d4] sm:$0xf0]  ;;  %v3926_v20 = vld [vmem:[%s6557_s1 + $0x820] sm:$0xf] }
  0x83   :  { %2273 = vmatpush.bf16.msrb.mxu3 %v3847_v37  ;;  %v4015_v32 = vor.u32 %v4355_v19, %v4014_v16  ;;  %2217 = vmatmul.bf16.vlgmr.msrb.gmra.mxu0 %v5456_v17  ;;  %v4353_v37 = vld [vmem:[%s6557_s1 + $0x8c4] sm:$0xf0]  ;;  %v3999_v16 = vor.u32 %v4351_v61, %v3998_v60  ;;  %v2979_v19 = vor.u32 %v4094_v62, %v2976_v63  ;;  %v4090_v60 = vld [vmem:[%s6557_s1 + $0x94] sm:$0xf]  ;;  %v2960_v61 = vld [vmem:[%s6557_s1 + $0x98] sm:$0xf0] }
  0x84   :  { %2285 = vmatpush.bf16.msra.mxu0 %v3967_v27  ;;  %v3951_v27 = vor.u32 %v4339_v15, %v3950_v12  ;;  %2236 = vmatmul.bf16.vlgmr.msrb.gmra.mxu1 %v5458_v18  ;;  %v4007_v52 = vor.u32 %v4353_v37, %v4006_v36  ;;  %v4060_v12 = vld [vmem:[%s6558_s0 + $0xc4] sm:$0xf]  ;;  %v2864_v15 = vld [vmem:[%s6558_s0 + $0x108] sm:$0xf0]  ;;  %v3927_v37 = vor.u32 %v4333_v21, %v3926_v20 }
  0x85   :  { %2304 = vmatpush.bf16.msra.mxu1 %v4031_v47  ;;  %2255 = vmatmul.bf16.vlgmr.msrb.gmra.mxu2 %v5469_v22  ;;  %v4078_v47 = vld [vmem:[%s6557_s1 + $0x34] sm:$0xf]  ;;  %v5603_v63 = vor.u32 %v4061_v34, %v2872_v35  ;;  %v4088_v20 = vld [vmem:[%s6557_s1 + $0x84] sm:$0xf]  ;;  %v2952_v21 = vld [vmem:[%s6557_s1 + $0x88] sm:$0xf0] }
  0x86   :  { %2323 = vmatpush.bf16.msra.mxu2 %v2947_v26  ;;  %v2931_v26 = vor.u32 %v4082_v4, %v2928_v7  ;;  %2274 = vmatmul.bf16.vlgmr.msrb.gmra.mxu3 %v5471_v25  ;;  %v4076_v4 = vld [vmem:[%s6557_s1 + $0x24] sm:$0xf]  ;;  %v2904_v7 = vld [vmem:[%s6557_s1 + $0x28] sm:$0xf0]  ;;  %v3136_v35 = vld [vmem:[%s6557_s1 + $0x1f8] sm:$0xf0] }
  0x87   :  { %2342 = vmatpush.bf16.msra.mxu3 %v3011_v49  ;;  %v2912_v49 = vld [vmem:[%s6557_s1 + $0x38] sm:$0xf0]  ;;  %v2907_v36 = vor.u32 %v4076_v4, %v2904_v7  ;;  %v2888_v7 = vld [vmem:[%s6557_s1 + $0x8] sm:$0xf0] }
  0x88   :  { %2286 = vmatpush.bf16.msra.mxu0 %v3959_v58  ;;  %v3934_v58 = vld [vmem:[%s6557_s1 + $0x830] sm:$0xf]  ;;  %v2915_v2 = vor.u32 %v4078_v47, %v2912_v49  ;;  %v4331_v49 = vld [vmem:[%s6557_s1 + $0x814] sm:$0xf0] }
  0x89   :  { %2305 = vmatpush.bf16.msra.mxu1 %v4023_v10  ;;  %v3935_v3 = vor.u32 %v4335_v59, %v3934_v58  ;;  %v2862_v10 = vld [vmem:[%s6558_s0 + $0xc0] sm:$0xf]  ;;  %v3918_v47 = vld [vmem:[%s6557_s1 + $0x810] sm:$0xf]  ;;  %v5590_v58 = vor.u32 %v4060_v12, %v2864_v15  ;;  %v4347_v59 = vld [vmem:[%s6557_s1 + $0x894] sm:$0xf0]  ;;  %v2963_v15 = vor.u32 %v4090_v60, %v2960_v61 }
  0x8a   :  { %2324 = vmatpush.bf16.msra.mxu2 %v2939_v55  ;;  %v2987_v55 = vor.u32 %v4096_v38, %v2984_v41  ;;  %v4074_v38 = vld [vmem:[%s6557_s1 + $0x14] sm:$0xf]  ;;  %v2896_v41 = vld [vmem:[%s6557_s1 + $0x18] sm:$0xf0]  ;;  %v3919_v4 = vor.u32 %v4331_v49, %v3918_v47  ;;  %v4148_v47 = vld [vmem:[%s6557_s1 + $0x264] sm:$0xf] }
  0x8b   :  { %2343 = vmatpush.bf16.msra.mxu3 %v3003_v11  ;;  %v4069_v11 = vld [vmem:[%s6558_s0 + $0x104] sm:$0xf0]  ;;  %v3192_v49 = vld [vmem:[%s6557_s1 + $0x268] sm:$0xf0]  ;;  %v4116_v60 = vld [vmem:[%s6557_s1 + $0x164] sm:$0xf] }
  0x8c   :  { %2287 = vmatpush.bf16.msra.mxu0 %v3951_v27  ;;  %v4349_v27 = vld [vmem:[%s6557_s1 + $0x8a4] sm:$0xf0]  ;;  %v3064_v61 = vld [vmem:[%s6557_s1 + $0x168] sm:$0xf0] }
  0x8d   :  { %2306 = vmatpush.bf16.msra.mxu1 %v4015_v32  ;;  %v2870_v32 = vld [vmem:[%s6558_s0 + $0xc8] sm:$0xf] }
  0x8e   :  { %2325 = vmatpush.bf16.msra.mxu2 %v2931_v26  ;;  %v3990_v26 = vld [vmem:[%s6557_s1 + $0x8a0] sm:$0xf] }
  0x8f   :  { %2344 = vmatpush.bf16.msra.mxu3 %v2995_v33  ;;  %v4070_v33 = vld [vmem:[%s6558_s0 + $0x10c] sm:$0xf0] }
  0x90   :  { %2288 = vmatpush.bf16.msra.mxu0 %v3943_v43  ;;  %v2971_v43 = vor.u32 %v4092_v30, %v2968_v31  ;;  %v5601_v62 = vor.u32 %v4070_v33, %v2870_v32  ;;  %v4118_v30 = vld [vmem:[%s6557_s1 + $0x174] sm:$0xf]  ;;  %v3072_v31 = vld [vmem:[%s6557_s1 + $0x178] sm:$0xf0] }
  0x91   :  { %2307 = vmatpush.bf16.msra.mxu1 %v4007_v52  ;;  %v3982_v52 = vld [vmem:[%s6557_s1 + $0x890] sm:$0xf]  ;;  %v4134_v32 = vld [vmem:[%s6557_s1 + $0x1f4] sm:$0xf] }
  0x92   :  { %2326 = vmatpush.bf16.msra.mxu2 %v2923_v42  ;;  %v3991_v42 = vor.u32 %v4349_v27, %v3990_v26  ;;  %v3983_v12 = vor.u32 %v4347_v59, %v3982_v52  ;;  %v4150_v26 = vld [vmem:[%s6557_s1 + $0x274] sm:$0xf]  ;;  %v3200_v27 = vld [vmem:[%s6557_s1 + $0x278] sm:$0xf0]  ;;  %v3139_v52 = vor.u32 %v4134_v32, %v3136_v35 }
  0x93   :  { %2345 = vmatpush.bf16.msra.mxu3 %v2987_v55  ;;  %v5588_v55 = vor.u32 %v4069_v11, %v2862_v10  ;;  %v3910_v10 = vld [vmem:[%s6557_s1 + $0x800] sm:$0xf]  ;;  %v4329_v11 = vld [vmem:[%s6557_s1 + $0x804] sm:$0xf0]  ;;  %v4130_v32 = vld [vmem:[%s6557_s1 + $0x1d4] sm:$0xf] }
  0x94   :  { %2289 = vmatpush.bf16.msra.mxu0 %v3935_v3  ;;  %v2899_v3 = vor.u32 %v4074_v38, %v2896_v41  ;;  %2241 = vmatmul.bf16.gmra.mxu1 %v5590_v58  ;;  %v3911_v34 = vor.u32 %v4329_v11, %v3910_v10  ;;  %v2955_v41 = vor.u32 %v4088_v20, %v2952_v21  ;;  %v2806_v10 = vld [vmem:[%s6558_s0 + $0x40] sm:$0xf] }
  0x95   :  { %2308 = vmatpush.bf16.msra.mxu1 %v3999_v16  ;;  %v3974_v16 = vld [vmem:[%s6557_s1 + $0x880] sm:$0xf]  ;;  %2222 = vmatmul.bf16.gmra.mxu0 %v5588_v55  ;;  %v3195_v11 = vor.u32 %v4148_v47, %v3192_v49  ;;  %v4144_v49 = vld [vmem:[%s6557_s1 + $0x244] sm:$0xf] }
  0x96   :  { %2327 = vmatpush.bf16.msra.mxu2 %v2915_v2  ;;  %v4072_v2 = vld [vmem:[%s6557_s1 + $0x4] sm:$0xf]  ;;  %2279 = vmatmul.bf16.gmra.mxu3 %v5603_v63 }
  0x97   :  { %2346 = vmatpush.bf16.msra.mxu3 %v2979_v19  ;;  %v4345_v19 = vld [vmem:[%s6557_s1 + $0x884] sm:$0xf0]  ;;  %2260 = vmatmul.bf16.gmra.mxu2 %v5601_v62  ;;  %v2891_v33 = vor.u32 %v4072_v2, %v2888_v7  ;;  %v4132_v2 = vld [vmem:[%s6557_s1 + $0x1e4] sm:$0xf]  ;;  %v3256_v7 = vld [vmem:[%s6557_s1 + $0x2e8] sm:$0xf0] }
  0x98   :  { %2290 = vmatpush.bf16.msra.mxu0 %v3927_v37  ;;  %v3264_v37 = vld [vmem:[%s6557_s1 + $0x2f8] sm:$0xf0]  ;;  %v3975_v38 = vor.u32 %v4345_v19, %v3974_v16  ;;  %v4044_v16 = vld [vmem:[%s6558_s0 + $0x44] sm:$0xf]  ;;  %v2808_v19 = vld [vmem:[%s6558_s0 + $0x88] sm:$0xf0] }
  0x99   :  { %2309 = vmatpush.bf16.msra.mxu1 %v3991_v42  ;;  %v3203_v42 = vor.u32 %v4150_v26, %v3200_v27  ;;  %v4146_v26 = vld [vmem:[%s6557_s1 + $0x254] sm:$0xf]  ;;  %v3184_v27 = vld [vmem:[%s6557_s1 + $0x258] sm:$0xf0]  ;;  %v5710_v35 = vor.u32 %v4044_v16, %v2808_v19 }
  0x9a   :  { %2328 = vmatpush.bf16.msra.mxu2 %v2907_v36  ;;  %v4166_v36 = vld [vmem:[%s6557_s1 + $0x2f4] sm:$0xf]  ;;  %v3168_v16 = vld [vmem:[%s6557_s1 + $0x238] sm:$0xf0] }
  0x9b   :  { %2347 = vmatpush.bf16.msra.mxu3 %v2971_v43  ;;  %v3075_v43 = vor.u32 %v4118_v30, %v3072_v31  ;;  %v3267_v59 = vor.u32 %v4166_v36, %v3264_v37  ;;  %v4114_v30 = vld [vmem:[%s6557_s1 + $0x154] sm:$0xf]  ;;  %v3056_v31 = vld [vmem:[%s6557_s1 + $0x158] sm:$0xf0] }
  0x9c   :  { %2291 = vmatpush.bf16.msra.mxu0 %v3919_v4  ;;  %v4164_v4 = vld [vmem:[%s6557_s1 + $0x2e4] sm:$0xf]  ;;  %v3120_v36 = vld [vmem:[%s6557_s1 + $0x1d8] sm:$0xf0]  ;;  %v4162_v37 = vld [vmem:[%s6557_s1 + $0x2d4] sm:$0xf]  ;;  %v3059_v47 = vor.u32 %v4114_v30, %v3056_v31 }
  0x9d   :  { %2310 = vmatpush.bf16.msra.mxu1 %v3983_v12  ;;  %v3067_v12 = vor.u32 %v4116_v60, %v3064_v61  ;;  %v3259_v21 = vor.u32 %v4164_v4, %v3256_v7  ;;  %v4112_v61 = vld [vmem:[%s6557_s1 + $0x144] sm:$0xf]  ;;  %v3112_v4 = vld [vmem:[%s6557_s1 + $0x1c8] sm:$0xf0] }
  0x9e   :  { %2329 = vmatpush.bf16.msra.mxu2 %v2899_v3  ;;  %v3128_v3 = vld [vmem:[%s6557_s1 + $0x1e8] sm:$0xf0]  ;;  %v4160_v7 = vld [vmem:[%s6557_s1 + $0x2c4] sm:$0xf] }
  0x9f   :  { %2348 = vmatpush.bf16.msra.mxu3 %v2963_v15  ;;  %v4053_v15 = vld [vmem:[%s6558_s0 + $0x84] sm:$0xf0]  ;;  %v3131_v20 = vor.u32 %v4132_v2, %v3128_v3  ;;  %v3048_v2 = vld [vmem:[%s6557_s1 + $0x148] sm:$0xf0]  ;;  %v4128_v3 = vld [vmem:[%s6557_s1 + $0x1c4] sm:$0xf] }
  0xa0   :  { %2292 = vmatpush.bf16.msra.mxu0 %v3911_v34  ;;  %v5708_v34 = vor.u32 %v4053_v15, %v2806_v10  ;;  %v3240_v10 = vld [vmem:[%s6557_s1 + $0x2c8] sm:$0xf0]  ;;  %v4142_v15 = vld [vmem:[%s6557_s1 + $0x234] sm:$0xf] }
  0xa1   :  { %2311 = vmatpush.bf16.msra.mxu1 %v3975_v38  ;;  %v3248_v38 = vld [vmem:[%s6557_s1 + $0x2d8] sm:$0xf0] }
  0xa2   :  { %2330 = vmatpush.bf16.msra.mxu2 %v2891_v33  ;;  %v1990_v33 = vpop.f32.mrf.mxu0  ;;  %v3251_v60 = vor.u32 %v4162_v37, %v3248_v38  ;;  %v3171_v38 = vor.u32 %v4142_v15, %v3168_v16  ;;  %v2880_v15 = vld [vmem:[%s6558_s0 + $0x118] sm:$0xf0] }
  0xa3   :  { %2349 = vmatpush.bf16.msra.mxu3 %v2955_v41  ;;  %v2009_v41 = vpop.f32.mrf.mxu1 }
  0xa4   :  { %2361 = vmatpush.bf16.msrb.mxu0 %v3075_v43  ;;  %v3187_v43 = vor.u32 %v4146_v26, %v3184_v27  ;;  %2312 = vmatmul.bf16.vlgmr.msra.gmra.mxu1 %v5710_v35  ;;  %v4126_v26 = vld [vmem:[%s6557_s1 + $0x1b4] sm:$0xf] }
  0xa5   :  { %2380 = vmatpush.bf16.msrb.mxu1 %v3139_v52  ;;  %v3176_v52 = vld [vmem:[%s6557_s1 + $0x248] sm:$0xf0]  ;;  %2293 = vmatmul.bf16.vlgmr.msra.gmra.mxu0 %v5708_v34 }
  0xa6   :  { %2399 = vmatpush.bf16.msrb.mxu2 %v3203_v42  ;;  %v2010_v42 = vadd.f32 %v2009_v41, %v1990_v33  ;;  %2350 = vmatmul.bf16.vlgmr.msra.gmra.mxu3 %v4633_v53  ;;  %v3040_v53 = vld [vmem:[%s6557_s1 + $0x138] sm:$0xf0]  ;;  %v4158_v33 = vld [vmem:[%s6557_s1 + $0x2b4] sm:$0xf] }
  0xa7   :  { %2418 = vmatpush.bf16.msrb.mxu3 %v3267_v59  ;;  %v3123_v59 = vor.u32 %v4130_v32, %v3120_v36  ;;  %2331 = vmatmul.bf16.vlgmr.msra.gmra.mxu2 %v4622_v48  ;;  %v4110_v48 = vld [vmem:[%s6557_s1 + $0x134] sm:$0xf]  ;;  %v3104_v32 = vld [vmem:[%s6557_s1 + $0x1b8] sm:$0xf0] }
  0xa8   :  { %2362 = vmatpush.bf16.msrb.mxu0 %v3067_v12  ;;  %v3051_v12 = vor.u32 %v4112_v61, %v3048_v2  ;;  %v2028_v19 = vpop.f32.mrf.mxu2  ;;  %v3232_v36 = vld [vmem:[%s6557_s1 + $0x2b8] sm:$0xf0]  ;;  %v4108_v61 = vld [vmem:[%s6557_s1 + $0x124] sm:$0xf]  ;;  %v3032_v2 = vld [vmem:[%s6557_s1 + $0x128] sm:$0xf0] }
  0xa9   :  { %2381 = vmatpush.bf16.msrb.mxu1 %v3131_v20  ;;  %v3115_v20 = vor.u32 %v4128_v3, %v3112_v4  ;;  %v2029_v27 = vadd.f32 %v2028_v19, %v2010_v42  ;;  %v2047_v30 = vpop.f32.mrf.mxu3  ;;  %v3043_v42 = vor.u32 %v4110_v48, %v3040_v53  ;;  %v4124_v3 = vld [vmem:[%s6557_s1 + $0x1a4] sm:$0xf]  ;;  %v3096_v4 = vld [vmem:[%s6557_s1 + $0x1a8] sm:$0xf0]  ;;  %v3035_v19 = vor.u32 %v4108_v61, %v3032_v2 }
  0xaa   :  { %2400 = vmatpush.bf16.msrb.mxu2 %v3195_v11  ;;  %v3179_v11 = vor.u32 %v4144_v49, %v3176_v52  ;;  %v1992_v31 = vpop.f32.mrf.mxu0  ;;  %v3160_v49 = vld [vmem:[%s6557_s1 + $0x228] sm:$0xf0]  ;;  %v2878_v52 = vld [vmem:[%s6558_s0 + $0xd0] sm:$0xf]  ;;  %v3099_v53 = vor.u32 %v4124_v3, %v3096_v4  ;;  %v4104_v4 = vld [vmem:[%s6557_s1 + $0x104] sm:$0xf] }
  0xab   :  { %2419 = vmatpush.bf16.msrb.mxu3 %v3259_v21  ;;  %v3243_v21 = vor.u32 %v4160_v7, %v3240_v10  ;;  %v2011_v37 = vpop.f32.mrf.mxu1  ;;  %v5773_v41 = vadd.f32 %v2047_v30, %v2029_v27  ;;  %v4156_v7 = vld [vmem:[%s6557_s1 + $0x2a4] sm:$0xf]  ;;  %v3224_v10 = vld [vmem:[%s6557_s1 + $0x2a8] sm:$0xf0]  ;;  %v4106_v27 = vld [vmem:[%s6557_s1 + $0x114] sm:$0xf] }
  0xac   :  { %2363 = vmatpush.bf16.msrb.mxu0 %v3059_v47  ;;  %v4140_v47 = vld [vmem:[%s6557_s1 + $0x224] sm:$0xf]  ;;  %v3024_v30 = vld [vmem:[%s6557_s1 + $0x118] sm:$0xf0]  ;;  %v3144_v3 = vld [vmem:[%s6557_s1 + $0x208] sm:$0xf0] }
  0xad   :  { %2382 = vmatpush.bf16.msrb.mxu1 %v3123_v59  ;;  %v3107_v59 = vor.u32 %v4126_v26, %v3104_v32  ;;  %v3163_v16 = vor.u32 %v4140_v47, %v3160_v49  ;;  %v3227_v26 = vor.u32 %v4156_v7, %v3224_v10  ;;  %v4154_v47 = vld [vmem:[%s6557_s1 + $0x294] sm:$0xf]  ;;  %v3216_v49 = vld [vmem:[%s6557_s1 + $0x298] sm:$0xf0]  ;;  %v3027_v2 = vor.u32 %v4106_v27, %v3024_v30  ;;  %v3016_v7 = vld [vmem:[%s6557_s1 + $0x108] sm:$0xf0] }
  0xae   :  { %2401 = vmatpush.bf16.msrb.mxu2 %v3187_v43  ;;  %v2012_v43 = vadd.f32 %v2011_v37, %v1992_v31  ;;  %v4122_v31 = vld [vmem:[%s6557_s1 + $0x194] sm:$0xf]  ;;  %v3019_v30 = vor.u32 %v4104_v4, %v3016_v7 }
  0xaf   :  { %2420 = vmatpush.bf16.msrb.mxu3 %v3251_v60  ;;  %v3235_v60 = vor.u32 %v4158_v33, %v3232_v36 }
  0xb0   :  { %2364 = vmatpush.bf16.msrb.mxu0 %v3051_v12  ;;  %v4062_v12 = vld [vmem:[%s6558_s0 + $0xd4] sm:$0xf]  ;;  %v2030_v48 = vpop.f32.mrf.mxu2 }
  0xb1   :  { %2383 = vmatpush.bf16.msrb.mxu1 %v3115_v20  ;;  %v4138_v20 = vld [vmem:[%s6557_s1 + $0x214] sm:$0xf]  ;;  %v2031_v32 = vadd.f32 %v2030_v48, %v2012_v43  ;;  %v2049_v33 = vpop.f32.mrf.mxu3 }
  0xb2   :  { %2402 = vmatpush.bf16.msrb.mxu2 %v3179_v11  ;;  %v4071_v11 = vld [vmem:[%s6558_s0 + $0x114] sm:$0xf0]  ;;  %v1995_v36 = vpop.f32.mrf.mxu0  ;;  %v4182_v48 = vld [vmem:[%s6557_s1 + $0x374] sm:$0xf] }
  0xb3   :  { %2421 = vmatpush.bf16.msrb.mxu3 %v3243_v21  ;;  %v3152_v21 = vld [vmem:[%s6557_s1 + $0x218] sm:$0xf0]  ;;  %v5826_v37 = vor.u32 %v4071_v11, %v2878_v52  ;;  %v4136_v52 = vld [vmem:[%s6557_s1 + $0x204] sm:$0xf]  ;;  %v3219_v11 = vor.u32 %v4154_v47, %v3216_v49 }
  0xb4   :  { %2365 = vmatpush.bf16.msrb.mxu0 %v3043_v42  ;;  %v3088_v42 = vld [vmem:[%s6557_s1 + $0x198] sm:$0xf0]  ;;  %v3155_v43 = vor.u32 %v4138_v20, %v3152_v21  ;;  %v4214_v20 = vld [vmem:[%s6557_s1 + $0x474] sm:$0xf]  ;;  %v3147_v27 = vor.u32 %v4136_v52, %v3144_v3  ;;  %v4212_v52 = vld [vmem:[%s6557_s1 + $0x464] sm:$0xf] }
  0xb5   :  { %2384 = vmatpush.bf16.msrb.mxu1 %v3107_v59  ;;  %v2014_v59 = vpop.f32.mrf.mxu1  ;;  %v3091_v10 = vor.u32 %v4122_v31, %v3088_v42  ;;  %2298 = vmatmul.bf16.gmra.mxu0 %v5826_v37  ;;  %v3456_v21 = vld [vmem:[%s6557_s1 + $0x478] sm:$0xf0] }
  0xb6   :  { %2403 = vmatpush.bf16.msrb.mxu2 %v3171_v38  ;;  %v5828_v38 = vor.u32 %v4062_v12, %v2880_v15  ;;  %v2015_v61 = vadd.f32 %v2014_v59, %v1995_v36  ;;  %v4120_v12 = vld [vmem:[%s6557_s1 + $0x184] sm:$0xf]  ;;  %v3080_v15 = vld [vmem:[%s6557_s1 + $0x188] sm:$0xf0]  ;;  %2355 = vmatmul.bf16.gmra.mxu3 %v4765_v50  ;;  %v4230_v50 = vld [vmem:[%s6557_s1 + $0x4f4] sm:$0xf]  ;;  %v3459_v59 = vor.u32 %v4214_v20, %v3456_v21 }
  0xb7   :  { %2422 = vmatpush.bf16.msrb.mxu3 %v3235_v60  ;;  %v5842_v60 = vadd.f32 %v2049_v33, %v2031_v32  ;;  %2336 = vmatmul.bf16.gmra.mxu2 %v4754_v44  ;;  %v3392_v44 = vld [vmem:[%s6557_s1 + $0x3f8] sm:$0xf0]  ;;  %v3083_v33 = vor.u32 %v4120_v12, %v3080_v15  ;;  %v3512_v20 = vld [vmem:[%s6557_s1 + $0x4e8] sm:$0xf0] }
  0xb8   :  { %2366 = vmatpush.bf16.msrb.mxu0 %v3035_v19  ;;  %2317 = vmatmul.bf16.gmra.mxu1 %v5828_v38  ;;  %v3208_v19 = vld [vmem:[%s6557_s1 + $0x288] sm:$0xf0]  ;;  %v3520_v31 = vld [vmem:[%s6557_s1 + $0x4f8] sm:$0xf0]  ;;  %v2033_v32 = vpop.f32.mrf.mxu2 }
  0xb9   :  { %2385 = vmatpush.bf16.msrb.mxu1 %v3099_v53  ;;  %v3328_v53 = vld [vmem:[%s6557_s1 + $0x378] sm:$0xf0]  ;;  %v2034_v42 = vadd.f32 %v2033_v32, %v2015_v61  ;;  %v2052_v47 = vpop.f32.mrf.mxu3  ;;  %v3523_v7 = vor.u32 %v4230_v50, %v3520_v31  ;;  %v3320_v61 = vld [vmem:[%s6557_s1 + $0x368] sm:$0xf0]  ;;  %v4178_v50 = vld [vmem:[%s6557_s1 + $0x354] sm:$0xf] }
  0xba   :  { %2404 = vmatpush.bf16.msrb.mxu2 %v3163_v16  ;;  %v4152_v16 = vld [vmem:[%s6557_s1 + $0x284] sm:$0xf]  ;;  %v1997_v49 = vpop.f32.mrf.mxu0  ;;  %v3312_v31 = vld [vmem:[%s6557_s1 + $0x358] sm:$0xf0]  ;;  %v4194_v32 = vld [vmem:[%s6557_s1 + $0x3d4] sm:$0xf] }
  0xbb   :  { %2423 = vmatpush.bf16.msrb.mxu3 %v3227_v26  ;;  %v4198_v26 = vld [vmem:[%s6557_s1 + $0x3f4] sm:$0xf]  ;;  %v3211_v36 = vor.u32 %v4152_v16, %v3208_v19  ;;  %v5908_v12 = vadd.f32 %v2052_v47, %v2034_v42  ;;  %v3384_v16 = vld [vmem:[%s6557_s1 + $0x3e8] sm:$0xf0]  ;;  %v4228_v19 = vld [vmem:[%s6557_s1 + $0x4e4] sm:$0xf] }
  0xbc   :  { %2367 = vmatpush.bf16.msrb.mxu0 %v3027_v2  ;;  %v3448_v2 = vld [vmem:[%s6557_s1 + $0x468] sm:$0xf0]  ;;  %v3395_v4 = vor.u32 %v4198_v26, %v3392_v44  ;;  %v3515_v26 = vor.u32 %v4228_v19, %v3512_v20  ;;  %v3376_v42 = vld [vmem:[%s6557_s1 + $0x3d8] sm:$0xf0]  ;;  %v4226_v47 = vld [vmem:[%s6557_s1 + $0x4d4] sm:$0xf] }
  0xbd   :  { %2386 = vmatpush.bf16.msrb.mxu1 %v3091_v10  ;;  %v2016_v3 = vpop.f32.mrf.mxu1  ;;  %v4180_v10 = vld [vmem:[%s6557_s1 + $0x364] sm:$0xf]  ;;  %v3451_v21 = vor.u32 %v4212_v52, %v3448_v2  ;;  %v3368_v20 = vld [vmem:[%s6557_s1 + $0x3c8] sm:$0xf0] }
  0xbe   :  { %2405 = vmatpush.bf16.msrb.mxu2 %v3155_v43  ;;  %v3331_v43 = vor.u32 %v4182_v48, %v3328_v53  ;;  %v2017_v15 = vadd.f32 %v2016_v3, %v1997_v49  ;;  %v3323_v48 = vor.u32 %v4180_v10, %v3320_v61  ;;  %v3504_v49 = vld [vmem:[%s6557_s1 + $0x4d8] sm:$0xf0]  ;;  %v3432_v10 = vld [vmem:[%s6557_s1 + $0x448] sm:$0xf0]  ;;  %v3379_v61 = vor.u32 %v4194_v32, %v3376_v42 }
  0xbf   :  { %2424 = vmatpush.bf16.msrb.mxu3 %v3219_v11  ;;  %v4196_v11 = vld [vmem:[%s6557_s1 + $0x3e4] sm:$0xf]  ;;  %v3360_v32 = vld [vmem:[%s6557_s1 + $0x3b8] sm:$0xf0] }
  0xc0   :  { %2368 = vmatpush.bf16.msrb.mxu0 %v3019_v30  ;;  %v3387_v53 = vor.u32 %v4196_v11, %v3384_v16  ;;  %v3440_v30 = vld [vmem:[%s6557_s1 + $0x458] sm:$0xf0]  ;;  %v2035_v44 = vpop.f32.mrf.mxu2  ;;  %v3507_v11 = vor.u32 %v4226_v47, %v3504_v49  ;;  %v4192_v16 = vld [vmem:[%s6557_s1 + $0x3c4] sm:$0xf] }
  0xc1   :  { %2387 = vmatpush.bf16.msrb.mxu1 %v3083_v33  ;;  %v2036_v33 = vadd.f32 %v2035_v44, %v2017_v15  ;;  %v4176_v15 = vld [vmem:[%s6557_s1 + $0x344] sm:$0xf]  ;;  %v4190_v44 = vld [vmem:[%s6557_s1 + $0x3b4] sm:$0xf] }
  0xc2   :  { %2406 = vmatpush.bf16.msrb.mxu2 %v3147_v27  ;;  %v4210_v27 = vld [vmem:[%s6557_s1 + $0x454] sm:$0xf] }
  0xc3   :  { %2425 = vmatpush.bf16.msrb.mxu3 %v3211_v36  ;;  %v2054_v36 = vpop.f32.mrf.mxu3  ;;  %v3443_v3 = vor.u32 %v4210_v27, %v3440_v30  ;;  %v3371_v27 = vor.u32 %v4192_v16, %v3368_v20  ;;  %v3352_v16 = vld [vmem:[%s6557_s1 + $0x3a8] sm:$0xf0] }
  0xc4   :  { %2437 = vmatpush.bf16.msra.mxu0 %v3331_v43  ;;  %v5943_v52 = vadd.f32 %v2054_v36, %v2036_v33  ;;  %v4222_v33 = vld [vmem:[%s6557_s1 + $0x4b4] sm:$0xf]  ;;  %v3488_v36 = vld [vmem:[%s6557_s1 + $0x4b8] sm:$0xf0]  ;;  %v3480_v20 = vld [vmem:[%s6557_s1 + $0x4a8] sm:$0xf0] }
  0xc5   :  { %2456 = vmatpush.bf16.msra.mxu1 %v3395_v4  ;;  %v2085_v43 = vpop.f32.mrf.mxu1  ;;  %v3315_v4 = vor.u32 %v4178_v50, %v3312_v31  ;;  %2369 = vmatmul.bf16.vlgmr.msrb.gmra.mxu0 %v4635_v54 }
  0xc6   :  { %2475 = vmatpush.bf16.msra.mxu2 %v3459_v59  ;;  %v2066_v59 = vpop.f32.mrf.mxu0  ;;  %2426 = vmatmul.bf16.vlgmr.msrb.gmra.mxu3 %v4912_v1  ;;  %v3296_v1 = vld [vmem:[%s6557_s1 + $0x338] sm:$0xf0] }
  0xc7   :  { %2494 = vmatpush.bf16.msra.mxu3 %v3523_v7  ;;  %v2067_v2 = vadd.f32 %v2066_v59, %v5773_v41  ;;  %v4208_v7 = vld [vmem:[%s6557_s1 + $0x444] sm:$0xf]  ;;  %v3304_v41 = vld [vmem:[%s6557_s1 + $0x348] sm:$0xf0]  ;;  %2407 = vmatmul.bf16.vlgmr.msrb.gmra.mxu2 %v4910_v0  ;;  %v4174_v0 = vld [vmem:[%s6557_s1 + $0x334] sm:$0xf] }
  0xc8   :  { %2438 = vmatpush.bf16.msra.mxu0 %v3323_v48  ;;  %2388 = vmatmul.bf16.vlgmr.msrb.gmra.mxu1 %v4643_v57  ;;  %v3496_v48 = vld [vmem:[%s6557_s1 + $0x4c8] sm:$0xf0]  ;;  %v3435_v54 = vor.u32 %v4208_v7, %v3432_v10  ;;  %v3307_v57 = vor.u32 %v4176_v15, %v3304_v41  ;;  %v2104_v50 = vpop.f32.mrf.mxu2  ;;  %v3363_v10 = vor.u32 %v4190_v44, %v3360_v32  ;;  %v4188_v15 = vld [vmem:[%s6557_s1 + $0x3a4] sm:$0xf]  ;;  %v3472_v32 = vld [vmem:[%s6557_s1 + $0x498] sm:$0xf0] }
  0xc9   :  { %2457 = vmatpush.bf16.msra.mxu1 %v3387_v53  ;;  %v2086_v19 = vadd.f32 %v2085_v43, %v2067_v2  ;;  %v4206_v53 = vld [vmem:[%s6557_s1 + $0x434] sm:$0xf]  ;;  %v3299_v2 = vor.u32 %v4174_v0, %v3296_v1 }
  0xca   :  { %2476 = vmatpush.bf16.msra.mxu2 %v3451_v21  ;;  %v4224_v21 = vld [vmem:[%s6557_s1 + $0x4c4] sm:$0xf]  ;;  %v4186_v0 = vld [vmem:[%s6557_s1 + $0x394] sm:$0xf] }
  0xcb   :  { %2495 = vmatpush.bf16.msra.mxu3 %v3515_v26  ;;  %v3424_v26 = vld [vmem:[%s6557_s1 + $0x438] sm:$0xf0]  ;;  %v3499_v30 = vor.u32 %v4224_v21, %v3496_v48  ;;  %v2123_v31 = vpop.f32.mrf.mxu3  ;;  %v2105_v42 = vadd.f32 %v2104_v50, %v2086_v19  ;;  %v4220_v19 = vld [vmem:[%s6557_s1 + $0x4a4] sm:$0xf] }
  0xcc   :  { %2439 = vmatpush.bf16.msra.mxu0 %v3315_v4  ;;  %v3427_v43 = vor.u32 %v4206_v53, %v3424_v26  ;;  %v3416_v4 = vld [vmem:[%s6557_s1 + $0x428] sm:$0xf0]  ;;  %v3355_v53 = vor.u32 %v4188_v15, %v3352_v16  ;;  %v3483_v26 = vor.u32 %v4220_v19, %v3480_v20  ;;  %v3344_v50 = vld [vmem:[%s6557_s1 + $0x398] sm:$0xf0]  ;;  %v4216_v15 = vld [vmem:[%s6557_s1 + $0x484] sm:$0xf] }
  0xcd   :  { %2458 = vmatpush.bf16.msra.mxu1 %v3379_v61  ;;  %v2087_v49 = vpop.f32.mrf.mxu1  ;;  %v6005_v7 = vadd.f32 %v2123_v31, %v2105_v42  ;;  %v3491_v61 = vor.u32 %v4222_v33, %v3488_v36  ;;  %v4218_v31 = vld [vmem:[%s6557_s1 + $0x494] sm:$0xf]  ;;  %v3464_v16 = vld [vmem:[%s6557_s1 + $0x488] sm:$0xf0]  ;;  %v3712_v20 = vld [vmem:[%s6557_s1 + $0x678] sm:$0xf0] }
  0xce   :  { %2477 = vmatpush.bf16.msra.mxu2 %v3443_v3  ;;  %v2068_v47 = vpop.f32.mrf.mxu0  ;;  %v4204_v3 = vld [vmem:[%s6557_s1 + $0x424] sm:$0xf]  ;;  %v4278_v19 = vld [vmem:[%s6557_s1 + $0x674] sm:$0xf] }
  0xcf   :  { %2496 = vmatpush.bf16.msra.mxu3 %v3507_v11  ;;  %v2069_v59 = vadd.f32 %v2068_v47, %v5842_v60  ;;  %v4172_v60 = vld [vmem:[%s6557_s1 + $0x324] sm:$0xf]  ;;  %v3288_v11 = vld [vmem:[%s6557_s1 + $0x328] sm:$0xf0]  ;;  %v3419_v21 = vor.u32 %v4204_v3, %v3416_v4 }
  0xd0   :  { %2440 = vmatpush.bf16.msra.mxu0 %v3307_v57  ;;  %v3291_v48 = vor.u32 %v4172_v60, %v3288_v11  ;;  %v3408_v57 = vld [vmem:[%s6557_s1 + $0x418] sm:$0xf0]  ;;  %v2106_v1 = vpop.f32.mrf.mxu2  ;;  %v4200_v47 = vld [vmem:[%s6557_s1 + $0x404] sm:$0xf]  ;;  %v3272_v4 = vld [vmem:[%s6557_s1 + $0x308] sm:$0xf0] }
  0xd1   :  { %2459 = vmatpush.bf16.msra.mxu1 %v3371_v27  ;;  %v2088_v41 = vadd.f32 %v2087_v49, %v2069_v59  ;;  %v4170_v27 = vld [vmem:[%s6557_s1 + $0x314] sm:$0xf]  ;;  %v4168_v3 = vld [vmem:[%s6557_s1 + $0x304] sm:$0xf]  ;;  %v3336_v11 = vld [vmem:[%s6557_s1 + $0x388] sm:$0xf0] }
  0xd2   :  { %2478 = vmatpush.bf16.msra.mxu2 %v3435_v54  ;;  %v4202_v54 = vld [vmem:[%s6557_s1 + $0x414] sm:$0xf]  ;;  %v4184_v60 = vld [vmem:[%s6557_s1 + $0x384] sm:$0xf] }
  0xd3   :  { %2497 = vmatpush.bf16.msra.mxu3 %v3499_v30  ;;  %v3280_v30 = vld [vmem:[%s6557_s1 + $0x318] sm:$0xf0]  ;;  %v2125_v44 = vpop.f32.mrf.mxu3  ;;  %v2107_v33 = vadd.f32 %v2106_v1, %v2088_v41  ;;  %v3411_v59 = vor.u32 %v4202_v54, %v3408_v57  ;;  %v3275_v54 = vor.u32 %v4168_v3, %v3272_v4  ;;  %v4292_v3 = vld [vmem:[%s6557_s1 + $0x6e4] sm:$0xf]  ;;  %v3768_v4 = vld [vmem:[%s6557_s1 + $0x6e8] sm:$0xf0] }
  0xd4   :  { %2441 = vmatpush.bf16.msra.mxu0 %v3299_v2  ;;  %v3400_v2 = vld [vmem:[%s6557_s1 + $0x408] sm:$0xf0]  ;;  %v3776_v57 = vld [vmem:[%s6557_s1 + $0x6f8] sm:$0xf0] }
  0xd5   :  { %2460 = vmatpush.bf16.msra.mxu1 %v3363_v10  ;;  %v2090_v42 = vpop.f32.mrf.mxu1  ;;  %v6062_v10 = vadd.f32 %v2125_v44, %v2107_v33  ;;  %2374 = vmatmul.bf16.gmra.mxu0 %v4767_v51  ;;  %v4246_v51 = vld [vmem:[%s6557_s1 + $0x574] sm:$0xf]  ;;  %v4276_v44 = vld [vmem:[%s6557_s1 + $0x664] sm:$0xf] }
  0xd6   :  { %2479 = vmatpush.bf16.msra.mxu2 %v3427_v43  ;;  %v2071_v36 = vpop.f32.mrf.mxu0  ;;  %v3283_v43 = vor.u32 %v4170_v27, %v3280_v30  ;;  %2431 = vmatmul.bf16.gmra.mxu3 %v5044_v9  ;;  %v4294_v9 = vld [vmem:[%s6557_s1 + $0x6f4] sm:$0xf] }
  0xd7   :  { %2498 = vmatpush.bf16.msra.mxu3 %v3491_v61  ;;  %v2072_v49 = vadd.f32 %v2071_v36, %v5908_v12  ;;  %v3347_v12 = vor.u32 %v4186_v0, %v3344_v50  ;;  %v3475_v61 = vor.u32 %v4218_v31, %v3472_v32  ;;  %2412 = vmatmul.bf16.gmra.mxu2 %v5042_v8  ;;  %v3648_v8 = vld [vmem:[%s6557_s1 + $0x5f8] sm:$0xf0]  ;;  %v3704_v50 = vld [vmem:[%s6557_s1 + $0x668] sm:$0xf0] }
  0xd8   :  { %2442 = vmatpush.bf16.msra.mxu0 %v3291_v48  ;;  %2393 = vmatmul.bf16.gmra.mxu1 %v4775_v56  ;;  %v3584_v56 = vld [vmem:[%s6557_s1 + $0x578] sm:$0xf0]  ;;  %v3403_v48 = vor.u32 %v4200_v47, %v3400_v2  ;;  %v2109_v27 = vpop.f32.mrf.mxu2  ;;  %v3715_v0 = vor.u32 %v4278_v19, %v3712_v20  ;;  %v4244_v47 = vld [vmem:[%s6557_s1 + $0x564] sm:$0xf]  ;;  %v3640_v2 = vld [vmem:[%s6557_s1 + $0x5e8] sm:$0xf0] }
  0xd9   :  { %2461 = vmatpush.bf16.msra.mxu1 %v3355_v53  ;;  %v2091_v41 = vadd.f32 %v2090_v42, %v2072_v49  ;;  %v3339_v53 = vor.u32 %v4184_v60, %v3336_v11  ;;  %v3587_v1 = vor.u32 %v4246_v51, %v3584_v56  ;;  %v3779_v42 = vor.u32 %v4294_v9, %v3776_v57  ;;  %v3576_v49 = vld [vmem:[%s6557_s1 + $0x568] sm:$0xf0]  ;;  %v4242_v19 = vld [vmem:[%s6557_s1 + $0x554] sm:$0xf]  ;;  %v3568_v20 = vld [vmem:[%s6557_s1 + $0x558] sm:$0xf0] }
  0xda   :  { %2480 = vmatpush.bf16.msra.mxu2 %v3419_v21  ;;  %v4262_v21 = vld [vmem:[%s6557_s1 + $0x5f4] sm:$0xf]  ;;  %v3579_v60 = vor.u32 %v4244_v47, %v3576_v49  ;;  %v4288_v47 = vld [vmem:[%s6557_s1 + $0x6c4] sm:$0xf]  ;;  %v3752_v49 = vld [vmem:[%s6557_s1 + $0x6c8] sm:$0xf0] }
  0xdb   :  { %2499 = vmatpush.bf16.msra.mxu3 %v3483_v26  ;;  %v3467_v26 = vor.u32 %v4216_v15, %v3464_v16  ;;  %v2128_v30 = vpop.f32.mrf.mxu3  ;;  %v2110_v31 = vadd.f32 %v2109_v27, %v2091_v41  ;;  %v3651_v36 = vor.u32 %v4262_v21, %v3648_v8  ;;  %v3771_v15 = vor.u32 %v4292_v3, %v3768_v4  ;;  %v4274_v41 = vld [vmem:[%s6557_s1 + $0x654] sm:$0xf]  ;;  %v3696_v16 = vld [vmem:[%s6557_s1 + $0x658] sm:$0xf0] }
  0xdc   :  { %2443 = vmatpush.bf16.msra.mxu0 %v3283_v43  ;;  %v4258_v51 = vld [vmem:[%s6557_s1 + $0x5d4] sm:$0xf]  ;;  %v3760_v8 = vld [vmem:[%s6557_s1 + $0x6d8] sm:$0xf0]  ;;  %v3699_v27 = vor.u32 %v4274_v41, %v3696_v16  ;;  %v3755_v3 = vor.u32 %v4288_v47, %v3752_v49 }
  0xdd   :  { %2462 = vmatpush.bf16.msra.mxu1 %v3347_v12  ;;  %v2092_v33 = vpop.f32.mrf.mxu1  ;;  %v6129_v12 = vadd.f32 %v2128_v30, %v2110_v31  ;;  %v3571_v30 = vor.u32 %v4242_v19, %v3568_v20  ;;  %v4254_v4 = vld [vmem:[%s6557_s1 + $0x5b4] sm:$0xf] }
  0xde   :  { %2481 = vmatpush.bf16.msra.mxu2 %v3411_v59  ;;  %v2073_v32 = vpop.f32.mrf.mxu0  ;;  %v4260_v59 = vld [vmem:[%s6557_s1 + $0x5e4] sm:$0xf]  ;;  %v4250_v47 = vld [vmem:[%s6557_s1 + $0x594] sm:$0xf] }
  0xdf   :  { %2500 = vmatpush.bf16.msra.mxu3 %v3475_v61  ;;  %v2074_v43 = vadd.f32 %v2073_v32, %v5943_v52  ;;  %v3707_v52 = vor.u32 %v4276_v44, %v3704_v50  ;;  %v3643_v11 = vor.u32 %v4260_v59, %v3640_v2  ;;  %v4240_v32 = vld [vmem:[%s6557_s1 + $0x544] sm:$0xf]  ;;  %v4270_v59 = vld [vmem:[%s6557_s1 + $0x634] sm:$0xf] }
  0xe0   :  { %2444 = vmatpush.bf16.msra.mxu0 %v3275_v54  ;;  %v2111_v56 = vpop.f32.mrf.mxu2  ;;  %v4290_v54 = vld [vmem:[%s6557_s1 + $0x6d4] sm:$0xf] }
  0xe1   :  { %2463 = vmatpush.bf16.msra.mxu1 %v3339_v53  ;;  %v2093_v61 = vadd.f32 %v2092_v33, %v2074_v43  ;;  %v3763_v31 = vor.u32 %v4290_v54, %v3760_v8  ;;  %v4256_v33 = vld [vmem:[%s6557_s1 + $0x5c4] sm:$0xf]  ;;  %v3680_v43 = vld [vmem:[%s6557_s1 + $0x638] sm:$0xf0] }
  0xe2   :  { %2482 = vmatpush.bf16.msra.mxu2 %v3403_v48  ;;  %v3632_v48 = vld [vmem:[%s6557_s1 + $0x5d8] sm:$0xf0] }
  0xe3   :  { %2501 = vmatpush.bf16.msra.mxu3 %v3467_v26  ;;  %v2130_v21 = vpop.f32.mrf.mxu3  ;;  %v2112_v9 = vadd.f32 %v2111_v56, %v2093_v61  ;;  %v3635_v50 = vor.u32 %v4258_v51, %v3632_v48  ;;  %v3683_v51 = vor.u32 %v4270_v59, %v3680_v43  ;;  %v3672_v48 = vld [vmem:[%s6557_s1 + $0x628] sm:$0xf0]  ;;  %v4282_v59 = vld [vmem:[%s6557_s1 + $0x694] sm:$0xf]  ;;  %v3728_v43 = vld [vmem:[%s6557_s1 + $0x698] sm:$0xf0] }
  0xe4   :  { %2513 = vmatpush.bf16.msrb.mxu0 %v3587_v1  ;;  %v3688_v1 = vld [vmem:[%s6557_s1 + $0x648] sm:$0xf0] }
  0xe5   :  { %2532 = vmatpush.bf16.msrb.mxu1 %v3651_v36  ;;  %v2161_v53 = vpop.f32.mrf.mxu1  ;;  %v6162_v44 = vadd.f32 %v2130_v21, %v2112_v9  ;;  %2445 = vmatmul.bf16.vlgmr.msra.gmra.mxu0 %v4923_v5  ;;  %v4268_v21 = vld [vmem:[%s6557_s1 + $0x624] sm:$0xf] }
  0xe6   :  { %2551 = vmatpush.bf16.msrb.mxu2 %v3715_v0  ;;  %v2142_v57 = vpop.f32.mrf.mxu0  ;;  %v4272_v0 = vld [vmem:[%s6557_s1 + $0x644] sm:$0xf]  ;;  %2502 = vmatmul.bf16.vlgmr.msra.gmra.mxu3 %v5182_v24  ;;  %v3552_v24 = vld [vmem:[%s6557_s1 + $0x538] sm:$0xf0] }
  0xe7   :  { %2570 = vmatpush.bf16.msrb.mxu3 %v3779_v42  ;;  %v2143_v26 = vadd.f32 %v2142_v57, %v6005_v7  ;;  %v3560_v7 = vld [vmem:[%s6557_s1 + $0x548] sm:$0xf0]  ;;  %2483 = vmatmul.bf16.vlgmr.msra.gmra.mxu2 %v5180_v23  ;;  %v3691_v5 = vor.u32 %v4272_v0, %v3688_v1  ;;  %v4238_v23 = vld [vmem:[%s6557_s1 + $0x534] sm:$0xf]  ;;  %v3675_v1 = vor.u32 %v4268_v21, %v3672_v48 }
  0xe8   :  { %2514 = vmatpush.bf16.msrb.mxu0 %v3579_v60  ;;  %2464 = vmatmul.bf16.vlgmr.msra.gmra.mxu1 %v4925_v6  ;;  %v3624_v42 = vld [vmem:[%s6557_s1 + $0x5c8] sm:$0xf0]  ;;  %v3563_v6 = vor.u32 %v4240_v32, %v3560_v7  ;;  %v2180_v61 = vpop.f32.mrf.mxu2  ;;  %v3616_v60 = vld [vmem:[%s6557_s1 + $0x5b8] sm:$0xf0]  ;;  %v3555_v56 = vor.u32 %v4238_v23, %v3552_v24  ;;  %v4264_v24 = vld [vmem:[%s6557_s1 + $0x604] sm:$0xf] }
  0xe9   :  { %2533 = vmatpush.bf16.msrb.mxu1 %v3643_v11  ;;  %v2162_v36 = vadd.f32 %v2161_v53, %v2143_v26  ;;  %v3627_v2 = vor.u32 %v4256_v33, %v3624_v42  ;;  %v4286_v11 = vld [vmem:[%s6557_s1 + $0x6b4] sm:$0xf]  ;;  %v3619_v8 = vor.u32 %v4254_v4, %v3616_v60  ;;  %v3544_v57 = vld [vmem:[%s6557_s1 + $0x528] sm:$0xf0]  ;;  %v4252_v53 = vld [vmem:[%s6557_s1 + $0x5a4] sm:$0xf] }
  0xea   :  { %2552 = vmatpush.bf16.msrb.mxu2 %v3707_v52  ;;  %v3736_v0 = vld [vmem:[%s6557_s1 + $0x6a8] sm:$0xf0]  ;;  %v3664_v32 = vld [vmem:[%s6557_s1 + $0x618] sm:$0xf0]  ;;  %v4342_v48 = vld [vmem:[%s6557_s1 + $0x874] sm:$0xf] }
  0xeb   :  { %2571 = vmatpush.bf16.msrb.mxu3 %v3771_v15  ;;  %v2199_v52 = vpop.f32.mrf.mxu3  ;;  %v3744_v15 = vld [vmem:[%s6557_s1 + $0x6b8] sm:$0xf0]  ;;  %v2181_v41 = vadd.f32 %v2180_v61, %v2162_v36  ;;  %v4234_v36 = vld [vmem:[%s6557_s1 + $0x514] sm:$0xf]  ;;  %v3656_v60 = vld [vmem:[%s6557_s1 + $0x608] sm:$0xf0] }
  0xec   :  { %2515 = vmatpush.bf16.msrb.mxu0 %v3571_v30  ;;  %v3747_v9 = vor.u32 %v4286_v11, %v3744_v15  ;;  %v4284_v30 = vld [vmem:[%s6557_s1 + $0x6a4] sm:$0xf]  ;;  %v3536_v42 = vld [vmem:[%s6557_s1 + $0x518] sm:$0xf0]  ;;  %v3528_v15 = vld [vmem:[%s6557_s1 + $0x508] sm:$0xf0] }
  0xed   :  { %2534 = vmatpush.bf16.msrb.mxu1 %v3635_v50  ;;  %v2163_v19 = vpop.f32.mrf.mxu1  ;;  %v6217_v54 = vadd.f32 %v2199_v52, %v2181_v41  ;;  %v3739_v33 = vor.u32 %v4284_v30, %v3736_v0  ;;  %v3539_v52 = vor.u32 %v4234_v36, %v3536_v42  ;;  %v4232_v11 = vld [vmem:[%s6557_s1 + $0x504] sm:$0xf]  ;;  %v3720_v21 = vld [vmem:[%s6557_s1 + $0x688] sm:$0xf0] }
  0xee   :  { %2553 = vmatpush.bf16.msrb.mxu2 %v3699_v27  ;;  %v2144_v16 = vpop.f32.mrf.mxu0  ;;  %v3608_v27 = vld [vmem:[%s6557_s1 + $0x5a8] sm:$0xf0] }
  0xef   :  { %2572 = vmatpush.bf16.msrb.mxu3 %v3763_v31  ;;  %v2145_v20 = vadd.f32 %v2144_v16, %v6062_v10  ;;  %v4236_v10 = vld [vmem:[%s6557_s1 + $0x524] sm:$0xf]  ;;  %v4266_v31 = vld [vmem:[%s6557_s1 + $0x614] sm:$0xf]  ;;  %v3611_v7 = vor.u32 %v4252_v53, %v3608_v27  ;;  %v3731_v16 = vor.u32 %v4282_v59, %v3728_v43  ;;  %v4032_v53 = vld [vmem:[%s6557_s1 + $0x8f8] sm:$0xf0] }
  0xf0   :  { %2516 = vmatpush.bf16.msrb.mxu0 %v3563_v6  ;;  %v3547_v50 = vor.u32 %v4236_v10, %v3544_v57  ;;  %v2182_v49 = vpop.f32.mrf.mxu2  ;;  %v3600_v6 = vld [vmem:[%s6557_s1 + $0x598] sm:$0xf0]  ;;  %v3667_v61 = vor.u32 %v4266_v31, %v3664_v32  ;;  %v3659_v10 = vor.u32 %v4264_v24, %v3656_v60  ;;  %v3531_v57 = vor.u32 %v4232_v11, %v3528_v15  ;;  %v4340_v31 = vld [vmem:[%s6557_s1 + $0x864] sm:$0xf]  ;;  %v3960_v32 = vld [vmem:[%s6557_s1 + $0x868] sm:$0xf0] }
  0xf1   :  { %2535 = vmatpush.bf16.msrb.mxu1 %v3627_v2  ;;  %v2164_v26 = vadd.f32 %v2163_v19, %v2145_v20  ;;  %v4248_v19 = vld [vmem:[%s6557_s1 + $0x584] sm:$0xf]  ;;  %v3592_v20 = vld [vmem:[%s6557_s1 + $0x588] sm:$0xf0]  ;;  %v4338_v60 = vld [vmem:[%s6557_s1 + $0x854] sm:$0xf] }
  0xf2   :  { %2554 = vmatpush.bf16.msrb.mxu2 %v3691_v5  ;;  %v3896_v43 = vld [vmem:[%s6557_s1 + $0x7e8] sm:$0xf0]  ;;  %v3952_v11 = vld [vmem:[%s6557_s1 + $0x858] sm:$0xf0]  ;;  %v4306_v15 = vld [vmem:[%s6557_s1 + $0x754] sm:$0xf] }
  0xf3   :  { %2573 = vmatpush.bf16.msrb.mxu3 %v3755_v3  ;;  %v2201_v5 = vpop.f32.mrf.mxu3  ;;  %v2183_v2 = vadd.f32 %v2182_v49, %v2164_v26  ;;  %v3595_v26 = vor.u32 %v4248_v19, %v3592_v20  ;;  %v4308_v49 = vld [vmem:[%s6557_s1 + $0x764] sm:$0xf] }
  0xf4   :  { %2517 = vmatpush.bf16.msrb.mxu0 %v3555_v56 }
  0xf5   :  { %2536 = vmatpush.bf16.msrb.mxu1 %v3619_v8  ;;  %v2166_v23 = vpop.f32.mrf.mxu1  ;;  %v6274_v41 = vadd.f32 %v2201_v5, %v2183_v2  ;;  %2450 = vmatmul.bf16.gmra.mxu0 %v5055_v13  ;;  %v3968_v8 = vld [vmem:[%s6557_s1 + $0x878] sm:$0xf0]  ;;  %v4310_v13 = vld [vmem:[%s6557_s1 + $0x774] sm:$0xf]  ;;  %v3832_v5 = vld [vmem:[%s6557_s1 + $0x768] sm:$0xf0] }
  0xf6   :  { %2555 = vmatpush.bf16.msrb.mxu2 %v3683_v51  ;;  %v2147_v3 = vpop.f32.mrf.mxu0  ;;  %v4280_v51 = vld [vmem:[%s6557_s1 + $0x684] sm:$0xf]  ;;  %2507 = vmatmul.bf16.gmra.mxu3 %v5314_v40  ;;  %v4358_v40 = vld [vmem:[%s6557_s1 + $0x8f4] sm:$0xf] }
  0xf7   :  { %2574 = vmatpush.bf16.msrb.mxu3 %v3747_v9  ;;  %v2148_v4 = vadd.f32 %v2147_v3, %v6129_v12  ;;  %v3603_v12 = vor.u32 %v4250_v47, %v3600_v6  ;;  %2488 = vmatmul.bf16.gmra.mxu2 %v5312_v39  ;;  %v4326_v9 = vld [vmem:[%s6557_s1 + $0x7f4] sm:$0xf]  ;;  %v3904_v39 = vld [vmem:[%s6557_s1 + $0x7f8] sm:$0xf0]  ;;  %v3723_v27 = vor.u32 %v4280_v51, %v3720_v21  ;;  %v4324_v6 = vld [vmem:[%s6557_s1 + $0x7e4] sm:$0xf] }
  0xf8   :  { %2518 = vmatpush.bf16.msrb.mxu0 %v3547_v50  ;;  %2469 = vmatmul.bf16.gmra.mxu1 %v5057_v14  ;;  %v3840_v14 = vld [vmem:[%s6557_s1 + $0x778] sm:$0xf0]  ;;  %v2185_v30 = vpop.f32.mrf.mxu2  ;;  %v3907_v42 = vor.u32 %v4326_v9, %v3904_v39  ;;  %v4035_v47 = vor.u32 %v4358_v40, %v4032_v53  ;;  %v4356_v2 = vld [vmem:[%s6557_s1 + $0x8e4] sm:$0xf]  ;;  %v4024_v3 = vld [vmem:[%s6557_s1 + $0x8e8] sm:$0xf0]  ;;  %v3955_v9 = vor.u32 %v4338_v60, %v3952_v11 }
  0xf9   :  { %2537 = vmatpush.bf16.msrb.mxu1 %v3611_v7  ;;  %v2167_v56 = vadd.f32 %v2166_v23, %v2148_v4  ;;  %v3843_v50 = vor.u32 %v4310_v13, %v3840_v14  ;;  %v3835_v4 = vor.u32 %v4308_v49, %v3832_v5  ;;  %v3888_v51 = vld [vmem:[%s6557_s1 + $0x7d8] sm:$0xf0]  ;;  %v3944_v39 = vld [vmem:[%s6557_s1 + $0x848] sm:$0xf0] }
  0xfa   :  { %2556 = vmatpush.bf16.msrb.mxu2 %v3675_v1  ;;  %v3971_v1 = vor.u32 %v4342_v48, %v3968_v8  ;;  %v4016_v21 = vld [vmem:[%s6557_s1 + $0x8d8] sm:$0xf0] }
  0xfb   :  { %2575 = vmatpush.bf16.msrb.mxu3 %v3739_v33  ;;  %v2204_v0 = vpop.f32.mrf.mxu3  ;;  %v2186_v7 = vadd.f32 %v2185_v30, %v2167_v56  ;;  %v4354_v56 = vld [vmem:[%s6557_s1 + $0x8d4] sm:$0xf]  ;;  %v4320_v30 = vld [vmem:[%s6557_s1 + $0x7c4] sm:$0xf]  ;;  %v3872_v5 = vld [vmem:[%s6557_s1 + $0x7b8] sm:$0xf0] }
  0xfc   :  { %2519 = vmatpush.bf16.msrb.mxu0 %v3539_v52  ;;  %v4027_v52 = vor.u32 %v4356_v2, %v4024_v3 }
  0xfd   :  { %2538 = vmatpush.bf16.msrb.mxu1 %v3603_v12  ;;  %v2168_v36 = vpop.f32.mrf.mxu1  ;;  %v6341_v23 = vadd.f32 %v2204_v0, %v2186_v7  ;;  %v3824_v12 = vld [vmem:[%s6557_s1 + $0x758] sm:$0xf0] }
  0xfe   :  { %2557 = vmatpush.bf16.msrb.mxu2 %v3667_v61  ;;  %v2149_v33 = vpop.f32.mrf.mxu0  ;;  %v3899_v61 = vor.u32 %v4324_v6, %v3896_v43  ;;  %v3936_v7 = vld [vmem:[%s6557_s1 + $0x838] sm:$0xf0]  ;;  %v4350_v6 = vld [vmem:[%s6557_s1 + $0x8b4] sm:$0xf] }
  0xff   :  { %2576 = vmatpush.bf16.msrb.mxu3 %v3731_v16  ;;  %v2150_v59 = vadd.f32 %v2149_v33, %v6162_v44  ;;  %v3963_v44 = vor.u32 %v4340_v31, %v3960_v32  ;;  %v4322_v16 = vld [vmem:[%s6557_s1 + $0x7d4] sm:$0xf]  ;;  %v4008_v31 = vld [vmem:[%s6557_s1 + $0x8c8] sm:$0xf0] }
 0x100   :  { %2520 = vmatpush.bf16.msrb.mxu0 %v3531_v57  ;;  %v2187_v19 = vpop.f32.mrf.mxu2  ;;  %v4336_v57 = vld [vmem:[%s6557_s1 + $0x844] sm:$0xf]  ;;  %v3891_v53 = vor.u32 %v4322_v16, %v3888_v51  ;;  %v4334_v32 = vld [vmem:[%s6557_s1 + $0x834] sm:$0xf] }
 0x101   :  { %2539 = vmatpush.bf16.msrb.mxu1 %v3595_v26  ;;  %v2169_v24 = vadd.f32 %v2168_v36, %v2150_v59  ;;  %v4019_v26 = vor.u32 %v4354_v56, %v4016_v21  ;;  %v4000_v59 = vld [vmem:[%s6557_s1 + $0x8b8] sm:$0xf0]  ;;  %v4316_v16 = vld [vmem:[%s6557_s1 + $0x7a4] sm:$0xf]  ;;  %v3992_v56 = vld [vmem:[%s6557_s1 + $0x8a8] sm:$0xf0] }
 0x102   :  { %2558 = vmatpush.bf16.msrb.mxu2 %v3659_v10  ;;  %v3827_v10 = vor.u32 %v4306_v15, %v3824_v12  ;;  %v4003_v15 = vor.u32 %v4350_v6, %v4000_v59  ;;  %v3800_v12 = vld [vmem:[%s6557_s1 + $0x728] sm:$0xf0]  ;;  %v4348_v51 = vld [vmem:[%s6557_s1 + $0x8a4] sm:$0xf] }
 0x103   :  { %2577 = vmatpush.bf16.msrb.mxu3 %v3723_v27  ;;  %v2206_v20 = vpop.f32.mrf.mxu3  ;;  %v2188_v48 = vadd.f32 %v2187_v19, %v2169_v24  ;;  %v4304_v27 = vld [vmem:[%s6557_s1 + $0x744] sm:$0xf]  ;;  %v3976_v6 = vld [vmem:[%s6557_s1 + $0x888] sm:$0xf0] }
 0x104   :  { %2589 = vmatpush.bf16.msra.mxu0 %v3843_v50  ;;  %v4352_v50 = vld [vmem:[%s6557_s1 + $0x8c4] sm:$0xf] }
 0x105   :  { %2608 = vmatpush.bf16.msra.mxu1 %v3907_v42  ;;  %v2237_v13 = vpop.f32.mrf.mxu1  ;;  %v6374_v40 = vadd.f32 %v2206_v20, %v2188_v48  ;;  %2521 = vmatmul.bf16.vlgmr.msrb.gmra.mxu0 %v5193_v28  ;;  %v3947_v28 = vor.u32 %v4336_v57, %v3944_v39  ;;  %v4011_v36 = vor.u32 %v4352_v50, %v4008_v31  ;;  %v4318_v42 = vld [vmem:[%s6557_s1 + $0x7b4] sm:$0xf]  ;;  %v3864_v20 = vld [vmem:[%s6557_s1 + $0x7a8] sm:$0xf0]  ;;  %v3792_v57 = vld [vmem:[%s6557_s1 + $0x718] sm:$0xf0] }
 0x106   :  { %2627 = vmatpush.bf16.msra.mxu2 %v3971_v1  ;;  %v2218_v8 = vpop.f32.mrf.mxu0  ;;  %v3880_v1 = vld [vmem:[%s6557_s1 + $0x7c8] sm:$0xf0]  ;;  %2578 = vmatmul.bf16.vlgmr.msrb.gmra.mxu3 %v5458_v18  ;;  %v3808_v18 = vld [vmem:[%s6557_s1 + $0x738] sm:$0xf0]  ;;  %v3875_v11 = vor.u32 %v4318_v42, %v3872_v5  ;;  %v4314_v39 = vld [vmem:[%s6557_s1 + $0x794] sm:$0xf] }
 0x107   :  { %2646 = vmatpush.bf16.msra.mxu3 %v4035_v47  ;;  %v2219_v14 = vadd.f32 %v2218_v8, %v6217_v54  ;;  %v3816_v54 = vld [vmem:[%s6557_s1 + $0x748] sm:$0xf0]  ;;  %2559 = vmatmul.bf16.vlgmr.msrb.gmra.mxu2 %v5456_v17  ;;  %v3883_v33 = vor.u32 %v4320_v30, %v3880_v1  ;;  %v4302_v17 = vld [vmem:[%s6557_s1 + $0x734] sm:$0xf]  ;;  %v3984_v30 = vld [vmem:[%s6557_s1 + $0x898] sm:$0xf0] }
 0x108   :  { %2590 = vmatpush.bf16.msra.mxu0 %v3835_v4  ;;  %2540 = vmatmul.bf16.vlgmr.msrb.gmra.mxu1 %v5195_v29  ;;  %v3819_v29 = vor.u32 %v4304_v27, %v3816_v54  ;;  %v2256_v47 = vpop.f32.mrf.mxu2  ;;  %v3811_v4 = vor.u32 %v4302_v17, %v3808_v18  ;;  %v4330_v8 = vld [vmem:[%s6557_s1 + $0x814] sm:$0xf]  ;;  %v3856_v27 = vld [vmem:[%s6557_s1 + $0x798] sm:$0xf0]  ;;  %v3784_v18 = vld [vmem:[%s6557_s1 + $0x708] sm:$0xf0] }
 0x109   :  { %2609 = vmatpush.bf16.msra.mxu1 %v3899_v61  ;;  %v2238_v0 = vadd.f32 %v2237_v13, %v2219_v14  ;;  %v4332_v61 = vld [vmem:[%s6557_s1 + $0x824] sm:$0xf]  ;;  %v3920_v13 = vld [vmem:[%s6557_s1 + $0x818] sm:$0xf0]  ;;  %v3867_v14 = vor.u32 %v4316_v16, %v3864_v20  ;;  %v4346_v54 = vld [vmem:[%s6557_s1 + $0x894] sm:$0xf] }
 0x10a   :  { %2628 = vmatpush.bf16.msra.mxu2 %v3963_v44  ;;  %v3939_v44 = vor.u32 %v4334_v32, %v3936_v7  ;;  %v4328_v32 = vld [vmem:[%s6557_s1 + $0x804] sm:$0xf]  ;;  %v3912_v7 = vld [vmem:[%s6557_s1 + $0x808] sm:$0xf0]  ;;  %v3987_v17 = vor.u32 %v4346_v54, %v3984_v30 }
 0x10b   :  { %2647 = vmatpush.bf16.msra.mxu3 %v4027_v52  ;;  %v2275_v49 = vpop.f32.mrf.mxu3  ;;  %v2257_v43 = vadd.f32 %v2256_v47, %v2238_v0  ;;  %v3928_v52 = vld [vmem:[%s6557_s1 + $0x828] sm:$0xf0]  ;;  %v4312_v42 = vld [vmem:[%s6557_s1 + $0x784] sm:$0xf] }
 0x10c   :  { %2591 = vmatpush.bf16.msra.mxu0 %v3827_v10  ;;  %v3931_v21 = vor.u32 %v4332_v61, %v3928_v52  ;;  %v4298_v10 = vld [vmem:[%s6557_s1 + $0x714] sm:$0xf]  ;;  %v4344_v5 = vld [vmem:[%s6557_s1 + $0x884] sm:$0xf] }
 0x10d   :  { %2610 = vmatpush.bf16.msra.mxu1 %v3891_v53  ;;  %v2239_v3 = vpop.f32.mrf.mxu1  ;;  %v6429_v60 = vadd.f32 %v2275_v49, %v2257_v43  ;;  %v3848_v49 = vld [vmem:[%s6557_s1 + $0x788] sm:$0xf0]  ;;  %v3979_v43 = vor.u32 %v4344_v5, %v3976_v6 }
 0x10e   :  { %2629 = vmatpush.bf16.msra.mxu2 %v3955_v9  ;;  %v2220_v2 = vpop.f32.mrf.mxu0  ;;  %v3995_v9 = vor.u32 %v4348_v51, %v3992_v56  ;;  %v3851_v59 = vor.u32 %v4312_v42, %v3848_v49 }
 0x10f   :  { %2648 = vmatpush.bf16.msra.mxu3 %v4019_v26  ;;  %v2221_v24 = vadd.f32 %v2220_v2, %v6274_v41  ;;  %v4300_v41 = vld [vmem:[%s6557_s1 + $0x724] sm:$0xf] }
 0x110   :  { %2592 = vmatpush.bf16.msra.mxu0 %v3819_v29  ;;  %v3803_v48 = vor.u32 %v4300_v41, %v3800_v12  ;;  %v2258_v53 = vpop.f32.mrf.mxu2  ;;  %v3795_v29 = vor.u32 %v4298_v10, %v3792_v57 }
 0x111   :  { %2611 = vmatpush.bf16.msra.mxu1 %v3883_v33  ;;  %v2240_v19 = vadd.f32 %v2239_v3, %v2221_v24 }
 0x112   :  { %2630 = vmatpush.bf16.msra.mxu2 %v3947_v28  ;;  %v3923_v28 = vor.u32 %v4330_v8, %v3920_v13 }
 0x113   :  { %2649 = vmatpush.bf16.msra.mxu3 %v4011_v36  ;;  %v2277_v26 = vpop.f32.mrf.mxu3  ;;  %v2259_v0 = vadd.f32 %v2258_v53, %v2240_v19  ;;  %v3859_v36 = vor.u32 %v4314_v39, %v3856_v27 }
 0x114   :  { %2593 = vmatpush.bf16.msra.mxu0 %v3811_v4 }
 0x115   :  { %2612 = vmatpush.bf16.msra.mxu1 %v3875_v11  ;;  %v2242_v50 = vpop.f32.mrf.mxu1  ;;  %v2278_v33 = vadd.f32 %v2277_v26, %v2259_v0  ;;  %2526 = vmatmul.bf16.gmra.mxu0 %v5325_v45  ;;  %v3915_v45 = vor.u32 %v4328_v32, %v3912_v7 }
 0x116   :  { %2631 = vmatpush.bf16.msra.mxu2 %v3939_v44  ;;  %v2223_v1 = vpop.f32.mrf.mxu0  ;;  %2583 = vmatmul.bf16.gmra.mxu3 %v5590_v58 }
 0x117   :  { %2650 = vmatpush.bf16.msra.mxu3 %v4003_v15  ;;  %v2224_v31 = vadd.f32 %v2223_v1, %v6341_v23  ;;  %v4296_v23 = vld [vmem:[%s6557_s1 + $0x704] sm:$0xf]  ;;  %2564 = vmatmul.bf16.gmra.mxu2 %v5588_v55 }
 0x118   :  { %2594 = vmatpush.bf16.msra.mxu0 %v3803_v48  ;;  %2545 = vmatmul.bf16.gmra.mxu1 %v5327_v46  ;;  %v3787_v46 = vor.u32 %v4296_v23, %v3784_v18 }
 0x119   :  { %2613 = vmatpush.bf16.msra.mxu1 %v3867_v14  ;;  %v2243_v47 = vadd.f32 %v2242_v50, %v2224_v31 }
 0x11a   :  { %2632 = vmatpush.bf16.msra.mxu2 %v3931_v21  ;;  %v2261_v2 = vpop.f32.mrf.mxu2 }
 0x11b   :  { %2651 = vmatpush.bf16.msra.mxu3 %v3995_v9  ;;  %v2280_v3 = vpop.f32.mrf.mxu3  ;;  %v2262_v24 = vadd.f32 %v2261_v2, %v2243_v47 }
 0x11c   :  { %2595 = vmatpush.bf16.msra.mxu0 %v3795_v29 }
 0x11d   :  { %2614 = vmatpush.bf16.msra.mxu1 %v3859_v36  ;;  %v2244_v4 = vpop.f32.mrf.mxu1  ;;  %v2281_v55 = vadd.f32 %v2280_v3, %v2262_v24 }
 0x11e   :  { %2633 = vmatpush.bf16.msra.mxu2 %v3923_v28  ;;  %v2225_v44 = vpop.f32.mrf.mxu0 }
 0x11f   :  { %2652 = vmatpush.bf16.msra.mxu3 %v3987_v17  ;;  %v2226_v61 = vadd.f32 %v2225_v44, %v6374_v40 }
 0x120   :  { %2596 = vmatpush.bf16.msra.mxu0 %v3787_v46 }
 0x121   :  { %2615 = vmatpush.bf16.msra.mxu1 %v3851_v59  ;;  %v2245_v58 = vadd.f32 %v2244_v4, %v2226_v61 }
 0x122   :  { %2634 = vmatpush.bf16.msra.mxu2 %v3915_v45  ;;  %v2263_v52 = vpop.f32.mrf.mxu2 }
 0x123   :  { %2653 = vmatpush.bf16.msra.mxu3 %v3979_v43  ;;  %v2282_v11 = vpop.f32.mrf.mxu3  ;;  %v2264_v15 = vadd.f32 %v2263_v52, %v2245_v58 }
 0x125   :  { %v2313_v12 = vpop.f32.mrf.mxu1  ;;  %v2283_v19 = vadd.f32 %v2282_v11, %v2264_v15  ;;  %2597 = vmatmul.bf16.vlgmr.msra.gmra.mxu0 %v5469_v22 }
 0x126   :  { %v2294_v41 = vpop.f32.mrf.mxu0  ;;  %2654 = vmatmul.bf16.vlgmr.msra.gmra.mxu3 %v5710_v35 }
 0x127   :  { %v2295_v16 = vadd.f32 %v2294_v41, %v6429_v60  ;;  %2635 = vmatmul.bf16.vlgmr.msra.gmra.mxu2 %v5708_v34 }
 0x128   :  { %2616 = vmatmul.bf16.vlgmr.msra.gmra.mxu1 %v5471_v25 }
 0x129   :  { %v6504_v20 = vadd.f32 %v2313_v12, %v2295_v16 }
 0x12a   :  { %v2332_v40 = vpop.f32.mrf.mxu2 }
 0x12b   :  { %v2351_v51 = vpop.f32.mrf.mxu3 }
 0x12c   :  { %v2352_v56 = vadd.f32 %v2351_v51, %v2332_v40 }
 0x12d   :  { %v2315_v48 = vpop.f32.mrf.mxu1 }
 0x12e   :  { %v2296_v21 = vpop.f32.mrf.mxu0 }
 0x12f   :  { %v2297_v8 = vadd.f32 %v2296_v21, %v2278_v33 }
 0x131   :  { %v6510_v13 = vadd.f32 %v2315_v48, %v2297_v8 }
 0x132   :  { %v2334_v60 = vpop.f32.mrf.mxu2 }
 0x133   :  { %v2353_v14 = vpop.f32.mrf.mxu3 }
 0x134   :  { %v2354_v9 = vadd.f32 %v2353_v14, %v2334_v60 }
 0x135   :  { %v2318_v57 = vpop.f32.mrf.mxu1  ;;  %2602 = vmatmul.bf16.gmra.mxu0 %v5601_v62 }
 0x136   :  { %v2299_v10 = vpop.f32.mrf.mxu0  ;;  %2659 = vmatmul.bf16.gmra.mxu3 %v5828_v38 }
 0x137   :  { %v2300_v22 = vadd.f32 %v2299_v10, %v2281_v55  ;;  %2640 = vmatmul.bf16.gmra.mxu2 %v5826_v37 }
 0x138   :  { %2621 = vmatmul.bf16.gmra.mxu1 %v5603_v63 }
 0x139   :  { %v6512_v39 = vadd.f32 %v2318_v57, %v2300_v22 }
 0x13a   :  { %v2337_v25 = vpop.f32.mrf.mxu2 }
 0x13b   :  { %v2356_v34 = vpop.f32.mrf.mxu3 }
 0x13c   :  { %v2357_v35 = vadd.f32 %v2356_v34, %v2337_v25 }
 0x13d   :  { %v2320_v26 = vpop.f32.mrf.mxu1 }
 0x13e   :  { %v2301_v53 = vpop.f32.mrf.mxu0 }
 0x13f   :  { %v2302_v27 = vadd.f32 %v2301_v53, %v2283_v19 }
 0x141   :  { %v6518_v54 = vadd.f32 %v2320_v26, %v2302_v27 }
 0x142   :  { %v2339_v30 = vpop.f32.mrf.mxu2 }
 0x143   :  { %v2358_v0 = vpop.f32.mrf.mxu3 }
 0x144   :  { %v2359_v1 = vadd.f32 %v2358_v0, %v2339_v30 }
 0x145   :  { %v2389_v31 = vpop.f32.mrf.mxu1 }
 0x146   :  { %v2370_v50 = vpop.f32.mrf.mxu0 }
 0x147   :  { %v2371_v62 = vadd.f32 %v2370_v50, %v2352_v56 }
 0x149   :  { %v2390_v28 = vadd.f32 %v2389_v31, %v2371_v62 }
 0x14a   :  { %v2408_v63 = vpop.f32.mrf.mxu2 }
 0x14b   :  { %v2427_v29 = vpop.f32.mrf.mxu3  ;;  %v2409_v37 = vadd.f32 %v2408_v63, %v2390_v28 }
 0x14d   :  { %v2391_v38 = vpop.f32.mrf.mxu1  ;;  %v2428_v33 = vadd.f32 %v2427_v29, %v2409_v37 }
 0x14e   :  { %v2372_v32 = vpop.f32.mrf.mxu0 }
 0x14f   :  { %v2373_v7 = vadd.f32 %v2372_v32, %v2354_v9 }
 0x151   :  { %v2392_v36 = vadd.f32 %v2391_v38, %v2373_v7 }
 0x152   :  { %v2410_v17 = vpop.f32.mrf.mxu2 }
 0x153   :  { %v2429_v23 = vpop.f32.mrf.mxu3  ;;  %v2411_v18 = vadd.f32 %v2410_v17, %v2392_v36 }
 0x155   :  { %v2394_v47 = vpop.f32.mrf.mxu1  ;;  %v2430_v5 = vadd.f32 %v2429_v23, %v2411_v18 }
 0x156   :  { %v2375_v42 = vpop.f32.mrf.mxu0 }
 0x157   :  { %v2376_v49 = vadd.f32 %v2375_v42, %v2357_v35 }
 0x159   :  { %v2395_v6 = vadd.f32 %v2394_v47, %v2376_v49 }
 0x15a   :  { %v2413_v45 = vpop.f32.mrf.mxu2 }
 0x15b   :  { %v2432_v46 = vpop.f32.mrf.mxu3  ;;  %v2414_v59 = vadd.f32 %v2413_v45, %v2395_v6 }
 0x15d   :  { %v2396_v2 = vpop.f32.mrf.mxu1  ;;  %v2433_v24 = vadd.f32 %v2432_v46, %v2414_v59 }
 0x15e   :  { %v2377_v43 = vpop.f32.mrf.mxu0 }
 0x15f   :  { %v2378_v3 = vadd.f32 %v2377_v43, %v2359_v1 }
 0x161   :  { %v2397_v44 = vadd.f32 %v2396_v2, %v2378_v3 }
 0x162   :  { %v2415_v4 = vpop.f32.mrf.mxu2 }
 0x163   :  { %v2434_v61 = vpop.f32.mrf.mxu3  ;;  %v2416_v55 = vadd.f32 %v2415_v4, %v2397_v44 }
 0x165   :  { %v2465_v52 = vpop.f32.mrf.mxu1  ;;  %v2435_v11 = vadd.f32 %v2434_v61, %v2416_v55 }
 0x166   :  { %v2446_v58 = vpop.f32.mrf.mxu0 }
 0x167   :  { %v2447_v53 = vadd.f32 %v2446_v58, %v2428_v33 }
 0x169   :  { %v2466_v26 = vadd.f32 %v2465_v52, %v2447_v53 }
 0x16a   :  { %v2484_v15 = vpop.f32.mrf.mxu2 }
 0x16b   :  { %v2503_v41 = vpop.f32.mrf.mxu3  ;;  %v2485_v0 = vadd.f32 %v2484_v15, %v2466_v26 }
 0x16d   :  { %v2467_v16 = vpop.f32.mrf.mxu1  ;;  %v2504_v62 = vadd.f32 %v2503_v41, %v2485_v0 }
 0x16e   :  { %v2448_v12 = vpop.f32.mrf.mxu0 }
 0x16f   :  { %v2449_v31 = vadd.f32 %v2448_v12, %v2430_v5  ;;  %v2692_v5 = vld [vmem:[%s6559_s2] sm:$0x3] }
 0x170   :  { %v6525_v44 = vperm.slane %v2692_v5, 0 }
 0x171   :  { %v2468_v28 = vadd.f32 %v2467_v16, %v2449_v31 }
 0x172   :  { %v2486_v19 = vpop.f32.mrf.mxu2  ;;  %v2698_v15 = vmul.f32 %v6525_v44, %v6504_v20 }
 0x173   :  { %v2505_v40 = vpop.f32.mrf.mxu3  ;;  %v2487_v32 = vadd.f32 %v2486_v19, %v2468_v28 }
 0x175   :  { %v2470_v56 = vpop.f32.mrf.mxu1  ;;  %v2506_v23 = vadd.f32 %v2505_v40, %v2487_v32 }
 0x176   :  { %v2451_v51 = vpop.f32.mrf.mxu0 }
 0x177   :  { %v2452_v36 = vadd.f32 %v2451_v51, %v2433_v24  ;;  %v2706_v24 = vld [vmem:[%s6560_s3] sm:$0x3]  ;;  %v2695_v51 = vperm.slane %v2692_v5, 1 }
 0x178   :  { %v6532_v41 = vperm.slane %v2706_v24, 0 }
 0x179   :  { %v2471_v33 = vadd.f32 %v2470_v56, %v2452_v36 }
 0x17a   :  { %v2489_v21 = vpop.f32.mrf.mxu2 }
 0x17b   :  { %v2508_v48 = vpop.f32.mrf.mxu3  ;;  %v2490_v6 = vadd.f32 %v2489_v21, %v2471_v33 }
 0x17d   :  { %v2472_v60 = vpop.f32.mrf.mxu1  ;;  %v2509_v4 = vadd.f32 %v2508_v48, %v2490_v6  ;;  %v2709_v48 = vperm.slane %v2706_v24, 1 }
 0x17e   :  { %v2453_v8 = vpop.f32.mrf.mxu0 }
 0x17f   :  { %v2454_v43 = vadd.f32 %v2453_v8, %v2435_v11 }
 0x181   :  { %v2473_v55 = vadd.f32 %v2472_v60, %v2454_v43  ;;  %v2712_v60 = vadd.f32 %v6532_v41, %v2698_v15 }
 0x182   :  { %v2491_v14 = vpop.f32.mrf.mxu2 }
 0x183   :  { %v6520_v9 = vpop.f32.mrf.mxu3  ;;  %v2492_v16 = vadd.f32 %v2491_v14, %v2473_v55  ;;  %v2700_v14 = vmul.f32 %v6525_v44, %v6510_v13 }
 0x185   :  { %v2541_v57 = vpop.f32.mrf.mxu1 }
 0x186   :  { %v2522_v10 = vpop.f32.mrf.mxu0 }
 0x187   :  { %v2523_v63 = vadd.f32 %v2522_v10, %v2504_v62 }
 0x189   :  { %v2542_v17 = vadd.f32 %v2541_v57, %v2523_v63 }
 0x18a   :  { %v2560_v22 = vpop.f32.mrf.mxu2 }
 0x18b   :  { %v2579_v25 = vpop.f32.mrf.mxu3  ;;  %v2561_v18 = vadd.f32 %v2560_v22, %v2542_v17  ;;  %v2511_v22 = vadd.f32 %v6520_v9, %v2492_v16  ;;  %v2714_v9 = vadd.f32 %v6532_v41, %v2700_v14 }
 0x18d   :  { %v2543_v35 = vpop.f32.mrf.mxu1  ;;  %v2580_v45 = vadd.f32 %v2579_v25, %v2561_v18 }
 0x18e   :  { %v2524_v34 = vpop.f32.mrf.mxu0 }
 0x18f   :  { %v2525_v42 = vadd.f32 %v2524_v34, %v2506_v23  ;;  %v2722_v23 = vmax.f32 %v2714_v9, 0.0 }
 0x191   :  { %v2544_v2 = vadd.f32 %v2543_v35, %v2525_v42 }
 0x192   :  { %v2562_v27 = vpop.f32.mrf.mxu2 }
 0x193   :  { %v2581_v30 = vpop.f32.mrf.mxu3  ;;  %v2563_v61 = vadd.f32 %v2562_v27, %v2544_v2 }
 0x195   :  { %v2546_v50 = vpop.f32.mrf.mxu1  ;;  %v2582_v19 = vadd.f32 %v2581_v30, %v2563_v61  ;;  %v2720_v30 = vmax.f32 %v2712_v60, 0.0 }
 0x196   :  { %v2527_v1 = vpop.f32.mrf.mxu0 }
 0x197   :  { %v2528_v58 = vadd.f32 %v2527_v1, %v2509_v4 }
 0x199   :  { %v2547_v8 = vadd.f32 %v2546_v50, %v2528_v58 }
 0x19a   :  { %v2565_v29 = vpop.f32.mrf.mxu2 }
 0x19b   :  { %v2584_v37 = vpop.f32.mrf.mxu3  ;;  %v2566_v25 = vadd.f32 %v2565_v29, %v2547_v8 }
 0x19d   :  { %v2548_v7 = vpop.f32.mrf.mxu1  ;;  %v2585_v0 = vadd.f32 %v2584_v37, %v2566_v25 }
 0x19e   :  { %v2529_v38 = vpop.f32.mrf.mxu0 }
 0x19f   :  { %v2530_v34 = vadd.f32 %v2529_v38, %v2511_v22 }
 0x1a1   :  { %v2549_v62 = vadd.f32 %v2548_v7, %v2530_v34  ;;  %v2702_v7 = vmul.f32 %v6525_v44, %v6512_v39  ;;  %v2704_v39 = vmul.f32 %v6525_v44, %v6518_v54 }
 0x1a2   :  { %v2567_v47 = vpop.f32.mrf.mxu2 }
 0x1a3   :  { %v2586_v49 = vpop.f32.mrf.mxu3  ;;  %v2568_v38 = vadd.f32 %v2567_v47, %v2549_v62 }
 0x1a5   :  { %v2617_v59 = vpop.f32.mrf.mxu1  ;;  %v2587_v33 = vadd.f32 %v2586_v49, %v2568_v38 }
 0x1a6   :  { %v2598_v46 = vpop.f32.mrf.mxu0 }
 0x1a7   :  { %v2599_v3 = vadd.f32 %v2598_v46, %v2580_v45 }
 0x1a9   :  { %v2618_v52 = vadd.f32 %v2617_v59, %v2599_v3  ;;  %v2716_v59 = vadd.f32 %v6532_v41, %v2702_v7 }
 0x1aa   :  { %v2636_v12 = vpop.f32.mrf.mxu2 }
 0x1ab   :  { %v2655_v11 = vpop.f32.mrf.mxu3  ;;  %v2637_v40 = vadd.f32 %v2636_v12, %v2618_v52  ;;  %v2724_v61 = vmax.f32 %v2716_v59, 0.0  ;;  %v2718_v12 = vadd.f32 %v6532_v41, %v2704_v39 }
 0x1ad   :  { %v2619_v21 = vpop.f32.mrf.mxu1  ;;  %v2656_v10 = vadd.f32 %v2655_v11, %v2637_v40 }
 0x1ae   :  { %v2600_v56 = vpop.f32.mrf.mxu0 }
 0x1af   :  { %v2601_v57 = vadd.f32 %v2600_v56, %v2582_v19  ;;  %v2699_v20 = vmul.f32 %v2695_v51, %v2656_v10  ;;  %v2726_v19 = vmax.f32 %v2718_v12, 0.0 }
 0x1b1   :  { %v2713_v35 = vadd.f32 %v2709_v48, %v2699_v20  ;;  %v2620_v53 = vadd.f32 %v2619_v21, %v2601_v57 }
 0x1b2   :  { %v2638_v26 = vpop.f32.mrf.mxu2 }
 0x1b3   :  { %v2657_v27 = vpop.f32.mrf.mxu3  ;;  %v2721_v1 = vmax.f32 %v2713_v35, 0.0  ;;  %v2639_v50 = vadd.f32 %v2638_v26, %v2620_v53 }
 0x1b5   :  { %v2728_v28 = vpack.c.bf16 %v2721_v1, %v2720_v30  ;;  %v2658_v63 = vadd.f32 %v2657_v27, %v2639_v50  ;;  %v2622_v29 = vpop.f32.mrf.mxu1 }
 0x1b6   :  { %v2603_v31 = vpop.f32.mrf.mxu0 }
 0x1b7   :  { %v2604_v32 = vadd.f32 %v2603_v31, %v2585_v0  ;;  %2732 = vst [vmem:[%s6561_s4] sm:$0xff] %v2728_v28  ;;  %v2701_v13 = vmul.f32 %v2695_v51, %v2658_v63 }
 0x1b9   :  { %v2715_v36 = vadd.f32 %v2709_v48, %v2701_v13  ;;  %v2623_v17 = vadd.f32 %v2622_v29, %v2604_v32 }
 0x1ba   :  { %v2641_v37 = vpop.f32.mrf.mxu2 }
 0x1bb   :  { %v2660_v18 = vpop.f32.mrf.mxu3  ;;  %v2723_v42 = vmax.f32 %v2715_v36, 0.0  ;;  %v2642_v5 = vadd.f32 %v2641_v37, %v2623_v17 }
 0x1bd   :  { %v2729_v45 = vpack.c.bf16 %v2723_v42, %v2722_v23  ;;  %v2661_v46 = vadd.f32 %v2660_v18, %v2642_v5  ;;  %v2624_v2 = vpop.f32.mrf.mxu1 }
 0x1be   :  { %v2605_v6 = vpop.f32.mrf.mxu0 }
 0x1bf   :  { %v2606_v47 = vadd.f32 %v2605_v6, %v2587_v33  ;;  %2733 = vst [vmem:[%s6561_s4 + $0x8] sm:$0xff] %v2729_v45  ;;  %v2703_v43 = vmul.f32 %v2695_v51, %v2661_v46 }
 0x1c1   :  { %v2717_v3 = vadd.f32 %v2709_v48, %v2703_v43  ;;  %v2625_v24 = vadd.f32 %v2624_v2, %v2606_v47 }
 0x1c2   :  { %v2643_v4 = vpop.f32.mrf.mxu2 }
 0x1c3   :  { %v2725_v49 = vmax.f32 %v2717_v3, 0.0  ;;  %v2644_v55 = vadd.f32 %v2643_v4, %v2625_v24  ;;  %v2662_v58 = vpop.f32.mrf.mxu3 }
 0x1c5   :  { %v2730_v52 = vpack.c.bf16 %v2725_v49, %v2724_v61  ;;  %v2663_v15 = vadd.f32 %v2662_v58, %v2644_v55 }
 0x1c7   :  { %2734 = vst [vmem:[%s6561_s4 + $0x10] sm:$0xff] %v2730_v52  ;;  %v2705_v11 = vmul.f32 %v2695_v51, %v2663_v15 }
 0x1c9   :  { %v2719_v16 = vadd.f32 %v2709_v48, %v2705_v11 }
 0x1cb   :  { %v2727_v40 = vmax.f32 %v2719_v16, 0.0 }
 0x1cd   :  { %v2731_v56 = vpack.c.bf16 %v2727_v40, %v2726_v19 }
 0x1cf   :  { %2735 = vst [vmem:[%s6561_s4 + $0x18] sm:$0xff] %v2731_v56 }

</bundles_post_ra>
